<compile_context>
chip_gen: v7x
topology: tpu7x:2x2x1
jax: 0.10.0
libtpu: 0.0.40
codegen_flags: <defaults>
</compile_context>

<pallas_src>
import jax
import jax.numpy as jnp
from jax.experimental import pallas as pl
from jax.experimental.pallas import tpu as pltpu

ALPHA = 0.25      # nn.PReLU() default init value (static scalar per layer)
BN_EPS = 1e-5


def _round_up(x, m):
    return (x + m - 1) // m * m


# ---------------------------------------------------------------------------
# Generic fused Pallas kernel:
#   acc[n, m] = sum_t  W_t[n, :] . X[g_t, :, m + off_t]          (f32 accumulate)
#   Y[n, m]   = act( acc + shift[n] )  (+ residual)               (bf16 out)
# X arrives as one (G, C, tm) main tile plus a narrow (G, C, halo) right-halo tile;
# tap windows are static lane-shifted slices; one small MXU dot per tap.
# ---------------------------------------------------------------------------
def _make_kernel(taps, csz, tm, act, alpha, has_res):
    def kernel(*refs):
        if has_res:
            x_ref, h_ref, w_ref, sh_ref, r_ref, o_ref = refs
        else:
            x_ref, h_ref, w_ref, sh_ref, o_ref = refs

        n_out = o_ref.shape[0]
        # (G, C, tm + halo) bf16 working window: main tile + right halo.
        xc = jnp.concatenate([x_ref[...], h_ref[...]], axis=2)

        acc = jnp.zeros((n_out, tm), jnp.float32)
        for t, (g, off) in enumerate(taps):
            xs = xc[g, :, off:off + tm]          # (C, tm) bf16, static lane shift
            wt = w_ref[t]                        # (N, C)  bf16
            if csz == 1:
                # K == 1 tap (C_in == 1 head): outer-product update on the VPU,
                # skip a degenerate MXU pass.
                acc = acc + wt.astype(jnp.float32) * xs.astype(jnp.float32)
            else:
                acc = acc + jnp.dot(wt, xs, preferred_element_type=jnp.float32)

        y = acc + sh_ref[...]                    # folded conv-bias + BatchNorm shift

        if act == "prelu":
            y = jnp.where(y > 0.0, y, jnp.float32(alpha) * y)
        elif act == "sigmoid":
            y = 1.0 / (1.0 + jnp.exp(-y))        # exact; stays within [0, 1]

        if has_res:
            y = y + r_ref[...].astype(jnp.float32)

        o_ref[...] = y.astype(o_ref.dtype)

    return kernel


def fused_conv(x_slab, tap_ws, tap_pos, shift, valid_hw, act, alpha=ALPHA,
               residual=None):
    """Generic convolution as one fused multi-tap pallas_call.

    x_slab : (G, C, B, Hg, Wg)  activation slab (any float dtype; used as bf16)
    tap_ws : list of (N, C) weight matrices (BN scale already folded)
    tap_pos: list of (group g, dy, dx) static tap positions on the (Hg, Wg) grid
    shift  : (N,) f32 folded conv-bias + BN shift
    valid_hw: (Ho, Wo) valid output window (top-left corner of the grid)
    residual: (N, B, Ho, Wo) or None (fused add after the epilogue)
    returns : (N, B, Ho, Wo) bf16
    """
    G, C, B, Hg, Wg = x_slab.shape
    N, csz = tap_ws[0].shape
    Ho, Wo = valid_hw
    T = len(tap_ws)

    taps = tuple((int(g), int(dy) * Wg + int(dx)) for (g, dy, dx) in tap_pos)
    max_off = max(off for _, off in taps)
    M = B * Hg * Wg

    # Lane tiling: main tile tm (<= 512), right halo of round_up(max_off, 128) lanes.
    halo = max(128, _round_up(max_off, 128))
    tm = max(halo, min(512, _round_up(max(M + 1, 2) // 2, 128)))
    if tm % halo:
        tm = _round_up(tm, halo)
    m_out = _round_up(M, tm)
    n_tiles = m_out // tm
    lin = m_out + halo
    step = tm // halo

    # Flattened bf16 activation slab (no per-layer re-cast when already bf16).
    x_flat = x_slab.astype(jnp.bfloat16).reshape(G, C, M)
    x_flat = jnp.pad(x_flat, ((0, 0), (0, 0), (0, lin - M)))

    # Per-tap weights stacked on a leading axis (no K padding, no K staging).
    w_all = jnp.stack(tap_ws, axis=0).astype(jnp.bfloat16)        # (T, N, C)
    shift2 = shift.reshape(N, 1).astype(jnp.float32)

    in_specs = [
        pl.BlockSpec((G, C, tm), lambda j: (0, 0, j)),                      # main tile
        pl.BlockSpec((G, C, halo), lambda j: (0, 0, (j + 1) * step)),       # halo tile
        pl.BlockSpec((T, N, csz), lambda j: (0, 0, 0)),                     # weights
        pl.BlockSpec((N, 1), lambda j: (0, 0)),                             # shift
    ]
    inputs = [x_flat, x_flat, w_all, shift2]

    has_res = residual is not None
    if has_res:
        r = jnp.pad(residual.astype(jnp.bfloat16),
                    ((0, 0), (0, 0), (0, Hg - Ho), (0, Wg - Wo)))
        r = jnp.pad(r.reshape(N, M), ((0, 0), (0, m_out - M)))
        inputs.append(r)
        in_specs.append(pl.BlockSpec((N, tm), lambda j: (0, j)))

    kernel = _make_kernel(taps, csz, tm, act, alpha, has_res)
    y = pl.pallas_call(
        kernel,
        out_shape=jax.ShapeDtypeStruct((N, m_out), jnp.bfloat16),
        grid_spec=pltpu.PrefetchScalarGridSpec(
            num_scalar_prefetch=0,
            grid=(n_tiles,),
            in_specs=in_specs,
            out_specs=pl.BlockSpec((N, tm), lambda j: (0, j)),
        ),
        compiler_params=pltpu.CompilerParams(
            dimension_semantics=("parallel",),
            vmem_limit_bytes=32 * 1024 * 1024,   # safe on v5e/v6e/v7x; footprint << 1 MiB
        ),
    )(*inputs)

    # Drop row-wrap / padding garbage: keep the valid (Ho, Wo) corner of the grid.
    return y[:, :M].reshape(N, B, Hg, Wg)[:, :, :Ho, :Wo]


# ---------------------------------------------------------------------------
# Plain-JAX glue (tiny, bf16): padding, phase splitting, weight prep, BN folding
# ---------------------------------------------------------------------------
def _fold_bn(tap_ws, bias, bn):
    """Fold eval-mode BatchNorm into (per-tap weights, shift)."""
    if bn is None:
        return tap_ws, bias
    gamma, beta, rmean, rvar = bn
    scale = gamma / jnp.sqrt(rvar + BN_EPS)
    return [w * scale[:, None] for w in tap_ws], (bias - rmean) * scale + beta


def conv_same(x, w, b, bn, k, act, alpha=ALPHA, residual=None):
    """ReflectionPad2d(k//2) + Conv2d(k, stride=1) (+BN) (+act) (+residual).
    x: (C, B, H, W), w: (N, C, k, k)."""
    C, B, H, W = x.shape
    p = k // 2
    slab = jnp.pad(x, ((0, 0), (0, 0), (p, p), (p, p)), mode="reflect")[None]
    tap_ws = [w[:, :, dy, dx] for dy in range(k) for dx in range(k)]
    tap_pos = [(0, dy, dx) for dy in range(k) for dx in range(k)]
    tap_ws, shift = _fold_bn(tap_ws, b, bn)
    return fused_conv(slab, tap_ws, tap_pos, shift, (H, W), act, alpha, residual)


def conv_down(x, w, b, bn, act, alpha=ALPHA):
    """Conv2d(C, N, 3, stride=2, padding=1) + BN + act via phase-split input:
    exactly the 9 nonzero (phase, tap) pairs, no zero weight blocks."""
    C, B, H, W = x.shape
    xp = jnp.pad(x, ((0, 0), (0, 0), (1, 1), (1, 1)))
    # phase g = pi*2 + pj on a (H/2 + 1, W/2 + 1) grid
    slab = jnp.stack([xp[:, :, pi::2, pj::2] for pi in range(2) for pj in range(2)],
                     axis=0)                                        # (4, C, B, Hp, Wp)
    tap_ws, tap_pos = [], []
    for pi in range(2):
        for pj in range(2):
            for dy in range(2):
                for dx in range(2):
                    ky, kx = 2 * dy + pi, 2 * dx + pj
                    if ky <= 2 and kx <= 2:
                        tap_ws.append(w[:, :, ky, kx])              # (N, C)
                        tap_pos.append((pi * 2 + pj, dy, dx))
    tap_ws, shift = _fold_bn(tap_ws, b, bn)
    return fused_conv(slab, tap_ws, tap_pos, shift, (H // 2, W // 2), act, alpha)


def conv_up(x, w, b, bn, act, alpha=ALPHA):
    """ConvTranspose2d(C, Cout, 3, stride=2, padding=1, output_padding=1) + BN + act,
    lowered to 4 sub-pixel phase convolutions evaluated in a single kernel call.
    (Zero output-phase blocks are free on the MXU since N <= 64.)"""
    C, B, H, W = x.shape
    Cout = w.shape[1]                                               # w: (Cin, Cout, 3, 3)
    slab = jnp.pad(x, ((0, 0), (0, 0), (0, 1), (0, 1)))[None]       # high-side zero pad
    kmap = {(0, 0): 1, (1, 0): 2, (1, 1): 0}                        # (parity, tap) -> ky/kx
    tap_ws, tap_pos = [], []
    for dy in range(2):
        for dx in range(2):
            blocks = []
            for r in range(2):
                for s in range(2):
                    ky = kmap.get((r, dy))
                    kx = kmap.get((s, dx))
                    if ky is None or kx is None:
                        blocks.append(jnp.zeros((Cout, C), w.dtype))
                    else:
                        blocks.append(w[:, :, ky, kx].T)            # (Cout, Cin)
            tap_ws.append(jnp.concatenate(blocks, axis=0))          # (4*Cout, Cin)
            tap_pos.append((0, dy, dx))
    bias4 = jnp.tile(b, 4)
    bn4 = None if bn is None else tuple(jnp.tile(a, 4) for a in bn)
    tap_ws, shift = _fold_bn(tap_ws, bias4, bn4)
    y4 = fused_conv(slab, tap_ws, tap_pos, shift, (H, W), act, alpha)  # (4*Cout, B, H, W)
    # interleave phases: out[n, b, 2i+r, 2j+s] = y4[(r*2+s)*Cout + n, b, i, j]
    y4 = y4.reshape(2, 2, Cout, B, H, W)
    return jnp.transpose(y4, (2, 3, 4, 0, 5, 1)).reshape(Cout, B, 2 * H, 2 * W)


def residual_block(x, p):
    h = conv_same(x, p["w1"], p["b1"], p["bn1"], 3, "prelu", ALPHA)
    # TODO(synk): nn.Dropout2d(p=0.2) runs as eval-mode identity here.
    return conv_same(h, p["w2"], p["b2"], p["bn2"], 3, "none", 0.0, residual=x)


# ---------------------------------------------------------------------------
# Parameter init (deterministic, PyTorch-default-like shapes)
# ---------------------------------------------------------------------------
def _init_conv(key, cout, cin, k):
    k1, k2 = jax.random.split(key)
    bound = 1.0 / float(cin * k * k) ** 0.5
    w = jax.random.uniform(k1, (cout, cin, k, k), jnp.float32, -bound, bound)
    b = jax.random.uniform(k2, (cout,), jnp.float32, -bound, bound)
    return w, b


def _init_convT(key, cin, cout, k):
    k1, k2 = jax.random.split(key)
    bound = 1.0 / float(cout * k * k) ** 0.5
    w = jax.random.uniform(k1, (cin, cout, k, k), jnp.float32, -bound, bound)
    b = jax.random.uniform(k2, (cout,), jnp.float32, -bound, bound)
    return w, b


def _init_bn(key, c):
    k1, k2 = jax.random.split(key)
    gamma = jnp.ones((c,), jnp.float32)
    beta = jnp.zeros((c,), jnp.float32)
    rmean = 0.1 * jax.random.normal(k1, (c,), jnp.float32)
    rvar = 1.0 + 0.1 * jax.random.uniform(k2, (c,), jnp.float32)
    return (gamma, beta, rmean, rvar)


def init_resnet_params(key, in_channels=1, out_channels=1, res_blocks=2,
                       starting_n_features=8, updown_blocks=2):
    keys = iter(jax.random.split(key, 64))
    params = {}
    w, b = _init_conv(next(keys), starting_n_features, in_channels, 7)
    params["head"] = dict(w=w, b=b, bn=_init_bn(next(keys), starting_n_features))

    in_f = starting_n_features
    params["down"] = []
    for _ in range(updown_blocks):
        out_f = in_f * 2
        w, b = _init_conv(next(keys), out_f, in_f, 3)
        params["down"].append(dict(w=w, b=b, bn=_init_bn(next(keys), out_f)))
        in_f = out_f

    params["res"] = []
    for _ in range(res_blocks):
        w1, b1 = _init_conv(next(keys), in_f, in_f, 3)
        bn1 = _init_bn(next(keys), in_f)
        w2, b2 = _init_conv(next(keys), in_f, in_f, 3)
        bn2 = _init_bn(next(keys), in_f)
        params["res"].append(dict(w1=w1, b1=b1, bn1=bn1, w2=w2, b2=b2, bn2=bn2))

    params["up"] = []
    for _ in range(updown_blocks):
        out_f = in_f // 2
        w, b = _init_convT(next(keys), in_f, out_f, 3)
        params["up"].append(dict(w=w, b=b, bn=_init_bn(next(keys), out_f)))
        in_f = out_f

    w, b = _init_conv(next(keys), out_channels, starting_n_features, 7)
    params["tail"] = dict(w=w, b=b)
    return params


# ---------------------------------------------------------------------------
# Full forward (mirrors the nn.Sequential construction order)
# ---------------------------------------------------------------------------
def resnet_forward(x, params):
    # x: (C_in, B, H, W) channels-first layout used by the kernels
    h = x.astype(jnp.bfloat16)
    h = conv_same(h, params["head"]["w"], params["head"]["b"], params["head"]["bn"],
                  7, "prelu", ALPHA)
    for p in params["down"]:
        h = conv_down(h, p["w"], p["b"], p["bn"], "prelu", ALPHA)
    for p in params["res"]:
        h = residual_block(h, p)
    for p in params["up"]:
        h = conv_up(h, p["w"], p["b"], p["bn"], "prelu", ALPHA)
    h = conv_same(h, params["tail"]["w"], params["tail"]["b"], None, 7, "sigmoid", 0.0)
    return h.astype(jnp.float32)


if __name__ == "__main__":
    key = jax.random.PRNGKey(0)
    pkey, xkey = jax.random.split(key)

    params = init_resnet_params(pkey, in_channels=1, out_channels=1,
                                res_blocks=2, starting_n_features=8, updown_blocks=2)

    # Module is NCHW; the kernels use a channels-first (C, B, H, W) layout.
    x_nchw = jax.random.normal(xkey, (2, 1, 16, 16), jnp.float32)
    x_cbhw = jnp.transpose(x_nchw, (1, 0, 2, 3))

    y_cbhw = jax.jit(resnet_forward)(x_cbhw, params)
    y_nchw = jnp.transpose(y_cbhw, (1, 0, 2, 3))
    jax.block_until_ready(y_nchw)

    assert y_nchw.shape == (2, 1, 16, 16), y_nchw.shape
    assert bool(jnp.all(jnp.isfinite(y_nchw)))
    assert bool(jnp.all((y_nchw >= 0.0) & (y_nchw <= 1.0)))   # exact sigmoid epilogue
    print("KERNEL_OK")
</pallas_src>

<mosaic_0001>
module attributes {stable_mosaic.version = 11 : i64} {
  func.func @kernel(%arg0: i32, %arg1: memref<1x1x512xbf16, #tpu.memory_space<vmem>>, %arg2: memref<1x1x256xbf16, #tpu.memory_space<vmem>>, %arg3: memref<49x8x1xbf16, #tpu.memory_space<vmem>>, %arg4: memref<8x1xf32, #tpu.memory_space<vmem>>, %arg5: memref<8x512xbf16, #tpu.memory_space<vmem>>) attributes {dimension_semantics = [#tpu.dimension_semantics<parallel>], iteration_bounds = array<i64: 2>, scalar_prefetch = 0 : i64, scratch_operands = 0 : i64, tpu.core_type = #tpu.core_type<tc>, window_params = [{transform_indices = @transform_0, window_bounds = array<i64: 1, 1, 512>}, {transform_indices = @transform_1, window_bounds = array<i64: 1, 1, 256>}, {pipeline_mode = #tpu.pipeline_mode<synchronous>, transform_indices = @transform_2, window_bounds = array<i64: 49, 8, 1>}, {pipeline_mode = #tpu.pipeline_mode<synchronous>, transform_indices = @transform_3, window_bounds = array<i64: 8, 1>}, {transform_indices = @transform_4, window_bounds = array<i64: 8, 512>}]} {
    %c0 = arith.constant 0 : index
    %c0_0 = arith.constant 0 : index
    %c0_1 = arith.constant 0 : index
    %0 = vector.load %arg1[%c0, %c0_0, %c0_1] : memref<1x1x512xbf16, #tpu.memory_space<vmem>>, vector<1x1x512xbf16>
    %c0_2 = arith.constant 0 : index
    %c0_3 = arith.constant 0 : index
    %c0_4 = arith.constant 0 : index
    %1 = vector.load %arg2[%c0_2, %c0_3, %c0_4] : memref<1x1x256xbf16, #tpu.memory_space<vmem>>, vector<1x1x256xbf16>
    %2 = tpu.concatenate %0, %1 in 2 : vector<1x1x512xbf16>, vector<1x1x256xbf16> -> vector<1x1x768xbf16>
    %cst = arith.constant 0.000000e+00 : f32
    %3 = vector.broadcast %cst : f32 to vector<8x512xf32>
    %4 = vector.extract_strided_slice %2 {offsets = [0, 0, 0], sizes = [1, 1, 512], strides = [1, 1, 1]} : vector<1x1x768xbf16> to vector<1x1x512xbf16>
    %5 = vector.shape_cast %4 : vector<1x1x512xbf16> to vector<1x512xbf16>
    %c0_5 = arith.constant 0 : index
    %c0_6 = arith.constant 0 : index
    %c0_7 = arith.constant 0 : index
    %6 = vector.load %arg3[%c0_5, %c0_6, %c0_7] : memref<49x8x1xbf16, #tpu.memory_space<vmem>>, vector<1x8x1xbf16>
    %7 = vector.shape_cast %6 : vector<1x8x1xbf16> to vector<8x1xbf16>
    %8 = arith.extf %7 : vector<8x1xbf16> to vector<8x1xf32>
    %9 = arith.extf %5 : vector<1x512xbf16> to vector<1x512xf32>
    %10 = vector.broadcast %8 : vector<8x1xf32> to vector<8x512xf32>
    %11 = vector.broadcast %9 : vector<1x512xf32> to vector<8x512xf32>
    %12 = arith.mulf %10, %11 : vector<8x512xf32>
    %13 = arith.addf %3, %12 : vector<8x512xf32>
    %14 = vector.extract_strided_slice %2 {offsets = [0, 0, 1], sizes = [1, 1, 512], strides = [1, 1, 1]} : vector<1x1x768xbf16> to vector<1x1x512xbf16>
    %15 = vector.shape_cast %14 : vector<1x1x512xbf16> to vector<1x512xbf16>
    %c1 = arith.constant 1 : index
    %c0_8 = arith.constant 0 : index
    %c0_9 = arith.constant 0 : index
    %16 = vector.load %arg3[%c1, %c0_8, %c0_9] : memref<49x8x1xbf16, #tpu.memory_space<vmem>>, vector<1x8x1xbf16>
    %17 = vector.shape_cast %16 : vector<1x8x1xbf16> to vector<8x1xbf16>
    %18 = arith.extf %17 : vector<8x1xbf16> to vector<8x1xf32>
    %19 = arith.extf %15 : vector<1x512xbf16> to vector<1x512xf32>
    %20 = vector.broadcast %18 : vector<8x1xf32> to vector<8x512xf32>
    %21 = vector.broadcast %19 : vector<1x512xf32> to vector<8x512xf32>
    %22 = arith.mulf %20, %21 : vector<8x512xf32>
    %23 = arith.addf %13, %22 : vector<8x512xf32>
    %24 = vector.extract_strided_slice %2 {offsets = [0, 0, 2], sizes = [1, 1, 512], strides = [1, 1, 1]} : vector<1x1x768xbf16> to vector<1x1x512xbf16>
    %25 = vector.shape_cast %24 : vector<1x1x512xbf16> to vector<1x512xbf16>
    %c2 = arith.constant 2 : index
    %c0_10 = arith.constant 0 : index
    %c0_11 = arith.constant 0 : index
    %26 = vector.load %arg3[%c2, %c0_10, %c0_11] : memref<49x8x1xbf16, #tpu.memory_space<vmem>>, vector<1x8x1xbf16>
    %27 = vector.shape_cast %26 : vector<1x8x1xbf16> to vector<8x1xbf16>
    %28 = arith.extf %27 : vector<8x1xbf16> to vector<8x1xf32>
    %29 = arith.extf %25 : vector<1x512xbf16> to vector<1x512xf32>
    %30 = vector.broadcast %28 : vector<8x1xf32> to vector<8x512xf32>
    %31 = vector.broadcast %29 : vector<1x512xf32> to vector<8x512xf32>
    %32 = arith.mulf %30, %31 : vector<8x512xf32>
    %33 = arith.addf %23, %32 : vector<8x512xf32>
    %34 = vector.extract_strided_slice %2 {offsets = [0, 0, 3], sizes = [1, 1, 512], strides = [1, 1, 1]} : vector<1x1x768xbf16> to vector<1x1x512xbf16>
    %35 = vector.shape_cast %34 : vector<1x1x512xbf16> to vector<1x512xbf16>
    %c3 = arith.constant 3 : index
    %c0_12 = arith.constant 0 : index
    %c0_13 = arith.constant 0 : index
    %36 = vector.load %arg3[%c3, %c0_12, %c0_13] : memref<49x8x1xbf16, #tpu.memory_space<vmem>>, vector<1x8x1xbf16>
    %37 = vector.shape_cast %36 : vector<1x8x1xbf16> to vector<8x1xbf16>
    %38 = arith.extf %37 : vector<8x1xbf16> to vector<8x1xf32>
    %39 = arith.extf %35 : vector<1x512xbf16> to vector<1x512xf32>
    %40 = vector.broadcast %38 : vector<8x1xf32> to vector<8x512xf32>
    %41 = vector.broadcast %39 : vector<1x512xf32> to vector<8x512xf32>
    %42 = arith.mulf %40, %41 : vector<8x512xf32>
    %43 = arith.addf %33, %42 : vector<8x512xf32>
    %44 = vector.extract_strided_slice %2 {offsets = [0, 0, 4], sizes = [1, 1, 512], strides = [1, 1, 1]} : vector<1x1x768xbf16> to vector<1x1x512xbf16>
    %45 = vector.shape_cast %44 : vector<1x1x512xbf16> to vector<1x512xbf16>
    %c4 = arith.constant 4 : index
    %c0_14 = arith.constant 0 : index
    %c0_15 = arith.constant 0 : index
    %46 = vector.load %arg3[%c4, %c0_14, %c0_15] : memref<49x8x1xbf16, #tpu.memory_space<vmem>>, vector<1x8x1xbf16>
    %47 = vector.shape_cast %46 : vector<1x8x1xbf16> to vector<8x1xbf16>
    %48 = arith.extf %47 : vector<8x1xbf16> to vector<8x1xf32>
    %49 = arith.extf %45 : vector<1x512xbf16> to vector<1x512xf32>
    %50 = vector.broadcast %48 : vector<8x1xf32> to vector<8x512xf32>
    %51 = vector.broadcast %49 : vector<1x512xf32> to vector<8x512xf32>
    %52 = arith.mulf %50, %51 : vector<8x512xf32>
    %53 = arith.addf %43, %52 : vector<8x512xf32>
    %54 = vector.extract_strided_slice %2 {offsets = [0, 0, 5], sizes = [1, 1, 512], strides = [1, 1, 1]} : vector<1x1x768xbf16> to vector<1x1x512xbf16>
    %55 = vector.shape_cast %54 : vector<1x1x512xbf16> to vector<1x512xbf16>
    %c5 = arith.constant 5 : index
    %c0_16 = arith.constant 0 : index
    %c0_17 = arith.constant 0 : index
    %56 = vector.load %arg3[%c5, %c0_16, %c0_17] : memref<49x8x1xbf16, #tpu.memory_space<vmem>>, vector<1x8x1xbf16>
    %57 = vector.shape_cast %56 : vector<1x8x1xbf16> to vector<8x1xbf16>
    %58 = arith.extf %57 : vector<8x1xbf16> to vector<8x1xf32>
    %59 = arith.extf %55 : vector<1x512xbf16> to vector<1x512xf32>
    %60 = vector.broadcast %58 : vector<8x1xf32> to vector<8x512xf32>
    %61 = vector.broadcast %59 : vector<1x512xf32> to vector<8x512xf32>
    %62 = arith.mulf %60, %61 : vector<8x512xf32>
    %63 = arith.addf %53, %62 : vector<8x512xf32>
    %64 = vector.extract_strided_slice %2 {offsets = [0, 0, 6], sizes = [1, 1, 512], strides = [1, 1, 1]} : vector<1x1x768xbf16> to vector<1x1x512xbf16>
    %65 = vector.shape_cast %64 : vector<1x1x512xbf16> to vector<1x512xbf16>
    %c6 = arith.constant 6 : index
    %c0_18 = arith.constant 0 : index
    %c0_19 = arith.constant 0 : index
    %66 = vector.load %arg3[%c6, %c0_18, %c0_19] : memref<49x8x1xbf16, #tpu.memory_space<vmem>>, vector<1x8x1xbf16>
    %67 = vector.shape_cast %66 : vector<1x8x1xbf16> to vector<8x1xbf16>
    %68 = arith.extf %67 : vector<8x1xbf16> to vector<8x1xf32>
    %69 = arith.extf %65 : vector<1x512xbf16> to vector<1x512xf32>
    %70 = vector.broadcast %68 : vector<8x1xf32> to vector<8x512xf32>
    %71 = vector.broadcast %69 : vector<1x512xf32> to vector<8x512xf32>
    %72 = arith.mulf %70, %71 : vector<8x512xf32>
    %73 = arith.addf %63, %72 : vector<8x512xf32>
    %74 = vector.extract_strided_slice %2 {offsets = [0, 0, 22], sizes = [1, 1, 512], strides = [1, 1, 1]} : vector<1x1x768xbf16> to vector<1x1x512xbf16>
    %75 = vector.shape_cast %74 : vector<1x1x512xbf16> to vector<1x512xbf16>
    %c7 = arith.constant 7 : index
    %c0_20 = arith.constant 0 : index
    %c0_21 = arith.constant 0 : index
    %76 = vector.load %arg3[%c7, %c0_20, %c0_21] : memref<49x8x1xbf16, #tpu.memory_space<vmem>>, vector<1x8x1xbf16>
    %77 = vector.shape_cast %76 : vector<1x8x1xbf16> to vector<8x1xbf16>
    %78 = arith.extf %77 : vector<8x1xbf16> to vector<8x1xf32>
    %79 = arith.extf %75 : vector<1x512xbf16> to vector<1x512xf32>
    %80 = vector.broadcast %78 : vector<8x1xf32> to vector<8x512xf32>
    %81 = vector.broadcast %79 : vector<1x512xf32> to vector<8x512xf32>
    %82 = arith.mulf %80, %81 : vector<8x512xf32>
    %83 = arith.addf %73, %82 : vector<8x512xf32>
    %84 = vector.extract_strided_slice %2 {offsets = [0, 0, 23], sizes = [1, 1, 512], strides = [1, 1, 1]} : vector<1x1x768xbf16> to vector<1x1x512xbf16>
    %85 = vector.shape_cast %84 : vector<1x1x512xbf16> to vector<1x512xbf16>
    %c8 = arith.constant 8 : index
    %c0_22 = arith.constant 0 : index
    %c0_23 = arith.constant 0 : index
    %86 = vector.load %arg3[%c8, %c0_22, %c0_23] : memref<49x8x1xbf16, #tpu.memory_space<vmem>>, vector<1x8x1xbf16>
    %87 = vector.shape_cast %86 : vector<1x8x1xbf16> to vector<8x1xbf16>
    %88 = arith.extf %87 : vector<8x1xbf16> to vector<8x1xf32>
    %89 = arith.extf %85 : vector<1x512xbf16> to vector<1x512xf32>
    %90 = vector.broadcast %88 : vector<8x1xf32> to vector<8x512xf32>
    %91 = vector.broadcast %89 : vector<1x512xf32> to vector<8x512xf32>
    %92 = arith.mulf %90, %91 : vector<8x512xf32>
    %93 = arith.addf %83, %92 : vector<8x512xf32>
    %94 = vector.extract_strided_slice %2 {offsets = [0, 0, 24], sizes = [1, 1, 512], strides = [1, 1, 1]} : vector<1x1x768xbf16> to vector<1x1x512xbf16>
    %95 = vector.shape_cast %94 : vector<1x1x512xbf16> to vector<1x512xbf16>
    %c9 = arith.constant 9 : index
    %c0_24 = arith.constant 0 : index
    %c0_25 = arith.constant 0 : index
    %96 = vector.load %arg3[%c9, %c0_24, %c0_25] : memref<49x8x1xbf16, #tpu.memory_space<vmem>>, vector<1x8x1xbf16>
    %97 = vector.shape_cast %96 : vector<1x8x1xbf16> to vector<8x1xbf16>
    %98 = arith.extf %97 : vector<8x1xbf16> to vector<8x1xf32>
    %99 = arith.extf %95 : vector<1x512xbf16> to vector<1x512xf32>
    %100 = vector.broadcast %98 : vector<8x1xf32> to vector<8x512xf32>
    %101 = vector.broadcast %99 : vector<1x512xf32> to vector<8x512xf32>
    %102 = arith.mulf %100, %101 : vector<8x512xf32>
    %103 = arith.addf %93, %102 : vector<8x512xf32>
    %104 = vector.extract_strided_slice %2 {offsets = [0, 0, 25], sizes = [1, 1, 512], strides = [1, 1, 1]} : vector<1x1x768xbf16> to vector<1x1x512xbf16>
    %105 = vector.shape_cast %104 : vector<1x1x512xbf16> to vector<1x512xbf16>
    %c10 = arith.constant 10 : index
    %c0_26 = arith.constant 0 : index
    %c0_27 = arith.constant 0 : index
    %106 = vector.load %arg3[%c10, %c0_26, %c0_27] : memref<49x8x1xbf16, #tpu.memory_space<vmem>>, vector<1x8x1xbf16>
    %107 = vector.shape_cast %106 : vector<1x8x1xbf16> to vector<8x1xbf16>
    %108 = arith.extf %107 : vector<8x1xbf16> to vector<8x1xf32>
    %109 = arith.extf %105 : vector<1x512xbf16> to vector<1x512xf32>
    %110 = vector.broadcast %108 : vector<8x1xf32> to vector<8x512xf32>
    %111 = vector.broadcast %109 : vector<1x512xf32> to vector<8x512xf32>
    %112 = arith.mulf %110, %111 : vector<8x512xf32>
    %113 = arith.addf %103, %112 : vector<8x512xf32>
    %114 = vector.extract_strided_slice %2 {offsets = [0, 0, 26], sizes = [1, 1, 512], strides = [1, 1, 1]} : vector<1x1x768xbf16> to vector<1x1x512xbf16>
    %115 = vector.shape_cast %114 : vector<1x1x512xbf16> to vector<1x512xbf16>
    %c11 = arith.constant 11 : index
    %c0_28 = arith.constant 0 : index
    %c0_29 = arith.constant 0 : index
    %116 = vector.load %arg3[%c11, %c0_28, %c0_29] : memref<49x8x1xbf16, #tpu.memory_space<vmem>>, vector<1x8x1xbf16>
    %117 = vector.shape_cast %116 : vector<1x8x1xbf16> to vector<8x1xbf16>
    %118 = arith.extf %117 : vector<8x1xbf16> to vector<8x1xf32>
    %119 = arith.extf %115 : vector<1x512xbf16> to vector<1x512xf32>
    %120 = vector.broadcast %118 : vector<8x1xf32> to vector<8x512xf32>
    %121 = vector.broadcast %119 : vector<1x512xf32> to vector<8x512xf32>
    %122 = arith.mulf %120, %121 : vector<8x512xf32>
    %123 = arith.addf %113, %122 : vector<8x512xf32>
    %124 = vector.extract_strided_slice %2 {offsets = [0, 0, 27], sizes = [1, 1, 512], strides = [1, 1, 1]} : vector<1x1x768xbf16> to vector<1x1x512xbf16>
    %125 = vector.shape_cast %124 : vector<1x1x512xbf16> to vector<1x512xbf16>
    %c12 = arith.constant 12 : index
    %c0_30 = arith.constant 0 : index
    %c0_31 = arith.constant 0 : index
    %126 = vector.load %arg3[%c12, %c0_30, %c0_31] : memref<49x8x1xbf16, #tpu.memory_space<vmem>>, vector<1x8x1xbf16>
    %127 = vector.shape_cast %126 : vector<1x8x1xbf16> to vector<8x1xbf16>
    %128 = arith.extf %127 : vector<8x1xbf16> to vector<8x1xf32>
    %129 = arith.extf %125 : vector<1x512xbf16> to vector<1x512xf32>
    %130 = vector.broadcast %128 : vector<8x1xf32> to vector<8x512xf32>
    %131 = vector.broadcast %129 : vector<1x512xf32> to vector<8x512xf32>
    %132 = arith.mulf %130, %131 : vector<8x512xf32>
    %133 = arith.addf %123, %132 : vector<8x512xf32>
    %134 = vector.extract_strided_slice %2 {offsets = [0, 0, 28], sizes = [1, 1, 512], strides = [1, 1, 1]} : vector<1x1x768xbf16> to vector<1x1x512xbf16>
    %135 = vector.shape_cast %134 : vector<1x1x512xbf16> to vector<1x512xbf16>
    %c13 = arith.constant 13 : index
    %c0_32 = arith.constant 0 : index
    %c0_33 = arith.constant 0 : index
    %136 = vector.load %arg3[%c13, %c0_32, %c0_33] : memref<49x8x1xbf16, #tpu.memory_space<vmem>>, vector<1x8x1xbf16>
    %137 = vector.shape_cast %136 : vector<1x8x1xbf16> to vector<8x1xbf16>
    %138 = arith.extf %137 : vector<8x1xbf16> to vector<8x1xf32>
    %139 = arith.extf %135 : vector<1x512xbf16> to vector<1x512xf32>
    %140 = vector.broadcast %138 : vector<8x1xf32> to vector<8x512xf32>
    %141 = vector.broadcast %139 : vector<1x512xf32> to vector<8x512xf32>
    %142 = arith.mulf %140, %141 : vector<8x512xf32>
    %143 = arith.addf %133, %142 : vector<8x512xf32>
    %144 = vector.extract_strided_slice %2 {offsets = [0, 0, 44], sizes = [1, 1, 512], strides = [1, 1, 1]} : vector<1x1x768xbf16> to vector<1x1x512xbf16>
    %145 = vector.shape_cast %144 : vector<1x1x512xbf16> to vector<1x512xbf16>
    %c14 = arith.constant 14 : index
    %c0_34 = arith.constant 0 : index
    %c0_35 = arith.constant 0 : index
    %146 = vector.load %arg3[%c14, %c0_34, %c0_35] : memref<49x8x1xbf16, #tpu.memory_space<vmem>>, vector<1x8x1xbf16>
    %147 = vector.shape_cast %146 : vector<1x8x1xbf16> to vector<8x1xbf16>
    %148 = arith.extf %147 : vector<8x1xbf16> to vector<8x1xf32>
    %149 = arith.extf %145 : vector<1x512xbf16> to vector<1x512xf32>
    %150 = vector.broadcast %148 : vector<8x1xf32> to vector<8x512xf32>
    %151 = vector.broadcast %149 : vector<1x512xf32> to vector<8x512xf32>
    %152 = arith.mulf %150, %151 : vector<8x512xf32>
    %153 = arith.addf %143, %152 : vector<8x512xf32>
    %154 = vector.extract_strided_slice %2 {offsets = [0, 0, 45], sizes = [1, 1, 512], strides = [1, 1, 1]} : vector<1x1x768xbf16> to vector<1x1x512xbf16>
    %155 = vector.shape_cast %154 : vector<1x1x512xbf16> to vector<1x512xbf16>
    %c15 = arith.constant 15 : index
    %c0_36 = arith.constant 0 : index
    %c0_37 = arith.constant 0 : index
    %156 = vector.load %arg3[%c15, %c0_36, %c0_37] : memref<49x8x1xbf16, #tpu.memory_space<vmem>>, vector<1x8x1xbf16>
    %157 = vector.shape_cast %156 : vector<1x8x1xbf16> to vector<8x1xbf16>
    %158 = arith.extf %157 : vector<8x1xbf16> to vector<8x1xf32>
    %159 = arith.extf %155 : vector<1x512xbf16> to vector<1x512xf32>
    %160 = vector.broadcast %158 : vector<8x1xf32> to vector<8x512xf32>
    %161 = vector.broadcast %159 : vector<1x512xf32> to vector<8x512xf32>
    %162 = arith.mulf %160, %161 : vector<8x512xf32>
    %163 = arith.addf %153, %162 : vector<8x512xf32>
    %164 = vector.extract_strided_slice %2 {offsets = [0, 0, 46], sizes = [1, 1, 512], strides = [1, 1, 1]} : vector<1x1x768xbf16> to vector<1x1x512xbf16>
    %165 = vector.shape_cast %164 : vector<1x1x512xbf16> to vector<1x512xbf16>
    %c16 = arith.constant 16 : index
    %c0_38 = arith.constant 0 : index
    %c0_39 = arith.constant 0 : index
    %166 = vector.load %arg3[%c16, %c0_38, %c0_39] : memref<49x8x1xbf16, #tpu.memory_space<vmem>>, vector<1x8x1xbf16>
    %167 = vector.shape_cast %166 : vector<1x8x1xbf16> to vector<8x1xbf16>
    %168 = arith.extf %167 : vector<8x1xbf16> to vector<8x1xf32>
    %169 = arith.extf %165 : vector<1x512xbf16> to vector<1x512xf32>
    %170 = vector.broadcast %168 : vector<8x1xf32> to vector<8x512xf32>
    %171 = vector.broadcast %169 : vector<1x512xf32> to vector<8x512xf32>
    %172 = arith.mulf %170, %171 : vector<8x512xf32>
    %173 = arith.addf %163, %172 : vector<8x512xf32>
    %174 = vector.extract_strided_slice %2 {offsets = [0, 0, 47], sizes = [1, 1, 512], strides = [1, 1, 1]} : vector<1x1x768xbf16> to vector<1x1x512xbf16>
    %175 = vector.shape_cast %174 : vector<1x1x512xbf16> to vector<1x512xbf16>
    %c17 = arith.constant 17 : index
    %c0_40 = arith.constant 0 : index
    %c0_41 = arith.constant 0 : index
    %176 = vector.load %arg3[%c17, %c0_40, %c0_41] : memref<49x8x1xbf16, #tpu.memory_space<vmem>>, vector<1x8x1xbf16>
    %177 = vector.shape_cast %176 : vector<1x8x1xbf16> to vector<8x1xbf16>
    %178 = arith.extf %177 : vector<8x1xbf16> to vector<8x1xf32>
    %179 = arith.extf %175 : vector<1x512xbf16> to vector<1x512xf32>
    %180 = vector.broadcast %178 : vector<8x1xf32> to vector<8x512xf32>
    %181 = vector.broadcast %179 : vector<1x512xf32> to vector<8x512xf32>
    %182 = arith.mulf %180, %181 : vector<8x512xf32>
    %183 = arith.addf %173, %182 : vector<8x512xf32>
    %184 = vector.extract_strided_slice %2 {offsets = [0, 0, 48], sizes = [1, 1, 512], strides = [1, 1, 1]} : vector<1x1x768xbf16> to vector<1x1x512xbf16>
    %185 = vector.shape_cast %184 : vector<1x1x512xbf16> to vector<1x512xbf16>
    %c18 = arith.constant 18 : index
    %c0_42 = arith.constant 0 : index
    %c0_43 = arith.constant 0 : index
    %186 = vector.load %arg3[%c18, %c0_42, %c0_43] : memref<49x8x1xbf16, #tpu.memory_space<vmem>>, vector<1x8x1xbf16>
    %187 = vector.shape_cast %186 : vector<1x8x1xbf16> to vector<8x1xbf16>
    %188 = arith.extf %187 : vector<8x1xbf16> to vector<8x1xf32>
    %189 = arith.extf %185 : vector<1x512xbf16> to vector<1x512xf32>
    %190 = vector.broadcast %188 : vector<8x1xf32> to vector<8x512xf32>
    %191 = vector.broadcast %189 : vector<1x512xf32> to vector<8x512xf32>
    %192 = arith.mulf %190, %191 : vector<8x512xf32>
    %193 = arith.addf %183, %192 : vector<8x512xf32>
    %194 = vector.extract_strided_slice %2 {offsets = [0, 0, 49], sizes = [1, 1, 512], strides = [1, 1, 1]} : vector<1x1x768xbf16> to vector<1x1x512xbf16>
    %195 = vector.shape_cast %194 : vector<1x1x512xbf16> to vector<1x512xbf16>
    %c19 = arith.constant 19 : index
    %c0_44 = arith.constant 0 : index
    %c0_45 = arith.constant 0 : index
    %196 = vector.load %arg3[%c19, %c0_44, %c0_45] : memref<49x8x1xbf16, #tpu.memory_space<vmem>>, vector<1x8x1xbf16>
    %197 = vector.shape_cast %196 : vector<1x8x1xbf16> to vector<8x1xbf16>
    %198 = arith.extf %197 : vector<8x1xbf16> to vector<8x1xf32>
    %199 = arith.extf %195 : vector<1x512xbf16> to vector<1x512xf32>
    %200 = vector.broadcast %198 : vector<8x1xf32> to vector<8x512xf32>
    %201 = vector.broadcast %199 : vector<1x512xf32> to vector<8x512xf32>
    %202 = arith.mulf %200, %201 : vector<8x512xf32>
    %203 = arith.addf %193, %202 : vector<8x512xf32>
    %204 = vector.extract_strided_slice %2 {offsets = [0, 0, 50], sizes = [1, 1, 512], strides = [1, 1, 1]} : vector<1x1x768xbf16> to vector<1x1x512xbf16>
    %205 = vector.shape_cast %204 : vector<1x1x512xbf16> to vector<1x512xbf16>
    %c20 = arith.constant 20 : index
    %c0_46 = arith.constant 0 : index
    %c0_47 = arith.constant 0 : index
    %206 = vector.load %arg3[%c20, %c0_46, %c0_47] : memref<49x8x1xbf16, #tpu.memory_space<vmem>>, vector<1x8x1xbf16>
    %207 = vector.shape_cast %206 : vector<1x8x1xbf16> to vector<8x1xbf16>
    %208 = arith.extf %207 : vector<8x1xbf16> to vector<8x1xf32>
    %209 = arith.extf %205 : vector<1x512xbf16> to vector<1x512xf32>
    %210 = vector.broadcast %208 : vector<8x1xf32> to vector<8x512xf32>
    %211 = vector.broadcast %209 : vector<1x512xf32> to vector<8x512xf32>
    %212 = arith.mulf %210, %211 : vector<8x512xf32>
    %213 = arith.addf %203, %212 : vector<8x512xf32>
    %214 = vector.extract_strided_slice %2 {offsets = [0, 0, 66], sizes = [1, 1, 512], strides = [1, 1, 1]} : vector<1x1x768xbf16> to vector<1x1x512xbf16>
    %215 = vector.shape_cast %214 : vector<1x1x512xbf16> to vector<1x512xbf16>
    %c21 = arith.constant 21 : index
    %c0_48 = arith.constant 0 : index
    %c0_49 = arith.constant 0 : index
    %216 = vector.load %arg3[%c21, %c0_48, %c0_49] : memref<49x8x1xbf16, #tpu.memory_space<vmem>>, vector<1x8x1xbf16>
    %217 = vector.shape_cast %216 : vector<1x8x1xbf16> to vector<8x1xbf16>
    %218 = arith.extf %217 : vector<8x1xbf16> to vector<8x1xf32>
    %219 = arith.extf %215 : vector<1x512xbf16> to vector<1x512xf32>
    %220 = vector.broadcast %218 : vector<8x1xf32> to vector<8x512xf32>
    %221 = vector.broadcast %219 : vector<1x512xf32> to vector<8x512xf32>
    %222 = arith.mulf %220, %221 : vector<8x512xf32>
    %223 = arith.addf %213, %222 : vector<8x512xf32>
    %224 = vector.extract_strided_slice %2 {offsets = [0, 0, 67], sizes = [1, 1, 512], strides = [1, 1, 1]} : vector<1x1x768xbf16> to vector<1x1x512xbf16>
    %225 = vector.shape_cast %224 : vector<1x1x512xbf16> to vector<1x512xbf16>
    %c22 = arith.constant 22 : index
    %c0_50 = arith.constant 0 : index
    %c0_51 = arith.constant 0 : index
    %226 = vector.load %arg3[%c22, %c0_50, %c0_51] : memref<49x8x1xbf16, #tpu.memory_space<vmem>>, vector<1x8x1xbf16>
    %227 = vector.shape_cast %226 : vector<1x8x1xbf16> to vector<8x1xbf16>
    %228 = arith.extf %227 : vector<8x1xbf16> to vector<8x1xf32>
    %229 = arith.extf %225 : vector<1x512xbf16> to vector<1x512xf32>
    %230 = vector.broadcast %228 : vector<8x1xf32> to vector<8x512xf32>
    %231 = vector.broadcast %229 : vector<1x512xf32> to vector<8x512xf32>
    %232 = arith.mulf %230, %231 : vector<8x512xf32>
    %233 = arith.addf %223, %232 : vector<8x512xf32>
    %234 = vector.extract_strided_slice %2 {offsets = [0, 0, 68], sizes = [1, 1, 512], strides = [1, 1, 1]} : vector<1x1x768xbf16> to vector<1x1x512xbf16>
    %235 = vector.shape_cast %234 : vector<1x1x512xbf16> to vector<1x512xbf16>
    %c23 = arith.constant 23 : index
    %c0_52 = arith.constant 0 : index
    %c0_53 = arith.constant 0 : index
    %236 = vector.load %arg3[%c23, %c0_52, %c0_53] : memref<49x8x1xbf16, #tpu.memory_space<vmem>>, vector<1x8x1xbf16>
    %237 = vector.shape_cast %236 : vector<1x8x1xbf16> to vector<8x1xbf16>
    %238 = arith.extf %237 : vector<8x1xbf16> to vector<8x1xf32>
    %239 = arith.extf %235 : vector<1x512xbf16> to vector<1x512xf32>
    %240 = vector.broadcast %238 : vector<8x1xf32> to vector<8x512xf32>
    %241 = vector.broadcast %239 : vector<1x512xf32> to vector<8x512xf32>
    %242 = arith.mulf %240, %241 : vector<8x512xf32>
    %243 = arith.addf %233, %242 : vector<8x512xf32>
    %244 = vector.extract_strided_slice %2 {offsets = [0, 0, 69], sizes = [1, 1, 512], strides = [1, 1, 1]} : vector<1x1x768xbf16> to vector<1x1x512xbf16>
    %245 = vector.shape_cast %244 : vector<1x1x512xbf16> to vector<1x512xbf16>
    %c24 = arith.constant 24 : index
    %c0_54 = arith.constant 0 : index
    %c0_55 = arith.constant 0 : index
    %246 = vector.load %arg3[%c24, %c0_54, %c0_55] : memref<49x8x1xbf16, #tpu.memory_space<vmem>>, vector<1x8x1xbf16>
    %247 = vector.shape_cast %246 : vector<1x8x1xbf16> to vector<8x1xbf16>
    %248 = arith.extf %247 : vector<8x1xbf16> to vector<8x1xf32>
    %249 = arith.extf %245 : vector<1x512xbf16> to vector<1x512xf32>
    %250 = vector.broadcast %248 : vector<8x1xf32> to vector<8x512xf32>
    %251 = vector.broadcast %249 : vector<1x512xf32> to vector<8x512xf32>
    %252 = arith.mulf %250, %251 : vector<8x512xf32>
    %253 = arith.addf %243, %252 : vector<8x512xf32>
    %254 = vector.extract_strided_slice %2 {offsets = [0, 0, 70], sizes = [1, 1, 512], strides = [1, 1, 1]} : vector<1x1x768xbf16> to vector<1x1x512xbf16>
    %255 = vector.shape_cast %254 : vector<1x1x512xbf16> to vector<1x512xbf16>
    %c25 = arith.constant 25 : index
    %c0_56 = arith.constant 0 : index
    %c0_57 = arith.constant 0 : index
    %256 = vector.load %arg3[%c25, %c0_56, %c0_57] : memref<49x8x1xbf16, #tpu.memory_space<vmem>>, vector<1x8x1xbf16>
    %257 = vector.shape_cast %256 : vector<1x8x1xbf16> to vector<8x1xbf16>
    %258 = arith.extf %257 : vector<8x1xbf16> to vector<8x1xf32>
    %259 = arith.extf %255 : vector<1x512xbf16> to vector<1x512xf32>
    %260 = vector.broadcast %258 : vector<8x1xf32> to vector<8x512xf32>
    %261 = vector.broadcast %259 : vector<1x512xf32> to vector<8x512xf32>
    %262 = arith.mulf %260, %261 : vector<8x512xf32>
    %263 = arith.addf %253, %262 : vector<8x512xf32>
    %264 = vector.extract_strided_slice %2 {offsets = [0, 0, 71], sizes = [1, 1, 512], strides = [1, 1, 1]} : vector<1x1x768xbf16> to vector<1x1x512xbf16>
    %265 = vector.shape_cast %264 : vector<1x1x512xbf16> to vector<1x512xbf16>
    %c26 = arith.constant 26 : index
    %c0_58 = arith.constant 0 : index
    %c0_59 = arith.constant 0 : index
    %266 = vector.load %arg3[%c26, %c0_58, %c0_59] : memref<49x8x1xbf16, #tpu.memory_space<vmem>>, vector<1x8x1xbf16>
    %267 = vector.shape_cast %266 : vector<1x8x1xbf16> to vector<8x1xbf16>
    %268 = arith.extf %267 : vector<8x1xbf16> to vector<8x1xf32>
    %269 = arith.extf %265 : vector<1x512xbf16> to vector<1x512xf32>
    %270 = vector.broadcast %268 : vector<8x1xf32> to vector<8x512xf32>
    %271 = vector.broadcast %269 : vector<1x512xf32> to vector<8x512xf32>
    %272 = arith.mulf %270, %271 : vector<8x512xf32>
    %273 = arith.addf %263, %272 : vector<8x512xf32>
    %274 = vector.extract_strided_slice %2 {offsets = [0, 0, 72], sizes = [1, 1, 512], strides = [1, 1, 1]} : vector<1x1x768xbf16> to vector<1x1x512xbf16>
    %275 = vector.shape_cast %274 : vector<1x1x512xbf16> to vector<1x512xbf16>
    %c27 = arith.constant 27 : index
    %c0_60 = arith.constant 0 : index
    %c0_61 = arith.constant 0 : index
    %276 = vector.load %arg3[%c27, %c0_60, %c0_61] : memref<49x8x1xbf16, #tpu.memory_space<vmem>>, vector<1x8x1xbf16>
    %277 = vector.shape_cast %276 : vector<1x8x1xbf16> to vector<8x1xbf16>
    %278 = arith.extf %277 : vector<8x1xbf16> to vector<8x1xf32>
    %279 = arith.extf %275 : vector<1x512xbf16> to vector<1x512xf32>
    %280 = vector.broadcast %278 : vector<8x1xf32> to vector<8x512xf32>
    %281 = vector.broadcast %279 : vector<1x512xf32> to vector<8x512xf32>
    %282 = arith.mulf %280, %281 : vector<8x512xf32>
    %283 = arith.addf %273, %282 : vector<8x512xf32>
    %284 = vector.extract_strided_slice %2 {offsets = [0, 0, 88], sizes = [1, 1, 512], strides = [1, 1, 1]} : vector<1x1x768xbf16> to vector<1x1x512xbf16>
    %285 = vector.shape_cast %284 : vector<1x1x512xbf16> to vector<1x512xbf16>
    %c28 = arith.constant 28 : index
    %c0_62 = arith.constant 0 : index
    %c0_63 = arith.constant 0 : index
    %286 = vector.load %arg3[%c28, %c0_62, %c0_63] : memref<49x8x1xbf16, #tpu.memory_space<vmem>>, vector<1x8x1xbf16>
    %287 = vector.shape_cast %286 : vector<1x8x1xbf16> to vector<8x1xbf16>
    %288 = arith.extf %287 : vector<8x1xbf16> to vector<8x1xf32>
    %289 = arith.extf %285 : vector<1x512xbf16> to vector<1x512xf32>
    %290 = vector.broadcast %288 : vector<8x1xf32> to vector<8x512xf32>
    %291 = vector.broadcast %289 : vector<1x512xf32> to vector<8x512xf32>
    %292 = arith.mulf %290, %291 : vector<8x512xf32>
    %293 = arith.addf %283, %292 : vector<8x512xf32>
    %294 = vector.extract_strided_slice %2 {offsets = [0, 0, 89], sizes = [1, 1, 512], strides = [1, 1, 1]} : vector<1x1x768xbf16> to vector<1x1x512xbf16>
    %295 = vector.shape_cast %294 : vector<1x1x512xbf16> to vector<1x512xbf16>
    %c29 = arith.constant 29 : index
    %c0_64 = arith.constant 0 : index
    %c0_65 = arith.constant 0 : index
    %296 = vector.load %arg3[%c29, %c0_64, %c0_65] : memref<49x8x1xbf16, #tpu.memory_space<vmem>>, vector<1x8x1xbf16>
    %297 = vector.shape_cast %296 : vector<1x8x1xbf16> to vector<8x1xbf16>
    %298 = arith.extf %297 : vector<8x1xbf16> to vector<8x1xf32>
    %299 = arith.extf %295 : vector<1x512xbf16> to vector<1x512xf32>
    %300 = vector.broadcast %298 : vector<8x1xf32> to vector<8x512xf32>
    %301 = vector.broadcast %299 : vector<1x512xf32> to vector<8x512xf32>
    %302 = arith.mulf %300, %301 : vector<8x512xf32>
    %303 = arith.addf %293, %302 : vector<8x512xf32>
    %304 = vector.extract_strided_slice %2 {offsets = [0, 0, 90], sizes = [1, 1, 512], strides = [1, 1, 1]} : vector<1x1x768xbf16> to vector<1x1x512xbf16>
    %305 = vector.shape_cast %304 : vector<1x1x512xbf16> to vector<1x512xbf16>
    %c30 = arith.constant 30 : index
    %c0_66 = arith.constant 0 : index
    %c0_67 = arith.constant 0 : index
    %306 = vector.load %arg3[%c30, %c0_66, %c0_67] : memref<49x8x1xbf16, #tpu.memory_space<vmem>>, vector<1x8x1xbf16>
    %307 = vector.shape_cast %306 : vector<1x8x1xbf16> to vector<8x1xbf16>
    %308 = arith.extf %307 : vector<8x1xbf16> to vector<8x1xf32>
    %309 = arith.extf %305 : vector<1x512xbf16> to vector<1x512xf32>
    %310 = vector.broadcast %308 : vector<8x1xf32> to vector<8x512xf32>
    %311 = vector.broadcast %309 : vector<1x512xf32> to vector<8x512xf32>
    %312 = arith.mulf %310, %311 : vector<8x512xf32>
    %313 = arith.addf %303, %312 : vector<8x512xf32>
    %314 = vector.extract_strided_slice %2 {offsets = [0, 0, 91], sizes = [1, 1, 512], strides = [1, 1, 1]} : vector<1x1x768xbf16> to vector<1x1x512xbf16>
    %315 = vector.shape_cast %314 : vector<1x1x512xbf16> to vector<1x512xbf16>
    %c31 = arith.constant 31 : index
    %c0_68 = arith.constant 0 : index
    %c0_69 = arith.constant 0 : index
    %316 = vector.load %arg3[%c31, %c0_68, %c0_69] : memref<49x8x1xbf16, #tpu.memory_space<vmem>>, vector<1x8x1xbf16>
    %317 = vector.shape_cast %316 : vector<1x8x1xbf16> to vector<8x1xbf16>
    %318 = arith.extf %317 : vector<8x1xbf16> to vector<8x1xf32>
    %319 = arith.extf %315 : vector<1x512xbf16> to vector<1x512xf32>
    %320 = vector.broadcast %318 : vector<8x1xf32> to vector<8x512xf32>
    %321 = vector.broadcast %319 : vector<1x512xf32> to vector<8x512xf32>
    %322 = arith.mulf %320, %321 : vector<8x512xf32>
    %323 = arith.addf %313, %322 : vector<8x512xf32>
    %324 = vector.extract_strided_slice %2 {offsets = [0, 0, 92], sizes = [1, 1, 512], strides = [1, 1, 1]} : vector<1x1x768xbf16> to vector<1x1x512xbf16>
    %325 = vector.shape_cast %324 : vector<1x1x512xbf16> to vector<1x512xbf16>
    %c32 = arith.constant 32 : index
    %c0_70 = arith.constant 0 : index
    %c0_71 = arith.constant 0 : index
    %326 = vector.load %arg3[%c32, %c0_70, %c0_71] : memref<49x8x1xbf16, #tpu.memory_space<vmem>>, vector<1x8x1xbf16>
    %327 = vector.shape_cast %326 : vector<1x8x1xbf16> to vector<8x1xbf16>
    %328 = arith.extf %327 : vector<8x1xbf16> to vector<8x1xf32>
    %329 = arith.extf %325 : vector<1x512xbf16> to vector<1x512xf32>
    %330 = vector.broadcast %328 : vector<8x1xf32> to vector<8x512xf32>
    %331 = vector.broadcast %329 : vector<1x512xf32> to vector<8x512xf32>
    %332 = arith.mulf %330, %331 : vector<8x512xf32>
    %333 = arith.addf %323, %332 : vector<8x512xf32>
    %334 = vector.extract_strided_slice %2 {offsets = [0, 0, 93], sizes = [1, 1, 512], strides = [1, 1, 1]} : vector<1x1x768xbf16> to vector<1x1x512xbf16>
    %335 = vector.shape_cast %334 : vector<1x1x512xbf16> to vector<1x512xbf16>
    %c33 = arith.constant 33 : index
    %c0_72 = arith.constant 0 : index
    %c0_73 = arith.constant 0 : index
    %336 = vector.load %arg3[%c33, %c0_72, %c0_73] : memref<49x8x1xbf16, #tpu.memory_space<vmem>>, vector<1x8x1xbf16>
    %337 = vector.shape_cast %336 : vector<1x8x1xbf16> to vector<8x1xbf16>
    %338 = arith.extf %337 : vector<8x1xbf16> to vector<8x1xf32>
    %339 = arith.extf %335 : vector<1x512xbf16> to vector<1x512xf32>
    %340 = vector.broadcast %338 : vector<8x1xf32> to vector<8x512xf32>
    %341 = vector.broadcast %339 : vector<1x512xf32> to vector<8x512xf32>
    %342 = arith.mulf %340, %341 : vector<8x512xf32>
    %343 = arith.addf %333, %342 : vector<8x512xf32>
    %344 = vector.extract_strided_slice %2 {offsets = [0, 0, 94], sizes = [1, 1, 512], strides = [1, 1, 1]} : vector<1x1x768xbf16> to vector<1x1x512xbf16>
    %345 = vector.shape_cast %344 : vector<1x1x512xbf16> to vector<1x512xbf16>
    %c34 = arith.constant 34 : index
    %c0_74 = arith.constant 0 : index
    %c0_75 = arith.constant 0 : index
    %346 = vector.load %arg3[%c34, %c0_74, %c0_75] : memref<49x8x1xbf16, #tpu.memory_space<vmem>>, vector<1x8x1xbf16>
    %347 = vector.shape_cast %346 : vector<1x8x1xbf16> to vector<8x1xbf16>
    %348 = arith.extf %347 : vector<8x1xbf16> to vector<8x1xf32>
    %349 = arith.extf %345 : vector<1x512xbf16> to vector<1x512xf32>
    %350 = vector.broadcast %348 : vector<8x1xf32> to vector<8x512xf32>
    %351 = vector.broadcast %349 : vector<1x512xf32> to vector<8x512xf32>
    %352 = arith.mulf %350, %351 : vector<8x512xf32>
    %353 = arith.addf %343, %352 : vector<8x512xf32>
    %354 = vector.extract_strided_slice %2 {offsets = [0, 0, 110], sizes = [1, 1, 512], strides = [1, 1, 1]} : vector<1x1x768xbf16> to vector<1x1x512xbf16>
    %355 = vector.shape_cast %354 : vector<1x1x512xbf16> to vector<1x512xbf16>
    %c35 = arith.constant 35 : index
    %c0_76 = arith.constant 0 : index
    %c0_77 = arith.constant 0 : index
    %356 = vector.load %arg3[%c35, %c0_76, %c0_77] : memref<49x8x1xbf16, #tpu.memory_space<vmem>>, vector<1x8x1xbf16>
    %357 = vector.shape_cast %356 : vector<1x8x1xbf16> to vector<8x1xbf16>
    %358 = arith.extf %357 : vector<8x1xbf16> to vector<8x1xf32>
    %359 = arith.extf %355 : vector<1x512xbf16> to vector<1x512xf32>
    %360 = vector.broadcast %358 : vector<8x1xf32> to vector<8x512xf32>
    %361 = vector.broadcast %359 : vector<1x512xf32> to vector<8x512xf32>
    %362 = arith.mulf %360, %361 : vector<8x512xf32>
    %363 = arith.addf %353, %362 : vector<8x512xf32>
    %364 = vector.extract_strided_slice %2 {offsets = [0, 0, 111], sizes = [1, 1, 512], strides = [1, 1, 1]} : vector<1x1x768xbf16> to vector<1x1x512xbf16>
    %365 = vector.shape_cast %364 : vector<1x1x512xbf16> to vector<1x512xbf16>
    %c36 = arith.constant 36 : index
    %c0_78 = arith.constant 0 : index
    %c0_79 = arith.constant 0 : index
    %366 = vector.load %arg3[%c36, %c0_78, %c0_79] : memref<49x8x1xbf16, #tpu.memory_space<vmem>>, vector<1x8x1xbf16>
    %367 = vector.shape_cast %366 : vector<1x8x1xbf16> to vector<8x1xbf16>
    %368 = arith.extf %367 : vector<8x1xbf16> to vector<8x1xf32>
    %369 = arith.extf %365 : vector<1x512xbf16> to vector<1x512xf32>
    %370 = vector.broadcast %368 : vector<8x1xf32> to vector<8x512xf32>
    %371 = vector.broadcast %369 : vector<1x512xf32> to vector<8x512xf32>
    %372 = arith.mulf %370, %371 : vector<8x512xf32>
    %373 = arith.addf %363, %372 : vector<8x512xf32>
    %374 = vector.extract_strided_slice %2 {offsets = [0, 0, 112], sizes = [1, 1, 512], strides = [1, 1, 1]} : vector<1x1x768xbf16> to vector<1x1x512xbf16>
    %375 = vector.shape_cast %374 : vector<1x1x512xbf16> to vector<1x512xbf16>
    %c37 = arith.constant 37 : index
    %c0_80 = arith.constant 0 : index
    %c0_81 = arith.constant 0 : index
    %376 = vector.load %arg3[%c37, %c0_80, %c0_81] : memref<49x8x1xbf16, #tpu.memory_space<vmem>>, vector<1x8x1xbf16>
    %377 = vector.shape_cast %376 : vector<1x8x1xbf16> to vector<8x1xbf16>
    %378 = arith.extf %377 : vector<8x1xbf16> to vector<8x1xf32>
    %379 = arith.extf %375 : vector<1x512xbf16> to vector<1x512xf32>
    %380 = vector.broadcast %378 : vector<8x1xf32> to vector<8x512xf32>
    %381 = vector.broadcast %379 : vector<1x512xf32> to vector<8x512xf32>
    %382 = arith.mulf %380, %381 : vector<8x512xf32>
    %383 = arith.addf %373, %382 : vector<8x512xf32>
    %384 = vector.extract_strided_slice %2 {offsets = [0, 0, 113], sizes = [1, 1, 512], strides = [1, 1, 1]} : vector<1x1x768xbf16> to vector<1x1x512xbf16>
    %385 = vector.shape_cast %384 : vector<1x1x512xbf16> to vector<1x512xbf16>
    %c38 = arith.constant 38 : index
    %c0_82 = arith.constant 0 : index
    %c0_83 = arith.constant 0 : index
    %386 = vector.load %arg3[%c38, %c0_82, %c0_83] : memref<49x8x1xbf16, #tpu.memory_space<vmem>>, vector<1x8x1xbf16>
    %387 = vector.shape_cast %386 : vector<1x8x1xbf16> to vector<8x1xbf16>
    %388 = arith.extf %387 : vector<8x1xbf16> to vector<8x1xf32>
    %389 = arith.extf %385 : vector<1x512xbf16> to vector<1x512xf32>
    %390 = vector.broadcast %388 : vector<8x1xf32> to vector<8x512xf32>
    %391 = vector.broadcast %389 : vector<1x512xf32> to vector<8x512xf32>
    %392 = arith.mulf %390, %391 : vector<8x512xf32>
    %393 = arith.addf %383, %392 : vector<8x512xf32>
    %394 = vector.extract_strided_slice %2 {offsets = [0, 0, 114], sizes = [1, 1, 512], strides = [1, 1, 1]} : vector<1x1x768xbf16> to vector<1x1x512xbf16>
    %395 = vector.shape_cast %394 : vector<1x1x512xbf16> to vector<1x512xbf16>
    %c39 = arith.constant 39 : index
    %c0_84 = arith.constant 0 : index
    %c0_85 = arith.constant 0 : index
    %396 = vector.load %arg3[%c39, %c0_84, %c0_85] : memref<49x8x1xbf16, #tpu.memory_space<vmem>>, vector<1x8x1xbf16>
    %397 = vector.shape_cast %396 : vector<1x8x1xbf16> to vector<8x1xbf16>
    %398 = arith.extf %397 : vector<8x1xbf16> to vector<8x1xf32>
    %399 = arith.extf %395 : vector<1x512xbf16> to vector<1x512xf32>
    %400 = vector.broadcast %398 : vector<8x1xf32> to vector<8x512xf32>
    %401 = vector.broadcast %399 : vector<1x512xf32> to vector<8x512xf32>
    %402 = arith.mulf %400, %401 : vector<8x512xf32>
    %403 = arith.addf %393, %402 : vector<8x512xf32>
    %404 = vector.extract_strided_slice %2 {offsets = [0, 0, 115], sizes = [1, 1, 512], strides = [1, 1, 1]} : vector<1x1x768xbf16> to vector<1x1x512xbf16>
    %405 = vector.shape_cast %404 : vector<1x1x512xbf16> to vector<1x512xbf16>
    %c40 = arith.constant 40 : index
    %c0_86 = arith.constant 0 : index
    %c0_87 = arith.constant 0 : index
    %406 = vector.load %arg3[%c40, %c0_86, %c0_87] : memref<49x8x1xbf16, #tpu.memory_space<vmem>>, vector<1x8x1xbf16>
    %407 = vector.shape_cast %406 : vector<1x8x1xbf16> to vector<8x1xbf16>
    %408 = arith.extf %407 : vector<8x1xbf16> to vector<8x1xf32>
    %409 = arith.extf %405 : vector<1x512xbf16> to vector<1x512xf32>
    %410 = vector.broadcast %408 : vector<8x1xf32> to vector<8x512xf32>
    %411 = vector.broadcast %409 : vector<1x512xf32> to vector<8x512xf32>
    %412 = arith.mulf %410, %411 : vector<8x512xf32>
    %413 = arith.addf %403, %412 : vector<8x512xf32>
    %414 = vector.extract_strided_slice %2 {offsets = [0, 0, 116], sizes = [1, 1, 512], strides = [1, 1, 1]} : vector<1x1x768xbf16> to vector<1x1x512xbf16>
    %415 = vector.shape_cast %414 : vector<1x1x512xbf16> to vector<1x512xbf16>
    %c41 = arith.constant 41 : index
    %c0_88 = arith.constant 0 : index
    %c0_89 = arith.constant 0 : index
    %416 = vector.load %arg3[%c41, %c0_88, %c0_89] : memref<49x8x1xbf16, #tpu.memory_space<vmem>>, vector<1x8x1xbf16>
    %417 = vector.shape_cast %416 : vector<1x8x1xbf16> to vector<8x1xbf16>
    %418 = arith.extf %417 : vector<8x1xbf16> to vector<8x1xf32>
    %419 = arith.extf %415 : vector<1x512xbf16> to vector<1x512xf32>
    %420 = vector.broadcast %418 : vector<8x1xf32> to vector<8x512xf32>
    %421 = vector.broadcast %419 : vector<1x512xf32> to vector<8x512xf32>
    %422 = arith.mulf %420, %421 : vector<8x512xf32>
    %423 = arith.addf %413, %422 : vector<8x512xf32>
    %424 = vector.extract_strided_slice %2 {offsets = [0, 0, 132], sizes = [1, 1, 512], strides = [1, 1, 1]} : vector<1x1x768xbf16> to vector<1x1x512xbf16>
    %425 = vector.shape_cast %424 : vector<1x1x512xbf16> to vector<1x512xbf16>
    %c42 = arith.constant 42 : index
    %c0_90 = arith.constant 0 : index
    %c0_91 = arith.constant 0 : index
    %426 = vector.load %arg3[%c42, %c0_90, %c0_91] : memref<49x8x1xbf16, #tpu.memory_space<vmem>>, vector<1x8x1xbf16>
    %427 = vector.shape_cast %426 : vector<1x8x1xbf16> to vector<8x1xbf16>
    %428 = arith.extf %427 : vector<8x1xbf16> to vector<8x1xf32>
    %429 = arith.extf %425 : vector<1x512xbf16> to vector<1x512xf32>
    %430 = vector.broadcast %428 : vector<8x1xf32> to vector<8x512xf32>
    %431 = vector.broadcast %429 : vector<1x512xf32> to vector<8x512xf32>
    %432 = arith.mulf %430, %431 : vector<8x512xf32>
    %433 = arith.addf %423, %432 : vector<8x512xf32>
    %434 = vector.extract_strided_slice %2 {offsets = [0, 0, 133], sizes = [1, 1, 512], strides = [1, 1, 1]} : vector<1x1x768xbf16> to vector<1x1x512xbf16>
    %435 = vector.shape_cast %434 : vector<1x1x512xbf16> to vector<1x512xbf16>
    %c43 = arith.constant 43 : index
    %c0_92 = arith.constant 0 : index
    %c0_93 = arith.constant 0 : index
    %436 = vector.load %arg3[%c43, %c0_92, %c0_93] : memref<49x8x1xbf16, #tpu.memory_space<vmem>>, vector<1x8x1xbf16>
    %437 = vector.shape_cast %436 : vector<1x8x1xbf16> to vector<8x1xbf16>
    %438 = arith.extf %437 : vector<8x1xbf16> to vector<8x1xf32>
    %439 = arith.extf %435 : vector<1x512xbf16> to vector<1x512xf32>
    %440 = vector.broadcast %438 : vector<8x1xf32> to vector<8x512xf32>
    %441 = vector.broadcast %439 : vector<1x512xf32> to vector<8x512xf32>
    %442 = arith.mulf %440, %441 : vector<8x512xf32>
    %443 = arith.addf %433, %442 : vector<8x512xf32>
    %444 = vector.extract_strided_slice %2 {offsets = [0, 0, 134], sizes = [1, 1, 512], strides = [1, 1, 1]} : vector<1x1x768xbf16> to vector<1x1x512xbf16>
    %445 = vector.shape_cast %444 : vector<1x1x512xbf16> to vector<1x512xbf16>
    %c44 = arith.constant 44 : index
    %c0_94 = arith.constant 0 : index
    %c0_95 = arith.constant 0 : index
    %446 = vector.load %arg3[%c44, %c0_94, %c0_95] : memref<49x8x1xbf16, #tpu.memory_space<vmem>>, vector<1x8x1xbf16>
    %447 = vector.shape_cast %446 : vector<1x8x1xbf16> to vector<8x1xbf16>
    %448 = arith.extf %447 : vector<8x1xbf16> to vector<8x1xf32>
    %449 = arith.extf %445 : vector<1x512xbf16> to vector<1x512xf32>
    %450 = vector.broadcast %448 : vector<8x1xf32> to vector<8x512xf32>
    %451 = vector.broadcast %449 : vector<1x512xf32> to vector<8x512xf32>
    %452 = arith.mulf %450, %451 : vector<8x512xf32>
    %453 = arith.addf %443, %452 : vector<8x512xf32>
    %454 = vector.extract_strided_slice %2 {offsets = [0, 0, 135], sizes = [1, 1, 512], strides = [1, 1, 1]} : vector<1x1x768xbf16> to vector<1x1x512xbf16>
    %455 = vector.shape_cast %454 : vector<1x1x512xbf16> to vector<1x512xbf16>
    %c45 = arith.constant 45 : index
    %c0_96 = arith.constant 0 : index
    %c0_97 = arith.constant 0 : index
    %456 = vector.load %arg3[%c45, %c0_96, %c0_97] : memref<49x8x1xbf16, #tpu.memory_space<vmem>>, vector<1x8x1xbf16>
    %457 = vector.shape_cast %456 : vector<1x8x1xbf16> to vector<8x1xbf16>
    %458 = arith.extf %457 : vector<8x1xbf16> to vector<8x1xf32>
    %459 = arith.extf %455 : vector<1x512xbf16> to vector<1x512xf32>
    %460 = vector.broadcast %458 : vector<8x1xf32> to vector<8x512xf32>
    %461 = vector.broadcast %459 : vector<1x512xf32> to vector<8x512xf32>
    %462 = arith.mulf %460, %461 : vector<8x512xf32>
    %463 = arith.addf %453, %462 : vector<8x512xf32>
    %464 = vector.extract_strided_slice %2 {offsets = [0, 0, 136], sizes = [1, 1, 512], strides = [1, 1, 1]} : vector<1x1x768xbf16> to vector<1x1x512xbf16>
    %465 = vector.shape_cast %464 : vector<1x1x512xbf16> to vector<1x512xbf16>
    %c46 = arith.constant 46 : index
    %c0_98 = arith.constant 0 : index
    %c0_99 = arith.constant 0 : index
    %466 = vector.load %arg3[%c46, %c0_98, %c0_99] : memref<49x8x1xbf16, #tpu.memory_space<vmem>>, vector<1x8x1xbf16>
    %467 = vector.shape_cast %466 : vector<1x8x1xbf16> to vector<8x1xbf16>
    %468 = arith.extf %467 : vector<8x1xbf16> to vector<8x1xf32>
    %469 = arith.extf %465 : vector<1x512xbf16> to vector<1x512xf32>
    %470 = vector.broadcast %468 : vector<8x1xf32> to vector<8x512xf32>
    %471 = vector.broadcast %469 : vector<1x512xf32> to vector<8x512xf32>
    %472 = arith.mulf %470, %471 : vector<8x512xf32>
    %473 = arith.addf %463, %472 : vector<8x512xf32>
    %474 = vector.extract_strided_slice %2 {offsets = [0, 0, 137], sizes = [1, 1, 512], strides = [1, 1, 1]} : vector<1x1x768xbf16> to vector<1x1x512xbf16>
    %475 = vector.shape_cast %474 : vector<1x1x512xbf16> to vector<1x512xbf16>
    %c47 = arith.constant 47 : index
    %c0_100 = arith.constant 0 : index
    %c0_101 = arith.constant 0 : index
    %476 = vector.load %arg3[%c47, %c0_100, %c0_101] : memref<49x8x1xbf16, #tpu.memory_space<vmem>>, vector<1x8x1xbf16>
    %477 = vector.shape_cast %476 : vector<1x8x1xbf16> to vector<8x1xbf16>
    %478 = arith.extf %477 : vector<8x1xbf16> to vector<8x1xf32>
    %479 = arith.extf %475 : vector<1x512xbf16> to vector<1x512xf32>
    %480 = vector.broadcast %478 : vector<8x1xf32> to vector<8x512xf32>
    %481 = vector.broadcast %479 : vector<1x512xf32> to vector<8x512xf32>
    %482 = arith.mulf %480, %481 : vector<8x512xf32>
    %483 = arith.addf %473, %482 : vector<8x512xf32>
    %484 = vector.extract_strided_slice %2 {offsets = [0, 0, 138], sizes = [1, 1, 512], strides = [1, 1, 1]} : vector<1x1x768xbf16> to vector<1x1x512xbf16>
    %485 = vector.shape_cast %484 : vector<1x1x512xbf16> to vector<1x512xbf16>
    %c48 = arith.constant 48 : index
    %c0_102 = arith.constant 0 : index
    %c0_103 = arith.constant 0 : index
    %486 = vector.load %arg3[%c48, %c0_102, %c0_103] : memref<49x8x1xbf16, #tpu.memory_space<vmem>>, vector<1x8x1xbf16>
    %487 = vector.shape_cast %486 : vector<1x8x1xbf16> to vector<8x1xbf16>
    %488 = arith.extf %487 : vector<8x1xbf16> to vector<8x1xf32>
    %489 = arith.extf %485 : vector<1x512xbf16> to vector<1x512xf32>
    %490 = vector.broadcast %488 : vector<8x1xf32> to vector<8x512xf32>
    %491 = vector.broadcast %489 : vector<1x512xf32> to vector<8x512xf32>
    %492 = arith.mulf %490, %491 : vector<8x512xf32>
    %493 = arith.addf %483, %492 : vector<8x512xf32>
    %c0_104 = arith.constant 0 : index
    %c0_105 = arith.constant 0 : index
    %494 = vector.load %arg4[%c0_104, %c0_105] : memref<8x1xf32, #tpu.memory_space<vmem>>, vector<8x1xf32>
    %495 = vector.broadcast %494 : vector<8x1xf32> to vector<8x512xf32>
    %496 = arith.addf %493, %495 : vector<8x512xf32>
    %cst_106 = arith.constant 0.000000e+00 : f32
    %497 = vector.broadcast %cst_106 : f32 to vector<8x512xf32>
    %498 = arith.cmpf ogt, %496, %497 : vector<8x512xf32>
    %cst_107 = arith.constant 2.500000e-01 : f32
    %499 = vector.broadcast %cst_107 : f32 to vector<8x512xf32>
    %500 = arith.mulf %499, %496 : vector<8x512xf32>
    %501 = arith.select %498, %496, %500 : vector<8x512xi1>, vector<8x512xf32>
    %502 = arith.truncf %501 : vector<8x512xf32> to vector<8x512xbf16>
    %c0_108 = arith.constant 0 : index
    %c0_109 = arith.constant 0 : index
    %503 = vector.load %arg5[%c0_108, %c0_109] : memref<8x512xbf16, #tpu.memory_space<vmem>>, vector<8x512xbf16>
    tpu.vector_store %arg5[%c0_108, %c0_109], %502 {strides = array<i32>} : memref<8x512xbf16, #tpu.memory_space<vmem>>, vector<8x512xbf16>,
    return
  }
  func.func @transform_0(%arg0: i32) -> (i32, i32, i32) {
    %c0_i32 = arith.constant 0 : i32
    %c0_i32_0 = arith.constant 0 : i32
    %c0_i32_1 = arith.constant 0 : i32
    return %c0_i32, %c0_i32_0, %arg0 : i32, i32, i32
  }
  func.func @transform_1(%arg0: i32) -> (i32, i32, i32) {
    %c1_i32 = arith.constant 1 : i32
    %0 = arith.addi %arg0, %c1_i32 : i32
    %c2_i32 = arith.constant 2 : i32
    %1 = arith.muli %0, %c2_i32 : i32
    %c0_i32 = arith.constant 0 : i32
    %c0_i32_0 = arith.constant 0 : i32
    %c0_i32_1 = arith.constant 0 : i32
    return %c0_i32, %c0_i32_0, %1 : i32, i32, i32
  }
  func.func @transform_2(%arg0: i32) -> (i32, i32, i32) {
    %c0_i32 = arith.constant 0 : i32
    %c0_i32_0 = arith.constant 0 : i32
    %c0_i32_1 = arith.constant 0 : i32
    %c0_i32_2 = arith.constant 0 : i32
    return %c0_i32, %c0_i32_0, %c0_i32_1 : i32, i32, i32
  }
  func.func @transform_3(%arg0: i32) -> (i32, i32) {
    %c0_i32 = arith.constant 0 : i32
    %c0_i32_0 = arith.constant 0 : i32
    %c0_i32_1 = arith.constant 0 : i32
    return %c0_i32, %c0_i32_0 : i32, i32
  }
  func.func @transform_4(%arg0: i32) -> (i32, i32) {
    %c0_i32 = arith.constant 0 : i32
    %c0_i32_0 = arith.constant 0 : i32
    return %c0_i32, %arg0 : i32, i32
  }
}

module attributes {stable_mosaic.version = 11 : i64} {
  func.func @kernel(%arg0: i32, %arg1: memref<4x8x128xbf16, #tpu.memory_space<vmem>>, %arg2: memref<4x8x128xbf16, #tpu.memory_space<vmem>>, %arg3: memref<9x16x8xbf16, #tpu.memory_space<vmem>>, %arg4: memref<16x1xf32, #tpu.memory_space<vmem>>, %arg5: memref<16x128xbf16, #tpu.memory_space<vmem>>) attributes {dimension_semantics = [#tpu.dimension_semantics<parallel>], iteration_bounds = array<i64: 2>, scalar_prefetch = 0 : i64, scratch_operands = 0 : i64, tpu.core_type = #tpu.core_type<tc>, window_params = [{transform_indices = @transform_0, window_bounds = array<i64: 4, 8, 128>}, {transform_indices = @transform_1, window_bounds = array<i64: 4, 8, 128>}, {pipeline_mode = #tpu.pipeline_mode<synchronous>, transform_indices = @transform_2, window_bounds = array<i64: 9, 16, 8>}, {pipeline_mode = #tpu.pipeline_mode<synchronous>, transform_indices = @transform_3, window_bounds = array<i64: 16, 1>}, {transform_indices = @transform_4, window_bounds = array<i64: 16, 128>}]} {
    %c0 = arith.constant 0 : index
    %c0_0 = arith.constant 0 : index
    %c0_1 = arith.constant 0 : index
    %0 = vector.load %arg1[%c0, %c0_0, %c0_1] : memref<4x8x128xbf16, #tpu.memory_space<vmem>>, vector<4x8x128xbf16>
    %c0_2 = arith.constant 0 : index
    %c0_3 = arith.constant 0 : index
    %c0_4 = arith.constant 0 : index
    %1 = vector.load %arg2[%c0_2, %c0_3, %c0_4] : memref<4x8x128xbf16, #tpu.memory_space<vmem>>, vector<4x8x128xbf16>
    %2 = tpu.concatenate %0, %1 in 2 : vector<4x8x128xbf16>, vector<4x8x128xbf16> -> vector<4x8x256xbf16>
    %cst = arith.constant 0.000000e+00 : f32
    %3 = vector.broadcast %cst : f32 to vector<16x128xf32>
    %4 = vector.extract_strided_slice %2 {offsets = [0, 0, 0], sizes = [1, 8, 128], strides = [1, 1, 1]} : vector<4x8x256xbf16> to vector<1x8x128xbf16>
    %5 = vector.shape_cast %4 : vector<1x8x128xbf16> to vector<8x128xbf16>
    %c0_5 = arith.constant 0 : index
    %c0_6 = arith.constant 0 : index
    %c0_7 = arith.constant 0 : index
    %6 = vector.load %arg3[%c0_5, %c0_6, %c0_7] : memref<9x16x8xbf16, #tpu.memory_space<vmem>>, vector<1x16x8xbf16>
    %7 = vector.shape_cast %6 : vector<1x16x8xbf16> to vector<16x8xbf16>
    %cst_8 = arith.constant dense<0.000000e+00> : vector<16x128xf32>
    %8 = tpu.matmul %7, %5, %cst_8 {dimension_numbers = #tpu.dot_dimension_numbers<[1], [0], [0], [1], [0, 0, 1, 1], [], []>} : vector<16x8xbf16>, vector<8x128xbf16>, vector<16x128xf32> -> vector<16x128xf32>
    %9 = arith.addf %3, %8 : vector<16x128xf32>
    %10 = vector.extract_strided_slice %2 {offsets = [0, 0, 1], sizes = [1, 8, 128], strides = [1, 1, 1]} : vector<4x8x256xbf16> to vector<1x8x128xbf16>
    %11 = vector.shape_cast %10 : vector<1x8x128xbf16> to vector<8x128xbf16>
    %c1 = arith.constant 1 : index
    %c0_9 = arith.constant 0 : index
    %c0_10 = arith.constant 0 : index
    %12 = vector.load %arg3[%c1, %c0_9, %c0_10] : memref<9x16x8xbf16, #tpu.memory_space<vmem>>, vector<1x16x8xbf16>
    %13 = vector.shape_cast %12 : vector<1x16x8xbf16> to vector<16x8xbf16>
    %cst_11 = arith.constant dense<0.000000e+00> : vector<16x128xf32>
    %14 = tpu.matmul %13, %11, %cst_11 {dimension_numbers = #tpu.dot_dimension_numbers<[1], [0], [0], [1], [0, 0, 1, 1], [], []>} : vector<16x8xbf16>, vector<8x128xbf16>, vector<16x128xf32> -> vector<16x128xf32>
    %15 = arith.addf %9, %14 : vector<16x128xf32>
    %16 = vector.extract_strided_slice %2 {offsets = [0, 0, 9], sizes = [1, 8, 128], strides = [1, 1, 1]} : vector<4x8x256xbf16> to vector<1x8x128xbf16>
    %17 = vector.shape_cast %16 : vector<1x8x128xbf16> to vector<8x128xbf16>
    %c2 = arith.constant 2 : index
    %c0_12 = arith.constant 0 : index
    %c0_13 = arith.constant 0 : index
    %18 = vector.load %arg3[%c2, %c0_12, %c0_13] : memref<9x16x8xbf16, #tpu.memory_space<vmem>>, vector<1x16x8xbf16>
    %19 = vector.shape_cast %18 : vector<1x16x8xbf16> to vector<16x8xbf16>
    %cst_14 = arith.constant dense<0.000000e+00> : vector<16x128xf32>
    %20 = tpu.matmul %19, %17, %cst_14 {dimension_numbers = #tpu.dot_dimension_numbers<[1], [0], [0], [1], [0, 0, 1, 1], [], []>} : vector<16x8xbf16>, vector<8x128xbf16>, vector<16x128xf32> -> vector<16x128xf32>
    %21 = arith.addf %15, %20 : vector<16x128xf32>
    %22 = vector.extract_strided_slice %2 {offsets = [0, 0, 10], sizes = [1, 8, 128], strides = [1, 1, 1]} : vector<4x8x256xbf16> to vector<1x8x128xbf16>
    %23 = vector.shape_cast %22 : vector<1x8x128xbf16> to vector<8x128xbf16>
    %c3 = arith.constant 3 : index
    %c0_15 = arith.constant 0 : index
    %c0_16 = arith.constant 0 : index
    %24 = vector.load %arg3[%c3, %c0_15, %c0_16] : memref<9x16x8xbf16, #tpu.memory_space<vmem>>, vector<1x16x8xbf16>
    %25 = vector.shape_cast %24 : vector<1x16x8xbf16> to vector<16x8xbf16>
    %cst_17 = arith.constant dense<0.000000e+00> : vector<16x128xf32>
    %26 = tpu.matmul %25, %23, %cst_17 {dimension_numbers = #tpu.dot_dimension_numbers<[1], [0], [0], [1], [0, 0, 1, 1], [], []>} : vector<16x8xbf16>, vector<8x128xbf16>, vector<16x128xf32> -> vector<16x128xf32>
    %27 = arith.addf %21, %26 : vector<16x128xf32>
    %28 = vector.extract_strided_slice %2 {offsets = [1, 0, 0], sizes = [1, 8, 128], strides = [1, 1, 1]} : vector<4x8x256xbf16> to vector<1x8x128xbf16>
    %29 = vector.shape_cast %28 : vector<1x8x128xbf16> to vector<8x128xbf16>
    %c4 = arith.constant 4 : index
    %c0_18 = arith.constant 0 : index
    %c0_19 = arith.constant 0 : index
    %30 = vector.load %arg3[%c4, %c0_18, %c0_19] : memref<9x16x8xbf16, #tpu.memory_space<vmem>>, vector<1x16x8xbf16>
    %31 = vector.shape_cast %30 : vector<1x16x8xbf16> to vector<16x8xbf16>
    %cst_20 = arith.constant dense<0.000000e+00> : vector<16x128xf32>
    %32 = tpu.matmul %31, %29, %cst_20 {dimension_numbers = #tpu.dot_dimension_numbers<[1], [0], [0], [1], [0, 0, 1, 1], [], []>} : vector<16x8xbf16>, vector<8x128xbf16>, vector<16x128xf32> -> vector<16x128xf32>
    %33 = arith.addf %27, %32 : vector<16x128xf32>
    %34 = vector.extract_strided_slice %2 {offsets = [1, 0, 9], sizes = [1, 8, 128], strides = [1, 1, 1]} : vector<4x8x256xbf16> to vector<1x8x128xbf16>
    %35 = vector.shape_cast %34 : vector<1x8x128xbf16> to vector<8x128xbf16>
    %c5 = arith.constant 5 : index
    %c0_21 = arith.constant 0 : index
    %c0_22 = arith.constant 0 : index
    %36 = vector.load %arg3[%c5, %c0_21, %c0_22] : memref<9x16x8xbf16, #tpu.memory_space<vmem>>, vector<1x16x8xbf16>
    %37 = vector.shape_cast %36 : vector<1x16x8xbf16> to vector<16x8xbf16>
    %cst_23 = arith.constant dense<0.000000e+00> : vector<16x128xf32>
    %38 = tpu.matmul %37, %35, %cst_23 {dimension_numbers = #tpu.dot_dimension_numbers<[1], [0], [0], [1], [0, 0, 1, 1], [], []>} : vector<16x8xbf16>, vector<8x128xbf16>, vector<16x128xf32> -> vector<16x128xf32>
    %39 = arith.addf %33, %38 : vector<16x128xf32>
    %40 = vector.extract_strided_slice %2 {offsets = [2, 0, 0], sizes = [1, 8, 128], strides = [1, 1, 1]} : vector<4x8x256xbf16> to vector<1x8x128xbf16>
    %41 = vector.shape_cast %40 : vector<1x8x128xbf16> to vector<8x128xbf16>
    %c6 = arith.constant 6 : index
    %c0_24 = arith.constant 0 : index
    %c0_25 = arith.constant 0 : index
    %42 = vector.load %arg3[%c6, %c0_24, %c0_25] : memref<9x16x8xbf16, #tpu.memory_space<vmem>>, vector<1x16x8xbf16>
    %43 = vector.shape_cast %42 : vector<1x16x8xbf16> to vector<16x8xbf16>
    %cst_26 = arith.constant dense<0.000000e+00> : vector<16x128xf32>
    %44 = tpu.matmul %43, %41, %cst_26 {dimension_numbers = #tpu.dot_dimension_numbers<[1], [0], [0], [1], [0, 0, 1, 1], [], []>} : vector<16x8xbf16>, vector<8x128xbf16>, vector<16x128xf32> -> vector<16x128xf32>
    %45 = arith.addf %39, %44 : vector<16x128xf32>
    %46 = vector.extract_strided_slice %2 {offsets = [2, 0, 1], sizes = [1, 8, 128], strides = [1, 1, 1]} : vector<4x8x256xbf16> to vector<1x8x128xbf16>
    %47 = vector.shape_cast %46 : vector<1x8x128xbf16> to vector<8x128xbf16>
    %c7 = arith.constant 7 : index
    %c0_27 = arith.constant 0 : index
    %c0_28 = arith.constant 0 : index
    %48 = vector.load %arg3[%c7, %c0_27, %c0_28] : memref<9x16x8xbf16, #tpu.memory_space<vmem>>, vector<1x16x8xbf16>
    %49 = vector.shape_cast %48 : vector<1x16x8xbf16> to vector<16x8xbf16>
    %cst_29 = arith.constant dense<0.000000e+00> : vector<16x128xf32>
    %50 = tpu.matmul %49, %47, %cst_29 {dimension_numbers = #tpu.dot_dimension_numbers<[1], [0], [0], [1], [0, 0, 1, 1], [], []>} : vector<16x8xbf16>, vector<8x128xbf16>, vector<16x128xf32> -> vector<16x128xf32>
    %51 = arith.addf %45, %50 : vector<16x128xf32>
    %52 = vector.extract_strided_slice %2 {offsets = [3, 0, 0], sizes = [1, 8, 128], strides = [1, 1, 1]} : vector<4x8x256xbf16> to vector<1x8x128xbf16>
    %53 = vector.shape_cast %52 : vector<1x8x128xbf16> to vector<8x128xbf16>
    %c8 = arith.constant 8 : index
    %c0_30 = arith.constant 0 : index
    %c0_31 = arith.constant 0 : index
    %54 = vector.load %arg3[%c8, %c0_30, %c0_31] : memref<9x16x8xbf16, #tpu.memory_space<vmem>>, vector<1x16x8xbf16>
    %55 = vector.shape_cast %54 : vector<1x16x8xbf16> to vector<16x8xbf16>
    %cst_32 = arith.constant dense<0.000000e+00> : vector<16x128xf32>
    %56 = tpu.matmul %55, %53, %cst_32 {dimension_numbers = #tpu.dot_dimension_numbers<[1], [0], [0], [1], [0, 0, 1, 1], [], []>} : vector<16x8xbf16>, vector<8x128xbf16>, vector<16x128xf32> -> vector<16x128xf32>
    %57 = arith.addf %51, %56 : vector<16x128xf32>
    %c0_33 = arith.constant 0 : index
    %c0_34 = arith.constant 0 : index
    %58 = vector.load %arg4[%c0_33, %c0_34] : memref<16x1xf32, #tpu.memory_space<vmem>>, vector<16x1xf32>
    %59 = vector.broadcast %58 : vector<16x1xf32> to vector<16x128xf32>
    %60 = arith.addf %57, %59 : vector<16x128xf32>
    %cst_35 = arith.constant 0.000000e+00 : f32
    %61 = vector.broadcast %cst_35 : f32 to vector<16x128xf32>
    %62 = arith.cmpf ogt, %60, %61 : vector<16x128xf32>
    %cst_36 = arith.constant 2.500000e-01 : f32
    %63 = vector.broadcast %cst_36 : f32 to vector<16x128xf32>
    %64 = arith.mulf %63, %60 : vector<16x128xf32>
    %65 = arith.select %62, %60, %64 : vector<16x128xi1>, vector<16x128xf32>
    %66 = arith.truncf %65 : vector<16x128xf32> to vector<16x128xbf16>
    %c0_37 = arith.constant 0 : index
    %c0_38 = arith.constant 0 : index
    %67 = vector.load %arg5[%c0_37, %c0_38] : memref<16x128xbf16, #tpu.memory_space<vmem>>, vector<16x128xbf16>
    tpu.vector_store %arg5[%c0_37, %c0_38], %66 {strides = array<i32>} : memref<16x128xbf16, #tpu.memory_space<vmem>>, vector<16x128xbf16>,
    return
  }
  func.func @transform_0(%arg0: i32) -> (i32, i32, i32) {
    %c0_i32 = arith.constant 0 : i32
    %c0_i32_0 = arith.constant 0 : i32
    %c0_i32_1 = arith.constant 0 : i32
    return %c0_i32, %c0_i32_0, %arg0 : i32, i32, i32
  }
  func.func @transform_1(%arg0: i32) -> (i32, i32, i32) {
    %c1_i32 = arith.constant 1 : i32
    %0 = arith.addi %arg0, %c1_i32 : i32
    %c1_i32_0 = arith.constant 1 : i32
    %1 = arith.muli %0, %c1_i32_0 : i32
    %c0_i32 = arith.constant 0 : i32
    %c0_i32_1 = arith.constant 0 : i32
    %c0_i32_2 = arith.constant 0 : i32
    return %c0_i32, %c0_i32_1, %1 : i32, i32, i32
  }
  func.func @transform_2(%arg0: i32) -> (i32, i32, i32) {
    %c0_i32 = arith.constant 0 : i32
    %c0_i32_0 = arith.constant 0 : i32
    %c0_i32_1 = arith.constant 0 : i32
    %c0_i32_2 = arith.constant 0 : i32
    return %c0_i32, %c0_i32_0, %c0_i32_1 : i32, i32, i32
  }
  func.func @transform_3(%arg0: i32) -> (i32, i32) {
    %c0_i32 = arith.constant 0 : i32
    %c0_i32_0 = arith.constant 0 : i32
    %c0_i32_1 = arith.constant 0 : i32
    return %c0_i32, %c0_i32_0 : i32, i32
  }
  func.func @transform_4(%arg0: i32) -> (i32, i32) {
    %c0_i32 = arith.constant 0 : i32
    %c0_i32_0 = arith.constant 0 : i32
    return %c0_i32, %arg0 : i32, i32
  }
}

module attributes {stable_mosaic.version = 11 : i64} {
  func.func @kernel(%arg0: i32, %arg1: memref<4x16x128xbf16, #tpu.memory_space<vmem>>, %arg2: memref<4x16x128xbf16, #tpu.memory_space<vmem>>, %arg3: memref<9x32x16xbf16, #tpu.memory_space<vmem>>, %arg4: memref<32x1xf32, #tpu.memory_space<vmem>>, %arg5: memref<32x128xbf16, #tpu.memory_space<vmem>>) attributes {dimension_semantics = [#tpu.dimension_semantics<parallel>], iteration_bounds = array<i64: 1>, scalar_prefetch = 0 : i64, scratch_operands = 0 : i64, tpu.core_type = #tpu.core_type<tc>, window_params = [{transform_indices = @transform_0, window_bounds = array<i64: 4, 16, 128>}, {transform_indices = @transform_1, window_bounds = array<i64: 4, 16, 128>}, {pipeline_mode = #tpu.pipeline_mode<synchronous>, transform_indices = @transform_2, window_bounds = array<i64: 9, 32, 16>}, {pipeline_mode = #tpu.pipeline_mode<synchronous>, transform_indices = @transform_3, window_bounds = array<i64: 32, 1>}, {transform_indices = @transform_4, window_bounds = array<i64: 32, 128>}]} {
    %c0 = arith.constant 0 : index
    %c0_0 = arith.constant 0 : index
    %c0_1 = arith.constant 0 : index
    %0 = vector.load %arg1[%c0, %c0_0, %c0_1] : memref<4x16x128xbf16, #tpu.memory_space<vmem>>, vector<4x16x128xbf16>
    %c0_2 = arith.constant 0 : index
    %c0_3 = arith.constant 0 : index
    %c0_4 = arith.constant 0 : index
    %1 = vector.load %arg2[%c0_2, %c0_3, %c0_4] : memref<4x16x128xbf16, #tpu.memory_space<vmem>>, vector<4x16x128xbf16>
    %2 = tpu.concatenate %0, %1 in 2 : vector<4x16x128xbf16>, vector<4x16x128xbf16> -> vector<4x16x256xbf16>
    %cst = arith.constant 0.000000e+00 : f32
    %3 = vector.broadcast %cst : f32 to vector<32x128xf32>
    %4 = vector.extract_strided_slice %2 {offsets = [0, 0, 0], sizes = [1, 16, 128], strides = [1, 1, 1]} : vector<4x16x256xbf16> to vector<1x16x128xbf16>
    %5 = vector.shape_cast %4 : vector<1x16x128xbf16> to vector<16x128xbf16>
    %c0_5 = arith.constant 0 : index
    %c0_6 = arith.constant 0 : index
    %c0_7 = arith.constant 0 : index
    %6 = vector.load %arg3[%c0_5, %c0_6, %c0_7] : memref<9x32x16xbf16, #tpu.memory_space<vmem>>, vector<1x32x16xbf16>
    %7 = vector.shape_cast %6 : vector<1x32x16xbf16> to vector<32x16xbf16>
    %cst_8 = arith.constant dense<0.000000e+00> : vector<32x128xf32>
    %8 = tpu.matmul %7, %5, %cst_8 {dimension_numbers = #tpu.dot_dimension_numbers<[1], [0], [0], [1], [0, 0, 1, 1], [], []>} : vector<32x16xbf16>, vector<16x128xbf16>, vector<32x128xf32> -> vector<32x128xf32>
    %9 = arith.addf %3, %8 : vector<32x128xf32>
    %10 = vector.extract_strided_slice %2 {offsets = [0, 0, 1], sizes = [1, 16, 128], strides = [1, 1, 1]} : vector<4x16x256xbf16> to vector<1x16x128xbf16>
    %11 = vector.shape_cast %10 : vector<1x16x128xbf16> to vector<16x128xbf16>
    %c1 = arith.constant 1 : index
    %c0_9 = arith.constant 0 : index
    %c0_10 = arith.constant 0 : index
    %12 = vector.load %arg3[%c1, %c0_9, %c0_10] : memref<9x32x16xbf16, #tpu.memory_space<vmem>>, vector<1x32x16xbf16>
    %13 = vector.shape_cast %12 : vector<1x32x16xbf16> to vector<32x16xbf16>
    %cst_11 = arith.constant dense<0.000000e+00> : vector<32x128xf32>
    %14 = tpu.matmul %13, %11, %cst_11 {dimension_numbers = #tpu.dot_dimension_numbers<[1], [0], [0], [1], [0, 0, 1, 1], [], []>} : vector<32x16xbf16>, vector<16x128xbf16>, vector<32x128xf32> -> vector<32x128xf32>
    %15 = arith.addf %9, %14 : vector<32x128xf32>
    %16 = vector.extract_strided_slice %2 {offsets = [0, 0, 5], sizes = [1, 16, 128], strides = [1, 1, 1]} : vector<4x16x256xbf16> to vector<1x16x128xbf16>
    %17 = vector.shape_cast %16 : vector<1x16x128xbf16> to vector<16x128xbf16>
    %c2 = arith.constant 2 : index
    %c0_12 = arith.constant 0 : index
    %c0_13 = arith.constant 0 : index
    %18 = vector.load %arg3[%c2, %c0_12, %c0_13] : memref<9x32x16xbf16, #tpu.memory_space<vmem>>, vector<1x32x16xbf16>
    %19 = vector.shape_cast %18 : vector<1x32x16xbf16> to vector<32x16xbf16>
    %cst_14 = arith.constant dense<0.000000e+00> : vector<32x128xf32>
    %20 = tpu.matmul %19, %17, %cst_14 {dimension_numbers = #tpu.dot_dimension_numbers<[1], [0], [0], [1], [0, 0, 1, 1], [], []>} : vector<32x16xbf16>, vector<16x128xbf16>, vector<32x128xf32> -> vector<32x128xf32>
    %21 = arith.addf %15, %20 : vector<32x128xf32>
    %22 = vector.extract_strided_slice %2 {offsets = [0, 0, 6], sizes = [1, 16, 128], strides = [1, 1, 1]} : vector<4x16x256xbf16> to vector<1x16x128xbf16>
    %23 = vector.shape_cast %22 : vector<1x16x128xbf16> to vector<16x128xbf16>
    %c3 = arith.constant 3 : index
    %c0_15 = arith.constant 0 : index
    %c0_16 = arith.constant 0 : index
    %24 = vector.load %arg3[%c3, %c0_15, %c0_16] : memref<9x32x16xbf16, #tpu.memory_space<vmem>>, vector<1x32x16xbf16>
    %25 = vector.shape_cast %24 : vector<1x32x16xbf16> to vector<32x16xbf16>
    %cst_17 = arith.constant dense<0.000000e+00> : vector<32x128xf32>
    %26 = tpu.matmul %25, %23, %cst_17 {dimension_numbers = #tpu.dot_dimension_numbers<[1], [0], [0], [1], [0, 0, 1, 1], [], []>} : vector<32x16xbf16>, vector<16x128xbf16>, vector<32x128xf32> -> vector<32x128xf32>
    %27 = arith.addf %21, %26 : vector<32x128xf32>
    %28 = vector.extract_strided_slice %2 {offsets = [1, 0, 0], sizes = [1, 16, 128], strides = [1, 1, 1]} : vector<4x16x256xbf16> to vector<1x16x128xbf16>
    %29 = vector.shape_cast %28 : vector<1x16x128xbf16> to vector<16x128xbf16>
    %c4 = arith.constant 4 : index
    %c0_18 = arith.constant 0 : index
    %c0_19 = arith.constant 0 : index
    %30 = vector.load %arg3[%c4, %c0_18, %c0_19] : memref<9x32x16xbf16, #tpu.memory_space<vmem>>, vector<1x32x16xbf16>
    %31 = vector.shape_cast %30 : vector<1x32x16xbf16> to vector<32x16xbf16>
    %cst_20 = arith.constant dense<0.000000e+00> : vector<32x128xf32>
    %32 = tpu.matmul %31, %29, %cst_20 {dimension_numbers = #tpu.dot_dimension_numbers<[1], [0], [0], [1], [0, 0, 1, 1], [], []>} : vector<32x16xbf16>, vector<16x128xbf16>, vector<32x128xf32> -> vector<32x128xf32>
    %33 = arith.addf %27, %32 : vector<32x128xf32>
    %34 = vector.extract_strided_slice %2 {offsets = [1, 0, 5], sizes = [1, 16, 128], strides = [1, 1, 1]} : vector<4x16x256xbf16> to vector<1x16x128xbf16>
    %35 = vector.shape_cast %34 : vector<1x16x128xbf16> to vector<16x128xbf16>
    %c5 = arith.constant 5 : index
    %c0_21 = arith.constant 0 : index
    %c0_22 = arith.constant 0 : index
    %36 = vector.load %arg3[%c5, %c0_21, %c0_22] : memref<9x32x16xbf16, #tpu.memory_space<vmem>>, vector<1x32x16xbf16>
    %37 = vector.shape_cast %36 : vector<1x32x16xbf16> to vector<32x16xbf16>
    %cst_23 = arith.constant dense<0.000000e+00> : vector<32x128xf32>
    %38 = tpu.matmul %37, %35, %cst_23 {dimension_numbers = #tpu.dot_dimension_numbers<[1], [0], [0], [1], [0, 0, 1, 1], [], []>} : vector<32x16xbf16>, vector<16x128xbf16>, vector<32x128xf32> -> vector<32x128xf32>
    %39 = arith.addf %33, %38 : vector<32x128xf32>
    %40 = vector.extract_strided_slice %2 {offsets = [2, 0, 0], sizes = [1, 16, 128], strides = [1, 1, 1]} : vector<4x16x256xbf16> to vector<1x16x128xbf16>
    %41 = vector.shape_cast %40 : vector<1x16x128xbf16> to vector<16x128xbf16>
    %c6 = arith.constant 6 : index
    %c0_24 = arith.constant 0 : index
    %c0_25 = arith.constant 0 : index
    %42 = vector.load %arg3[%c6, %c0_24, %c0_25] : memref<9x32x16xbf16, #tpu.memory_space<vmem>>, vector<1x32x16xbf16>
    %43 = vector.shape_cast %42 : vector<1x32x16xbf16> to vector<32x16xbf16>
    %cst_26 = arith.constant dense<0.000000e+00> : vector<32x128xf32>
    %44 = tpu.matmul %43, %41, %cst_26 {dimension_numbers = #tpu.dot_dimension_numbers<[1], [0], [0], [1], [0, 0, 1, 1], [], []>} : vector<32x16xbf16>, vector<16x128xbf16>, vector<32x128xf32> -> vector<32x128xf32>
    %45 = arith.addf %39, %44 : vector<32x128xf32>
    %46 = vector.extract_strided_slice %2 {offsets = [2, 0, 1], sizes = [1, 16, 128], strides = [1, 1, 1]} : vector<4x16x256xbf16> to vector<1x16x128xbf16>
    %47 = vector.shape_cast %46 : vector<1x16x128xbf16> to vector<16x128xbf16>
    %c7 = arith.constant 7 : index
    %c0_27 = arith.constant 0 : index
    %c0_28 = arith.constant 0 : index
    %48 = vector.load %arg3[%c7, %c0_27, %c0_28] : memref<9x32x16xbf16, #tpu.memory_space<vmem>>, vector<1x32x16xbf16>
    %49 = vector.shape_cast %48 : vector<1x32x16xbf16> to vector<32x16xbf16>
    %cst_29 = arith.constant dense<0.000000e+00> : vector<32x128xf32>
    %50 = tpu.matmul %49, %47, %cst_29 {dimension_numbers = #tpu.dot_dimension_numbers<[1], [0], [0], [1], [0, 0, 1, 1], [], []>} : vector<32x16xbf16>, vector<16x128xbf16>, vector<32x128xf32> -> vector<32x128xf32>
    %51 = arith.addf %45, %50 : vector<32x128xf32>
    %52 = vector.extract_strided_slice %2 {offsets = [3, 0, 0], sizes = [1, 16, 128], strides = [1, 1, 1]} : vector<4x16x256xbf16> to vector<1x16x128xbf16>
    %53 = vector.shape_cast %52 : vector<1x16x128xbf16> to vector<16x128xbf16>
    %c8 = arith.constant 8 : index
    %c0_30 = arith.constant 0 : index
    %c0_31 = arith.constant 0 : index
    %54 = vector.load %arg3[%c8, %c0_30, %c0_31] : memref<9x32x16xbf16, #tpu.memory_space<vmem>>, vector<1x32x16xbf16>
    %55 = vector.shape_cast %54 : vector<1x32x16xbf16> to vector<32x16xbf16>
    %cst_32 = arith.constant dense<0.000000e+00> : vector<32x128xf32>
    %56 = tpu.matmul %55, %53, %cst_32 {dimension_numbers = #tpu.dot_dimension_numbers<[1], [0], [0], [1], [0, 0, 1, 1], [], []>} : vector<32x16xbf16>, vector<16x128xbf16>, vector<32x128xf32> -> vector<32x128xf32>
    %57 = arith.addf %51, %56 : vector<32x128xf32>
    %c0_33 = arith.constant 0 : index
    %c0_34 = arith.constant 0 : index
    %58 = vector.load %arg4[%c0_33, %c0_34] : memref<32x1xf32, #tpu.memory_space<vmem>>, vector<32x1xf32>
    %59 = vector.broadcast %58 : vector<32x1xf32> to vector<32x128xf32>
    %60 = arith.addf %57, %59 : vector<32x128xf32>
    %cst_35 = arith.constant 0.000000e+00 : f32
    %61 = vector.broadcast %cst_35 : f32 to vector<32x128xf32>
    %62 = arith.cmpf ogt, %60, %61 : vector<32x128xf32>
    %cst_36 = arith.constant 2.500000e-01 : f32
    %63 = vector.broadcast %cst_36 : f32 to vector<32x128xf32>
    %64 = arith.mulf %63, %60 : vector<32x128xf32>
    %65 = arith.select %62, %60, %64 : vector<32x128xi1>, vector<32x128xf32>
    %66 = arith.truncf %65 : vector<32x128xf32> to vector<32x128xbf16>
    %c0_37 = arith.constant 0 : index
    %c0_38 = arith.constant 0 : index
    %67 = vector.load %arg5[%c0_37, %c0_38] : memref<32x128xbf16, #tpu.memory_space<vmem>>, vector<32x128xbf16>
    tpu.vector_store %arg5[%c0_37, %c0_38], %66 {strides = array<i32>} : memref<32x128xbf16, #tpu.memory_space<vmem>>, vector<32x128xbf16>,
    return
  }
  func.func @transform_0(%arg0: i32) -> (i32, i32, i32) {
    %c0_i32 = arith.constant 0 : i32
    %c0_i32_0 = arith.constant 0 : i32
    %c0_i32_1 = arith.constant 0 : i32
    return %c0_i32, %c0_i32_0, %arg0 : i32, i32, i32
  }
  func.func @transform_1(%arg0: i32) -> (i32, i32, i32) {
    %c1_i32 = arith.constant 1 : i32
    %0 = arith.addi %arg0, %c1_i32 : i32
    %c1_i32_0 = arith.constant 1 : i32
    %1 = arith.muli %0, %c1_i32_0 : i32
    %c0_i32 = arith.constant 0 : i32
    %c0_i32_1 = arith.constant 0 : i32
    %c0_i32_2 = arith.constant 0 : i32
    return %c0_i32, %c0_i32_1, %1 : i32, i32, i32
  }
  func.func @transform_2(%arg0: i32) -> (i32, i32, i32) {
    %c0_i32 = arith.constant 0 : i32
    %c0_i32_0 = arith.constant 0 : i32
    %c0_i32_1 = arith.constant 0 : i32
    %c0_i32_2 = arith.constant 0 : i32
    return %c0_i32, %c0_i32_0, %c0_i32_1 : i32, i32, i32
  }
  func.func @transform_3(%arg0: i32) -> (i32, i32) {
    %c0_i32 = arith.constant 0 : i32
    %c0_i32_0 = arith.constant 0 : i32
    %c0_i32_1 = arith.constant 0 : i32
    return %c0_i32, %c0_i32_0 : i32, i32
  }
  func.func @transform_4(%arg0: i32) -> (i32, i32) {
    %c0_i32 = arith.constant 0 : i32
    %c0_i32_0 = arith.constant 0 : i32
    return %c0_i32, %arg0 : i32, i32
  }
}

module attributes {stable_mosaic.version = 11 : i64} {
  func.func @kernel(%arg0: i32, %arg1: memref<1x32x128xbf16, #tpu.memory_space<vmem>>, %arg2: memref<1x32x128xbf16, #tpu.memory_space<vmem>>, %arg3: memref<9x32x32xbf16, #tpu.memory_space<vmem>>, %arg4: memref<32x1xf32, #tpu.memory_space<vmem>>, %arg5: memref<32x128xbf16, #tpu.memory_space<vmem>>) attributes {dimension_semantics = [#tpu.dimension_semantics<parallel>], iteration_bounds = array<i64: 1>, scalar_prefetch = 0 : i64, scratch_operands = 0 : i64, tpu.core_type = #tpu.core_type<tc>, window_params = [{transform_indices = @transform_0, window_bounds = array<i64: 1, 32, 128>}, {transform_indices = @transform_1, window_bounds = array<i64: 1, 32, 128>}, {pipeline_mode = #tpu.pipeline_mode<synchronous>, transform_indices = @transform_2, window_bounds = array<i64: 9, 32, 32>}, {pipeline_mode = #tpu.pipeline_mode<synchronous>, transform_indices = @transform_3, window_bounds = array<i64: 32, 1>}, {transform_indices = @transform_4, window_bounds = array<i64: 32, 128>}]} {
    %c0 = arith.constant 0 : index
    %c0_0 = arith.constant 0 : index
    %c0_1 = arith.constant 0 : index
    %0 = vector.load %arg1[%c0, %c0_0, %c0_1] : memref<1x32x128xbf16, #tpu.memory_space<vmem>>, vector<1x32x128xbf16>
    %c0_2 = arith.constant 0 : index
    %c0_3 = arith.constant 0 : index
    %c0_4 = arith.constant 0 : index
    %1 = vector.load %arg2[%c0_2, %c0_3, %c0_4] : memref<1x32x128xbf16, #tpu.memory_space<vmem>>, vector<1x32x128xbf16>
    %2 = tpu.concatenate %0, %1 in 2 : vector<1x32x128xbf16>, vector<1x32x128xbf16> -> vector<1x32x256xbf16>
    %cst = arith.constant 0.000000e+00 : f32
    %3 = vector.broadcast %cst : f32 to vector<32x128xf32>
    %4 = vector.extract_strided_slice %2 {offsets = [0, 0, 0], sizes = [1, 32, 128], strides = [1, 1, 1]} : vector<1x32x256xbf16> to vector<1x32x128xbf16>
    %5 = vector.shape_cast %4 : vector<1x32x128xbf16> to vector<32x128xbf16>
    %c0_5 = arith.constant 0 : index
    %c0_6 = arith.constant 0 : index
    %c0_7 = arith.constant 0 : index
    %6 = vector.load %arg3[%c0_5, %c0_6, %c0_7] : memref<9x32x32xbf16, #tpu.memory_space<vmem>>, vector<1x32x32xbf16>
    %7 = vector.shape_cast %6 : vector<1x32x32xbf16> to vector<32x32xbf16>
    %cst_8 = arith.constant dense<0.000000e+00> : vector<32x128xf32>
    %8 = tpu.matmul %7, %5, %cst_8 {dimension_numbers = #tpu.dot_dimension_numbers<[1], [0], [0], [1], [0, 0, 1, 1], [], []>} : vector<32x32xbf16>, vector<32x128xbf16>, vector<32x128xf32> -> vector<32x128xf32>
    %9 = arith.addf %3, %8 : vector<32x128xf32>
    %10 = vector.extract_strided_slice %2 {offsets = [0, 0, 1], sizes = [1, 32, 128], strides = [1, 1, 1]} : vector<1x32x256xbf16> to vector<1x32x128xbf16>
    %11 = vector.shape_cast %10 : vector<1x32x128xbf16> to vector<32x128xbf16>
    %c1 = arith.constant 1 : index
    %c0_9 = arith.constant 0 : index
    %c0_10 = arith.constant 0 : index
    %12 = vector.load %arg3[%c1, %c0_9, %c0_10] : memref<9x32x32xbf16, #tpu.memory_space<vmem>>, vector<1x32x32xbf16>
    %13 = vector.shape_cast %12 : vector<1x32x32xbf16> to vector<32x32xbf16>
    %cst_11 = arith.constant dense<0.000000e+00> : vector<32x128xf32>
    %14 = tpu.matmul %13, %11, %cst_11 {dimension_numbers = #tpu.dot_dimension_numbers<[1], [0], [0], [1], [0, 0, 1, 1], [], []>} : vector<32x32xbf16>, vector<32x128xbf16>, vector<32x128xf32> -> vector<32x128xf32>
    %15 = arith.addf %9, %14 : vector<32x128xf32>
    %16 = vector.extract_strided_slice %2 {offsets = [0, 0, 2], sizes = [1, 32, 128], strides = [1, 1, 1]} : vector<1x32x256xbf16> to vector<1x32x128xbf16>
    %17 = vector.shape_cast %16 : vector<1x32x128xbf16> to vector<32x128xbf16>
    %c2 = arith.constant 2 : index
    %c0_12 = arith.constant 0 : index
    %c0_13 = arith.constant 0 : index
    %18 = vector.load %arg3[%c2, %c0_12, %c0_13] : memref<9x32x32xbf16, #tpu.memory_space<vmem>>, vector<1x32x32xbf16>
    %19 = vector.shape_cast %18 : vector<1x32x32xbf16> to vector<32x32xbf16>
    %cst_14 = arith.constant dense<0.000000e+00> : vector<32x128xf32>
    %20 = tpu.matmul %19, %17, %cst_14 {dimension_numbers = #tpu.dot_dimension_numbers<[1], [0], [0], [1], [0, 0, 1, 1], [], []>} : vector<32x32xbf16>, vector<32x128xbf16>, vector<32x128xf32> -> vector<32x128xf32>
    %21 = arith.addf %15, %20 : vector<32x128xf32>
    %22 = vector.extract_strided_slice %2 {offsets = [0, 0, 6], sizes = [1, 32, 128], strides = [1, 1, 1]} : vector<1x32x256xbf16> to vector<1x32x128xbf16>
    %23 = vector.shape_cast %22 : vector<1x32x128xbf16> to vector<32x128xbf16>
    %c3 = arith.constant 3 : index
    %c0_15 = arith.constant 0 : index
    %c0_16 = arith.constant 0 : index
    %24 = vector.load %arg3[%c3, %c0_15, %c0_16] : memref<9x32x32xbf16, #tpu.memory_space<vmem>>, vector<1x32x32xbf16>
    %25 = vector.shape_cast %24 : vector<1x32x32xbf16> to vector<32x32xbf16>
    %cst_17 = arith.constant dense<0.000000e+00> : vector<32x128xf32>
    %26 = tpu.matmul %25, %23, %cst_17 {dimension_numbers = #tpu.dot_dimension_numbers<[1], [0], [0], [1], [0, 0, 1, 1], [], []>} : vector<32x32xbf16>, vector<32x128xbf16>, vector<32x128xf32> -> vector<32x128xf32>
    %27 = arith.addf %21, %26 : vector<32x128xf32>
    %28 = vector.extract_strided_slice %2 {offsets = [0, 0, 7], sizes = [1, 32, 128], strides = [1, 1, 1]} : vector<1x32x256xbf16> to vector<1x32x128xbf16>
    %29 = vector.shape_cast %28 : vector<1x32x128xbf16> to vector<32x128xbf16>
    %c4 = arith.constant 4 : index
    %c0_18 = arith.constant 0 : index
    %c0_19 = arith.constant 0 : index
    %30 = vector.load %arg3[%c4, %c0_18, %c0_19] : memref<9x32x32xbf16, #tpu.memory_space<vmem>>, vector<1x32x32xbf16>
    %31 = vector.shape_cast %30 : vector<1x32x32xbf16> to vector<32x32xbf16>
    %cst_20 = arith.constant dense<0.000000e+00> : vector<32x128xf32>
    %32 = tpu.matmul %31, %29, %cst_20 {dimension_numbers = #tpu.dot_dimension_numbers<[1], [0], [0], [1], [0, 0, 1, 1], [], []>} : vector<32x32xbf16>, vector<32x128xbf16>, vector<32x128xf32> -> vector<32x128xf32>
    %33 = arith.addf %27, %32 : vector<32x128xf32>
    %34 = vector.extract_strided_slice %2 {offsets = [0, 0, 8], sizes = [1, 32, 128], strides = [1, 1, 1]} : vector<1x32x256xbf16> to vector<1x32x128xbf16>
    %35 = vector.shape_cast %34 : vector<1x32x128xbf16> to vector<32x128xbf16>
    %c5 = arith.constant 5 : index
    %c0_21 = arith.constant 0 : index
    %c0_22 = arith.constant 0 : index
    %36 = vector.load %arg3[%c5, %c0_21, %c0_22] : memref<9x32x32xbf16, #tpu.memory_space<vmem>>, vector<1x32x32xbf16>
    %37 = vector.shape_cast %36 : vector<1x32x32xbf16> to vector<32x32xbf16>
    %cst_23 = arith.constant dense<0.000000e+00> : vector<32x128xf32>
    %38 = tpu.matmul %37, %35, %cst_23 {dimension_numbers = #tpu.dot_dimension_numbers<[1], [0], [0], [1], [0, 0, 1, 1], [], []>} : vector<32x32xbf16>, vector<32x128xbf16>, vector<32x128xf32> -> vector<32x128xf32>
    %39 = arith.addf %33, %38 : vector<32x128xf32>
    %40 = vector.extract_strided_slice %2 {offsets = [0, 0, 12], sizes = [1, 32, 128], strides = [1, 1, 1]} : vector<1x32x256xbf16> to vector<1x32x128xbf16>
    %41 = vector.shape_cast %40 : vector<1x32x128xbf16> to vector<32x128xbf16>
    %c6 = arith.constant 6 : index
    %c0_24 = arith.constant 0 : index
    %c0_25 = arith.constant 0 : index
    %42 = vector.load %arg3[%c6, %c0_24, %c0_25] : memref<9x32x32xbf16, #tpu.memory_space<vmem>>, vector<1x32x32xbf16>
    %43 = vector.shape_cast %42 : vector<1x32x32xbf16> to vector<32x32xbf16>
    %cst_26 = arith.constant dense<0.000000e+00> : vector<32x128xf32>
    %44 = tpu.matmul %43, %41, %cst_26 {dimension_numbers = #tpu.dot_dimension_numbers<[1], [0], [0], [1], [0, 0, 1, 1], [], []>} : vector<32x32xbf16>, vector<32x128xbf16>, vector<32x128xf32> -> vector<32x128xf32>
    %45 = arith.addf %39, %44 : vector<32x128xf32>
    %46 = vector.extract_strided_slice %2 {offsets = [0, 0, 13], sizes = [1, 32, 128], strides = [1, 1, 1]} : vector<1x32x256xbf16> to vector<1x32x128xbf16>
    %47 = vector.shape_cast %46 : vector<1x32x128xbf16> to vector<32x128xbf16>
    %c7 = arith.constant 7 : index
    %c0_27 = arith.constant 0 : index
    %c0_28 = arith.constant 0 : index
    %48 = vector.load %arg3[%c7, %c0_27, %c0_28] : memref<9x32x32xbf16, #tpu.memory_space<vmem>>, vector<1x32x32xbf16>
    %49 = vector.shape_cast %48 : vector<1x32x32xbf16> to vector<32x32xbf16>
    %cst_29 = arith.constant dense<0.000000e+00> : vector<32x128xf32>
    %50 = tpu.matmul %49, %47, %cst_29 {dimension_numbers = #tpu.dot_dimension_numbers<[1], [0], [0], [1], [0, 0, 1, 1], [], []>} : vector<32x32xbf16>, vector<32x128xbf16>, vector<32x128xf32> -> vector<32x128xf32>
    %51 = arith.addf %45, %50 : vector<32x128xf32>
    %52 = vector.extract_strided_slice %2 {offsets = [0, 0, 14], sizes = [1, 32, 128], strides = [1, 1, 1]} : vector<1x32x256xbf16> to vector<1x32x128xbf16>
    %53 = vector.shape_cast %52 : vector<1x32x128xbf16> to vector<32x128xbf16>
    %c8 = arith.constant 8 : index
    %c0_30 = arith.constant 0 : index
    %c0_31 = arith.constant 0 : index
    %54 = vector.load %arg3[%c8, %c0_30, %c0_31] : memref<9x32x32xbf16, #tpu.memory_space<vmem>>, vector<1x32x32xbf16>
    %55 = vector.shape_cast %54 : vector<1x32x32xbf16> to vector<32x32xbf16>
    %cst_32 = arith.constant dense<0.000000e+00> : vector<32x128xf32>
    %56 = tpu.matmul %55, %53, %cst_32 {dimension_numbers = #tpu.dot_dimension_numbers<[1], [0], [0], [1], [0, 0, 1, 1], [], []>} : vector<32x32xbf16>, vector<32x128xbf16>, vector<32x128xf32> -> vector<32x128xf32>
    %57 = arith.addf %51, %56 : vector<32x128xf32>
    %c0_33 = arith.constant 0 : index
    %c0_34 = arith.constant 0 : index
    %58 = vector.load %arg4[%c0_33, %c0_34] : memref<32x1xf32, #tpu.memory_space<vmem>>, vector<32x1xf32>
    %59 = vector.broadcast %58 : vector<32x1xf32> to vector<32x128xf32>
    %60 = arith.addf %57, %59 : vector<32x128xf32>
    %cst_35 = arith.constant 0.000000e+00 : f32
    %61 = vector.broadcast %cst_35 : f32 to vector<32x128xf32>
    %62 = arith.cmpf ogt, %60, %61 : vector<32x128xf32>
    %cst_36 = arith.constant 2.500000e-01 : f32
    %63 = vector.broadcast %cst_36 : f32 to vector<32x128xf32>
    %64 = arith.mulf %63, %60 : vector<32x128xf32>
    %65 = arith.select %62, %60, %64 : vector<32x128xi1>, vector<32x128xf32>
    %66 = arith.truncf %65 : vector<32x128xf32> to vector<32x128xbf16>
    %c0_37 = arith.constant 0 : index
    %c0_38 = arith.constant 0 : index
    %67 = vector.load %arg5[%c0_37, %c0_38] : memref<32x128xbf16, #tpu.memory_space<vmem>>, vector<32x128xbf16>
    tpu.vector_store %arg5[%c0_37, %c0_38], %66 {strides = array<i32>} : memref<32x128xbf16, #tpu.memory_space<vmem>>, vector<32x128xbf16>,
    return
  }
  func.func @transform_0(%arg0: i32) -> (i32, i32, i32) {
    %c0_i32 = arith.constant 0 : i32
    %c0_i32_0 = arith.constant 0 : i32
    %c0_i32_1 = arith.constant 0 : i32
    return %c0_i32, %c0_i32_0, %arg0 : i32, i32, i32
  }
  func.func @transform_1(%arg0: i32) -> (i32, i32, i32) {
    %c1_i32 = arith.constant 1 : i32
    %0 = arith.addi %arg0, %c1_i32 : i32
    %c1_i32_0 = arith.constant 1 : i32
    %1 = arith.muli %0, %c1_i32_0 : i32
    %c0_i32 = arith.constant 0 : i32
    %c0_i32_1 = arith.constant 0 : i32
    %c0_i32_2 = arith.constant 0 : i32
    return %c0_i32, %c0_i32_1, %1 : i32, i32, i32
  }
  func.func @transform_2(%arg0: i32) -> (i32, i32, i32) {
    %c0_i32 = arith.constant 0 : i32
    %c0_i32_0 = arith.constant 0 : i32
    %c0_i32_1 = arith.constant 0 : i32
    %c0_i32_2 = arith.constant 0 : i32
    return %c0_i32, %c0_i32_0, %c0_i32_1 : i32, i32, i32
  }
  func.func @transform_3(%arg0: i32) -> (i32, i32) {
    %c0_i32 = arith.constant 0 : i32
    %c0_i32_0 = arith.constant 0 : i32
    %c0_i32_1 = arith.constant 0 : i32
    return %c0_i32, %c0_i32_0 : i32, i32
  }
  func.func @transform_4(%arg0: i32) -> (i32, i32) {
    %c0_i32 = arith.constant 0 : i32
    %c0_i32_0 = arith.constant 0 : i32
    return %c0_i32, %arg0 : i32, i32
  }
}

module attributes {stable_mosaic.version = 11 : i64} {
  func.func @kernel(%arg0: i32, %arg1: memref<1x32x128xbf16, #tpu.memory_space<vmem>>, %arg2: memref<1x32x128xbf16, #tpu.memory_space<vmem>>, %arg3: memref<9x32x32xbf16, #tpu.memory_space<vmem>>, %arg4: memref<32x1xf32, #tpu.memory_space<vmem>>, %arg5: memref<32x128xbf16, #tpu.memory_space<vmem>>, %arg6: memref<32x128xbf16, #tpu.memory_space<vmem>>) attributes {dimension_semantics = [#tpu.dimension_semantics<parallel>], iteration_bounds = array<i64: 1>, scalar_prefetch = 0 : i64, scratch_operands = 0 : i64, tpu.core_type = #tpu.core_type<tc>, window_params = [{transform_indices = @transform_0, window_bounds = array<i64: 1, 32, 128>}, {transform_indices = @transform_1, window_bounds = array<i64: 1, 32, 128>}, {pipeline_mode = #tpu.pipeline_mode<synchronous>, transform_indices = @transform_2, window_bounds = array<i64: 9, 32, 32>}, {pipeline_mode = #tpu.pipeline_mode<synchronous>, transform_indices = @transform_3, window_bounds = array<i64: 32, 1>}, {transform_indices = @transform_4, window_bounds = array<i64: 32, 128>}, {transform_indices = @transform_5, window_bounds = array<i64: 32, 128>}]} {
    %c0 = arith.constant 0 : index
    %c0_0 = arith.constant 0 : index
    %c0_1 = arith.constant 0 : index
    %0 = vector.load %arg1[%c0, %c0_0, %c0_1] : memref<1x32x128xbf16, #tpu.memory_space<vmem>>, vector<1x32x128xbf16>
    %c0_2 = arith.constant 0 : index
    %c0_3 = arith.constant 0 : index
    %c0_4 = arith.constant 0 : index
    %1 = vector.load %arg2[%c0_2, %c0_3, %c0_4] : memref<1x32x128xbf16, #tpu.memory_space<vmem>>, vector<1x32x128xbf16>
    %2 = tpu.concatenate %0, %1 in 2 : vector<1x32x128xbf16>, vector<1x32x128xbf16> -> vector<1x32x256xbf16>
    %cst = arith.constant 0.000000e+00 : f32
    %3 = vector.broadcast %cst : f32 to vector<32x128xf32>
    %4 = vector.extract_strided_slice %2 {offsets = [0, 0, 0], sizes = [1, 32, 128], strides = [1, 1, 1]} : vector<1x32x256xbf16> to vector<1x32x128xbf16>
    %5 = vector.shape_cast %4 : vector<1x32x128xbf16> to vector<32x128xbf16>
    %c0_5 = arith.constant 0 : index
    %c0_6 = arith.constant 0 : index
    %c0_7 = arith.constant 0 : index
    %6 = vector.load %arg3[%c0_5, %c0_6, %c0_7] : memref<9x32x32xbf16, #tpu.memory_space<vmem>>, vector<1x32x32xbf16>
    %7 = vector.shape_cast %6 : vector<1x32x32xbf16> to vector<32x32xbf16>
    %cst_8 = arith.constant dense<0.000000e+00> : vector<32x128xf32>
    %8 = tpu.matmul %7, %5, %cst_8 {dimension_numbers = #tpu.dot_dimension_numbers<[1], [0], [0], [1], [0, 0, 1, 1], [], []>} : vector<32x32xbf16>, vector<32x128xbf16>, vector<32x128xf32> -> vector<32x128xf32>
    %9 = arith.addf %3, %8 : vector<32x128xf32>
    %10 = vector.extract_strided_slice %2 {offsets = [0, 0, 1], sizes = [1, 32, 128], strides = [1, 1, 1]} : vector<1x32x256xbf16> to vector<1x32x128xbf16>
    %11 = vector.shape_cast %10 : vector<1x32x128xbf16> to vector<32x128xbf16>
    %c1 = arith.constant 1 : index
    %c0_9 = arith.constant 0 : index
    %c0_10 = arith.constant 0 : index
    %12 = vector.load %arg3[%c1, %c0_9, %c0_10] : memref<9x32x32xbf16, #tpu.memory_space<vmem>>, vector<1x32x32xbf16>
    %13 = vector.shape_cast %12 : vector<1x32x32xbf16> to vector<32x32xbf16>
    %cst_11 = arith.constant dense<0.000000e+00> : vector<32x128xf32>
    %14 = tpu.matmul %13, %11, %cst_11 {dimension_numbers = #tpu.dot_dimension_numbers<[1], [0], [0], [1], [0, 0, 1, 1], [], []>} : vector<32x32xbf16>, vector<32x128xbf16>, vector<32x128xf32> -> vector<32x128xf32>
    %15 = arith.addf %9, %14 : vector<32x128xf32>
    %16 = vector.extract_strided_slice %2 {offsets = [0, 0, 2], sizes = [1, 32, 128], strides = [1, 1, 1]} : vector<1x32x256xbf16> to vector<1x32x128xbf16>
    %17 = vector.shape_cast %16 : vector<1x32x128xbf16> to vector<32x128xbf16>
    %c2 = arith.constant 2 : index
    %c0_12 = arith.constant 0 : index
    %c0_13 = arith.constant 0 : index
    %18 = vector.load %arg3[%c2, %c0_12, %c0_13] : memref<9x32x32xbf16, #tpu.memory_space<vmem>>, vector<1x32x32xbf16>
    %19 = vector.shape_cast %18 : vector<1x32x32xbf16> to vector<32x32xbf16>
    %cst_14 = arith.constant dense<0.000000e+00> : vector<32x128xf32>
    %20 = tpu.matmul %19, %17, %cst_14 {dimension_numbers = #tpu.dot_dimension_numbers<[1], [0], [0], [1], [0, 0, 1, 1], [], []>} : vector<32x32xbf16>, vector<32x128xbf16>, vector<32x128xf32> -> vector<32x128xf32>
    %21 = arith.addf %15, %20 : vector<32x128xf32>
    %22 = vector.extract_strided_slice %2 {offsets = [0, 0, 6], sizes = [1, 32, 128], strides = [1, 1, 1]} : vector<1x32x256xbf16> to vector<1x32x128xbf16>
    %23 = vector.shape_cast %22 : vector<1x32x128xbf16> to vector<32x128xbf16>
    %c3 = arith.constant 3 : index
    %c0_15 = arith.constant 0 : index
    %c0_16 = arith.constant 0 : index
    %24 = vector.load %arg3[%c3, %c0_15, %c0_16] : memref<9x32x32xbf16, #tpu.memory_space<vmem>>, vector<1x32x32xbf16>
    %25 = vector.shape_cast %24 : vector<1x32x32xbf16> to vector<32x32xbf16>
    %cst_17 = arith.constant dense<0.000000e+00> : vector<32x128xf32>
    %26 = tpu.matmul %25, %23, %cst_17 {dimension_numbers = #tpu.dot_dimension_numbers<[1], [0], [0], [1], [0, 0, 1, 1], [], []>} : vector<32x32xbf16>, vector<32x128xbf16>, vector<32x128xf32> -> vector<32x128xf32>
    %27 = arith.addf %21, %26 : vector<32x128xf32>
    %28 = vector.extract_strided_slice %2 {offsets = [0, 0, 7], sizes = [1, 32, 128], strides = [1, 1, 1]} : vector<1x32x256xbf16> to vector<1x32x128xbf16>
    %29 = vector.shape_cast %28 : vector<1x32x128xbf16> to vector<32x128xbf16>
    %c4 = arith.constant 4 : index
    %c0_18 = arith.constant 0 : index
    %c0_19 = arith.constant 0 : index
    %30 = vector.load %arg3[%c4, %c0_18, %c0_19] : memref<9x32x32xbf16, #tpu.memory_space<vmem>>, vector<1x32x32xbf16>
    %31 = vector.shape_cast %30 : vector<1x32x32xbf16> to vector<32x32xbf16>
    %cst_20 = arith.constant dense<0.000000e+00> : vector<32x128xf32>
    %32 = tpu.matmul %31, %29, %cst_20 {dimension_numbers = #tpu.dot_dimension_numbers<[1], [0], [0], [1], [0, 0, 1, 1], [], []>} : vector<32x32xbf16>, vector<32x128xbf16>, vector<32x128xf32> -> vector<32x128xf32>
    %33 = arith.addf %27, %32 : vector<32x128xf32>
    %34 = vector.extract_strided_slice %2 {offsets = [0, 0, 8], sizes = [1, 32, 128], strides = [1, 1, 1]} : vector<1x32x256xbf16> to vector<1x32x128xbf16>
    %35 = vector.shape_cast %34 : vector<1x32x128xbf16> to vector<32x128xbf16>
    %c5 = arith.constant 5 : index
    %c0_21 = arith.constant 0 : index
    %c0_22 = arith.constant 0 : index
    %36 = vector.load %arg3[%c5, %c0_21, %c0_22] : memref<9x32x32xbf16, #tpu.memory_space<vmem>>, vector<1x32x32xbf16>
    %37 = vector.shape_cast %36 : vector<1x32x32xbf16> to vector<32x32xbf16>
    %cst_23 = arith.constant dense<0.000000e+00> : vector<32x128xf32>
    %38 = tpu.matmul %37, %35, %cst_23 {dimension_numbers = #tpu.dot_dimension_numbers<[1], [0], [0], [1], [0, 0, 1, 1], [], []>} : vector<32x32xbf16>, vector<32x128xbf16>, vector<32x128xf32> -> vector<32x128xf32>
    %39 = arith.addf %33, %38 : vector<32x128xf32>
    %40 = vector.extract_strided_slice %2 {offsets = [0, 0, 12], sizes = [1, 32, 128], strides = [1, 1, 1]} : vector<1x32x256xbf16> to vector<1x32x128xbf16>
    %41 = vector.shape_cast %40 : vector<1x32x128xbf16> to vector<32x128xbf16>
    %c6 = arith.constant 6 : index
    %c0_24 = arith.constant 0 : index
    %c0_25 = arith.constant 0 : index
    %42 = vector.load %arg3[%c6, %c0_24, %c0_25] : memref<9x32x32xbf16, #tpu.memory_space<vmem>>, vector<1x32x32xbf16>
    %43 = vector.shape_cast %42 : vector<1x32x32xbf16> to vector<32x32xbf16>
    %cst_26 = arith.constant dense<0.000000e+00> : vector<32x128xf32>
    %44 = tpu.matmul %43, %41, %cst_26 {dimension_numbers = #tpu.dot_dimension_numbers<[1], [0], [0], [1], [0, 0, 1, 1], [], []>} : vector<32x32xbf16>, vector<32x128xbf16>, vector<32x128xf32> -> vector<32x128xf32>
    %45 = arith.addf %39, %44 : vector<32x128xf32>
    %46 = vector.extract_strided_slice %2 {offsets = [0, 0, 13], sizes = [1, 32, 128], strides = [1, 1, 1]} : vector<1x32x256xbf16> to vector<1x32x128xbf16>
    %47 = vector.shape_cast %46 : vector<1x32x128xbf16> to vector<32x128xbf16>
    %c7 = arith.constant 7 : index
    %c0_27 = arith.constant 0 : index
    %c0_28 = arith.constant 0 : index
    %48 = vector.load %arg3[%c7, %c0_27, %c0_28] : memref<9x32x32xbf16, #tpu.memory_space<vmem>>, vector<1x32x32xbf16>
    %49 = vector.shape_cast %48 : vector<1x32x32xbf16> to vector<32x32xbf16>
    %cst_29 = arith.constant dense<0.000000e+00> : vector<32x128xf32>
    %50 = tpu.matmul %49, %47, %cst_29 {dimension_numbers = #tpu.dot_dimension_numbers<[1], [0], [0], [1], [0, 0, 1, 1], [], []>} : vector<32x32xbf16>, vector<32x128xbf16>, vector<32x128xf32> -> vector<32x128xf32>
    %51 = arith.addf %45, %50 : vector<32x128xf32>
    %52 = vector.extract_strided_slice %2 {offsets = [0, 0, 14], sizes = [1, 32, 128], strides = [1, 1, 1]} : vector<1x32x256xbf16> to vector<1x32x128xbf16>
    %53 = vector.shape_cast %52 : vector<1x32x128xbf16> to vector<32x128xbf16>
    %c8 = arith.constant 8 : index
    %c0_30 = arith.constant 0 : index
    %c0_31 = arith.constant 0 : index
    %54 = vector.load %arg3[%c8, %c0_30, %c0_31] : memref<9x32x32xbf16, #tpu.memory_space<vmem>>, vector<1x32x32xbf16>
    %55 = vector.shape_cast %54 : vector<1x32x32xbf16> to vector<32x32xbf16>
    %cst_32 = arith.constant dense<0.000000e+00> : vector<32x128xf32>
    %56 = tpu.matmul %55, %53, %cst_32 {dimension_numbers = #tpu.dot_dimension_numbers<[1], [0], [0], [1], [0, 0, 1, 1], [], []>} : vector<32x32xbf16>, vector<32x128xbf16>, vector<32x128xf32> -> vector<32x128xf32>
    %57 = arith.addf %51, %56 : vector<32x128xf32>
    %c0_33 = arith.constant 0 : index
    %c0_34 = arith.constant 0 : index
    %58 = vector.load %arg4[%c0_33, %c0_34] : memref<32x1xf32, #tpu.memory_space<vmem>>, vector<32x1xf32>
    %59 = vector.broadcast %58 : vector<32x1xf32> to vector<32x128xf32>
    %60 = arith.addf %57, %59 : vector<32x128xf32>
    %c0_35 = arith.constant 0 : index
    %c0_36 = arith.constant 0 : index
    %61 = vector.load %arg5[%c0_35, %c0_36] : memref<32x128xbf16, #tpu.memory_space<vmem>>, vector<32x128xbf16>
    %62 = arith.extf %61 : vector<32x128xbf16> to vector<32x128xf32>
    %63 = arith.addf %60, %62 : vector<32x128xf32>
    %64 = arith.truncf %63 : vector<32x128xf32> to vector<32x128xbf16>
    %c0_37 = arith.constant 0 : index
    %c0_38 = arith.constant 0 : index
    %65 = vector.load %arg6[%c0_37, %c0_38] : memref<32x128xbf16, #tpu.memory_space<vmem>>, vector<32x128xbf16>
    tpu.vector_store %arg6[%c0_37, %c0_38], %64 {strides = array<i32>} : memref<32x128xbf16, #tpu.memory_space<vmem>>, vector<32x128xbf16>,
    return
  }
  func.func @transform_0(%arg0: i32) -> (i32, i32, i32) {
    %c0_i32 = arith.constant 0 : i32
    %c0_i32_0 = arith.constant 0 : i32
    %c0_i32_1 = arith.constant 0 : i32
    return %c0_i32, %c0_i32_0, %arg0 : i32, i32, i32
  }
  func.func @transform_1(%arg0: i32) -> (i32, i32, i32) {
    %c1_i32 = arith.constant 1 : i32
    %0 = arith.addi %arg0, %c1_i32 : i32
    %c1_i32_0 = arith.constant 1 : i32
    %1 = arith.muli %0, %c1_i32_0 : i32
    %c0_i32 = arith.constant 0 : i32
    %c0_i32_1 = arith.constant 0 : i32
    %c0_i32_2 = arith.constant 0 : i32
    return %c0_i32, %c0_i32_1, %1 : i32, i32, i32
  }
  func.func @transform_2(%arg0: i32) -> (i32, i32, i32) {
    %c0_i32 = arith.constant 0 : i32
    %c0_i32_0 = arith.constant 0 : i32
    %c0_i32_1 = arith.constant 0 : i32
    %c0_i32_2 = arith.constant 0 : i32
    return %c0_i32, %c0_i32_0, %c0_i32_1 : i32, i32, i32
  }
  func.func @transform_3(%arg0: i32) -> (i32, i32) {
    %c0_i32 = arith.constant 0 : i32
    %c0_i32_0 = arith.constant 0 : i32
    %c0_i32_1 = arith.constant 0 : i32
    return %c0_i32, %c0_i32_0 : i32, i32
  }
  func.func @transform_4(%arg0: i32) -> (i32, i32) {
    %c0_i32 = arith.constant 0 : i32
    %c0_i32_0 = arith.constant 0 : i32
    return %c0_i32, %arg0 : i32, i32
  }
  func.func @transform_5(%arg0: i32) -> (i32, i32) {
    %c0_i32 = arith.constant 0 : i32
    %c0_i32_0 = arith.constant 0 : i32
    return %c0_i32, %arg0 : i32, i32
  }
}

module attributes {stable_mosaic.version = 11 : i64} {
  func.func @kernel(%arg0: i32, %arg1: memref<1x32x128xbf16, #tpu.memory_space<vmem>>, %arg2: memref<1x32x128xbf16, #tpu.memory_space<vmem>>, %arg3: memref<4x64x32xbf16, #tpu.memory_space<vmem>>, %arg4: memref<64x1xf32, #tpu.memory_space<vmem>>, %arg5: memref<64x128xbf16, #tpu.memory_space<vmem>>) attributes {dimension_semantics = [#tpu.dimension_semantics<parallel>], iteration_bounds = array<i64: 1>, scalar_prefetch = 0 : i64, scratch_operands = 0 : i64, tpu.core_type = #tpu.core_type<tc>, window_params = [{transform_indices = @transform_0, window_bounds = array<i64: 1, 32, 128>}, {transform_indices = @transform_1, window_bounds = array<i64: 1, 32, 128>}, {pipeline_mode = #tpu.pipeline_mode<synchronous>, transform_indices = @transform_2, window_bounds = array<i64: 4, 64, 32>}, {pipeline_mode = #tpu.pipeline_mode<synchronous>, transform_indices = @transform_3, window_bounds = array<i64: 64, 1>}, {transform_indices = @transform_4, window_bounds = array<i64: 64, 128>}]} {
    %c0 = arith.constant 0 : index
    %c0_0 = arith.constant 0 : index
    %c0_1 = arith.constant 0 : index
    %0 = vector.load %arg1[%c0, %c0_0, %c0_1] : memref<1x32x128xbf16, #tpu.memory_space<vmem>>, vector<1x32x128xbf16>
    %c0_2 = arith.constant 0 : index
    %c0_3 = arith.constant 0 : index
    %c0_4 = arith.constant 0 : index
    %1 = vector.load %arg2[%c0_2, %c0_3, %c0_4] : memref<1x32x128xbf16, #tpu.memory_space<vmem>>, vector<1x32x128xbf16>
    %2 = tpu.concatenate %0, %1 in 2 : vector<1x32x128xbf16>, vector<1x32x128xbf16> -> vector<1x32x256xbf16>
    %cst = arith.constant 0.000000e+00 : f32
    %3 = vector.broadcast %cst : f32 to vector<64x128xf32>
    %4 = vector.extract_strided_slice %2 {offsets = [0, 0, 0], sizes = [1, 32, 128], strides = [1, 1, 1]} : vector<1x32x256xbf16> to vector<1x32x128xbf16>
    %5 = vector.shape_cast %4 : vector<1x32x128xbf16> to vector<32x128xbf16>
    %c0_5 = arith.constant 0 : index
    %c0_6 = arith.constant 0 : index
    %c0_7 = arith.constant 0 : index
    %6 = vector.load %arg3[%c0_5, %c0_6, %c0_7] : memref<4x64x32xbf16, #tpu.memory_space<vmem>>, vector<1x64x32xbf16>
    %7 = vector.shape_cast %6 : vector<1x64x32xbf16> to vector<64x32xbf16>
    %cst_8 = arith.constant dense<0.000000e+00> : vector<64x128xf32>
    %8 = tpu.matmul %7, %5, %cst_8 {dimension_numbers = #tpu.dot_dimension_numbers<[1], [0], [0], [1], [0, 0, 1, 1], [], []>} : vector<64x32xbf16>, vector<32x128xbf16>, vector<64x128xf32> -> vector<64x128xf32>
    %9 = arith.addf %3, %8 : vector<64x128xf32>
    %10 = vector.extract_strided_slice %2 {offsets = [0, 0, 1], sizes = [1, 32, 128], strides = [1, 1, 1]} : vector<1x32x256xbf16> to vector<1x32x128xbf16>
    %11 = vector.shape_cast %10 : vector<1x32x128xbf16> to vector<32x128xbf16>
    %c1 = arith.constant 1 : index
    %c0_9 = arith.constant 0 : index
    %c0_10 = arith.constant 0 : index
    %12 = vector.load %arg3[%c1, %c0_9, %c0_10] : memref<4x64x32xbf16, #tpu.memory_space<vmem>>, vector<1x64x32xbf16>
    %13 = vector.shape_cast %12 : vector<1x64x32xbf16> to vector<64x32xbf16>
    %cst_11 = arith.constant dense<0.000000e+00> : vector<64x128xf32>
    %14 = tpu.matmul %13, %11, %cst_11 {dimension_numbers = #tpu.dot_dimension_numbers<[1], [0], [0], [1], [0, 0, 1, 1], [], []>} : vector<64x32xbf16>, vector<32x128xbf16>, vector<64x128xf32> -> vector<64x128xf32>
    %15 = arith.addf %9, %14 : vector<64x128xf32>
    %16 = vector.extract_strided_slice %2 {offsets = [0, 0, 5], sizes = [1, 32, 128], strides = [1, 1, 1]} : vector<1x32x256xbf16> to vector<1x32x128xbf16>
    %17 = vector.shape_cast %16 : vector<1x32x128xbf16> to vector<32x128xbf16>
    %c2 = arith.constant 2 : index
    %c0_12 = arith.constant 0 : index
    %c0_13 = arith.constant 0 : index
    %18 = vector.load %arg3[%c2, %c0_12, %c0_13] : memref<4x64x32xbf16, #tpu.memory_space<vmem>>, vector<1x64x32xbf16>
    %19 = vector.shape_cast %18 : vector<1x64x32xbf16> to vector<64x32xbf16>
    %cst_14 = arith.constant dense<0.000000e+00> : vector<64x128xf32>
    %20 = tpu.matmul %19, %17, %cst_14 {dimension_numbers = #tpu.dot_dimension_numbers<[1], [0], [0], [1], [0, 0, 1, 1], [], []>} : vector<64x32xbf16>, vector<32x128xbf16>, vector<64x128xf32> -> vector<64x128xf32>
    %21 = arith.addf %15, %20 : vector<64x128xf32>
    %22 = vector.extract_strided_slice %2 {offsets = [0, 0, 6], sizes = [1, 32, 128], strides = [1, 1, 1]} : vector<1x32x256xbf16> to vector<1x32x128xbf16>
    %23 = vector.shape_cast %22 : vector<1x32x128xbf16> to vector<32x128xbf16>
    %c3 = arith.constant 3 : index
    %c0_15 = arith.constant 0 : index
    %c0_16 = arith.constant 0 : index
    %24 = vector.load %arg3[%c3, %c0_15, %c0_16] : memref<4x64x32xbf16, #tpu.memory_space<vmem>>, vector<1x64x32xbf16>
    %25 = vector.shape_cast %24 : vector<1x64x32xbf16> to vector<64x32xbf16>
    %cst_17 = arith.constant dense<0.000000e+00> : vector<64x128xf32>
    %26 = tpu.matmul %25, %23, %cst_17 {dimension_numbers = #tpu.dot_dimension_numbers<[1], [0], [0], [1], [0, 0, 1, 1], [], []>} : vector<64x32xbf16>, vector<32x128xbf16>, vector<64x128xf32> -> vector<64x128xf32>
    %27 = arith.addf %21, %26 : vector<64x128xf32>
    %c0_18 = arith.constant 0 : index
    %c0_19 = arith.constant 0 : index
    %28 = vector.load %arg4[%c0_18, %c0_19] : memref<64x1xf32, #tpu.memory_space<vmem>>, vector<64x1xf32>
    %29 = vector.broadcast %28 : vector<64x1xf32> to vector<64x128xf32>
    %30 = arith.addf %27, %29 : vector<64x128xf32>
    %cst_20 = arith.constant 0.000000e+00 : f32
    %31 = vector.broadcast %cst_20 : f32 to vector<64x128xf32>
    %32 = arith.cmpf ogt, %30, %31 : vector<64x128xf32>
    %cst_21 = arith.constant 2.500000e-01 : f32
    %33 = vector.broadcast %cst_21 : f32 to vector<64x128xf32>
    %34 = arith.mulf %33, %30 : vector<64x128xf32>
    %35 = arith.select %32, %30, %34 : vector<64x128xi1>, vector<64x128xf32>
    %36 = arith.truncf %35 : vector<64x128xf32> to vector<64x128xbf16>
    %c0_22 = arith.constant 0 : index
    %c0_23 = arith.constant 0 : index
    %37 = vector.load %arg5[%c0_22, %c0_23] : memref<64x128xbf16, #tpu.memory_space<vmem>>, vector<64x128xbf16>
    tpu.vector_store %arg5[%c0_22, %c0_23], %36 {strides = array<i32>} : memref<64x128xbf16, #tpu.memory_space<vmem>>, vector<64x128xbf16>,
    return
  }
  func.func @transform_0(%arg0: i32) -> (i32, i32, i32) {
    %c0_i32 = arith.constant 0 : i32
    %c0_i32_0 = arith.constant 0 : i32
    %c0_i32_1 = arith.constant 0 : i32
    return %c0_i32, %c0_i32_0, %arg0 : i32, i32, i32
  }
  func.func @transform_1(%arg0: i32) -> (i32, i32, i32) {
    %c1_i32 = arith.constant 1 : i32
    %0 = arith.addi %arg0, %c1_i32 : i32
    %c1_i32_0 = arith.constant 1 : i32
    %1 = arith.muli %0, %c1_i32_0 : i32
    %c0_i32 = arith.constant 0 : i32
    %c0_i32_1 = arith.constant 0 : i32
    %c0_i32_2 = arith.constant 0 : i32
    return %c0_i32, %c0_i32_1, %1 : i32, i32, i32
  }
  func.func @transform_2(%arg0: i32) -> (i32, i32, i32) {
    %c0_i32 = arith.constant 0 : i32
    %c0_i32_0 = arith.constant 0 : i32
    %c0_i32_1 = arith.constant 0 : i32
    %c0_i32_2 = arith.constant 0 : i32
    return %c0_i32, %c0_i32_0, %c0_i32_1 : i32, i32, i32
  }
  func.func @transform_3(%arg0: i32) -> (i32, i32) {
    %c0_i32 = arith.constant 0 : i32
    %c0_i32_0 = arith.constant 0 : i32
    %c0_i32_1 = arith.constant 0 : i32
    return %c0_i32, %c0_i32_0 : i32, i32
  }
  func.func @transform_4(%arg0: i32) -> (i32, i32) {
    %c0_i32 = arith.constant 0 : i32
    %c0_i32_0 = arith.constant 0 : i32
    return %c0_i32, %arg0 : i32, i32
  }
}

module attributes {stable_mosaic.version = 11 : i64} {
  func.func @kernel(%arg0: i32, %arg1: memref<1x16x128xbf16, #tpu.memory_space<vmem>>, %arg2: memref<1x16x128xbf16, #tpu.memory_space<vmem>>, %arg3: memref<4x32x16xbf16, #tpu.memory_space<vmem>>, %arg4: memref<32x1xf32, #tpu.memory_space<vmem>>, %arg5: memref<32x128xbf16, #tpu.memory_space<vmem>>) attributes {dimension_semantics = [#tpu.dimension_semantics<parallel>], iteration_bounds = array<i64: 2>, scalar_prefetch = 0 : i64, scratch_operands = 0 : i64, tpu.core_type = #tpu.core_type<tc>, window_params = [{transform_indices = @transform_0, window_bounds = array<i64: 1, 16, 128>}, {transform_indices = @transform_1, window_bounds = array<i64: 1, 16, 128>}, {pipeline_mode = #tpu.pipeline_mode<synchronous>, transform_indices = @transform_2, window_bounds = array<i64: 4, 32, 16>}, {pipeline_mode = #tpu.pipeline_mode<synchronous>, transform_indices = @transform_3, window_bounds = array<i64: 32, 1>}, {transform_indices = @transform_4, window_bounds = array<i64: 32, 128>}]} {
    %c0 = arith.constant 0 : index
    %c0_0 = arith.constant 0 : index
    %c0_1 = arith.constant 0 : index
    %0 = vector.load %arg1[%c0, %c0_0, %c0_1] : memref<1x16x128xbf16, #tpu.memory_space<vmem>>, vector<1x16x128xbf16>
    %c0_2 = arith.constant 0 : index
    %c0_3 = arith.constant 0 : index
    %c0_4 = arith.constant 0 : index
    %1 = vector.load %arg2[%c0_2, %c0_3, %c0_4] : memref<1x16x128xbf16, #tpu.memory_space<vmem>>, vector<1x16x128xbf16>
    %2 = tpu.concatenate %0, %1 in 2 : vector<1x16x128xbf16>, vector<1x16x128xbf16> -> vector<1x16x256xbf16>
    %cst = arith.constant 0.000000e+00 : f32
    %3 = vector.broadcast %cst : f32 to vector<32x128xf32>
    %4 = vector.extract_strided_slice %2 {offsets = [0, 0, 0], sizes = [1, 16, 128], strides = [1, 1, 1]} : vector<1x16x256xbf16> to vector<1x16x128xbf16>
    %5 = vector.shape_cast %4 : vector<1x16x128xbf16> to vector<16x128xbf16>
    %c0_5 = arith.constant 0 : index
    %c0_6 = arith.constant 0 : index
    %c0_7 = arith.constant 0 : index
    %6 = vector.load %arg3[%c0_5, %c0_6, %c0_7] : memref<4x32x16xbf16, #tpu.memory_space<vmem>>, vector<1x32x16xbf16>
    %7 = vector.shape_cast %6 : vector<1x32x16xbf16> to vector<32x16xbf16>
    %cst_8 = arith.constant dense<0.000000e+00> : vector<32x128xf32>
    %8 = tpu.matmul %7, %5, %cst_8 {dimension_numbers = #tpu.dot_dimension_numbers<[1], [0], [0], [1], [0, 0, 1, 1], [], []>} : vector<32x16xbf16>, vector<16x128xbf16>, vector<32x128xf32> -> vector<32x128xf32>
    %9 = arith.addf %3, %8 : vector<32x128xf32>
    %10 = vector.extract_strided_slice %2 {offsets = [0, 0, 1], sizes = [1, 16, 128], strides = [1, 1, 1]} : vector<1x16x256xbf16> to vector<1x16x128xbf16>
    %11 = vector.shape_cast %10 : vector<1x16x128xbf16> to vector<16x128xbf16>
    %c1 = arith.constant 1 : index
    %c0_9 = arith.constant 0 : index
    %c0_10 = arith.constant 0 : index
    %12 = vector.load %arg3[%c1, %c0_9, %c0_10] : memref<4x32x16xbf16, #tpu.memory_space<vmem>>, vector<1x32x16xbf16>
    %13 = vector.shape_cast %12 : vector<1x32x16xbf16> to vector<32x16xbf16>
    %cst_11 = arith.constant dense<0.000000e+00> : vector<32x128xf32>
    %14 = tpu.matmul %13, %11, %cst_11 {dimension_numbers = #tpu.dot_dimension_numbers<[1], [0], [0], [1], [0, 0, 1, 1], [], []>} : vector<32x16xbf16>, vector<16x128xbf16>, vector<32x128xf32> -> vector<32x128xf32>
    %15 = arith.addf %9, %14 : vector<32x128xf32>
    %16 = vector.extract_strided_slice %2 {offsets = [0, 0, 9], sizes = [1, 16, 128], strides = [1, 1, 1]} : vector<1x16x256xbf16> to vector<1x16x128xbf16>
    %17 = vector.shape_cast %16 : vector<1x16x128xbf16> to vector<16x128xbf16>
    %c2 = arith.constant 2 : index
    %c0_12 = arith.constant 0 : index
    %c0_13 = arith.constant 0 : index
    %18 = vector.load %arg3[%c2, %c0_12, %c0_13] : memref<4x32x16xbf16, #tpu.memory_space<vmem>>, vector<1x32x16xbf16>
    %19 = vector.shape_cast %18 : vector<1x32x16xbf16> to vector<32x16xbf16>
    %cst_14 = arith.constant dense<0.000000e+00> : vector<32x128xf32>
    %20 = tpu.matmul %19, %17, %cst_14 {dimension_numbers = #tpu.dot_dimension_numbers<[1], [0], [0], [1], [0, 0, 1, 1], [], []>} : vector<32x16xbf16>, vector<16x128xbf16>, vector<32x128xf32> -> vector<32x128xf32>
    %21 = arith.addf %15, %20 : vector<32x128xf32>
    %22 = vector.extract_strided_slice %2 {offsets = [0, 0, 10], sizes = [1, 16, 128], strides = [1, 1, 1]} : vector<1x16x256xbf16> to vector<1x16x128xbf16>
    %23 = vector.shape_cast %22 : vector<1x16x128xbf16> to vector<16x128xbf16>
    %c3 = arith.constant 3 : index
    %c0_15 = arith.constant 0 : index
    %c0_16 = arith.constant 0 : index
    %24 = vector.load %arg3[%c3, %c0_15, %c0_16] : memref<4x32x16xbf16, #tpu.memory_space<vmem>>, vector<1x32x16xbf16>
    %25 = vector.shape_cast %24 : vector<1x32x16xbf16> to vector<32x16xbf16>
    %cst_17 = arith.constant dense<0.000000e+00> : vector<32x128xf32>
    %26 = tpu.matmul %25, %23, %cst_17 {dimension_numbers = #tpu.dot_dimension_numbers<[1], [0], [0], [1], [0, 0, 1, 1], [], []>} : vector<32x16xbf16>, vector<16x128xbf16>, vector<32x128xf32> -> vector<32x128xf32>
    %27 = arith.addf %21, %26 : vector<32x128xf32>
    %c0_18 = arith.constant 0 : index
    %c0_19 = arith.constant 0 : index
    %28 = vector.load %arg4[%c0_18, %c0_19] : memref<32x1xf32, #tpu.memory_space<vmem>>, vector<32x1xf32>
    %29 = vector.broadcast %28 : vector<32x1xf32> to vector<32x128xf32>
    %30 = arith.addf %27, %29 : vector<32x128xf32>
    %cst_20 = arith.constant 0.000000e+00 : f32
    %31 = vector.broadcast %cst_20 : f32 to vector<32x128xf32>
    %32 = arith.cmpf ogt, %30, %31 : vector<32x128xf32>
    %cst_21 = arith.constant 2.500000e-01 : f32
    %33 = vector.broadcast %cst_21 : f32 to vector<32x128xf32>
    %34 = arith.mulf %33, %30 : vector<32x128xf32>
    %35 = arith.select %32, %30, %34 : vector<32x128xi1>, vector<32x128xf32>
    %36 = arith.truncf %35 : vector<32x128xf32> to vector<32x128xbf16>
    %c0_22 = arith.constant 0 : index
    %c0_23 = arith.constant 0 : index
    %37 = vector.load %arg5[%c0_22, %c0_23] : memref<32x128xbf16, #tpu.memory_space<vmem>>, vector<32x128xbf16>
    tpu.vector_store %arg5[%c0_22, %c0_23], %36 {strides = array<i32>} : memref<32x128xbf16, #tpu.memory_space<vmem>>, vector<32x128xbf16>,
    return
  }
  func.func @transform_0(%arg0: i32) -> (i32, i32, i32) {
    %c0_i32 = arith.constant 0 : i32
    %c0_i32_0 = arith.constant 0 : i32
    %c0_i32_1 = arith.constant 0 : i32
    return %c0_i32, %c0_i32_0, %arg0 : i32, i32, i32
  }
  func.func @transform_1(%arg0: i32) -> (i32, i32, i32) {
    %c1_i32 = arith.constant 1 : i32
    %0 = arith.addi %arg0, %c1_i32 : i32
    %c1_i32_0 = arith.constant 1 : i32
    %1 = arith.muli %0, %c1_i32_0 : i32
    %c0_i32 = arith.constant 0 : i32
    %c0_i32_1 = arith.constant 0 : i32
    %c0_i32_2 = arith.constant 0 : i32
    return %c0_i32, %c0_i32_1, %1 : i32, i32, i32
  }
  func.func @transform_2(%arg0: i32) -> (i32, i32, i32) {
    %c0_i32 = arith.constant 0 : i32
    %c0_i32_0 = arith.constant 0 : i32
    %c0_i32_1 = arith.constant 0 : i32
    %c0_i32_2 = arith.constant 0 : i32
    return %c0_i32, %c0_i32_0, %c0_i32_1 : i32, i32, i32
  }
  func.func @transform_3(%arg0: i32) -> (i32, i32) {
    %c0_i32 = arith.constant 0 : i32
    %c0_i32_0 = arith.constant 0 : i32
    %c0_i32_1 = arith.constant 0 : i32
    return %c0_i32, %c0_i32_0 : i32, i32
  }
  func.func @transform_4(%arg0: i32) -> (i32, i32) {
    %c0_i32 = arith.constant 0 : i32
    %c0_i32_0 = arith.constant 0 : i32
    return %c0_i32, %arg0 : i32, i32
  }
}

module attributes {stable_mosaic.version = 11 : i64} {
  func.func @kernel(%arg0: i32, %arg1: memref<1x8x512xbf16, #tpu.memory_space<vmem>>, %arg2: memref<1x8x256xbf16, #tpu.memory_space<vmem>>, %arg3: memref<49x1x8xbf16, #tpu.memory_space<vmem>>, %arg4: memref<1x1xf32, #tpu.memory_space<vmem>>, %arg5: memref<1x512xbf16, #tpu.memory_space<vmem>>) attributes {dimension_semantics = [#tpu.dimension_semantics<parallel>], iteration_bounds = array<i64: 2>, scalar_prefetch = 0 : i64, scratch_operands = 0 : i64, tpu.core_type = #tpu.core_type<tc>, window_params = [{transform_indices = @transform_0, window_bounds = array<i64: 1, 8, 512>}, {transform_indices = @transform_1, window_bounds = array<i64: 1, 8, 256>}, {pipeline_mode = #tpu.pipeline_mode<synchronous>, transform_indices = @transform_2, window_bounds = array<i64: 49, 1, 8>}, {pipeline_mode = #tpu.pipeline_mode<synchronous>, transform_indices = @transform_3, window_bounds = array<i64: 1, 1>}, {transform_indices = @transform_4, window_bounds = array<i64: 1, 512>}]} {
    %c0 = arith.constant 0 : index
    %c0_0 = arith.constant 0 : index
    %c0_1 = arith.constant 0 : index
    %0 = vector.load %arg1[%c0, %c0_0, %c0_1] : memref<1x8x512xbf16, #tpu.memory_space<vmem>>, vector<1x8x512xbf16>
    %c0_2 = arith.constant 0 : index
    %c0_3 = arith.constant 0 : index
    %c0_4 = arith.constant 0 : index
    %1 = vector.load %arg2[%c0_2, %c0_3, %c0_4] : memref<1x8x256xbf16, #tpu.memory_space<vmem>>, vector<1x8x256xbf16>
    %2 = tpu.concatenate %0, %1 in 2 : vector<1x8x512xbf16>, vector<1x8x256xbf16> -> vector<1x8x768xbf16>
    %cst = arith.constant 0.000000e+00 : f32
    %3 = vector.broadcast %cst : f32 to vector<1x512xf32>
    %4 = vector.extract_strided_slice %2 {offsets = [0, 0, 0], sizes = [1, 8, 512], strides = [1, 1, 1]} : vector<1x8x768xbf16> to vector<1x8x512xbf16>
    %5 = vector.shape_cast %4 : vector<1x8x512xbf16> to vector<8x512xbf16>
    %c0_5 = arith.constant 0 : index
    %c0_6 = arith.constant 0 : index
    %c0_7 = arith.constant 0 : index
    %6 = vector.load %arg3[%c0_5, %c0_6, %c0_7] : memref<49x1x8xbf16, #tpu.memory_space<vmem>>, vector<1x1x8xbf16>
    %7 = vector.shape_cast %6 : vector<1x1x8xbf16> to vector<1x8xbf16>
    %cst_8 = arith.constant dense<0.000000e+00> : vector<1x512xf32>
    %8 = tpu.matmul %7, %5, %cst_8 {dimension_numbers = #tpu.dot_dimension_numbers<[1], [0], [0], [1], [0, 0, 1, 1], [], []>} : vector<1x8xbf16>, vector<8x512xbf16>, vector<1x512xf32> -> vector<1x512xf32>
    %9 = arith.addf %3, %8 : vector<1x512xf32>
    %10 = vector.extract_strided_slice %2 {offsets = [0, 0, 1], sizes = [1, 8, 512], strides = [1, 1, 1]} : vector<1x8x768xbf16> to vector<1x8x512xbf16>
    %11 = vector.shape_cast %10 : vector<1x8x512xbf16> to vector<8x512xbf16>
    %c1 = arith.constant 1 : index
    %c0_9 = arith.constant 0 : index
    %c0_10 = arith.constant 0 : index
    %12 = vector.load %arg3[%c1, %c0_9, %c0_10] : memref<49x1x8xbf16, #tpu.memory_space<vmem>>, vector<1x1x8xbf16>
    %13 = vector.shape_cast %12 : vector<1x1x8xbf16> to vector<1x8xbf16>
    %cst_11 = arith.constant dense<0.000000e+00> : vector<1x512xf32>
    %14 = tpu.matmul %13, %11, %cst_11 {dimension_numbers = #tpu.dot_dimension_numbers<[1], [0], [0], [1], [0, 0, 1, 1], [], []>} : vector<1x8xbf16>, vector<8x512xbf16>, vector<1x512xf32> -> vector<1x512xf32>
    %15 = arith.addf %9, %14 : vector<1x512xf32>
    %16 = vector.extract_strided_slice %2 {offsets = [0, 0, 2], sizes = [1, 8, 512], strides = [1, 1, 1]} : vector<1x8x768xbf16> to vector<1x8x512xbf16>
    %17 = vector.shape_cast %16 : vector<1x8x512xbf16> to vector<8x512xbf16>
    %c2 = arith.constant 2 : index
    %c0_12 = arith.constant 0 : index
    %c0_13 = arith.constant 0 : index
    %18 = vector.load %arg3[%c2, %c0_12, %c0_13] : memref<49x1x8xbf16, #tpu.memory_space<vmem>>, vector<1x1x8xbf16>
    %19 = vector.shape_cast %18 : vector<1x1x8xbf16> to vector<1x8xbf16>
    %cst_14 = arith.constant dense<0.000000e+00> : vector<1x512xf32>
    %20 = tpu.matmul %19, %17, %cst_14 {dimension_numbers = #tpu.dot_dimension_numbers<[1], [0], [0], [1], [0, 0, 1, 1], [], []>} : vector<1x8xbf16>, vector<8x512xbf16>, vector<1x512xf32> -> vector<1x512xf32>
    %21 = arith.addf %15, %20 : vector<1x512xf32>
    %22 = vector.extract_strided_slice %2 {offsets = [0, 0, 3], sizes = [1, 8, 512], strides = [1, 1, 1]} : vector<1x8x768xbf16> to vector<1x8x512xbf16>
    %23 = vector.shape_cast %22 : vector<1x8x512xbf16> to vector<8x512xbf16>
    %c3 = arith.constant 3 : index
    %c0_15 = arith.constant 0 : index
    %c0_16 = arith.constant 0 : index
    %24 = vector.load %arg3[%c3, %c0_15, %c0_16] : memref<49x1x8xbf16, #tpu.memory_space<vmem>>, vector<1x1x8xbf16>
    %25 = vector.shape_cast %24 : vector<1x1x8xbf16> to vector<1x8xbf16>
    %cst_17 = arith.constant dense<0.000000e+00> : vector<1x512xf32>
    %26 = tpu.matmul %25, %23, %cst_17 {dimension_numbers = #tpu.dot_dimension_numbers<[1], [0], [0], [1], [0, 0, 1, 1], [], []>} : vector<1x8xbf16>, vector<8x512xbf16>, vector<1x512xf32> -> vector<1x512xf32>
    %27 = arith.addf %21, %26 : vector<1x512xf32>
    %28 = vector.extract_strided_slice %2 {offsets = [0, 0, 4], sizes = [1, 8, 512], strides = [1, 1, 1]} : vector<1x8x768xbf16> to vector<1x8x512xbf16>
    %29 = vector.shape_cast %28 : vector<1x8x512xbf16> to vector<8x512xbf16>
    %c4 = arith.constant 4 : index
    %c0_18 = arith.constant 0 : index
    %c0_19 = arith.constant 0 : index
    %30 = vector.load %arg3[%c4, %c0_18, %c0_19] : memref<49x1x8xbf16, #tpu.memory_space<vmem>>, vector<1x1x8xbf16>
    %31 = vector.shape_cast %30 : vector<1x1x8xbf16> to vector<1x8xbf16>
    %cst_20 = arith.constant dense<0.000000e+00> : vector<1x512xf32>
    %32 = tpu.matmul %31, %29, %cst_20 {dimension_numbers = #tpu.dot_dimension_numbers<[1], [0], [0], [1], [0, 0, 1, 1], [], []>} : vector<1x8xbf16>, vector<8x512xbf16>, vector<1x512xf32> -> vector<1x512xf32>
    %33 = arith.addf %27, %32 : vector<1x512xf32>
    %34 = vector.extract_strided_slice %2 {offsets = [0, 0, 5], sizes = [1, 8, 512], strides = [1, 1, 1]} : vector<1x8x768xbf16> to vector<1x8x512xbf16>
    %35 = vector.shape_cast %34 : vector<1x8x512xbf16> to vector<8x512xbf16>
    %c5 = arith.constant 5 : index
    %c0_21 = arith.constant 0 : index
    %c0_22 = arith.constant 0 : index
    %36 = vector.load %arg3[%c5, %c0_21, %c0_22] : memref<49x1x8xbf16, #tpu.memory_space<vmem>>, vector<1x1x8xbf16>
    %37 = vector.shape_cast %36 : vector<1x1x8xbf16> to vector<1x8xbf16>
    %cst_23 = arith.constant dense<0.000000e+00> : vector<1x512xf32>
    %38 = tpu.matmul %37, %35, %cst_23 {dimension_numbers = #tpu.dot_dimension_numbers<[1], [0], [0], [1], [0, 0, 1, 1], [], []>} : vector<1x8xbf16>, vector<8x512xbf16>, vector<1x512xf32> -> vector<1x512xf32>
    %39 = arith.addf %33, %38 : vector<1x512xf32>
    %40 = vector.extract_strided_slice %2 {offsets = [0, 0, 6], sizes = [1, 8, 512], strides = [1, 1, 1]} : vector<1x8x768xbf16> to vector<1x8x512xbf16>
    %41 = vector.shape_cast %40 : vector<1x8x512xbf16> to vector<8x512xbf16>
    %c6 = arith.constant 6 : index
    %c0_24 = arith.constant 0 : index
    %c0_25 = arith.constant 0 : index
    %42 = vector.load %arg3[%c6, %c0_24, %c0_25] : memref<49x1x8xbf16, #tpu.memory_space<vmem>>, vector<1x1x8xbf16>
    %43 = vector.shape_cast %42 : vector<1x1x8xbf16> to vector<1x8xbf16>
    %cst_26 = arith.constant dense<0.000000e+00> : vector<1x512xf32>
    %44 = tpu.matmul %43, %41, %cst_26 {dimension_numbers = #tpu.dot_dimension_numbers<[1], [0], [0], [1], [0, 0, 1, 1], [], []>} : vector<1x8xbf16>, vector<8x512xbf16>, vector<1x512xf32> -> vector<1x512xf32>
    %45 = arith.addf %39, %44 : vector<1x512xf32>
    %46 = vector.extract_strided_slice %2 {offsets = [0, 0, 22], sizes = [1, 8, 512], strides = [1, 1, 1]} : vector<1x8x768xbf16> to vector<1x8x512xbf16>
    %47 = vector.shape_cast %46 : vector<1x8x512xbf16> to vector<8x512xbf16>
    %c7 = arith.constant 7 : index
    %c0_27 = arith.constant 0 : index
    %c0_28 = arith.constant 0 : index
    %48 = vector.load %arg3[%c7, %c0_27, %c0_28] : memref<49x1x8xbf16, #tpu.memory_space<vmem>>, vector<1x1x8xbf16>
    %49 = vector.shape_cast %48 : vector<1x1x8xbf16> to vector<1x8xbf16>
    %cst_29 = arith.constant dense<0.000000e+00> : vector<1x512xf32>
    %50 = tpu.matmul %49, %47, %cst_29 {dimension_numbers = #tpu.dot_dimension_numbers<[1], [0], [0], [1], [0, 0, 1, 1], [], []>} : vector<1x8xbf16>, vector<8x512xbf16>, vector<1x512xf32> -> vector<1x512xf32>
    %51 = arith.addf %45, %50 : vector<1x512xf32>
    %52 = vector.extract_strided_slice %2 {offsets = [0, 0, 23], sizes = [1, 8, 512], strides = [1, 1, 1]} : vector<1x8x768xbf16> to vector<1x8x512xbf16>
    %53 = vector.shape_cast %52 : vector<1x8x512xbf16> to vector<8x512xbf16>
    %c8 = arith.constant 8 : index
    %c0_30 = arith.constant 0 : index
    %c0_31 = arith.constant 0 : index
    %54 = vector.load %arg3[%c8, %c0_30, %c0_31] : memref<49x1x8xbf16, #tpu.memory_space<vmem>>, vector<1x1x8xbf16>
    %55 = vector.shape_cast %54 : vector<1x1x8xbf16> to vector<1x8xbf16>
    %cst_32 = arith.constant dense<0.000000e+00> : vector<1x512xf32>
    %56 = tpu.matmul %55, %53, %cst_32 {dimension_numbers = #tpu.dot_dimension_numbers<[1], [0], [0], [1], [0, 0, 1, 1], [], []>} : vector<1x8xbf16>, vector<8x512xbf16>, vector<1x512xf32> -> vector<1x512xf32>
    %57 = arith.addf %51, %56 : vector<1x512xf32>
    %58 = vector.extract_strided_slice %2 {offsets = [0, 0, 24], sizes = [1, 8, 512], strides = [1, 1, 1]} : vector<1x8x768xbf16> to vector<1x8x512xbf16>
    %59 = vector.shape_cast %58 : vector<1x8x512xbf16> to vector<8x512xbf16>
    %c9 = arith.constant 9 : index
    %c0_33 = arith.constant 0 : index
    %c0_34 = arith.constant 0 : index
    %60 = vector.load %arg3[%c9, %c0_33, %c0_34] : memref<49x1x8xbf16, #tpu.memory_space<vmem>>, vector<1x1x8xbf16>
    %61 = vector.shape_cast %60 : vector<1x1x8xbf16> to vector<1x8xbf16>
    %cst_35 = arith.constant dense<0.000000e+00> : vector<1x512xf32>
    %62 = tpu.matmul %61, %59, %cst_35 {dimension_numbers = #tpu.dot_dimension_numbers<[1], [0], [0], [1], [0, 0, 1, 1], [], []>} : vector<1x8xbf16>, vector<8x512xbf16>, vector<1x512xf32> -> vector<1x512xf32>
    %63 = arith.addf %57, %62 : vector<1x512xf32>
    %64 = vector.extract_strided_slice %2 {offsets = [0, 0, 25], sizes = [1, 8, 512], strides = [1, 1, 1]} : vector<1x8x768xbf16> to vector<1x8x512xbf16>
    %65 = vector.shape_cast %64 : vector<1x8x512xbf16> to vector<8x512xbf16>
    %c10 = arith.constant 10 : index
    %c0_36 = arith.constant 0 : index
    %c0_37 = arith.constant 0 : index
    %66 = vector.load %arg3[%c10, %c0_36, %c0_37] : memref<49x1x8xbf16, #tpu.memory_space<vmem>>, vector<1x1x8xbf16>
    %67 = vector.shape_cast %66 : vector<1x1x8xbf16> to vector<1x8xbf16>
    %cst_38 = arith.constant dense<0.000000e+00> : vector<1x512xf32>
    %68 = tpu.matmul %67, %65, %cst_38 {dimension_numbers = #tpu.dot_dimension_numbers<[1], [0], [0], [1], [0, 0, 1, 1], [], []>} : vector<1x8xbf16>, vector<8x512xbf16>, vector<1x512xf32> -> vector<1x512xf32>
    %69 = arith.addf %63, %68 : vector<1x512xf32>
    %70 = vector.extract_strided_slice %2 {offsets = [0, 0, 26], sizes = [1, 8, 512], strides = [1, 1, 1]} : vector<1x8x768xbf16> to vector<1x8x512xbf16>
    %71 = vector.shape_cast %70 : vector<1x8x512xbf16> to vector<8x512xbf16>
    %c11 = arith.constant 11 : index
    %c0_39 = arith.constant 0 : index
    %c0_40 = arith.constant 0 : index
    %72 = vector.load %arg3[%c11, %c0_39, %c0_40] : memref<49x1x8xbf16, #tpu.memory_space<vmem>>, vector<1x1x8xbf16>
    %73 = vector.shape_cast %72 : vector<1x1x8xbf16> to vector<1x8xbf16>
    %cst_41 = arith.constant dense<0.000000e+00> : vector<1x512xf32>
    %74 = tpu.matmul %73, %71, %cst_41 {dimension_numbers = #tpu.dot_dimension_numbers<[1], [0], [0], [1], [0, 0, 1, 1], [], []>} : vector<1x8xbf16>, vector<8x512xbf16>, vector<1x512xf32> -> vector<1x512xf32>
    %75 = arith.addf %69, %74 : vector<1x512xf32>
    %76 = vector.extract_strided_slice %2 {offsets = [0, 0, 27], sizes = [1, 8, 512], strides = [1, 1, 1]} : vector<1x8x768xbf16> to vector<1x8x512xbf16>
    %77 = vector.shape_cast %76 : vector<1x8x512xbf16> to vector<8x512xbf16>
    %c12 = arith.constant 12 : index
    %c0_42 = arith.constant 0 : index
    %c0_43 = arith.constant 0 : index
    %78 = vector.load %arg3[%c12, %c0_42, %c0_43] : memref<49x1x8xbf16, #tpu.memory_space<vmem>>, vector<1x1x8xbf16>
    %79 = vector.shape_cast %78 : vector<1x1x8xbf16> to vector<1x8xbf16>
    %cst_44 = arith.constant dense<0.000000e+00> : vector<1x512xf32>
    %80 = tpu.matmul %79, %77, %cst_44 {dimension_numbers = #tpu.dot_dimension_numbers<[1], [0], [0], [1], [0, 0, 1, 1], [], []>} : vector<1x8xbf16>, vector<8x512xbf16>, vector<1x512xf32> -> vector<1x512xf32>
    %81 = arith.addf %75, %80 : vector<1x512xf32>
    %82 = vector.extract_strided_slice %2 {offsets = [0, 0, 28], sizes = [1, 8, 512], strides = [1, 1, 1]} : vector<1x8x768xbf16> to vector<1x8x512xbf16>
    %83 = vector.shape_cast %82 : vector<1x8x512xbf16> to vector<8x512xbf16>
    %c13 = arith.constant 13 : index
    %c0_45 = arith.constant 0 : index
    %c0_46 = arith.constant 0 : index
    %84 = vector.load %arg3[%c13, %c0_45, %c0_46] : memref<49x1x8xbf16, #tpu.memory_space<vmem>>, vector<1x1x8xbf16>
    %85 = vector.shape_cast %84 : vector<1x1x8xbf16> to vector<1x8xbf16>
    %cst_47 = arith.constant dense<0.000000e+00> : vector<1x512xf32>
    %86 = tpu.matmul %85, %83, %cst_47 {dimension_numbers = #tpu.dot_dimension_numbers<[1], [0], [0], [1], [0, 0, 1, 1], [], []>} : vector<1x8xbf16>, vector<8x512xbf16>, vector<1x512xf32> -> vector<1x512xf32>
    %87 = arith.addf %81, %86 : vector<1x512xf32>
    %88 = vector.extract_strided_slice %2 {offsets = [0, 0, 44], sizes = [1, 8, 512], strides = [1, 1, 1]} : vector<1x8x768xbf16> to vector<1x8x512xbf16>
    %89 = vector.shape_cast %88 : vector<1x8x512xbf16> to vector<8x512xbf16>
    %c14 = arith.constant 14 : index
    %c0_48 = arith.constant 0 : index
    %c0_49 = arith.constant 0 : index
    %90 = vector.load %arg3[%c14, %c0_48, %c0_49] : memref<49x1x8xbf16, #tpu.memory_space<vmem>>, vector<1x1x8xbf16>
    %91 = vector.shape_cast %90 : vector<1x1x8xbf16> to vector<1x8xbf16>
    %cst_50 = arith.constant dense<0.000000e+00> : vector<1x512xf32>
    %92 = tpu.matmul %91, %89, %cst_50 {dimension_numbers = #tpu.dot_dimension_numbers<[1], [0], [0], [1], [0, 0, 1, 1], [], []>} : vector<1x8xbf16>, vector<8x512xbf16>, vector<1x512xf32> -> vector<1x512xf32>
    %93 = arith.addf %87, %92 : vector<1x512xf32>
    %94 = vector.extract_strided_slice %2 {offsets = [0, 0, 45], sizes = [1, 8, 512], strides = [1, 1, 1]} : vector<1x8x768xbf16> to vector<1x8x512xbf16>
    %95 = vector.shape_cast %94 : vector<1x8x512xbf16> to vector<8x512xbf16>
    %c15 = arith.constant 15 : index
    %c0_51 = arith.constant 0 : index
    %c0_52 = arith.constant 0 : index
    %96 = vector.load %arg3[%c15, %c0_51, %c0_52] : memref<49x1x8xbf16, #tpu.memory_space<vmem>>, vector<1x1x8xbf16>
    %97 = vector.shape_cast %96 : vector<1x1x8xbf16> to vector<1x8xbf16>
    %cst_53 = arith.constant dense<0.000000e+00> : vector<1x512xf32>
    %98 = tpu.matmul %97, %95, %cst_53 {dimension_numbers = #tpu.dot_dimension_numbers<[1], [0], [0], [1], [0, 0, 1, 1], [], []>} : vector<1x8xbf16>, vector<8x512xbf16>, vector<1x512xf32> -> vector<1x512xf32>
    %99 = arith.addf %93, %98 : vector<1x512xf32>
    %100 = vector.extract_strided_slice %2 {offsets = [0, 0, 46], sizes = [1, 8, 512], strides = [1, 1, 1]} : vector<1x8x768xbf16> to vector<1x8x512xbf16>
    %101 = vector.shape_cast %100 : vector<1x8x512xbf16> to vector<8x512xbf16>
    %c16 = arith.constant 16 : index
    %c0_54 = arith.constant 0 : index
    %c0_55 = arith.constant 0 : index
    %102 = vector.load %arg3[%c16, %c0_54, %c0_55] : memref<49x1x8xbf16, #tpu.memory_space<vmem>>, vector<1x1x8xbf16>
    %103 = vector.shape_cast %102 : vector<1x1x8xbf16> to vector<1x8xbf16>
    %cst_56 = arith.constant dense<0.000000e+00> : vector<1x512xf32>
    %104 = tpu.matmul %103, %101, %cst_56 {dimension_numbers = #tpu.dot_dimension_numbers<[1], [0], [0], [1], [0, 0, 1, 1], [], []>} : vector<1x8xbf16>, vector<8x512xbf16>, vector<1x512xf32> -> vector<1x512xf32>
    %105 = arith.addf %99, %104 : vector<1x512xf32>
    %106 = vector.extract_strided_slice %2 {offsets = [0, 0, 47], sizes = [1, 8, 512], strides = [1, 1, 1]} : vector<1x8x768xbf16> to vector<1x8x512xbf16>
    %107 = vector.shape_cast %106 : vector<1x8x512xbf16> to vector<8x512xbf16>
    %c17 = arith.constant 17 : index
    %c0_57 = arith.constant 0 : index
    %c0_58 = arith.constant 0 : index
    %108 = vector.load %arg3[%c17, %c0_57, %c0_58] : memref<49x1x8xbf16, #tpu.memory_space<vmem>>, vector<1x1x8xbf16>
    %109 = vector.shape_cast %108 : vector<1x1x8xbf16> to vector<1x8xbf16>
    %cst_59 = arith.constant dense<0.000000e+00> : vector<1x512xf32>
    %110 = tpu.matmul %109, %107, %cst_59 {dimension_numbers = #tpu.dot_dimension_numbers<[1], [0], [0], [1], [0, 0, 1, 1], [], []>} : vector<1x8xbf16>, vector<8x512xbf16>, vector<1x512xf32> -> vector<1x512xf32>
    %111 = arith.addf %105, %110 : vector<1x512xf32>
    %112 = vector.extract_strided_slice %2 {offsets = [0, 0, 48], sizes = [1, 8, 512], strides = [1, 1, 1]} : vector<1x8x768xbf16> to vector<1x8x512xbf16>
    %113 = vector.shape_cast %112 : vector<1x8x512xbf16> to vector<8x512xbf16>
    %c18 = arith.constant 18 : index
    %c0_60 = arith.constant 0 : index
    %c0_61 = arith.constant 0 : index
    %114 = vector.load %arg3[%c18, %c0_60, %c0_61] : memref<49x1x8xbf16, #tpu.memory_space<vmem>>, vector<1x1x8xbf16>
    %115 = vector.shape_cast %114 : vector<1x1x8xbf16> to vector<1x8xbf16>
    %cst_62 = arith.constant dense<0.000000e+00> : vector<1x512xf32>
    %116 = tpu.matmul %115, %113, %cst_62 {dimension_numbers = #tpu.dot_dimension_numbers<[1], [0], [0], [1], [0, 0, 1, 1], [], []>} : vector<1x8xbf16>, vector<8x512xbf16>, vector<1x512xf32> -> vector<1x512xf32>
    %117 = arith.addf %111, %116 : vector<1x512xf32>
    %118 = vector.extract_strided_slice %2 {offsets = [0, 0, 49], sizes = [1, 8, 512], strides = [1, 1, 1]} : vector<1x8x768xbf16> to vector<1x8x512xbf16>
    %119 = vector.shape_cast %118 : vector<1x8x512xbf16> to vector<8x512xbf16>
    %c19 = arith.constant 19 : index
    %c0_63 = arith.constant 0 : index
    %c0_64 = arith.constant 0 : index
    %120 = vector.load %arg3[%c19, %c0_63, %c0_64] : memref<49x1x8xbf16, #tpu.memory_space<vmem>>, vector<1x1x8xbf16>
    %121 = vector.shape_cast %120 : vector<1x1x8xbf16> to vector<1x8xbf16>
    %cst_65 = arith.constant dense<0.000000e+00> : vector<1x512xf32>
    %122 = tpu.matmul %121, %119, %cst_65 {dimension_numbers = #tpu.dot_dimension_numbers<[1], [0], [0], [1], [0, 0, 1, 1], [], []>} : vector<1x8xbf16>, vector<8x512xbf16>, vector<1x512xf32> -> vector<1x512xf32>
    %123 = arith.addf %117, %122 : vector<1x512xf32>
    %124 = vector.extract_strided_slice %2 {offsets = [0, 0, 50], sizes = [1, 8, 512], strides = [1, 1, 1]} : vector<1x8x768xbf16> to vector<1x8x512xbf16>
    %125 = vector.shape_cast %124 : vector<1x8x512xbf16> to vector<8x512xbf16>
    %c20 = arith.constant 20 : index
    %c0_66 = arith.constant 0 : index
    %c0_67 = arith.constant 0 : index
    %126 = vector.load %arg3[%c20, %c0_66, %c0_67] : memref<49x1x8xbf16, #tpu.memory_space<vmem>>, vector<1x1x8xbf16>
    %127 = vector.shape_cast %126 : vector<1x1x8xbf16> to vector<1x8xbf16>
    %cst_68 = arith.constant dense<0.000000e+00> : vector<1x512xf32>
    %128 = tpu.matmul %127, %125, %cst_68 {dimension_numbers = #tpu.dot_dimension_numbers<[1], [0], [0], [1], [0, 0, 1, 1], [], []>} : vector<1x8xbf16>, vector<8x512xbf16>, vector<1x512xf32> -> vector<1x512xf32>
    %129 = arith.addf %123, %128 : vector<1x512xf32>
    %130 = vector.extract_strided_slice %2 {offsets = [0, 0, 66], sizes = [1, 8, 512], strides = [1, 1, 1]} : vector<1x8x768xbf16> to vector<1x8x512xbf16>
    %131 = vector.shape_cast %130 : vector<1x8x512xbf16> to vector<8x512xbf16>
    %c21 = arith.constant 21 : index
    %c0_69 = arith.constant 0 : index
    %c0_70 = arith.constant 0 : index
    %132 = vector.load %arg3[%c21, %c0_69, %c0_70] : memref<49x1x8xbf16, #tpu.memory_space<vmem>>, vector<1x1x8xbf16>
    %133 = vector.shape_cast %132 : vector<1x1x8xbf16> to vector<1x8xbf16>
    %cst_71 = arith.constant dense<0.000000e+00> : vector<1x512xf32>
    %134 = tpu.matmul %133, %131, %cst_71 {dimension_numbers = #tpu.dot_dimension_numbers<[1], [0], [0], [1], [0, 0, 1, 1], [], []>} : vector<1x8xbf16>, vector<8x512xbf16>, vector<1x512xf32> -> vector<1x512xf32>
    %135 = arith.addf %129, %134 : vector<1x512xf32>
    %136 = vector.extract_strided_slice %2 {offsets = [0, 0, 67], sizes = [1, 8, 512], strides = [1, 1, 1]} : vector<1x8x768xbf16> to vector<1x8x512xbf16>
    %137 = vector.shape_cast %136 : vector<1x8x512xbf16> to vector<8x512xbf16>
    %c22 = arith.constant 22 : index
    %c0_72 = arith.constant 0 : index
    %c0_73 = arith.constant 0 : index
    %138 = vector.load %arg3[%c22, %c0_72, %c0_73] : memref<49x1x8xbf16, #tpu.memory_space<vmem>>, vector<1x1x8xbf16>
    %139 = vector.shape_cast %138 : vector<1x1x8xbf16> to vector<1x8xbf16>
    %cst_74 = arith.constant dense<0.000000e+00> : vector<1x512xf32>
    %140 = tpu.matmul %139, %137, %cst_74 {dimension_numbers = #tpu.dot_dimension_numbers<[1], [0], [0], [1], [0, 0, 1, 1], [], []>} : vector<1x8xbf16>, vector<8x512xbf16>, vector<1x512xf32> -> vector<1x512xf32>
    %141 = arith.addf %135, %140 : vector<1x512xf32>
    %142 = vector.extract_strided_slice %2 {offsets = [0, 0, 68], sizes = [1, 8, 512], strides = [1, 1, 1]} : vector<1x8x768xbf16> to vector<1x8x512xbf16>
    %143 = vector.shape_cast %142 : vector<1x8x512xbf16> to vector<8x512xbf16>
    %c23 = arith.constant 23 : index
    %c0_75 = arith.constant 0 : index
    %c0_76 = arith.constant 0 : index
    %144 = vector.load %arg3[%c23, %c0_75, %c0_76] : memref<49x1x8xbf16, #tpu.memory_space<vmem>>, vector<1x1x8xbf16>
    %145 = vector.shape_cast %144 : vector<1x1x8xbf16> to vector<1x8xbf16>
    %cst_77 = arith.constant dense<0.000000e+00> : vector<1x512xf32>
    %146 = tpu.matmul %145, %143, %cst_77 {dimension_numbers = #tpu.dot_dimension_numbers<[1], [0], [0], [1], [0, 0, 1, 1], [], []>} : vector<1x8xbf16>, vector<8x512xbf16>, vector<1x512xf32> -> vector<1x512xf32>
    %147 = arith.addf %141, %146 : vector<1x512xf32>
    %148 = vector.extract_strided_slice %2 {offsets = [0, 0, 69], sizes = [1, 8, 512], strides = [1, 1, 1]} : vector<1x8x768xbf16> to vector<1x8x512xbf16>
    %149 = vector.shape_cast %148 : vector<1x8x512xbf16> to vector<8x512xbf16>
    %c24 = arith.constant 24 : index
    %c0_78 = arith.constant 0 : index
    %c0_79 = arith.constant 0 : index
    %150 = vector.load %arg3[%c24, %c0_78, %c0_79] : memref<49x1x8xbf16, #tpu.memory_space<vmem>>, vector<1x1x8xbf16>
    %151 = vector.shape_cast %150 : vector<1x1x8xbf16> to vector<1x8xbf16>
    %cst_80 = arith.constant dense<0.000000e+00> : vector<1x512xf32>
    %152 = tpu.matmul %151, %149, %cst_80 {dimension_numbers = #tpu.dot_dimension_numbers<[1], [0], [0], [1], [0, 0, 1, 1], [], []>} : vector<1x8xbf16>, vector<8x512xbf16>, vector<1x512xf32> -> vector<1x512xf32>
    %153 = arith.addf %147, %152 : vector<1x512xf32>
    %154 = vector.extract_strided_slice %2 {offsets = [0, 0, 70], sizes = [1, 8, 512], strides = [1, 1, 1]} : vector<1x8x768xbf16> to vector<1x8x512xbf16>
    %155 = vector.shape_cast %154 : vector<1x8x512xbf16> to vector<8x512xbf16>
    %c25 = arith.constant 25 : index
    %c0_81 = arith.constant 0 : index
    %c0_82 = arith.constant 0 : index
    %156 = vector.load %arg3[%c25, %c0_81, %c0_82] : memref<49x1x8xbf16, #tpu.memory_space<vmem>>, vector<1x1x8xbf16>
    %157 = vector.shape_cast %156 : vector<1x1x8xbf16> to vector<1x8xbf16>
    %cst_83 = arith.constant dense<0.000000e+00> : vector<1x512xf32>
    %158 = tpu.matmul %157, %155, %cst_83 {dimension_numbers = #tpu.dot_dimension_numbers<[1], [0], [0], [1], [0, 0, 1, 1], [], []>} : vector<1x8xbf16>, vector<8x512xbf16>, vector<1x512xf32> -> vector<1x512xf32>
    %159 = arith.addf %153, %158 : vector<1x512xf32>
    %160 = vector.extract_strided_slice %2 {offsets = [0, 0, 71], sizes = [1, 8, 512], strides = [1, 1, 1]} : vector<1x8x768xbf16> to vector<1x8x512xbf16>
    %161 = vector.shape_cast %160 : vector<1x8x512xbf16> to vector<8x512xbf16>
    %c26 = arith.constant 26 : index
    %c0_84 = arith.constant 0 : index
    %c0_85 = arith.constant 0 : index
    %162 = vector.load %arg3[%c26, %c0_84, %c0_85] : memref<49x1x8xbf16, #tpu.memory_space<vmem>>, vector<1x1x8xbf16>
    %163 = vector.shape_cast %162 : vector<1x1x8xbf16> to vector<1x8xbf16>
    %cst_86 = arith.constant dense<0.000000e+00> : vector<1x512xf32>
    %164 = tpu.matmul %163, %161, %cst_86 {dimension_numbers = #tpu.dot_dimension_numbers<[1], [0], [0], [1], [0, 0, 1, 1], [], []>} : vector<1x8xbf16>, vector<8x512xbf16>, vector<1x512xf32> -> vector<1x512xf32>
    %165 = arith.addf %159, %164 : vector<1x512xf32>
    %166 = vector.extract_strided_slice %2 {offsets = [0, 0, 72], sizes = [1, 8, 512], strides = [1, 1, 1]} : vector<1x8x768xbf16> to vector<1x8x512xbf16>
    %167 = vector.shape_cast %166 : vector<1x8x512xbf16> to vector<8x512xbf16>
    %c27 = arith.constant 27 : index
    %c0_87 = arith.constant 0 : index
    %c0_88 = arith.constant 0 : index
    %168 = vector.load %arg3[%c27, %c0_87, %c0_88] : memref<49x1x8xbf16, #tpu.memory_space<vmem>>, vector<1x1x8xbf16>
    %169 = vector.shape_cast %168 : vector<1x1x8xbf16> to vector<1x8xbf16>
    %cst_89 = arith.constant dense<0.000000e+00> : vector<1x512xf32>
    %170 = tpu.matmul %169, %167, %cst_89 {dimension_numbers = #tpu.dot_dimension_numbers<[1], [0], [0], [1], [0, 0, 1, 1], [], []>} : vector<1x8xbf16>, vector<8x512xbf16>, vector<1x512xf32> -> vector<1x512xf32>
    %171 = arith.addf %165, %170 : vector<1x512xf32>
    %172 = vector.extract_strided_slice %2 {offsets = [0, 0, 88], sizes = [1, 8, 512], strides = [1, 1, 1]} : vector<1x8x768xbf16> to vector<1x8x512xbf16>
    %173 = vector.shape_cast %172 : vector<1x8x512xbf16> to vector<8x512xbf16>
    %c28 = arith.constant 28 : index
    %c0_90 = arith.constant 0 : index
    %c0_91 = arith.constant 0 : index
    %174 = vector.load %arg3[%c28, %c0_90, %c0_91] : memref<49x1x8xbf16, #tpu.memory_space<vmem>>, vector<1x1x8xbf16>
    %175 = vector.shape_cast %174 : vector<1x1x8xbf16> to vector<1x8xbf16>
    %cst_92 = arith.constant dense<0.000000e+00> : vector<1x512xf32>
    %176 = tpu.matmul %175, %173, %cst_92 {dimension_numbers = #tpu.dot_dimension_numbers<[1], [0], [0], [1], [0, 0, 1, 1], [], []>} : vector<1x8xbf16>, vector<8x512xbf16>, vector<1x512xf32> -> vector<1x512xf32>
    %177 = arith.addf %171, %176 : vector<1x512xf32>
    %178 = vector.extract_strided_slice %2 {offsets = [0, 0, 89], sizes = [1, 8, 512], strides = [1, 1, 1]} : vector<1x8x768xbf16> to vector<1x8x512xbf16>
    %179 = vector.shape_cast %178 : vector<1x8x512xbf16> to vector<8x512xbf16>
    %c29 = arith.constant 29 : index
    %c0_93 = arith.constant 0 : index
    %c0_94 = arith.constant 0 : index
    %180 = vector.load %arg3[%c29, %c0_93, %c0_94] : memref<49x1x8xbf16, #tpu.memory_space<vmem>>, vector<1x1x8xbf16>
    %181 = vector.shape_cast %180 : vector<1x1x8xbf16> to vector<1x8xbf16>
    %cst_95 = arith.constant dense<0.000000e+00> : vector<1x512xf32>
    %182 = tpu.matmul %181, %179, %cst_95 {dimension_numbers = #tpu.dot_dimension_numbers<[1], [0], [0], [1], [0, 0, 1, 1], [], []>} : vector<1x8xbf16>, vector<8x512xbf16>, vector<1x512xf32> -> vector<1x512xf32>
    %183 = arith.addf %177, %182 : vector<1x512xf32>
    %184 = vector.extract_strided_slice %2 {offsets = [0, 0, 90], sizes = [1, 8, 512], strides = [1, 1, 1]} : vector<1x8x768xbf16> to vector<1x8x512xbf16>
    %185 = vector.shape_cast %184 : vector<1x8x512xbf16> to vector<8x512xbf16>
    %c30 = arith.constant 30 : index
    %c0_96 = arith.constant 0 : index
    %c0_97 = arith.constant 0 : index
    %186 = vector.load %arg3[%c30, %c0_96, %c0_97] : memref<49x1x8xbf16, #tpu.memory_space<vmem>>, vector<1x1x8xbf16>
    %187 = vector.shape_cast %186 : vector<1x1x8xbf16> to vector<1x8xbf16>
    %cst_98 = arith.constant dense<0.000000e+00> : vector<1x512xf32>
    %188 = tpu.matmul %187, %185, %cst_98 {dimension_numbers = #tpu.dot_dimension_numbers<[1], [0], [0], [1], [0, 0, 1, 1], [], []>} : vector<1x8xbf16>, vector<8x512xbf16>, vector<1x512xf32> -> vector<1x512xf32>
    %189 = arith.addf %183, %188 : vector<1x512xf32>
    %190 = vector.extract_strided_slice %2 {offsets = [0, 0, 91], sizes = [1, 8, 512], strides = [1, 1, 1]} : vector<1x8x768xbf16> to vector<1x8x512xbf16>
    %191 = vector.shape_cast %190 : vector<1x8x512xbf16> to vector<8x512xbf16>
    %c31 = arith.constant 31 : index
    %c0_99 = arith.constant 0 : index
    %c0_100 = arith.constant 0 : index
    %192 = vector.load %arg3[%c31, %c0_99, %c0_100] : memref<49x1x8xbf16, #tpu.memory_space<vmem>>, vector<1x1x8xbf16>
    %193 = vector.shape_cast %192 : vector<1x1x8xbf16> to vector<1x8xbf16>
    %cst_101 = arith.constant dense<0.000000e+00> : vector<1x512xf32>
    %194 = tpu.matmul %193, %191, %cst_101 {dimension_numbers = #tpu.dot_dimension_numbers<[1], [0], [0], [1], [0, 0, 1, 1], [], []>} : vector<1x8xbf16>, vector<8x512xbf16>, vector<1x512xf32> -> vector<1x512xf32>
    %195 = arith.addf %189, %194 : vector<1x512xf32>
    %196 = vector.extract_strided_slice %2 {offsets = [0, 0, 92], sizes = [1, 8, 512], strides = [1, 1, 1]} : vector<1x8x768xbf16> to vector<1x8x512xbf16>
    %197 = vector.shape_cast %196 : vector<1x8x512xbf16> to vector<8x512xbf16>
    %c32 = arith.constant 32 : index
    %c0_102 = arith.constant 0 : index
    %c0_103 = arith.constant 0 : index
    %198 = vector.load %arg3[%c32, %c0_102, %c0_103] : memref<49x1x8xbf16, #tpu.memory_space<vmem>>, vector<1x1x8xbf16>
    %199 = vector.shape_cast %198 : vector<1x1x8xbf16> to vector<1x8xbf16>
    %cst_104 = arith.constant dense<0.000000e+00> : vector<1x512xf32>
    %200 = tpu.matmul %199, %197, %cst_104 {dimension_numbers = #tpu.dot_dimension_numbers<[1], [0], [0], [1], [0, 0, 1, 1], [], []>} : vector<1x8xbf16>, vector<8x512xbf16>, vector<1x512xf32> -> vector<1x512xf32>
    %201 = arith.addf %195, %200 : vector<1x512xf32>
    %202 = vector.extract_strided_slice %2 {offsets = [0, 0, 93], sizes = [1, 8, 512], strides = [1, 1, 1]} : vector<1x8x768xbf16> to vector<1x8x512xbf16>
    %203 = vector.shape_cast %202 : vector<1x8x512xbf16> to vector<8x512xbf16>
    %c33 = arith.constant 33 : index
    %c0_105 = arith.constant 0 : index
    %c0_106 = arith.constant 0 : index
    %204 = vector.load %arg3[%c33, %c0_105, %c0_106] : memref<49x1x8xbf16, #tpu.memory_space<vmem>>, vector<1x1x8xbf16>
    %205 = vector.shape_cast %204 : vector<1x1x8xbf16> to vector<1x8xbf16>
    %cst_107 = arith.constant dense<0.000000e+00> : vector<1x512xf32>
    %206 = tpu.matmul %205, %203, %cst_107 {dimension_numbers = #tpu.dot_dimension_numbers<[1], [0], [0], [1], [0, 0, 1, 1], [], []>} : vector<1x8xbf16>, vector<8x512xbf16>, vector<1x512xf32> -> vector<1x512xf32>
    %207 = arith.addf %201, %206 : vector<1x512xf32>
    %208 = vector.extract_strided_slice %2 {offsets = [0, 0, 94], sizes = [1, 8, 512], strides = [1, 1, 1]} : vector<1x8x768xbf16> to vector<1x8x512xbf16>
    %209 = vector.shape_cast %208 : vector<1x8x512xbf16> to vector<8x512xbf16>
    %c34 = arith.constant 34 : index
    %c0_108 = arith.constant 0 : index
    %c0_109 = arith.constant 0 : index
    %210 = vector.load %arg3[%c34, %c0_108, %c0_109] : memref<49x1x8xbf16, #tpu.memory_space<vmem>>, vector<1x1x8xbf16>
    %211 = vector.shape_cast %210 : vector<1x1x8xbf16> to vector<1x8xbf16>
    %cst_110 = arith.constant dense<0.000000e+00> : vector<1x512xf32>
    %212 = tpu.matmul %211, %209, %cst_110 {dimension_numbers = #tpu.dot_dimension_numbers<[1], [0], [0], [1], [0, 0, 1, 1], [], []>} : vector<1x8xbf16>, vector<8x512xbf16>, vector<1x512xf32> -> vector<1x512xf32>
    %213 = arith.addf %207, %212 : vector<1x512xf32>
    %214 = vector.extract_strided_slice %2 {offsets = [0, 0, 110], sizes = [1, 8, 512], strides = [1, 1, 1]} : vector<1x8x768xbf16> to vector<1x8x512xbf16>
    %215 = vector.shape_cast %214 : vector<1x8x512xbf16> to vector<8x512xbf16>
    %c35 = arith.constant 35 : index
    %c0_111 = arith.constant 0 : index
    %c0_112 = arith.constant 0 : index
    %216 = vector.load %arg3[%c35, %c0_111, %c0_112] : memref<49x1x8xbf16, #tpu.memory_space<vmem>>, vector<1x1x8xbf16>
    %217 = vector.shape_cast %216 : vector<1x1x8xbf16> to vector<1x8xbf16>
    %cst_113 = arith.constant dense<0.000000e+00> : vector<1x512xf32>
    %218 = tpu.matmul %217, %215, %cst_113 {dimension_numbers = #tpu.dot_dimension_numbers<[1], [0], [0], [1], [0, 0, 1, 1], [], []>} : vector<1x8xbf16>, vector<8x512xbf16>, vector<1x512xf32> -> vector<1x512xf32>
    %219 = arith.addf %213, %218 : vector<1x512xf32>
    %220 = vector.extract_strided_slice %2 {offsets = [0, 0, 111], sizes = [1, 8, 512], strides = [1, 1, 1]} : vector<1x8x768xbf16> to vector<1x8x512xbf16>
    %221 = vector.shape_cast %220 : vector<1x8x512xbf16> to vector<8x512xbf16>
    %c36 = arith.constant 36 : index
    %c0_114 = arith.constant 0 : index
    %c0_115 = arith.constant 0 : index
    %222 = vector.load %arg3[%c36, %c0_114, %c0_115] : memref<49x1x8xbf16, #tpu.memory_space<vmem>>, vector<1x1x8xbf16>
    %223 = vector.shape_cast %222 : vector<1x1x8xbf16> to vector<1x8xbf16>
    %cst_116 = arith.constant dense<0.000000e+00> : vector<1x512xf32>
    %224 = tpu.matmul %223, %221, %cst_116 {dimension_numbers = #tpu.dot_dimension_numbers<[1], [0], [0], [1], [0, 0, 1, 1], [], []>} : vector<1x8xbf16>, vector<8x512xbf16>, vector<1x512xf32> -> vector<1x512xf32>
    %225 = arith.addf %219, %224 : vector<1x512xf32>
    %226 = vector.extract_strided_slice %2 {offsets = [0, 0, 112], sizes = [1, 8, 512], strides = [1, 1, 1]} : vector<1x8x768xbf16> to vector<1x8x512xbf16>
    %227 = vector.shape_cast %226 : vector<1x8x512xbf16> to vector<8x512xbf16>
    %c37 = arith.constant 37 : index
    %c0_117 = arith.constant 0 : index
    %c0_118 = arith.constant 0 : index
    %228 = vector.load %arg3[%c37, %c0_117, %c0_118] : memref<49x1x8xbf16, #tpu.memory_space<vmem>>, vector<1x1x8xbf16>
    %229 = vector.shape_cast %228 : vector<1x1x8xbf16> to vector<1x8xbf16>
    %cst_119 = arith.constant dense<0.000000e+00> : vector<1x512xf32>
    %230 = tpu.matmul %229, %227, %cst_119 {dimension_numbers = #tpu.dot_dimension_numbers<[1], [0], [0], [1], [0, 0, 1, 1], [], []>} : vector<1x8xbf16>, vector<8x512xbf16>, vector<1x512xf32> -> vector<1x512xf32>
    %231 = arith.addf %225, %230 : vector<1x512xf32>
    %232 = vector.extract_strided_slice %2 {offsets = [0, 0, 113], sizes = [1, 8, 512], strides = [1, 1, 1]} : vector<1x8x768xbf16> to vector<1x8x512xbf16>
    %233 = vector.shape_cast %232 : vector<1x8x512xbf16> to vector<8x512xbf16>
    %c38 = arith.constant 38 : index
    %c0_120 = arith.constant 0 : index
    %c0_121 = arith.constant 0 : index
    %234 = vector.load %arg3[%c38, %c0_120, %c0_121] : memref<49x1x8xbf16, #tpu.memory_space<vmem>>, vector<1x1x8xbf16>
    %235 = vector.shape_cast %234 : vector<1x1x8xbf16> to vector<1x8xbf16>
    %cst_122 = arith.constant dense<0.000000e+00> : vector<1x512xf32>
    %236 = tpu.matmul %235, %233, %cst_122 {dimension_numbers = #tpu.dot_dimension_numbers<[1], [0], [0], [1], [0, 0, 1, 1], [], []>} : vector<1x8xbf16>, vector<8x512xbf16>, vector<1x512xf32> -> vector<1x512xf32>
    %237 = arith.addf %231, %236 : vector<1x512xf32>
    %238 = vector.extract_strided_slice %2 {offsets = [0, 0, 114], sizes = [1, 8, 512], strides = [1, 1, 1]} : vector<1x8x768xbf16> to vector<1x8x512xbf16>
    %239 = vector.shape_cast %238 : vector<1x8x512xbf16> to vector<8x512xbf16>
    %c39 = arith.constant 39 : index
    %c0_123 = arith.constant 0 : index
    %c0_124 = arith.constant 0 : index
    %240 = vector.load %arg3[%c39, %c0_123, %c0_124] : memref<49x1x8xbf16, #tpu.memory_space<vmem>>, vector<1x1x8xbf16>
    %241 = vector.shape_cast %240 : vector<1x1x8xbf16> to vector<1x8xbf16>
    %cst_125 = arith.constant dense<0.000000e+00> : vector<1x512xf32>
    %242 = tpu.matmul %241, %239, %cst_125 {dimension_numbers = #tpu.dot_dimension_numbers<[1], [0], [0], [1], [0, 0, 1, 1], [], []>} : vector<1x8xbf16>, vector<8x512xbf16>, vector<1x512xf32> -> vector<1x512xf32>
    %243 = arith.addf %237, %242 : vector<1x512xf32>
    %244 = vector.extract_strided_slice %2 {offsets = [0, 0, 115], sizes = [1, 8, 512], strides = [1, 1, 1]} : vector<1x8x768xbf16> to vector<1x8x512xbf16>
    %245 = vector.shape_cast %244 : vector<1x8x512xbf16> to vector<8x512xbf16>
    %c40 = arith.constant 40 : index
    %c0_126 = arith.constant 0 : index
    %c0_127 = arith.constant 0 : index
    %246 = vector.load %arg3[%c40, %c0_126, %c0_127] : memref<49x1x8xbf16, #tpu.memory_space<vmem>>, vector<1x1x8xbf16>
    %247 = vector.shape_cast %246 : vector<1x1x8xbf16> to vector<1x8xbf16>
    %cst_128 = arith.constant dense<0.000000e+00> : vector<1x512xf32>
    %248 = tpu.matmul %247, %245, %cst_128 {dimension_numbers = #tpu.dot_dimension_numbers<[1], [0], [0], [1], [0, 0, 1, 1], [], []>} : vector<1x8xbf16>, vector<8x512xbf16>, vector<1x512xf32> -> vector<1x512xf32>
    %249 = arith.addf %243, %248 : vector<1x512xf32>
    %250 = vector.extract_strided_slice %2 {offsets = [0, 0, 116], sizes = [1, 8, 512], strides = [1, 1, 1]} : vector<1x8x768xbf16> to vector<1x8x512xbf16>
    %251 = vector.shape_cast %250 : vector<1x8x512xbf16> to vector<8x512xbf16>
    %c41 = arith.constant 41 : index
    %c0_129 = arith.constant 0 : index
    %c0_130 = arith.constant 0 : index
    %252 = vector.load %arg3[%c41, %c0_129, %c0_130] : memref<49x1x8xbf16, #tpu.memory_space<vmem>>, vector<1x1x8xbf16>
    %253 = vector.shape_cast %252 : vector<1x1x8xbf16> to vector<1x8xbf16>
    %cst_131 = arith.constant dense<0.000000e+00> : vector<1x512xf32>
    %254 = tpu.matmul %253, %251, %cst_131 {dimension_numbers = #tpu.dot_dimension_numbers<[1], [0], [0], [1], [0, 0, 1, 1], [], []>} : vector<1x8xbf16>, vector<8x512xbf16>, vector<1x512xf32> -> vector<1x512xf32>
    %255 = arith.addf %249, %254 : vector<1x512xf32>
    %256 = vector.extract_strided_slice %2 {offsets = [0, 0, 132], sizes = [1, 8, 512], strides = [1, 1, 1]} : vector<1x8x768xbf16> to vector<1x8x512xbf16>
    %257 = vector.shape_cast %256 : vector<1x8x512xbf16> to vector<8x512xbf16>
    %c42 = arith.constant 42 : index
    %c0_132 = arith.constant 0 : index
    %c0_133 = arith.constant 0 : index
    %258 = vector.load %arg3[%c42, %c0_132, %c0_133] : memref<49x1x8xbf16, #tpu.memory_space<vmem>>, vector<1x1x8xbf16>
    %259 = vector.shape_cast %258 : vector<1x1x8xbf16> to vector<1x8xbf16>
    %cst_134 = arith.constant dense<0.000000e+00> : vector<1x512xf32>
    %260 = tpu.matmul %259, %257, %cst_134 {dimension_numbers = #tpu.dot_dimension_numbers<[1], [0], [0], [1], [0, 0, 1, 1], [], []>} : vector<1x8xbf16>, vector<8x512xbf16>, vector<1x512xf32> -> vector<1x512xf32>
    %261 = arith.addf %255, %260 : vector<1x512xf32>
    %262 = vector.extract_strided_slice %2 {offsets = [0, 0, 133], sizes = [1, 8, 512], strides = [1, 1, 1]} : vector<1x8x768xbf16> to vector<1x8x512xbf16>
    %263 = vector.shape_cast %262 : vector<1x8x512xbf16> to vector<8x512xbf16>
    %c43 = arith.constant 43 : index
    %c0_135 = arith.constant 0 : index
    %c0_136 = arith.constant 0 : index
    %264 = vector.load %arg3[%c43, %c0_135, %c0_136] : memref<49x1x8xbf16, #tpu.memory_space<vmem>>, vector<1x1x8xbf16>
    %265 = vector.shape_cast %264 : vector<1x1x8xbf16> to vector<1x8xbf16>
    %cst_137 = arith.constant dense<0.000000e+00> : vector<1x512xf32>
    %266 = tpu.matmul %265, %263, %cst_137 {dimension_numbers = #tpu.dot_dimension_numbers<[1], [0], [0], [1], [0, 0, 1, 1], [], []>} : vector<1x8xbf16>, vector<8x512xbf16>, vector<1x512xf32> -> vector<1x512xf32>
    %267 = arith.addf %261, %266 : vector<1x512xf32>
    %268 = vector.extract_strided_slice %2 {offsets = [0, 0, 134], sizes = [1, 8, 512], strides = [1, 1, 1]} : vector<1x8x768xbf16> to vector<1x8x512xbf16>
    %269 = vector.shape_cast %268 : vector<1x8x512xbf16> to vector<8x512xbf16>
    %c44 = arith.constant 44 : index
    %c0_138 = arith.constant 0 : index
    %c0_139 = arith.constant 0 : index
    %270 = vector.load %arg3[%c44, %c0_138, %c0_139] : memref<49x1x8xbf16, #tpu.memory_space<vmem>>, vector<1x1x8xbf16>
    %271 = vector.shape_cast %270 : vector<1x1x8xbf16> to vector<1x8xbf16>
    %cst_140 = arith.constant dense<0.000000e+00> : vector<1x512xf32>
    %272 = tpu.matmul %271, %269, %cst_140 {dimension_numbers = #tpu.dot_dimension_numbers<[1], [0], [0], [1], [0, 0, 1, 1], [], []>} : vector<1x8xbf16>, vector<8x512xbf16>, vector<1x512xf32> -> vector<1x512xf32>
    %273 = arith.addf %267, %272 : vector<1x512xf32>
    %274 = vector.extract_strided_slice %2 {offsets = [0, 0, 135], sizes = [1, 8, 512], strides = [1, 1, 1]} : vector<1x8x768xbf16> to vector<1x8x512xbf16>
    %275 = vector.shape_cast %274 : vector<1x8x512xbf16> to vector<8x512xbf16>
    %c45 = arith.constant 45 : index
    %c0_141 = arith.constant 0 : index
    %c0_142 = arith.constant 0 : index
    %276 = vector.load %arg3[%c45, %c0_141, %c0_142] : memref<49x1x8xbf16, #tpu.memory_space<vmem>>, vector<1x1x8xbf16>
    %277 = vector.shape_cast %276 : vector<1x1x8xbf16> to vector<1x8xbf16>
    %cst_143 = arith.constant dense<0.000000e+00> : vector<1x512xf32>
    %278 = tpu.matmul %277, %275, %cst_143 {dimension_numbers = #tpu.dot_dimension_numbers<[1], [0], [0], [1], [0, 0, 1, 1], [], []>} : vector<1x8xbf16>, vector<8x512xbf16>, vector<1x512xf32> -> vector<1x512xf32>
    %279 = arith.addf %273, %278 : vector<1x512xf32>
    %280 = vector.extract_strided_slice %2 {offsets = [0, 0, 136], sizes = [1, 8, 512], strides = [1, 1, 1]} : vector<1x8x768xbf16> to vector<1x8x512xbf16>
    %281 = vector.shape_cast %280 : vector<1x8x512xbf16> to vector<8x512xbf16>
    %c46 = arith.constant 46 : index
    %c0_144 = arith.constant 0 : index
    %c0_145 = arith.constant 0 : index
    %282 = vector.load %arg3[%c46, %c0_144, %c0_145] : memref<49x1x8xbf16, #tpu.memory_space<vmem>>, vector<1x1x8xbf16>
    %283 = vector.shape_cast %282 : vector<1x1x8xbf16> to vector<1x8xbf16>
    %cst_146 = arith.constant dense<0.000000e+00> : vector<1x512xf32>
    %284 = tpu.matmul %283, %281, %cst_146 {dimension_numbers = #tpu.dot_dimension_numbers<[1], [0], [0], [1], [0, 0, 1, 1], [], []>} : vector<1x8xbf16>, vector<8x512xbf16>, vector<1x512xf32> -> vector<1x512xf32>
    %285 = arith.addf %279, %284 : vector<1x512xf32>
    %286 = vector.extract_strided_slice %2 {offsets = [0, 0, 137], sizes = [1, 8, 512], strides = [1, 1, 1]} : vector<1x8x768xbf16> to vector<1x8x512xbf16>
    %287 = vector.shape_cast %286 : vector<1x8x512xbf16> to vector<8x512xbf16>
    %c47 = arith.constant 47 : index
    %c0_147 = arith.constant 0 : index
    %c0_148 = arith.constant 0 : index
    %288 = vector.load %arg3[%c47, %c0_147, %c0_148] : memref<49x1x8xbf16, #tpu.memory_space<vmem>>, vector<1x1x8xbf16>
    %289 = vector.shape_cast %288 : vector<1x1x8xbf16> to vector<1x8xbf16>
    %cst_149 = arith.constant dense<0.000000e+00> : vector<1x512xf32>
    %290 = tpu.matmul %289, %287, %cst_149 {dimension_numbers = #tpu.dot_dimension_numbers<[1], [0], [0], [1], [0, 0, 1, 1], [], []>} : vector<1x8xbf16>, vector<8x512xbf16>, vector<1x512xf32> -> vector<1x512xf32>
    %291 = arith.addf %285, %290 : vector<1x512xf32>
    %292 = vector.extract_strided_slice %2 {offsets = [0, 0, 138], sizes = [1, 8, 512], strides = [1, 1, 1]} : vector<1x8x768xbf16> to vector<1x8x512xbf16>
    %293 = vector.shape_cast %292 : vector<1x8x512xbf16> to vector<8x512xbf16>
    %c48 = arith.constant 48 : index
    %c0_150 = arith.constant 0 : index
    %c0_151 = arith.constant 0 : index
    %294 = vector.load %arg3[%c48, %c0_150, %c0_151] : memref<49x1x8xbf16, #tpu.memory_space<vmem>>, vector<1x1x8xbf16>
    %295 = vector.shape_cast %294 : vector<1x1x8xbf16> to vector<1x8xbf16>
    %cst_152 = arith.constant dense<0.000000e+00> : vector<1x512xf32>
    %296 = tpu.matmul %295, %293, %cst_152 {dimension_numbers = #tpu.dot_dimension_numbers<[1], [0], [0], [1], [0, 0, 1, 1], [], []>} : vector<1x8xbf16>, vector<8x512xbf16>, vector<1x512xf32> -> vector<1x512xf32>
    %297 = arith.addf %291, %296 : vector<1x512xf32>
    %c0_153 = arith.constant 0 : index
    %c0_154 = arith.constant 0 : index
    %298 = vector.load %arg4[%c0_153, %c0_154] : memref<1x1xf32, #tpu.memory_space<vmem>>, vector<1x1xf32>
    %299 = vector.broadcast %298 : vector<1x1xf32> to vector<1x512xf32>
    %300 = arith.addf %297, %299 : vector<1x512xf32>
    %cst_155 = arith.constant 0.000000e+00 : f32
    %301 = vector.broadcast %cst_155 : f32 to vector<1x512xf32>
    %302 = arith.subf %301, %300 : vector<1x512xf32>
    %303 = math.exp %302 : vector<1x512xf32>
    %cst_156 = arith.constant 1.000000e+00 : f32
    %304 = vector.broadcast %cst_156 : f32 to vector<1x512xf32>
    %305 = arith.addf %304, %303 : vector<1x512xf32>
    %cst_157 = arith.constant 1.000000e+00 : f32
    %306 = vector.broadcast %cst_157 : f32 to vector<1x512xf32>
    %307 = arith.divf %306, %305 : vector<1x512xf32>
    %308 = arith.truncf %307 : vector<1x512xf32> to vector<1x512xbf16>
    %c0_158 = arith.constant 0 : index
    %c0_159 = arith.constant 0 : index
    %309 = vector.load %arg5[%c0_158, %c0_159] : memref<1x512xbf16, #tpu.memory_space<vmem>>, vector<1x512xbf16>
    tpu.vector_store %arg5[%c0_158, %c0_159], %308 {strides = array<i32>} : memref<1x512xbf16, #tpu.memory_space<vmem>>, vector<1x512xbf16>,
    return
  }
  func.func @transform_0(%arg0: i32) -> (i32, i32, i32) {
    %c0_i32 = arith.constant 0 : i32
    %c0_i32_0 = arith.constant 0 : i32
    %c0_i32_1 = arith.constant 0 : i32
    return %c0_i32, %c0_i32_0, %arg0 : i32, i32, i32
  }
  func.func @transform_1(%arg0: i32) -> (i32, i32, i32) {
    %c1_i32 = arith.constant 1 : i32
    %0 = arith.addi %arg0, %c1_i32 : i32
    %c2_i32 = arith.constant 2 : i32
    %1 = arith.muli %0, %c2_i32 : i32
    %c0_i32 = arith.constant 0 : i32
    %c0_i32_0 = arith.constant 0 : i32
    %c0_i32_1 = arith.constant 0 : i32
    return %c0_i32, %c0_i32_0, %1 : i32, i32, i32
  }
  func.func @transform_2(%arg0: i32) -> (i32, i32, i32) {
    %c0_i32 = arith.constant 0 : i32
    %c0_i32_0 = arith.constant 0 : i32
    %c0_i32_1 = arith.constant 0 : i32
    %c0_i32_2 = arith.constant 0 : i32
    return %c0_i32, %c0_i32_0, %c0_i32_1 : i32, i32, i32
  }
  func.func @transform_3(%arg0: i32) -> (i32, i32) {
    %c0_i32 = arith.constant 0 : i32
    %c0_i32_0 = arith.constant 0 : i32
    %c0_i32_1 = arith.constant 0 : i32
    return %c0_i32, %c0_i32_0 : i32, i32
  }
  func.func @transform_4(%arg0: i32) -> (i32, i32) {
    %c0_i32 = arith.constant 0 : i32
    %c0_i32_0 = arith.constant 0 : i32
    return %c0_i32, %arg0 : i32, i32
  }
}

</mosaic_0001>

<bundles_post_ra>
// kernel: resnet_forward.11
= control target key start
LH: loop header
LB: loop body
LE: loop exit
PB: predicated region body
PF: predicated region fallthrough
CT: control target
= control target key end

     0   :  { %s1294_s15 = smov 0   ;;  %s1296_s16 = smov 0   ;;  %s1482_s0 = inlined_call_operand.vmem [shape: bf16[4,8,384], index: 0, kind: input, shape index: {}, may-alias: {0,1}]   ;;  %s1483_s1 = inlined_call_operand.vmem [shape: bf16[4,8,384], index: 1, kind: input, shape index: {}, may-alias: {0,1}]   ;;  %s1484_s2 = inlined_call_operand.vmem [shape: bf16[9,16,8], index: 2, kind: input, shape index: {}]   ;;  %s1485_s3 = inlined_call_operand.vmem [shape: f32[16,1], index: 3, kind: input, shape index: {}]   ;;  %s1486_s4 = inlined_call_operand.vmem [shape: bf16[16,256], index: 4, kind: output, shape index: {}]  }
   0x1   :  { %s1298_s17 = smov 0   ;;  %s1300_s18 = smov 0  }
   0x2   :  { %s1302_s19 = smov 0  }
   0x3 LB: > { %s1031_s20 = sadd.s32 4294967295, %s1261_s19   ;;  %s1321_s21 = sadd.s32 1, %s1261_s19   ;;  %s1261_s19 = sphi %s1302_s19, %s1493_s19   ;;  %s1257_s18 = sphi %s1300_s18, %s1492_s18   ;;  %s1253_s17 = sphi %s1298_s17, %s1491_s17   ;;  %s1249_s16 = sphi %s1296_s16, %s1490_s16   ;;  %s1245_s15 = sphi %s1294_s15, %s1489_s15  }
   0x4   : > { %s18_s22 = ssub.s32 %s1261_s19, %s1321_s21  ;;  %s21_s23 = sadd.s32 1, %s1257_s18 }
   0x5   : > { %p19_p0 = scmp.eq.s32.totalorder %s18_s22, 0  ;;  %p28_p1 = scmp.ne.s32.totalorder %s1257_s18, %s1253_s17 }
   0x6   : > { %p29_p2 = scmp.eq.s32.totalorder %s1261_s19, 0  ;;  %s45_s24 = sadd.s32 1, %s1321_s21 }
   0x7   : > { %s1331_s25 = scalar_select %p19_p0, %s1257_s18, %s21_s23  }
   0x8   : > { %p30_p3 = por %p29_p2, %p28_p1  ;;  %s46_s26 = ssub.s32 %s1321_s21, %s45_s24 }
   0x9   : > { %p47_p4 = scmp.eq.s32.totalorder %s46_s26, 0  ;;  %s49_s27 = sadd.s32 1, %s1249_s16 }
   0xa   : > { %p56_p5 = scmp.ne.s32.totalorder %s1249_s16, %s1245_s15  ;;  %p128_p6 = scmp.eq.s32.totalorder %s1031_s20, 1 }
   0xb   : > { %s1340_s28 = scalar_select %p47_p4, %s1249_s16, %s49_s27  }
   0xc   : > { %p1342_p7 = por %p56_p5, %p29_p2  ;;  %p1346_p8 = por %p128_p6, %p28_p1 }
   0xd   : > { %p1034_p9 = scmp.ge.s32.totalorder %s1261_s19, 2 }
   0xf   : > { %156 = sbr.rel (%p1034_p9) target bundleno = 36 (0x24), region = 24 }
  0x16   : > { %159 = sbr.rel (!%p30_p3) target bundleno = 29 (0x1d), region = 28  ;;  %s161_s5 = sand.u32 (%p30_p3), 1, %s1257_s18  }
  0x17   : > { %s1036_s6 = sshll.u32 (%p30_p3), %s1261_s19, 2  ;;  %s1035_s7 = sshll.u32 (%p30_p3), %s161_s5, 4 }
  0x18   : > { %s165_s10 = scalar_lea.vmem (%p30_p3), %s1482_s0, %s1036_s6  ;;  %s163_s11 = scalar_lea.vmem (%p30_p3), [#allocation2], %s1035_s7 }
  0x19   : > { %v181_v0 = vld [vmem:[%s165_s10] sm:$0xf] (%p30_p3)  ;;  %v183_v1 = vld [vmem:[%s165_s10 + $0xc] sm:$0xf] (%p30_p3)  ;;  %v185_v2 = vld [vmem:[%s165_s10 + $0x18] sm:$0xf] (%p30_p3) }
  0x1a   : > { %182 = vst [vmem:[%s163_s11] sm:$0xf] (%p30_p3), %v181_v0  ;;  %184 = vst [vmem:[%s163_s11 + $0x4] sm:$0xf] (%p30_p3), %v183_v1  ;;  %v187_v3 = vld [vmem:[%s165_s10 + $0x24] sm:$0xf] (%p30_p3) }
  0x1b   : > { %186 = vst [vmem:[%s163_s11 + $0x8] sm:$0xf] (%p30_p3), %v185_v2  ;;  %188 = vst [vmem:[%s163_s11 + $0xc] sm:$0xf] (%p30_p3), %v187_v3 }
  0x1d PF: > { %219 = sbr.rel (!%p1342_p7) target bundleno = 36 (0x24), region = 69  ;;  %s221_s12 = sand.u32 (%p1342_p7), 1, %s1249_s16  }
  0x1e   : > { %s1038_s13 = sshll.u32 (%p1342_p7), %s1261_s19, 2  ;;  %s1037_s14 = sshll.u32 (%p1342_p7), %s221_s12, 4 }
  0x1f   : > { %s975_s24 = scalar_lea.vmem (%p1342_p7), %s1483_s1, %s1038_s13  ;;  %s223_s26 = scalar_lea.vmem (%p1342_p7), [#allocation3], %s1037_s14 }
  0x20   : > { %v1039_v4 = vld [vmem:[%s975_s24 + $0x4] sm:$0xf] (%p1342_p7)  ;;  %v1040_v5 = vld [vmem:[%s975_s24 + $0x10] sm:$0xf] (%p1342_p7)  ;;  %v1041_v6 = vld [vmem:[%s975_s24 + $0x1c] sm:$0xf] (%p1342_p7) }
  0x21   : > { %243 = vst [vmem:[%s223_s26] sm:$0xf] (%p1342_p7), %v1039_v4  ;;  %245 = vst [vmem:[%s223_s26 + $0x4] sm:$0xf] (%p1342_p7), %v1040_v5  ;;  %v1042_v7 = vld [vmem:[%s975_s24 + $0x28] sm:$0xf] (%p1342_p7) }
  0x22   : > { %247 = vst [vmem:[%s223_s26 + $0x8] sm:$0xf] (%p1342_p7), %v1041_v6  ;;  %249 = vst [vmem:[%s223_s26 + $0xc] sm:$0xf] (%p1342_p7), %v1042_v7 }
  0x24 PF: > { %p1043_p10 = scmp.ge.s32.totalorder %s1261_s19, 1  ;;  %p279_p11 = scmp.lt.s32.totalorder %s1261_s19, 3 }
  0x26   : > { %p280_p12 = pnand %p1043_p10, %p279_p11 }
  0x27   : > { %s286_s27 = sand.u32 (!%p280_p12), 1, %s1253_s17   ;;  %vm352_vm0 = vcmask (!%p280_p12), 1043456   ;;  %v1263_v8 = vmov (!%p280_p12), 0.0   ;;  %s293_s5 = sand.u32 (!%p280_p12), 1, %s1245_s15   ;;  %vm1264_vm1 = vmmov (!%p280_p12), 0   ;;  %v1215_v12 = vld [vmem:[%s1484_s2] sm:$0xff] (!%p280_p12)  }
  0x28   : > { %283 = sbr.rel (%p280_p12) target bundleno = 431 (0x1af), region = 110  ;;  %s1044_s29 = sshll.u32 (!%p280_p12), %s286_s27, 4  ;;  %1112 = vmatprep.subr.bf16.mxu0 (!%p280_p12), %v1263_v8  ;;  %1118 = vmatprep.subr.bf16.mxu1 (!%p280_p12), %v1263_v8  ;;  %vm348_vm2 = vcmask (!%p280_p12), 64512   ;;  %v874_v17 = vld [vmem:[%s1485_s3] sm:$0xff] (!%p280_p12)  ;;  %v875_v18 = vld [vmem:[%s1485_s3 + $0x8] sm:$0xff] (!%p280_p12)  ;;  %v1268_v19 = vmov (!%p280_p12), 0  }
  0x29   : > { %1114 = vmatprep.mubr.msk.bf16.mxu0 (!%p280_p12), %vm1264_vm1, %v1263_v8  ;;  %1120 = vmatprep.mubr.msk.bf16.mxu1 (!%p280_p12), %vm1264_vm1, %v1263_v8  ;;  %s1375_s6 = scalar_lea.vmem (!%p280_p12), [#allocation2], %s1044_s29  ;;  %s1045_s7 = sshll.u32 (!%p280_p12), %s293_s5, 4  ;;  %vm461_vm3 = vcmask (!%p280_p12), 973824   ;;  %vm346_vm4 = vcmask (!%p280_p12), 1039360   ;;  %v1214_v27 = vld [vmem:[%s1484_s2 + $0x8] sm:$0xff] (!%p280_p12)   ;;  %vm524_vm5 = vcmask (!%p280_p12), 965632  }
  0x2a   : > { %v323_v9 = vld [vmem:[%s1375_s6] sm:$0xf] (!%p280_p12)  ;;  %s1265_s8 = smov (!%p280_p12), 119   ;;  %s1266_s9 = smov (!%p280_p12), 127   ;;  %v324_v14 = vld [vmem:[%s1375_s6 + $0x4] sm:$0xf] (!%p280_p12)  ;;  %1212 = vset.pattern.permute.xlu0 (!%p280_p12), %v1268_v19  ;;  %1213 = vset.pattern.permute.xlu1 (!%p280_p12), %v1268_v19 }
  0x2b   : > { %457 = vrot.lane.b32.xlu1 (!%p280_p12), %v323_v9, %s1265_s8  ;;  %342 = vrot.lane.b32.xlu0 (!%p280_p12), %v323_v9, %s1266_s9  ;;  %v406_v10 = vsel (!%p280_p12), %vm352_vm0, %v323_v9, 0  ;;  %s295_s15 = scalar_lea.vmem (!%p280_p12), [#allocation3], %s1045_s7  ;;  %s1267_s12 = smov (!%p280_p12), 118   ;;  %v325_v16 = vld [vmem:[%s1375_s6 + $0x8] sm:$0xf] (!%p280_p12)  ;;  %v1216_v37 = vld [vmem:[%s1484_s2 + $0x10] sm:$0xff] (!%p280_p12)  }
  0x2c   : > { %v327_v11 = vld [vmem:[%s295_s15] sm:$0xf] (!%p280_p12)  ;;  %1119 = vmatpush3.bf16.msra.mxu1 (!%p280_p12), %v406_v10  ;;  %v328_v13 = vld [vmem:[%s295_s15 + $0x4] sm:$0xf] (!%p280_p12)  ;;  %v329_v15 = vld [vmem:[%s295_s15 + $0x8] sm:$0xf] (!%p280_p12) }
  0x2d   : > { %1130 = vmatprep.subr.bf16.mxu1 (!%p280_p12), %v1263_v8  ;;  %v1217_v33 = vld [vmem:[%s1484_s2 + $0x18] sm:$0xff] (!%p280_p12)   ;;  %v587_v39 = vsel (!%p280_p12), %vm352_vm0, %v324_v14, 0  ;;  %v1219_v43 = vld [vmem:[%s1484_s2 + $0x28] sm:$0xff] (!%p280_p12)   ;;  %v1218_v45 = vld [vmem:[%s1484_s2 + $0x20] sm:$0xff] (!%p280_p12)   ;;  %v708_v46 = vsel (!%p280_p12), %vm352_vm0, %v325_v16, 0 }
  0x2e   : > { %v1221_v47 = vld [vmem:[%s1484_s2 + $0x38] sm:$0xff] (!%p280_p12)   ;;  %v1220_v49 = vld [vmem:[%s1484_s2 + $0x30] sm:$0xff] (!%p280_p12)   ;;  %v1222_v51 = vld [vmem:[%s1484_s2 + $0x40] sm:$0xff] (!%p280_p12)  }
  0x2f   : > { %459 = vrot.lane.b32.xlu1 %v327_v11, %s1265_s8  ;;  %344 = vrot.lane.b32.xlu0 %v327_v11, %s1266_s9  ;;  %v326_v48 = vld [vmem:[%s1375_s6 + $0xc] sm:$0xf]  ;;  %s1046_s6 = sshll.u32 %s286_s27, 3  ;;  %s1084_s29 = sshll.u32 (%p1346_p8), %s1031_s20, 2 }
  0x30   : > { %1121 = vmatmul.mubr.msk.bf16.vlgmr.msra.gmra.mrb[0].mxu1 %vm348_vm2, %v1215_v12  ;;  %v829_v50 = vsel %vm352_vm0, %v326_v48, 0  ;;  %s320_s26 = scalar_lea.vmem [#allocation4], %s1046_s6  ;;  %s912_s17 = scalar_lea.vmem (%p1346_p8), %s1486_s4, %s1084_s29 }
  0x31   : > { %1132 = vmatprep.mubr.msk.bf16.mxu1 %vm1264_vm1, %v1263_v8 }
  0x33   : > { %522 = vrot.lane.b32.xlu1 %v327_v11, %s1267_s12  ;;  %520 = vrot.lane.b32.xlu0 %v323_v9, %s1267_s12 }
  0x37   : > { %644 = vrot.lane.b32.xlu1 %v328_v13, %s1265_s8  ;;  %642 = vrot.lane.b32.xlu0 %v324_v14, %s1265_s8 }
  0x3b   : > { %765 = vrot.lane.b32.xlu1 %v329_v15, %s1266_s9  ;;  %763 = vrot.lane.b32.xlu0 %v325_v16, %s1266_s9 }
  0x3f   : > { %878 = vperm.xlu0 %1212, %v874_v17   ;;  %883 = vperm.xlu1 %1213, %v875_v18  }
  0x9d   : > { %v458_v20 = vpop.permute.xlu1 %457  ;;  %v343_v21 = vpop.permute.xlu0 %342 }
  0xa1   : > { %v460_v22 = vpop.permute.xlu1 %459  ;;  %v345_v23 = vpop.permute.xlu0 %344 }
  0xa2   : > { %v462_v24 = vsel %vm461_vm3, %v458_v20, %v460_v22  ;;  %v347_v25 = vsel %vm346_vm4, %v343_v21, %v345_v23 }
  0xa3   : > { %v354_v26 = vsel %vm352_vm0, %v347_v25, 0  ;;  %v467_v28 = vsel %vm352_vm0, %v462_v24, 0 }
  0xa4   : > { %1113 = vmatpush3.bf16.msra.mxu0 %v354_v26 }
  0xa5   : > { %1124 = vmatprep.subr.bf16.mxu0 %v1263_v8  ;;  %v523_v29 = vpop.permute.xlu1 %522  ;;  %v521_v30 = vpop.permute.xlu0 %520 }
  0xa6   : > { %v525_v31 = vsel %vm524_vm5, %v521_v30, %v523_v29 }
  0xa7   : > { %1115 = vmatmul.mubr.msk.bf16.vlgmr.msra.gmra.mrb[0].mxu0 %vm348_vm2, %v1214_v27  ;;  %v530_v32 = vsel %vm352_vm0, %v525_v31, 0 }
  0xa8   : > { %1125 = vmatpush3.bf16.msra.mxu0 %v467_v28  ;;  %1126 = vmatprep.mubr.msk.bf16.mxu0 %vm1264_vm1, %v1263_v8 }
  0xa9   : > { %1131 = vmatpush3.bf16.msra.mxu1 %v530_v32  ;;  %1136 = vmatprep.subr.bf16.mxu0 %v1263_v8  ;;  %v645_v34 = vpop.permute.xlu1 %644  ;;  %v643_v35 = vpop.permute.xlu0 %642 }
  0xaa   : > { %v646_v36 = vsel %vm461_vm3, %v643_v35, %v645_v34  ;;  %1142 = vmatprep.subr.bf16.mxu1 %v1263_v8 }
  0xab   : > { %v651_v38 = vsel %vm352_vm0, %v646_v36, 0 }
  0xac   : > { %1133 = vmatmul.mubr.msk.bf16.vlgmr.msra.gmra.mrb[4].mxu1 %vm348_vm2, %v1217_v33 }
  0xad   : > { %1143 = vmatpush3.bf16.msra.mxu1 %v651_v38  ;;  %1144 = vmatprep.mubr.msk.bf16.mxu1 %vm1264_vm1, %v1263_v8  ;;  %v766_v40 = vpop.permute.xlu1 %765  ;;  %v764_v41 = vpop.permute.xlu0 %763 }
  0xae   : > { %1154 = vmatprep.subr.bf16.mxu1 %v1263_v8  ;;  %v767_v42 = vsel %vm346_vm4, %v764_v41, %v766_v40 }
  0xaf   : > { %1127 = vmatmul.mubr.msk.bf16.vlgmr.msra.gmra.mrb[4].mxu0 %vm348_vm2, %v1216_v37  ;;  %v772_v44 = vsel %vm352_vm0, %v767_v42, 0 }
  0xb0   : > { %1137 = vmatpush3.bf16.msra.mxu0 %v587_v39  ;;  %1138 = vmatprep.mubr.msk.bf16.mxu0 %vm1264_vm1, %v1263_v8 }
  0xb1   : > { %1148 = vmatprep.subr.bf16.mxu0 %v1263_v8 }
  0xb4   : > { %1145 = vmatmul.mubr.msk.bf16.vlgmr.msra.gmra.mrb[8].mxu1 %vm348_vm2, %v1219_v43 }
  0xb5   : > { %1155 = vmatpush3.bf16.msra.mxu1 %v772_v44  ;;  %1156 = vmatprep.mubr.msk.bf16.mxu1 %vm1264_vm1, %v1263_v8 }
  0xb7   : > { %1139 = vmatmul.mubr.msk.bf16.vlgmr.msra.gmra.mrb[8].mxu0 %vm348_vm2, %v1218_v45 }
  0xb8   : > { %1149 = vmatpush3.bf16.msra.mxu0 %v708_v46  ;;  %1150 = vmatprep.mubr.msk.bf16.mxu0 %vm1264_vm1, %v1263_v8 }
  0xb9   : > { %1160 = vmatprep.subr.bf16.mxu0 %v1263_v8 }
  0xbc   : > { %1157 = vmatmul.mubr.msk.bf16.vlgmr.msra.gmra.mrb[12].mxu1 %vm348_vm2, %v1221_v47 }
  0xbe   : > { %v879_v35 = vpop.permute.xlu0 %878  ;;  %v884_v39 = vpop.permute.xlu1 %883 }
  0xbf   : > { %1151 = vmatmul.mubr.msk.bf16.vlgmr.msra.gmra.mrb[12].mxu0 %vm348_vm2, %v1220_v49 }
  0xc0   : > { %1161 = vmatpush3.bf16.msra.mxu0 %v829_v50  ;;  %1162 = vmatprep.mubr.msk.bf16.mxu0 %vm1264_vm1, %v1263_v8 }
  0xc7   : > { %1163 = vmatmul.mubr.msk.bf16.vlgmr.msra.gmra.mrb[16].mxu0 %vm348_vm2, %v1222_v51 }
 0x103   : > { %v442_v52 = vpop.f32.mrb[0].mxu1 }
 0x104   : > { %v1122_v53 = vpop.f32.mrb[1].mxu1 }
 0x105   : > { %v445_v54 = vpop.f32.mrb[2].mxu1 }
 0x106   : > { %v1123_v55 = vpop.f32.mrb[3].mxu1 }
 0x17a   : > { %v390_v56 = vpop.f32.mrb[0].mxu0 }
 0x17b   : > { %v443_v57 = vadd.f32 %v442_v52, %v390_v56  ;;  %v1116_v58 = vpop.f32.mrb[1].mxu0 }
 0x17c   : > { %v393_v59 = vpop.f32.mrb[2].mxu0 }
 0x17d   : > { %v446_v60 = vadd.f32 %v445_v54, %v393_v59  ;;  %v1117_v61 = vpop.f32.mrb[3].mxu0 }
 0x17f   : > { %v566_v62 = vpop.f32.mrb[4].mxu1 }
 0x180   : > { %v1134_v63 = vpop.f32.mrb[5].mxu1 }
 0x181   : > { %v569_v0 = vpop.f32.mrb[6].mxu1 }
 0x182   : > { %v503_v1 = vpop.f32.mrb[4].mxu0  ;;  %v1135_v2 = vpop.f32.mrb[7].mxu1 }
 0x183   : > { %v510_v3 = vadd.f32 %v503_v1, %v443_v57  ;;  %v1128_v4 = vpop.f32.mrb[5].mxu0 }
 0x184   : > { %v506_v5 = vpop.f32.mrb[6].mxu0 }
 0x185   : > { %v511_v6 = vadd.f32 %v506_v5, %v446_v60  ;;  %v573_v7 = vadd.f32 %v566_v62, %v510_v3  ;;  %v1129_v8 = vpop.f32.mrb[7].mxu0 }
 0x187   : > { %v574_v9 = vadd.f32 %v569_v0, %v511_v6  ;;  %v687_v10 = vpop.f32.mrb[8].mxu1 }
 0x188   : > { %v1146_v11 = vpop.f32.mrb[9].mxu1 }
 0x189   : > { %v690_v12 = vpop.f32.mrb[10].mxu1 }
 0x18a   : > { %v623_v13 = vpop.f32.mrb[8].mxu0  ;;  %v1147_v14 = vpop.f32.mrb[11].mxu1 }
 0x18b   : > { %v630_v15 = vadd.f32 %v623_v13, %v573_v7  ;;  %v1140_v16 = vpop.f32.mrb[9].mxu0 }
 0x18c   : > { %v626_v17 = vpop.f32.mrb[10].mxu0 }
 0x18d   : > { %v631_v18 = vadd.f32 %v626_v17, %v574_v9  ;;  %v694_v19 = vadd.f32 %v687_v10, %v630_v15  ;;  %v1141_v20 = vpop.f32.mrb[11].mxu0 }
 0x18f   : > { %v695_v21 = vadd.f32 %v690_v12, %v631_v18  ;;  %v808_v22 = vpop.f32.mrb[12].mxu1 }
 0x190   : > { %v1158_v23 = vpop.f32.mrb[13].mxu1 }
 0x191   : > { %v811_v24 = vpop.f32.mrb[14].mxu1 }
 0x192   : > { %v744_v25 = vpop.f32.mrb[12].mxu0  ;;  %v1159_v26 = vpop.f32.mrb[15].mxu1 }
 0x193   : > { %v751_v27 = vadd.f32 %v744_v25, %v694_v19  ;;  %v1152_v28 = vpop.f32.mrb[13].mxu0 }
 0x194   : > { %v747_v29 = vpop.f32.mrb[14].mxu0 }
 0x195   : > { %v752_v30 = vadd.f32 %v747_v29, %v695_v21  ;;  %v815_v31 = vadd.f32 %v808_v22, %v751_v27  ;;  %v1153_v32 = vpop.f32.mrb[15].mxu0 }
 0x197   : > { %v816_v33 = vadd.f32 %v811_v24, %v752_v30 }
 0x19a   : > { %v865_v34 = vpop.f32.mrb[16].mxu0 }
 0x19b   : > { %v872_v36 = vadd.f32 %v865_v34, %v815_v31  ;;  %v1164_v37 = vpop.f32.mrb[17].mxu0 }
 0x19c   : > { %v868_v38 = vpop.f32.mrb[18].mxu0 }
 0x19d   : > { %v873_v40 = vadd.f32 %v868_v38, %v816_v33  ;;  %v886_v41 = vadd.f32 %v879_v35, %v872_v36  ;;  %v1165_v42 = vpop.f32.mrb[19].mxu0 }
 0x19f   : > { %v890_v43 = vmul.f32 0.25, %v886_v41  ;;  %v887_v44 = vadd.f32 %v884_v39, %v873_v40  ;;  %vm888_vm6 = vcmp.gt.f32.partialorder %v886_v41, 0.0 }
 0x1a0   : > { %910 = sbr.rel (!%p1346_p8) target bundleno = 431 (0x1af), region = 122 }
 0x1a1   : > { %vm889_vm7 = vcmp.gt.f32.partialorder %v887_v44, 0.0  ;;  %v891_v45 = vmul.f32 0.25, %v887_v44  ;;  %v892_v46 = vsel %vm888_vm6, %v886_v41, %v890_v43 }
 0x1a3   : > { %v893_v47 = vsel %vm889_vm7, %v887_v44, %v891_v45 }
 0x1a4   : > { %v1092_v48 = vpack.c.bf16 %v893_v47, %v892_v46 }
 0x1a6   : > { %1093 = vst [vmem:[%s320_s26] sm:$0xff] %v1092_v48  }
 0x1ad   : > { %v928_v49 = vld [vmem:[%s320_s26] sm:$0xf]  ;;  %v930_v50 = vld [vmem:[%s320_s26 + $0x4] sm:$0xf] }
 0x1ae   : > { %929 = vst [vmem:[%s912_s17] sm:$0xf] %v928_v49  ;;  %931 = vst [vmem:[%s912_s17 + $0x8] sm:$0xf] %v930_v50 }
 0x1af PF: > { %p11_p13 = scmp.ge.s32.totalorder %s1321_s21, 4   ;;  %s1489_s15 = smov %s1249_s16 }
 0x1b0   : > { %s1490_s16 = smov %s1340_s28  ;;  %s1491_s17 = smov %s1257_s18 }
 0x1b1   : > { %s1492_s18 = smov %s1331_s25  ;;  %s1493_s19 = smov %s1321_s21 }
 0x1b2   :  { %13 = sbr.rel (!%p11_p13) target bundleno = 3 (0x3), region = 210 }

// kernel: resnet_forward.10
= control target key start
LH: loop header
LB: loop body
LE: loop exit
PB: predicated region body
PF: predicated region fallthrough
CT: control target
= control target key end

     0   :  { %s2754_s15 = smov 0   ;;  %s3918_s0 = inlined_call_operand.vmem [shape: bf16[1,1,1280], index: 0, kind: input, shape index: {}, may-alias: {0,1}]   ;;  %s3919_s1 = inlined_call_operand.vmem [shape: bf16[1,1,1280], index: 1, kind: input, shape index: {}, may-alias: {0,1}]   ;;  %s3920_s2 = inlined_call_operand.vmem [shape: bf16[49,8,1], index: 2, kind: input, shape index: {}]   ;;  %s3921_s3 = inlined_call_operand.vmem [shape: f32[8,1], index: 3, kind: input, shape index: {}]   ;;  %s3922_s4 = inlined_call_operand.vmem [shape: bf16[8,1024], index: 4, kind: output, shape index: {}]  }
   0x1 LB: > { %s2419_s16 = sadd.s32 4294967295, %s2680_s15   ;;  %p2425_p0 = scmp.ge.s32.totalorder %s2680_s15, 1  ;;  %s2680_s15 = sphi %s2754_s15, %s14_s15  }
   0x2   : > { %p188_p1 = scmp.lt.s32.totalorder %s2680_s15, 3 }
   0x4   : > { %p189_p2 = pnand %p2425_p0, %p188_p1 }
   0x6   : > { %192 = sbr.rel (%p189_p2) target bundleno = 2481 (0x9b1), region = 36 }
   0xd   : > { %v307_v0 = vld [vmem:[%s3920_s2] sm:$0xff]   ;;  %v2434_v1 = vld [vmem:[%s3920_s2 + $0x8] sm:$0xff]   ;;  %v2682_v2 = vmov 0   ;;  %v2436_v7 = vld [vmem:[%s3920_s2 + $0x10] sm:$0xff]   ;;  %s2785_s5 = sshll.u32 %s2419_s16, 2  ;;  %v265_v31 = vlaneseq  ;;  %s2684_s14 = smov 127  }
   0xe   : > { %2551 = vset.pattern.permute.xlu0 %v2682_v2  ;;  %v308_v3 = vunpack.c.l.bf16 %v307_v0  ;;  %v344_v4 = vunpack.c.h.bf16 %v307_v0  ;;  %v390_v5 = vunpack.c.l.bf16 %v2434_v1  ;;  %v431_v6 = vunpack.c.h.bf16 %v2434_v1  ;;  %2562 = vset.pattern.permute.xlu1 %v2682_v2  ;;  %v2440_v8 = vld [vmem:[%s3920_s2 + $0x20] sm:$0xff]   ;;  %v2438_v9 = vld [vmem:[%s3920_s2 + $0x18] sm:$0xff]   ;;  %v2444_v15 = vld [vmem:[%s3920_s2 + $0x30] sm:$0xff]   ;;  %p228_p3 = scmp.lt.s32.totalorder %s2785_s5, 9  ;;  %s2495_s10 = sadd.s32 4, %s2785_s5 }
   0xf   : > { %v472_v11 = vunpack.c.l.bf16 %v2436_v7  ;;  %v513_v12 = vunpack.c.h.bf16 %v2436_v7  ;;  %v636_v13 = vunpack.c.l.bf16 %v2440_v8  ;;  %v677_v14 = vunpack.c.h.bf16 %v2440_v8  ;;  %v2442_v20 = vld [vmem:[%s3920_s2 + $0x28] sm:$0xff]   ;;  %p239_p4 = scmp.lt.s32.totalorder %s2495_s10, 9  ;;  %s2685_s16 = smov 126  }
  0x10   : > { %v2552_v10 = vpack.i.bf16 %v344_v4, %v308_v3  ;;  %v2557_v16 = vpack.i.bf16 %v431_v6, %v390_v5  ;;  %v554_v17 = vunpack.c.l.bf16 %v2438_v9  ;;  %v595_v18 = vunpack.c.h.bf16 %v2438_v9  ;;  %s229_s6 = scalar_select %p228_p3, %s2785_s5, 9 }
  0x11   : > { %v2563_v19 = vpack.i.bf16 %v513_v12, %v472_v11  ;;  %v2573_v21 = vpack.i.bf16 %v677_v14, %v636_v13  ;;  %v800_v22 = vunpack.c.l.bf16 %v2444_v15  ;;  %v841_v23 = vunpack.c.h.bf16 %v2444_v15  ;;  %s4212_s10 = smov (!%p239_p4, %s2495_s10), 9  ;;  %s2686_s17 = smov 125  }
  0x12   : > { %2553 = vperm.xlu0 %2551, %v2552_v10   ;;  %v2568_v24 = vpack.i.bf16 %v595_v18, %v554_v17  ;;  %v718_v25 = vunpack.c.l.bf16 %v2442_v20  ;;  %v759_v26 = vunpack.c.h.bf16 %v2442_v20  ;;  %v2683_v29 = vmov 1966171168   ;;  %s230_s9 = scalar_lea.vmem %s3918_s0, %s229_s6  ;;  %s2800_s13 = scalar_lea.vmem %s3919_s1, %s4212_s10 }
  0x13   : > { %2564 = vperm.xlu1 %2562, %v2563_v19   ;;  %v2583_v27 = vpack.i.bf16 %v841_v23, %v800_v22  ;;  %v263_v30 = vunpack.c.l.s4 %v2683_v29  ;;  %v266_v33 = vshrl.u32 %v265_v31, 7  ;;  %v2431_v34 = vld.sshfl [vmem:[%s230_s9] sm:$0x33 pattern:$0x75316420]  ;;  %s2687_s18 = smov 124  }
  0x14   : > { %v2578_v28 = vpack.i.bf16 %v759_v26, %v718_v25  ;;  %v261_v35 = vcombine.high %v2431_v34, %v2431_v34  ;;  %v2432_v44 = vld.sshfl [vmem:[%s2800_s13] sm:$0x11 pattern:$0x75316420]  ;;  %s2688_s19 = smov 123   ;;  %s2689_s20 = smov 122  }
  0x15   : > { %v264_v32 = vunpack.c.0.s8 %v263_v30  ;;  %v2802_v40 = vsub.s32 0, %v266_v33  ;;  %s2690_s21 = smov 106   ;;  %s2691_s22 = smov 105   ;;  %vm1605_vm0 = vcmask 302080   ;;  %vm375_vm1 = vcmask 1039360  }
  0x16   : > { %2558 = vperm.xlu0 %2551, %v2557_v16   ;;  %s2692_s23 = smov 104   ;;  %s2693_s24 = smov 103   ;;  %vm416_vm2 = vcmask 1031168   ;;  %vm457_vm3 = vcmask 1022976   ;;  %vm498_vm4 = vcmask 1014784   ;;  %vm539_vm5 = vcmask 1006592  }
  0x17   : > { %2574 = vperm.xlu1 %2562, %v2573_v21   ;;  %v2793_v36 = vsub.s32 %v264_v32, %v266_v33  ;;  %3990 = vst [vmem:[#allocation3_spill] sm:$0xff] %v2802_v40  ;;  %s2694_s25 = smov 102   ;;  %s2695_s26 = smov 101   ;;  %vm580_vm6 = vcmask 998400   ;;  %vm621_vm7 = vcmask 867328   ;;  %vm662_vm8 = vcmask 859136  }
  0x18   : > { %s2696_s29 = smov 100   ;;  %s2697_s30 = smov 84   ;;  %vm703_vm9 = vcmask 850944   ;;  %vm744_vm10 = vcmask 842752   ;;  %vm785_vm11 = vcmask 834560   ;;  %vm826_vm12 = vcmask 826368  }
  0x19   : > { %3989 = vst [vmem:[#allocation2_spill] sm:$0xff] %v2793_v36  ;;  %v275_v37 = vrot.slane %v261_v35, %v2793_v36  ;;  %v268_v38 = vrot.slane %v2431_v34, %v2793_v36  ;;  %v297_v50 = vrot.slane %v2432_v44, %v2793_v36  ;;  %s2698_s6 = smov 83   ;;  %s2699_s9 = smov 82   ;;  %vm867_vm13 = vcmask 818176  }
  0x1a   : > { %2569 = vperm.xlu0 %2551, %v2568_v24   ;;  %s2700_s10 = smov 81   ;;  %s2706_s27 = smov 60   ;;  %vm908_vm14 = vcmask 687104   ;;  %vm949_vm15 = vcmask 678912  }
  0x1b   : > { %2584 = vperm.xlu1 %2562, %v2583_v27   ;;  %v277_v39 = vcombine.high %v275_v37, %v275_v37  ;;  %v309_v41 = vunpack.c.l.bf16 %v268_v38  ;;  %v276_v42 = vcombine.high %v268_v38, %v268_v38  ;;  %v310_v43 = vunpack.c.l.bf16 %v275_v37  ;;  %s2721_s28 = smov 15   ;;  %s2727_s7 = smov 119  }
  0x1c   : > { %v345_v56 = vunpack.c.l.bf16 %v297_v50  ;;  %s2728_s8 = smov 118   ;;  %p246_p5 = scmp.lt.s32.totalorder %s2785_s5, 7 }
  0x1d   : > { %v312_v45 = vunpack.c.l.bf16 %v277_v39  ;;  %v2806_v46 = vrot.slane %v309_v41, %v2802_v40  ;;  %v311_v48 = vunpack.c.l.bf16 %v276_v42  ;;  %v2811_v49 = vrot.slane %v310_v43, %v2802_v40 }
  0x1e   : > { %2579 = vperm.xlu0 %2551, %v2578_v28   ;;  %v2825_v60 = vrot.slane %v345_v56, %v2802_v40  ;;  %s4214_s5 = smov (!%p246_p5, %s2785_s5), 7 }
  0x1f   : > { %v2816_v52 = vrot.slane %v312_v45, %v2802_v40  ;;  %v2820_v54 = vrot.slane %v311_v48, %v2802_v40 }
  0x91   : > { %v2808_v47 = vpop.permute.xlu0 %2553 }
  0x92   : > { %v2556_v51 = vunpack.i.h.bf16 %v2808_v47  ;;  %v2565_v6 = vpop.permute.xlu1 %2564 }
  0x93   : > { %v2566_v8 = vunpack.i.l.bf16 %v2565_v6  ;;  %v2567_v15 = vunpack.i.h.bf16 %v2565_v6 }
  0x94   : > { %v355_v53 = vmul.f32 %v2556_v51, %v2806_v46  ;;  %v356_v57 = vmul.f32 %v2556_v51, %v2811_v49  ;;  %v358_v59 = vmul.f32 %v2556_v51, %v2816_v52  ;;  %v357_v61 = vmul.f32 %v2556_v51, %v2820_v54 }
  0x95   : > { %v2559_v55 = vpop.permute.xlu0 %2558  ;;  %v359_v63 = vmul.f32 %v2556_v51, %v2825_v60  ;;  %v478_v11 = vmul.f32 %v2566_v8, %v2806_v46  ;;  %v480_v13 = vmul.f32 %v2566_v8, %v2820_v54  ;;  %v479_v14 = vmul.f32 %v2566_v8, %v2811_v49 }
  0x96   : > { %365 = vrot.lane.b32.xlu0 %v355_v53, %s2684_s14  ;;  %367 = vrot.lane.b32.xlu1 %v356_v57, %s2684_s14  ;;  %v2560_v58 = vunpack.i.l.bf16 %v2559_v55  ;;  %v2561_v0 = vunpack.i.h.bf16 %v2559_v55  ;;  %v482_v16 = vmul.f32 %v2566_v8, %v2825_v60  ;;  %v481_v17 = vmul.f32 %v2566_v8, %v2816_v52  ;;  %v2575_v33 = vpop.permute.xlu1 %2574 }
  0x97   : > { %v520_v18 = vmul.f32 %v2567_v15, %v2811_v49  ;;  %v519_v20 = vmul.f32 %v2567_v15, %v2806_v46  ;;  %v522_v22 = vmul.f32 %v2567_v15, %v2816_v52  ;;  %v521_v23 = vmul.f32 %v2567_v15, %v2820_v54 }
  0x98   : > { %v397_v62 = vmul.f32 %v2560_v58, %v2811_v49  ;;  %v399_v1 = vmul.f32 %v2560_v58, %v2816_v52  ;;  %v396_v2 = vmul.f32 %v2560_v58, %v2806_v46  ;;  %v437_v3 = vmul.f32 %v2561_v0, %v2806_v46 }
  0x99   : > { %v398_v4 = vmul.f32 %v2560_v58, %v2820_v54  ;;  %v439_v5 = vmul.f32 %v2561_v0, %v2820_v54  ;;  %v400_v7 = vmul.f32 %v2560_v58, %v2825_v60  ;;  %v441_v9 = vmul.f32 %v2561_v0, %v2825_v60  ;;  %v2570_v19 = vpop.permute.xlu0 %2569 }
  0x9a   : > { %371 = vrot.lane.b32.xlu0 %v358_v59, %s2684_s14  ;;  %369 = vrot.lane.b32.xlu1 %v357_v61, %s2684_s14  ;;  %v438_v10 = vmul.f32 %v2561_v0, %v2811_v49  ;;  %v440_v12 = vmul.f32 %v2561_v0, %v2816_v52  ;;  %v2571_v21 = vunpack.i.l.bf16 %v2570_v19  ;;  %v523_v25 = vmul.f32 %v2567_v15, %v2825_v60  ;;  %v2446_v15 = vld [vmem:[%s3920_s2 + $0x38] sm:$0xff]  }
  0x9b   : > { %v2572_v26 = vunpack.i.h.bf16 %v2570_v19  ;;  %v2576_v34 = vunpack.i.l.bf16 %v2575_v33  ;;  %v2577_v43 = vunpack.i.h.bf16 %v2575_v33  ;;  %v882_v19 = vunpack.c.l.bf16 %v2446_v15 }
  0x9c   : > { %v561_v24 = vmul.f32 %v2571_v21, %v2811_v49  ;;  %v563_v27 = vmul.f32 %v2571_v21, %v2816_v52  ;;  %v560_v28 = vmul.f32 %v2571_v21, %v2806_v46  ;;  %v562_v30 = vmul.f32 %v2571_v21, %v2820_v54 }
  0x9d   : > { %v601_v29 = vmul.f32 %v2572_v26, %v2806_v46  ;;  %v603_v31 = vmul.f32 %v2572_v26, %v2820_v54  ;;  %v564_v32 = vmul.f32 %v2571_v21, %v2825_v60  ;;  %v605_v35 = vmul.f32 %v2572_v26, %v2825_v60  ;;  %v2580_v50 = vpop.permute.xlu0 %2579 }
  0x9e   : > { %408 = vrot.lane.b32.xlu0 %v397_v62, %s2685_s16  ;;  %373 = vrot.lane.b32.xlu1 %v359_v63, %s2684_s14  ;;  %v602_v37 = vmul.f32 %v2572_v26, %v2811_v49  ;;  %v642_v38 = vmul.f32 %v2576_v34, %v2806_v46  ;;  %v604_v39 = vmul.f32 %v2572_v26, %v2816_v52  ;;  %v2581_v53 = vunpack.i.l.bf16 %v2580_v50  ;;  %s2701_s14 = smov 80  }
  0x9f   : > { %v644_v41 = vmul.f32 %v2576_v34, %v2820_v54  ;;  %v643_v42 = vmul.f32 %v2576_v34, %v2811_v49  ;;  %v646_v44 = vmul.f32 %v2576_v34, %v2825_v60  ;;  %v645_v45 = vmul.f32 %v2576_v34, %v2816_v52 }
  0xa0   : > { %v684_v48 = vmul.f32 %v2577_v43, %v2811_v49  ;;  %v683_v51 = vmul.f32 %v2577_v43, %v2806_v46  ;;  %v686_v55 = vmul.f32 %v2577_v43, %v2816_v52  ;;  %v685_v56 = vmul.f32 %v2577_v43, %v2820_v54 }
  0xa1   : > { %v725_v57 = vmul.f32 %v2581_v53, %v2811_v49  ;;  %v687_v58 = vmul.f32 %v2577_v43, %v2825_v60  ;;  %v2582_v59 = vunpack.i.h.bf16 %v2580_v50  ;;  %v727_v61 = vmul.f32 %v2581_v53, %v2816_v52 }
  0xa2   : > { %412 = vrot.lane.b32.xlu0 %v399_v1, %s2685_s16  ;;  %406 = vrot.lane.b32.xlu1 %v396_v2, %s2685_s16  ;;  %v724_v62 = vmul.f32 %v2581_v53, %v2806_v46  ;;  %v726_v0 = vmul.f32 %v2581_v53, %v2820_v54  ;;  %v2585_v2 = vpop.permute.xlu1 %2584 }
  0xa3   : > { %v765_v63 = vmul.f32 %v2582_v59, %v2806_v46  ;;  %v767_v1 = vmul.f32 %v2582_v59, %v2820_v54  ;;  %v766_v6 = vmul.f32 %v2582_v59, %v2811_v49  ;;  %v768_v8 = vmul.f32 %v2582_v59, %v2816_v52 }
  0xa6   : > { %447 = vrot.lane.b32.xlu0 %v437_v3, %s2686_s17  ;;  %410 = vrot.lane.b32.xlu1 %v398_v4, %s2685_s16  ;;  %v728_v3 = vmul.f32 %v2581_v53, %v2825_v60  ;;  %v2586_v4 = vunpack.i.l.bf16 %v2585_v2 }
  0xaa   : > { %451 = vrot.lane.b32.xlu0 %v439_v5, %s2686_s17  ;;  %414 = vrot.lane.b32.xlu1 %v400_v7, %s2685_s16  ;;  %v769_v5 = vmul.f32 %v2582_v59, %v2825_v60  ;;  %v806_v7 = vmul.f32 %v2586_v4, %v2806_v46  ;;  %s2702_s16 = smov 79  }
  0xae   : > { %455 = vrot.lane.b32.xlu0 %v441_v9, %s2686_s17  ;;  %449 = vrot.lane.b32.xlu1 %v438_v10, %s2686_s17  ;;  %v808_v9 = vmul.f32 %v2586_v4, %v2820_v54  ;;  %v807_v10 = vmul.f32 %v2586_v4, %v2811_v49 }
  0xb2   : > { %488 = vrot.lane.b32.xlu0 %v478_v11, %s2687_s18  ;;  %453 = vrot.lane.b32.xlu1 %v440_v12, %s2686_s17  ;;  %v2587_v11 = vunpack.i.h.bf16 %v2585_v2 }
  0xb4   : > { %v851_v26 = vmul.f32 %v2587_v11, %v2825_v60 }
  0xb6   : > { %492 = vrot.lane.b32.xlu0 %v480_v13, %s2687_s18  ;;  %490 = vrot.lane.b32.xlu1 %v479_v14, %s2687_s18  ;;  %v810_v13 = vmul.f32 %v2586_v4, %v2825_v60  ;;  %v809_v14 = vmul.f32 %v2586_v4, %v2816_v52 }
  0xba   : > { %496 = vrot.lane.b32.xlu0 %v482_v16, %s2687_s18  ;;  %494 = vrot.lane.b32.xlu1 %v481_v17, %s2687_s18  ;;  %v848_v17 = vmul.f32 %v2587_v11, %v2811_v49 }
  0xbe   : > { %531 = vrot.lane.b32.xlu0 %v520_v18, %s2688_s19  ;;  %529 = vrot.lane.b32.xlu1 %v519_v20, %s2688_s19  ;;  %v847_v18 = vmul.f32 %v2587_v11, %v2806_v46  ;;  %v923_v20 = vunpack.c.h.bf16 %v2446_v15 }
  0xc2   : > { %535 = vrot.lane.b32.xlu0 %v522_v22, %s2688_s19  ;;  %533 = vrot.lane.b32.xlu1 %v521_v23, %s2688_s19  ;;  %v850_v22 = vmul.f32 %v2587_v11, %v2816_v52  ;;  %v849_v23 = vmul.f32 %v2587_v11, %v2820_v54 }
  0xc6   : > { %572 = vrot.lane.b32.xlu0 %v561_v24, %s2689_s20  ;;  %537 = vrot.lane.b32.xlu1 %v523_v25, %s2688_s19  ;;  %v2588_v24 = vpack.i.bf16 %v923_v20, %v882_v19 }
  0xca   : > { %576 = vrot.lane.b32.xlu0 %v563_v27, %s2689_s20  ;;  %570 = vrot.lane.b32.xlu1 %v560_v28, %s2689_s20 }
  0xce   : > { %611 = vrot.lane.b32.xlu0 %v601_v29, %s2690_s21  ;;  %574 = vrot.lane.b32.xlu1 %v562_v30, %s2689_s20 }
  0xd2   : > { %615 = vrot.lane.b32.xlu0 %v603_v31, %s2690_s21  ;;  %578 = vrot.lane.b32.xlu1 %v564_v32, %s2689_s20 }
  0xd6   : > { %619 = vrot.lane.b32.xlu0 %v605_v35, %s2690_s21  ;;  %613 = vrot.lane.b32.xlu1 %v602_v37, %s2690_s21 }
  0xda   : > { %652 = vrot.lane.b32.xlu0 %v642_v38, %s2691_s22  ;;  %617 = vrot.lane.b32.xlu1 %v604_v39, %s2690_s21 }
  0xde   : > { %656 = vrot.lane.b32.xlu0 %v644_v41, %s2691_s22  ;;  %654 = vrot.lane.b32.xlu1 %v643_v42, %s2691_s22 }
  0xe2   : > { %660 = vrot.lane.b32.xlu0 %v646_v44, %s2691_s22  ;;  %658 = vrot.lane.b32.xlu1 %v645_v45, %s2691_s22  ;;  %s2703_s22 = smov 78  }
  0xe6   : > { %695 = vrot.lane.b32.xlu0 %v684_v48, %s2692_s23  ;;  %693 = vrot.lane.b32.xlu1 %v683_v51, %s2692_s23 }
  0xea   : > { %699 = vrot.lane.b32.xlu0 %v686_v55, %s2692_s23  ;;  %697 = vrot.lane.b32.xlu1 %v685_v56, %s2692_s23 }
  0xee   : > { %736 = vrot.lane.b32.xlu0 %v725_v57, %s2693_s24  ;;  %701 = vrot.lane.b32.xlu1 %v687_v58, %s2692_s23  ;;  %s2704_s23 = smov 62  }
  0xf2   : > { %740 = vrot.lane.b32.xlu0 %v727_v61, %s2693_s24  ;;  %734 = vrot.lane.b32.xlu1 %v724_v62, %s2693_s24 }
  0xf6   : > { %775 = vrot.lane.b32.xlu0 %v765_v63, %s2694_s25  ;;  %738 = vrot.lane.b32.xlu1 %v726_v0, %s2693_s24 }
  0xfa   : > { %779 = vrot.lane.b32.xlu0 %v767_v1, %s2694_s25  ;;  %742 = vrot.lane.b32.xlu1 %v728_v3, %s2693_s24 }
  0xfe   : > { %783 = vrot.lane.b32.xlu0 %v769_v5, %s2694_s25  ;;  %777 = vrot.lane.b32.xlu1 %v766_v6, %s2694_s25 }
 0x102   : > { %816 = vrot.lane.b32.xlu0 %v806_v7, %s2695_s26  ;;  %781 = vrot.lane.b32.xlu1 %v768_v8, %s2694_s25 }
 0x106   : > { %820 = vrot.lane.b32.xlu0 %v808_v9, %s2695_s26  ;;  %818 = vrot.lane.b32.xlu1 %v807_v10, %s2695_s26 }
 0x108   : > { %v2897_v12 = vpop.permute.xlu0 %365  ;;  %v2943_v43 = vpop.permute.xlu1 %367 }
 0x10a   : > { %824 = vrot.lane.b32.xlu0 %v810_v13, %s2695_s26  ;;  %822 = vrot.lane.b32.xlu1 %v809_v14, %s2695_s26  ;;  %s2705_s26 = smov 61  }
 0x10c   : > { %v2904_v16 = vpop.permute.xlu0 %371  ;;  %v2947_v45 = vpop.permute.xlu1 %369 }
 0x10e   : > { %859 = vrot.lane.b32.xlu0 %v848_v17, %s2696_s29  ;;  %857 = vrot.lane.b32.xlu1 %v847_v18, %s2696_s29 }
 0x110   : > { %v2908_v21 = vpop.permute.xlu0 %408  ;;  %v2953_v51 = vpop.permute.xlu1 %373 }
 0x112   : > { %863 = vrot.lane.b32.xlu0 %v850_v22, %s2696_s29  ;;  %861 = vrot.lane.b32.xlu1 %v849_v23, %s2696_s29 }
 0x114   : > { %v2912_v25 = vpop.permute.xlu0 %412  ;;  %v2957_v55 = vpop.permute.xlu1 %406 }
 0x116   : > { %2589 = vperm.xlu0 %2551, %v2588_v24   ;;  %865 = vrot.lane.b32.xlu1 %v851_v26, %s2696_s29  ;;  %s2722_s29 = smov 14  }
 0x118   : > { %v2915_v27 = vpop.permute.xlu0 %447  ;;  %v2963_v58 = vpop.permute.xlu1 %410 }
 0x11c   : > { %v2917_v28 = vpop.permute.xlu0 %451  ;;  %v2967_v61 = vpop.permute.xlu1 %414 }
 0x120   : > { %v2919_v29 = vpop.permute.xlu0 %455  ;;  %v2971_v63 = vpop.permute.xlu1 %449 }
 0x124   : > { %v2921_v30 = vpop.permute.xlu0 %488  ;;  %v2975_v1 = vpop.permute.xlu1 %453 }
 0x128   : > { %v2923_v31 = vpop.permute.xlu0 %492  ;;  %v2979_v3 = vpop.permute.xlu1 %490 }
 0x12c   : > { %v2925_v32 = vpop.permute.xlu0 %496  ;;  %v2983_v5 = vpop.permute.xlu1 %494 }
 0x130   : > { %v2927_v33 = vpop.permute.xlu0 %531  ;;  %v2987_v7 = vpop.permute.xlu1 %529 }
 0x134   : > { %v2929_v34 = vpop.permute.xlu0 %535  ;;  %v2991_v9 = vpop.permute.xlu1 %533 }
 0x138   : > { %v2931_v35 = vpop.permute.xlu0 %572  ;;  %v2995_v11 = vpop.permute.xlu1 %537 }
 0x13c   : > { %v2933_v37 = vpop.permute.xlu0 %576  ;;  %v2999_v18 = vpop.permute.xlu1 %570 }
 0x140   : > { %v2935_v38 = vpop.permute.xlu0 %611  ;;  %v3005_v26 = vpop.permute.xlu1 %574 }
 0x144   : > { %v2937_v39 = vpop.permute.xlu0 %615  ;;  %v3012_v40 = vpop.permute.xlu1 %578 }
 0x148   : > { %v2939_v41 = vpop.permute.xlu0 %619 }
 0x14c   : > { %v2941_v42 = vpop.permute.xlu0 %652 }
 0x150   : > { %v2945_v44 = vpop.permute.xlu0 %656 }
 0x154   : > { %v2949_v48 = vpop.permute.xlu0 %660 }
 0x158   : > { %v2951_v50 = vpop.permute.xlu0 %695 }
 0x15c   : > { %v2955_v53 = vpop.permute.xlu0 %699 }
 0x160   : > { %v2959_v56 = vpop.permute.xlu0 %736 }
 0x161   : > { %3991 = vst [vmem:[#allocation4_spill] sm:$0xff] %v2959_v56 }
 0x164   : > { %v2961_v57 = vpop.permute.xlu0 %740 }
 0x165   : > { %3992 = vst [vmem:[#allocation5_spill] sm:$0xff] %v2961_v57 }
 0x168   : > { %v2965_v59 = vpop.permute.xlu0 %775 }
 0x169   : > { %3993 = vst [vmem:[#allocation6_spill] sm:$0xff] %v2965_v59 }
 0x16c   : > { %v2969_v62 = vpop.permute.xlu0 %779 }
 0x16d   : > { %3994 = vst [vmem:[#allocation7_spill] sm:$0xff] %v2969_v62 }
 0x170   : > { %v2973_v0 = vpop.permute.xlu0 %783 }
 0x171   : > { %3995 = vst [vmem:[#allocation8_spill] sm:$0xff] %v2973_v0 }
 0x174   : > { %v2977_v2 = vpop.permute.xlu0 %816 }
 0x175   : > { %3996 = vst [vmem:[#allocation9_spill] sm:$0xff] %v2977_v2 }
 0x178   : > { %v2981_v4 = vpop.permute.xlu0 %820 }
 0x179   : > { %3997 = vst [vmem:[#allocation10_spill] sm:$0xff] %v2981_v4 }
 0x17c   : > { %v2985_v6 = vpop.permute.xlu0 %824 }
 0x17d   : > { %3998 = vst [vmem:[#allocation11_spill] sm:$0xff] %v2985_v6 }
 0x180   : > { %v2989_v8 = vpop.permute.xlu0 %859 }
 0x181   : > { %3999 = vst [vmem:[#allocation12_spill] sm:$0xff] %v2989_v8 }
 0x184   : > { %v2993_v10 = vpop.permute.xlu0 %863 }
 0x185   : > { %4000 = vst [vmem:[#allocation13_spill] sm:$0xff] %v2993_v10 }
 0x195   : > { %v2590_v13 = vpop.permute.xlu0 %2589 }
 0x196   : > { %v2591_v14 = vunpack.i.l.bf16 %v2590_v13  ;;  %v2592_v19 = vunpack.i.h.bf16 %v2590_v13 }
 0x198   : > { %v889_v15 = vmul.f32 %v2591_v14, %v2811_v49  ;;  %v888_v17 = vmul.f32 %v2591_v14, %v2806_v46  ;;  %v891_v20 = vmul.f32 %v2591_v14, %v2816_v52  ;;  %v890_v22 = vmul.f32 %v2591_v14, %v2820_v54 }
 0x199   : > { %v929_v23 = vmul.f32 %v2592_v19, %v2806_v46  ;;  %v892_v24 = vmul.f32 %v2591_v14, %v2825_v60  ;;  %v931_v13 = vmul.f32 %v2592_v19, %v2820_v54  ;;  %v933_v14 = vmul.f32 %v2592_v19, %v2825_v60 }
 0x19a   : > { %900 = vrot.lane.b32.xlu0 %v889_v15, %s2697_s30  ;;  %898 = vrot.lane.b32.xlu1 %v888_v17, %s2697_s30  ;;  %v2448_v15 = vld [vmem:[%s3920_s2 + $0x40] sm:$0xff]   ;;  %v930_v17 = vmul.f32 %v2592_v19, %v2811_v49  ;;  %v932_v36 = vmul.f32 %v2592_v19, %v2816_v52 }
 0x19e   : > { %904 = vrot.lane.b32.xlu0 %v891_v20, %s2697_s30  ;;  %902 = vrot.lane.b32.xlu1 %v890_v22, %s2697_s30  ;;  %v964_v20 = vunpack.c.l.bf16 %v2448_v15  ;;  %v1005_v22 = vunpack.c.h.bf16 %v2448_v15 }
 0x1a2   : > { %939 = vrot.lane.b32.xlu0 %v929_v23, %s2698_s6  ;;  %906 = vrot.lane.b32.xlu1 %v892_v24, %s2697_s30  ;;  %v2593_v23 = vpack.i.bf16 %v1005_v22, %v964_v20  ;;  %v3016_v24 = vpop.permute.xlu1 %613  ;;  %s2707_s30 = smov 59  }
 0x1a6   : > { %943 = vrot.lane.b32.xlu0 %v931_v13, %s2698_s6  ;;  %941 = vrot.lane.b32.xlu1 %v930_v17, %s2698_s6  ;;  %v3018_v10 = vpop.permute.xlu1 %617 }
 0x1aa   : > { %947 = vrot.lane.b32.xlu0 %v933_v14, %s2698_s6  ;;  %945 = vrot.lane.b32.xlu1 %v932_v36, %s2698_s6  ;;  %v3020_v8 = vpop.permute.xlu1 %654  ;;  %s2708_s6 = smov 58  }
 0x1ae   : > { %2594 = vperm.xlu1 %2562, %v2593_v23   ;;  %v3022_v13 = vpop.permute.xlu1 %658 }
 0x1b2   : > { %v3024_v17 = vpop.permute.xlu1 %693 }
 0x1b6   : > { %v3026_v15 = vpop.permute.xlu1 %697 }
 0x1ba   : > { %v3028_v6 = vpop.permute.xlu1 %701 }
 0x1bb   : > { %4001 = vst [vmem:[#allocation14_spill] sm:$0xff] %v3028_v6 }
 0x1be   : > { %v3030_v4 = vpop.permute.xlu1 %734 }
 0x1bf   : > { %4002 = vst [vmem:[#allocation15_spill] sm:$0xff] %v3030_v4 }
 0x1c2   : > { %v3032_v19 = vpop.permute.xlu1 %738 }
 0x1c3   : > { %4003 = vst [vmem:[#allocation16_spill] sm:$0xff] %v3032_v19 }
 0x1c6   : > { %v3034_v36 = vpop.permute.xlu1 %742 }
 0x1c7   : > { %4004 = vst [vmem:[#allocation17_spill] sm:$0xff] %v3034_v36 }
 0x1ca   : > { %v3036_v20 = vpop.permute.xlu1 %777 }
 0x1cb   : > { %4005 = vst [vmem:[#allocation18_spill] sm:$0xff] %v3036_v20 }
 0x1ce   : > { %v3038_v22 = vpop.permute.xlu1 %781 }
 0x1cf   : > { %4006 = vst [vmem:[#allocation19_spill] sm:$0xff] %v3038_v22 }
 0x1d2   : > { %v3040_v14 = vpop.permute.xlu1 %818 }
 0x1d3   : > { %4007 = vst [vmem:[#allocation20_spill] sm:$0xff] %v3040_v14 }
 0x1d6   : > { %v3042_v23 = vpop.permute.xlu1 %822 }
 0x1d7   : > { %4008 = vst [vmem:[#allocation21_spill] sm:$0xff] %v3042_v23 }
 0x1da   : > { %v3044_v2 = vpop.permute.xlu1 %857 }
 0x1db   : > { %4009 = vst [vmem:[#allocation22_spill] sm:$0xff] %v3044_v2 }
 0x1de   : > { %v3046_v0 = vpop.permute.xlu1 %861 }
 0x1df   : > { %4010 = vst [vmem:[#allocation23_spill] sm:$0xff] %v3046_v0 }
 0x1e2   : > { %v3048_v62 = vpop.permute.xlu1 %865 }
 0x1e3   : > { %4011 = vst [vmem:[#allocation24_spill] sm:$0xff] %v3048_v62 }
 0x20c   : > { %v3050_v59 = vpop.permute.xlu1 %898 }
 0x20d   : > { %4012 = vst [vmem:[#allocation25_spill] sm:$0xff] %v3050_v59 }
 0x210   : > { %v3052_v57 = vpop.permute.xlu1 %902 }
 0x211   : > { %4013 = vst [vmem:[#allocation26_spill] sm:$0xff] %v3052_v57 }
 0x214   : > { %v3054_v19 = vpop.permute.xlu1 %906 }
 0x215   : > { %4014 = vst [vmem:[#allocation27_spill] sm:$0xff] %v3054_v19  ;;  %v2450_v19 = vld [vmem:[%s3920_s2 + $0x48] sm:$0xff]  }
 0x218   : > { %v3056_v36 = vpop.permute.xlu1 %941 }
 0x219   : > { %4015 = vst [vmem:[#allocation28_spill] sm:$0xff] %v3056_v36 }
 0x21c   : > { %v3058_v20 = vpop.permute.xlu1 %945 }
 0x21d   : > { %4016 = vst [vmem:[#allocation29_spill] sm:$0xff] %v3058_v20 }
 0x22d   : > { %v2595_v22 = vpop.permute.xlu1 %2594 }
 0x22e   : > { %v2596_v14 = vunpack.i.l.bf16 %v2595_v22  ;;  %v2597_v62 = vunpack.i.h.bf16 %v2595_v22 }
 0x230   : > { %v971_v23 = vmul.f32 %v2596_v14, %v2811_v49  ;;  %v970_v2 = vmul.f32 %v2596_v14, %v2806_v46  ;;  %v973_v59 = vmul.f32 %v2596_v14, %v2816_v52  ;;  %v972_v57 = vmul.f32 %v2596_v14, %v2820_v54 }
 0x231   : > { %v1011_v36 = vmul.f32 %v2597_v62, %v2806_v46  ;;  %v974_v20 = vmul.f32 %v2596_v14, %v2825_v60  ;;  %v1012_v22 = vmul.f32 %v2597_v62, %v2811_v49  ;;  %v1014_v0 = vmul.f32 %v2597_v62, %v2816_v52 }
 0x232   : > { %982 = vrot.lane.b32.xlu1 %v971_v23, %s2699_s9  ;;  %980 = vrot.lane.b32.xlu0 %v970_v2, %s2699_s9  ;;  %v1013_v2 = vmul.f32 %v2597_v62, %v2820_v54  ;;  %v1046_v23 = vunpack.c.l.bf16 %v2450_v19 }
 0x236   : > { %986 = vrot.lane.b32.xlu1 %v973_v59, %s2699_s9  ;;  %984 = vrot.lane.b32.xlu0 %v972_v57, %s2699_s9  ;;  %v1087_v59 = vunpack.c.h.bf16 %v2450_v19  ;;  %v1015_v57 = vmul.f32 %v2597_v62, %v2825_v60 }
 0x23a   : > { %1021 = vrot.lane.b32.xlu1 %v1011_v36, %s2700_s10  ;;  %988 = vrot.lane.b32.xlu0 %v974_v20, %s2699_s9  ;;  %v2598_v36 = vpack.i.bf16 %v1087_v59, %v1046_v23  ;;  %v3073_v20 = vpop.permute.xlu0 %900  ;;  %s2709_s9 = smov 57  }
 0x23b   : > { %4017 = vst [vmem:[#allocation30_spill] sm:$0xff] %v3073_v20 }
 0x23e   : > { %1025 = vrot.lane.b32.xlu1 %v1013_v2, %s2700_s10  ;;  %1023 = vrot.lane.b32.xlu0 %v1012_v22, %s2700_s10  ;;  %v3075_v14 = vpop.permute.xlu0 %904 }
 0x23f   : > { %4018 = vst [vmem:[#allocation31_spill] sm:$0xff] %v3075_v14 }
 0x242   : > { %1029 = vrot.lane.b32.xlu1 %v1015_v57, %s2700_s10  ;;  %1027 = vrot.lane.b32.xlu0 %v1014_v0, %s2700_s10  ;;  %v3077_v4 = vpop.permute.xlu0 %939  ;;  %s2710_s10 = smov 56  }
 0x243   : > { %4019 = vst [vmem:[#allocation32_spill] sm:$0xff] %v3077_v4 }
 0x246   : > { %2599 = vperm.xlu0 %2551, %v2598_v36   ;;  %v3079_v56 = vpop.permute.xlu0 %943 }
 0x247   : > { %4020 = vst [vmem:[#allocation33_spill] sm:$0xff] %v3079_v56 }
 0x24a   : > { %v3081_v2 = vpop.permute.xlu0 %947 }
 0x24b   : > { %4021 = vst [vmem:[#allocation34_spill] sm:$0xff] %v3081_v2 }
 0x2a4   : > { %v3083_v22 = vpop.permute.xlu0 %980 }
 0x2a5   : > { %4022 = vst [vmem:[#allocation35_spill] sm:$0xff] %v3083_v22 }
 0x2a8   : > { %v3085_v19 = vpop.permute.xlu0 %984 }
 0x2a9   : > { %4023 = vst [vmem:[#allocation36_spill] sm:$0xff] %v3085_v19 }
 0x2ac   : > { %v3087_v6 = vpop.permute.xlu0 %988 }
 0x2ad   : > { %4024 = vst [vmem:[#allocation37_spill] sm:$0xff] %v3087_v6  ;;  %v2452_v6 = vld [vmem:[%s3920_s2 + $0x50] sm:$0xff]  }
 0x2b0   : > { %v3089_v62 = vpop.permute.xlu0 %1023 }
 0x2b1   : > { %4025 = vst [vmem:[#allocation38_spill] sm:$0xff] %v3089_v62 }
 0x2b4   : > { %v3091_v0 = vpop.permute.xlu0 %1027 }
 0x2b5   : > { %4026 = vst [vmem:[#allocation39_spill] sm:$0xff] %v3091_v0 }
 0x2c5   : > { %v2600_v23 = vpop.permute.xlu0 %2599 }
 0x2c6   : > { %v2601_v59 = vunpack.i.l.bf16 %v2600_v23  ;;  %v2602_v2 = vunpack.i.h.bf16 %v2600_v23 }
 0x2c8   : > { %v1053_v57 = vmul.f32 %v2601_v59, %v2811_v49  ;;  %v1052_v36 = vmul.f32 %v2601_v59, %v2806_v46  ;;  %v1055_v22 = vmul.f32 %v2601_v59, %v2816_v52  ;;  %v1054_v19 = vmul.f32 %v2601_v59, %v2820_v54 }
 0x2c9   : > { %v1093_v62 = vmul.f32 %v2602_v2, %v2806_v46  ;;  %v1056_v0 = vmul.f32 %v2601_v59, %v2825_v60  ;;  %v1094_v23 = vmul.f32 %v2602_v2, %v2811_v49  ;;  %v1096_v56 = vmul.f32 %v2602_v2, %v2816_v52 }
 0x2ca   : > { %1064 = vrot.lane.b32.xlu0 %v1053_v57, %s2701_s14  ;;  %1062 = vrot.lane.b32.xlu1 %v1052_v36, %s2701_s14  ;;  %v1095_v57 = vmul.f32 %v2602_v2, %v2820_v54  ;;  %v1128_v36 = vunpack.c.l.bf16 %v2452_v6 }
 0x2ce   : > { %1068 = vrot.lane.b32.xlu0 %v1055_v22, %s2701_s14  ;;  %1066 = vrot.lane.b32.xlu1 %v1054_v19, %s2701_s14  ;;  %v1169_v22 = vunpack.c.h.bf16 %v2452_v6  ;;  %v1097_v19 = vmul.f32 %v2602_v2, %v2825_v60 }
 0x2d2   : > { %1103 = vrot.lane.b32.xlu0 %v1093_v62, %s2702_s16  ;;  %1070 = vrot.lane.b32.xlu1 %v1056_v0, %s2701_s14  ;;  %v2603_v62 = vpack.i.bf16 %v1169_v22, %v1128_v36  ;;  %v3106_v0 = vpop.permute.xlu1 %982  ;;  %s2711_s14 = smov 40  }
 0x2d3   : > { %4027 = vst [vmem:[#allocation40_spill] sm:$0xff] %v3106_v0 }
 0x2d6   : > { %1107 = vrot.lane.b32.xlu0 %v1095_v57, %s2702_s16  ;;  %1105 = vrot.lane.b32.xlu1 %v1094_v23, %s2702_s16  ;;  %v3108_v59 = vpop.permute.xlu1 %986 }
 0x2d7   : > { %4028 = vst [vmem:[#allocation41_spill] sm:$0xff] %v3108_v59 }
 0x2da   : > { %1111 = vrot.lane.b32.xlu0 %v1097_v19, %s2702_s16  ;;  %1109 = vrot.lane.b32.xlu1 %v1096_v56, %s2702_s16  ;;  %v3110_v4 = vpop.permute.xlu1 %1021  ;;  %s2712_s16 = smov 39  }
 0x2db   : > { %4029 = vst [vmem:[#allocation42_spill] sm:$0xff] %v3110_v4 }
 0x2de   : > { %2604 = vperm.xlu1 %2562, %v2603_v62   ;;  %v3112_v14 = vpop.permute.xlu1 %1025 }
 0x2df   : > { %4030 = vst [vmem:[#allocation43_spill] sm:$0xff] %v3112_v14 }
 0x2e2   : > { %v3114_v57 = vpop.permute.xlu1 %1029 }
 0x2e3   : > { %4031 = vst [vmem:[#allocation44_spill] sm:$0xff] %v3114_v57 }
 0x33c   : > { %v3116_v23 = vpop.permute.xlu1 %1062 }
 0x33d   : > { %4032 = vst [vmem:[#allocation45_spill] sm:$0xff] %v3116_v23 }
 0x340   : > { %v3118_v6 = vpop.permute.xlu1 %1066 }
 0x341   : > { %4033 = vst [vmem:[#allocation46_spill] sm:$0xff] %v3118_v6 }
 0x344   : > { %v3120_v20 = vpop.permute.xlu1 %1070 }
 0x345   : > { %4034 = vst [vmem:[#allocation47_spill] sm:$0xff] %v3120_v20  ;;  %v2454_v20 = vld [vmem:[%s3920_s2 + $0x58] sm:$0xff]  }
 0x348   : > { %v3122_v2 = vpop.permute.xlu1 %1105 }
 0x349   : > { %4035 = vst [vmem:[#allocation48_spill] sm:$0xff] %v3122_v2 }
 0x34c   : > { %v3124_v56 = vpop.permute.xlu1 %1109 }
 0x34d   : > { %4036 = vst [vmem:[#allocation49_spill] sm:$0xff] %v3124_v56 }
 0x35d   : > { %v2605_v36 = vpop.permute.xlu1 %2604 }
 0x35e   : > { %v2606_v22 = vunpack.i.l.bf16 %v2605_v36  ;;  %v2607_v57 = vunpack.i.h.bf16 %v2605_v36 }
 0x360   : > { %v1135_v19 = vmul.f32 %v2606_v22, %v2811_v49  ;;  %v1134_v62 = vmul.f32 %v2606_v22, %v2806_v46  ;;  %v1137_v23 = vmul.f32 %v2606_v22, %v2816_v52  ;;  %v1136_v6 = vmul.f32 %v2606_v22, %v2820_v54 }
 0x361   : > { %v1175_v2 = vmul.f32 %v2607_v57, %v2806_v46  ;;  %v1138_v56 = vmul.f32 %v2606_v22, %v2825_v60  ;;  %v1176_v36 = vmul.f32 %v2607_v57, %v2811_v49  ;;  %v1178_v14 = vmul.f32 %v2607_v57, %v2816_v52 }
 0x362   : > { %1146 = vrot.lane.b32.xlu1 %v1135_v19, %s2703_s22  ;;  %1144 = vrot.lane.b32.xlu0 %v1134_v62, %s2703_s22  ;;  %v1177_v19 = vmul.f32 %v2607_v57, %v2820_v54  ;;  %v1210_v62 = vunpack.c.l.bf16 %v2454_v20 }
 0x366   : > { %1150 = vrot.lane.b32.xlu1 %v1137_v23, %s2703_s22  ;;  %1148 = vrot.lane.b32.xlu0 %v1136_v6, %s2703_s22  ;;  %v1251_v23 = vunpack.c.h.bf16 %v2454_v20  ;;  %v1179_v6 = vmul.f32 %v2607_v57, %v2825_v60 }
 0x36a   : > { %1185 = vrot.lane.b32.xlu1 %v1175_v2, %s2704_s23  ;;  %1152 = vrot.lane.b32.xlu0 %v1138_v56, %s2703_s22  ;;  %v2608_v2 = vpack.i.bf16 %v1251_v23, %v1210_v62  ;;  %v3139_v56 = vpop.permute.xlu0 %1064  ;;  %s2713_s22 = smov 38  }
 0x36b   : > { %4037 = vst [vmem:[#allocation50_spill] sm:$0xff] %v3139_v56 }
 0x36e   : > { %1189 = vrot.lane.b32.xlu1 %v1177_v19, %s2704_s23  ;;  %1187 = vrot.lane.b32.xlu0 %v1176_v36, %s2704_s23  ;;  %v3141_v22 = vpop.permute.xlu0 %1068 }
 0x36f   : > { %4038 = vst [vmem:[#allocation51_spill] sm:$0xff] %v3141_v22 }
 0x372   : > { %1193 = vrot.lane.b32.xlu1 %v1179_v6, %s2704_s23  ;;  %1191 = vrot.lane.b32.xlu0 %v1178_v14, %s2704_s23  ;;  %v3143_v4 = vpop.permute.xlu0 %1103  ;;  %s2714_s23 = smov 37  }
 0x373   : > { %4039 = vst [vmem:[#allocation52_spill] sm:$0xff] %v3143_v4 }
 0x376   : > { %2609 = vperm.xlu0 %2551, %v2608_v2   ;;  %v3145_v59 = vpop.permute.xlu0 %1107 }
 0x377   : > { %4040 = vst [vmem:[#allocation53_spill] sm:$0xff] %v3145_v59 }
 0x37a   : > { %v3147_v19 = vpop.permute.xlu0 %1111 }
 0x37b   : > { %4041 = vst [vmem:[#allocation54_spill] sm:$0xff] %v3147_v19 }
 0x3d4   : > { %v3149_v36 = vpop.permute.xlu0 %1144 }
 0x3d5   : > { %4042 = vst [vmem:[#allocation55_spill] sm:$0xff] %v3149_v36 }
 0x3d8   : > { %v3151_v20 = vpop.permute.xlu0 %1148 }
 0x3d9   : > { %4043 = vst [vmem:[#allocation56_spill] sm:$0xff] %v3151_v20 }
 0x3dc   : > { %v3153_v0 = vpop.permute.xlu0 %1152 }
 0x3dd   : > { %4044 = vst [vmem:[#allocation57_spill] sm:$0xff] %v3153_v0  ;;  %v2456_v0 = vld [vmem:[%s3920_s2 + $0x60] sm:$0xff]  }
 0x3e0   : > { %v3155_v57 = vpop.permute.xlu0 %1187 }
 0x3e1   : > { %4045 = vst [vmem:[#allocation58_spill] sm:$0xff] %v3155_v57 }
 0x3e4   : > { %v3157_v14 = vpop.permute.xlu0 %1191 }
 0x3e5   : > { %4046 = vst [vmem:[#allocation59_spill] sm:$0xff] %v3157_v14 }
 0x3f5   : > { %v2610_v62 = vpop.permute.xlu0 %2609 }
 0x3f6   : > { %v2611_v23 = vunpack.i.l.bf16 %v2610_v62  ;;  %v2612_v19 = vunpack.i.h.bf16 %v2610_v62 }
 0x3f8   : > { %v1217_v6 = vmul.f32 %v2611_v23, %v2811_v49  ;;  %v1216_v2 = vmul.f32 %v2611_v23, %v2806_v46  ;;  %v1219_v36 = vmul.f32 %v2611_v23, %v2816_v52  ;;  %v1218_v20 = vmul.f32 %v2611_v23, %v2820_v54 }
 0x3f9   : > { %v1257_v57 = vmul.f32 %v2612_v19, %v2806_v46  ;;  %v1220_v14 = vmul.f32 %v2611_v23, %v2825_v60  ;;  %v1258_v62 = vmul.f32 %v2612_v19, %v2811_v49  ;;  %v1260_v59 = vmul.f32 %v2612_v19, %v2816_v52 }
 0x3fa   : > { %1228 = vrot.lane.b32.xlu0 %v1217_v6, %s2705_s26  ;;  %1226 = vrot.lane.b32.xlu1 %v1216_v2, %s2705_s26  ;;  %v1259_v6 = vmul.f32 %v2612_v19, %v2820_v54  ;;  %v1292_v2 = vunpack.c.l.bf16 %v2456_v0 }
 0x3fe   : > { %1232 = vrot.lane.b32.xlu0 %v1219_v36, %s2705_s26  ;;  %1230 = vrot.lane.b32.xlu1 %v1218_v20, %s2705_s26  ;;  %v1333_v36 = vunpack.c.h.bf16 %v2456_v0  ;;  %v1261_v20 = vmul.f32 %v2612_v19, %v2825_v60 }
 0x402   : > { %1267 = vrot.lane.b32.xlu0 %v1257_v57, %s2706_s27  ;;  %1234 = vrot.lane.b32.xlu1 %v1220_v14, %s2705_s26  ;;  %v2613_v57 = vpack.i.bf16 %v1333_v36, %v1292_v2  ;;  %v3172_v14 = vpop.permute.xlu1 %1146  ;;  %s2715_s26 = smov 36  }
 0x403   : > { %4047 = vst [vmem:[#allocation60_spill] sm:$0xff] %v3172_v14 }
 0x406   : > { %1271 = vrot.lane.b32.xlu0 %v1259_v6, %s2706_s27  ;;  %1269 = vrot.lane.b32.xlu1 %v1258_v62, %s2706_s27  ;;  %v3174_v23 = vpop.permute.xlu1 %1150 }
 0x407   : > { %4048 = vst [vmem:[#allocation61_spill] sm:$0xff] %v3174_v23 }
 0x40a   : > { %1275 = vrot.lane.b32.xlu0 %v1261_v20, %s2706_s27  ;;  %1273 = vrot.lane.b32.xlu1 %v1260_v59, %s2706_s27  ;;  %v3176_v4 = vpop.permute.xlu1 %1185  ;;  %s2716_s27 = smov 35  }
 0x40b   : > { %4049 = vst [vmem:[#allocation62_spill] sm:$0xff] %v3176_v4 }
 0x40e   : > { %2614 = vperm.xlu1 %2562, %v2613_v57   ;;  %v3178_v22 = vpop.permute.xlu1 %1189 }
 0x40f   : > { %4050 = vst [vmem:[#allocation63_spill] sm:$0xff] %v3178_v22 }
 0x412   : > { %v3180_v6 = vpop.permute.xlu1 %1193 }
 0x413   : > { %4051 = vst [vmem:[#allocation64_spill] sm:$0xff] %v3180_v6 }
 0x46c   : > { %v3182_v62 = vpop.permute.xlu1 %1226 }
 0x46d   : > { %4052 = vst [vmem:[#allocation65_spill] sm:$0xff] %v3182_v62 }
 0x470   : > { %v3184_v0 = vpop.permute.xlu1 %1230 }
 0x471   : > { %4053 = vst [vmem:[#allocation66_spill] sm:$0xff] %v3184_v0 }
 0x474   : > { %v3186_v56 = vpop.permute.xlu1 %1234 }
 0x475   : > { %4054 = vst [vmem:[#allocation67_spill] sm:$0xff] %v3186_v56  ;;  %v2458_v56 = vld [vmem:[%s3920_s2 + $0x68] sm:$0xff]  }
 0x478   : > { %v3188_v19 = vpop.permute.xlu1 %1269 }
 0x479   : > { %4055 = vst [vmem:[#allocation68_spill] sm:$0xff] %v3188_v19 }
 0x47c   : > { %v3190_v59 = vpop.permute.xlu1 %1273 }
 0x47d   : > { %4056 = vst [vmem:[#allocation69_spill] sm:$0xff] %v3190_v59 }
 0x48d   : > { %v2615_v2 = vpop.permute.xlu1 %2614 }
 0x48e   : > { %v2616_v36 = vunpack.i.l.bf16 %v2615_v2  ;;  %v2617_v6 = vunpack.i.h.bf16 %v2615_v2 }
 0x490   : > { %v1299_v20 = vmul.f32 %v2616_v36, %v2811_v49  ;;  %v1298_v57 = vmul.f32 %v2616_v36, %v2806_v46  ;;  %v1301_v62 = vmul.f32 %v2616_v36, %v2816_v52  ;;  %v1300_v0 = vmul.f32 %v2616_v36, %v2820_v54 }
 0x491   : > { %v1339_v19 = vmul.f32 %v2617_v6, %v2806_v46  ;;  %v1302_v59 = vmul.f32 %v2616_v36, %v2825_v60  ;;  %v1340_v2 = vmul.f32 %v2617_v6, %v2811_v49  ;;  %v1342_v4 = vmul.f32 %v2617_v6, %v2816_v52 }
 0x492   : > { %1310 = vrot.lane.b32.xlu1 %v1299_v20, %s2707_s30  ;;  %1308 = vrot.lane.b32.xlu0 %v1298_v57, %s2707_s30  ;;  %v1341_v20 = vmul.f32 %v2617_v6, %v2820_v54  ;;  %v1374_v57 = vunpack.c.l.bf16 %v2458_v56 }
 0x496   : > { %1314 = vrot.lane.b32.xlu1 %v1301_v62, %s2707_s30  ;;  %1312 = vrot.lane.b32.xlu0 %v1300_v0, %s2707_s30  ;;  %v1415_v62 = vunpack.c.h.bf16 %v2458_v56  ;;  %v1343_v0 = vmul.f32 %v2617_v6, %v2825_v60 }
 0x49a   : > { %1349 = vrot.lane.b32.xlu1 %v1339_v19, %s2708_s6  ;;  %1316 = vrot.lane.b32.xlu0 %v1302_v59, %s2707_s30  ;;  %v2618_v19 = vpack.i.bf16 %v1415_v62, %v1374_v57  ;;  %v3205_v59 = vpop.permute.xlu0 %1228  ;;  %s2717_s30 = smov 34  }
 0x49b   : > { %4057 = vst [vmem:[#allocation70_spill] sm:$0xff] %v3205_v59 }
 0x49e   : > { %1353 = vrot.lane.b32.xlu1 %v1341_v20, %s2708_s6  ;;  %1351 = vrot.lane.b32.xlu0 %v1340_v2, %s2708_s6  ;;  %v3207_v36 = vpop.permute.xlu0 %1232 }
 0x49f   : > { %4058 = vst [vmem:[#allocation71_spill] sm:$0xff] %v3207_v36 }
 0x4a2   : > { %1357 = vrot.lane.b32.xlu1 %v1343_v0, %s2708_s6  ;;  %1355 = vrot.lane.b32.xlu0 %v1342_v4, %s2708_s6  ;;  %v3209_v22 = vpop.permute.xlu0 %1267  ;;  %s2718_s6 = smov 18  }
 0x4a3   : > { %4059 = vst [vmem:[#allocation72_spill] sm:$0xff] %v3209_v22 }
 0x4a6   : > { %2619 = vperm.xlu0 %2551, %v2618_v19   ;;  %v3211_v23 = vpop.permute.xlu0 %1271 }
 0x4a7   : > { %4060 = vst [vmem:[#allocation73_spill] sm:$0xff] %v3211_v23 }
 0x4aa   : > { %v3213_v20 = vpop.permute.xlu0 %1275 }
 0x4ab   : > { %4061 = vst [vmem:[#allocation74_spill] sm:$0xff] %v3213_v20 }
 0x504   : > { %v3215_v2 = vpop.permute.xlu0 %1308 }
 0x505   : > { %4062 = vst [vmem:[#allocation75_spill] sm:$0xff] %v3215_v2 }
 0x508   : > { %v3217_v56 = vpop.permute.xlu0 %1312 }
 0x509   : > { %4063 = vst [vmem:[#allocation76_spill] sm:$0xff] %v3217_v56 }
 0x50c   : > { %v3219_v14 = vpop.permute.xlu0 %1316 }
 0x50d   : > { %4064 = vst [vmem:[#allocation77_spill] sm:$0xff] %v3219_v14 }
 0x510   : > { %v3221_v6 = vpop.permute.xlu0 %1351 }
 0x511   : > { %4065 = vst [vmem:[#allocation78_spill] sm:$0xff] %v3221_v6  ;;  %v2460_v6 = vld [vmem:[%s3920_s2 + $0x70] sm:$0xff]  }
 0x514   : > { %v3223_v4 = vpop.permute.xlu0 %1355 }
 0x515   : > { %4066 = vst [vmem:[#allocation79_spill] sm:$0xff] %v3223_v4 }
 0x525   : > { %v2620_v57 = vpop.permute.xlu0 %2619 }
 0x526   : > { %v2621_v62 = vunpack.i.l.bf16 %v2620_v57  ;;  %v2622_v20 = vunpack.i.h.bf16 %v2620_v57 }
 0x528   : > { %v1381_v0 = vmul.f32 %v2621_v62, %v2811_v49  ;;  %v1380_v19 = vmul.f32 %v2621_v62, %v2806_v46  ;;  %v1383_v2 = vmul.f32 %v2621_v62, %v2816_v52  ;;  %v1382_v56 = vmul.f32 %v2621_v62, %v2820_v54 }
 0x529   : > { %v1421_v14 = vmul.f32 %v2622_v20, %v2806_v46  ;;  %v1384_v4 = vmul.f32 %v2621_v62, %v2825_v60  ;;  %v1422_v57 = vmul.f32 %v2622_v20, %v2811_v49  ;;  %v1424_v22 = vmul.f32 %v2622_v20, %v2816_v52 }
 0x52a   : > { %1392 = vrot.lane.b32.xlu0 %v1381_v0, %s2709_s9  ;;  %1390 = vrot.lane.b32.xlu1 %v1380_v19, %s2709_s9  ;;  %v1423_v0 = vmul.f32 %v2622_v20, %v2820_v54  ;;  %v1456_v19 = vunpack.c.l.bf16 %v2460_v6 }
 0x52e   : > { %1396 = vrot.lane.b32.xlu0 %v1383_v2, %s2709_s9  ;;  %1394 = vrot.lane.b32.xlu1 %v1382_v56, %s2709_s9  ;;  %v1497_v2 = vunpack.c.h.bf16 %v2460_v6  ;;  %v1425_v56 = vmul.f32 %v2622_v20, %v2825_v60 }
 0x532   : > { %1431 = vrot.lane.b32.xlu0 %v1421_v14, %s2710_s10  ;;  %1398 = vrot.lane.b32.xlu1 %v1384_v4, %s2709_s9  ;;  %v2623_v14 = vpack.i.bf16 %v1497_v2, %v1456_v19  ;;  %v3238_v4 = vpop.permute.xlu1 %1310  ;;  %s2719_s9 = smov 17  }
 0x533   : > { %4067 = vst [vmem:[#allocation80_spill] sm:$0xff] %v3238_v4 }
 0x536   : > { %1435 = vrot.lane.b32.xlu0 %v1423_v0, %s2710_s10  ;;  %1433 = vrot.lane.b32.xlu1 %v1422_v57, %s2710_s10  ;;  %v3240_v62 = vpop.permute.xlu1 %1314 }
 0x537   : > { %4068 = vst [vmem:[#allocation81_spill] sm:$0xff] %v3240_v62 }
 0x53a   : > { %1439 = vrot.lane.b32.xlu0 %v1425_v56, %s2710_s10  ;;  %1437 = vrot.lane.b32.xlu1 %v1424_v22, %s2710_s10  ;;  %v3242_v23 = vpop.permute.xlu1 %1349  ;;  %s2720_s10 = smov 16  }
 0x53b   : > { %4069 = vst [vmem:[#allocation82_spill] sm:$0xff] %v3242_v23 }
 0x53e   : > { %2624 = vperm.xlu1 %2562, %v2623_v14   ;;  %v3244_v36 = vpop.permute.xlu1 %1353 }
 0x53f   : > { %4070 = vst [vmem:[#allocation83_spill] sm:$0xff] %v3244_v36 }
 0x542   : > { %v3246_v0 = vpop.permute.xlu1 %1357 }
 0x543   : > { %4071 = vst [vmem:[#allocation84_spill] sm:$0xff] %v3246_v0 }
 0x59c   : > { %v3248_v57 = vpop.permute.xlu1 %1390 }
 0x59d   : > { %4072 = vst [vmem:[#allocation85_spill] sm:$0xff] %v3248_v57 }
 0x5a0   : > { %v3250_v6 = vpop.permute.xlu1 %1394 }
 0x5a1   : > { %4073 = vst [vmem:[#allocation86_spill] sm:$0xff] %v3250_v6 }
 0x5a4   : > { %v3252_v59 = vpop.permute.xlu1 %1398 }
 0x5a5   : > { %4074 = vst [vmem:[#allocation87_spill] sm:$0xff] %v3252_v59 }
 0x5a8   : > { %v3254_v20 = vpop.permute.xlu1 %1433 }
 0x5a9   : > { %4075 = vst [vmem:[#allocation88_spill] sm:$0xff] %v3254_v20  ;;  %v2462_v20 = vld [vmem:[%s3920_s2 + $0x78] sm:$0xff]  }
 0x5ac   : > { %v3256_v22 = vpop.permute.xlu1 %1437 }
 0x5ad   : > { %4076 = vst [vmem:[#allocation89_spill] sm:$0xff] %v3256_v22 }
 0x5bd   : > { %v2625_v19 = vpop.permute.xlu1 %2624 }
 0x5be   : > { %v2626_v2 = vunpack.i.l.bf16 %v2625_v19  ;;  %v2627_v23 = vunpack.i.h.bf16 %v2625_v19 }
 0x5c0   : > { %v1463_v56 = vmul.f32 %v2626_v2, %v2811_v49  ;;  %v1462_v14 = vmul.f32 %v2626_v2, %v2806_v46  ;;  %v1465_v57 = vmul.f32 %v2626_v2, %v2816_v52  ;;  %v1464_v0 = vmul.f32 %v2626_v2, %v2820_v54 }
 0x5c1   : > { %v1503_v59 = vmul.f32 %v2627_v23, %v2806_v46  ;;  %v1466_v22 = vmul.f32 %v2626_v2, %v2825_v60  ;;  %v1504_v19 = vmul.f32 %v2627_v23, %v2811_v49  ;;  %v1506_v6 = vmul.f32 %v2627_v23, %v2816_v52 }
 0x5c2   : > { %1474 = vrot.lane.b32.xlu1 %v1463_v56, %s2711_s14  ;;  %1472 = vrot.lane.b32.xlu0 %v1462_v14, %s2711_s14  ;;  %v1505_v56 = vmul.f32 %v2627_v23, %v2820_v54  ;;  %v1538_v14 = vunpack.c.l.bf16 %v2462_v20 }
 0x5c6   : > { %1478 = vrot.lane.b32.xlu1 %v1465_v57, %s2711_s14  ;;  %1476 = vrot.lane.b32.xlu0 %v1464_v0, %s2711_s14  ;;  %v1579_v57 = vunpack.c.h.bf16 %v2462_v20  ;;  %v1507_v0 = vmul.f32 %v2627_v23, %v2825_v60 }
 0x5ca   : > { %1513 = vrot.lane.b32.xlu1 %v1503_v59, %s2712_s16  ;;  %1480 = vrot.lane.b32.xlu0 %v1466_v22, %s2711_s14  ;;  %v2628_v59 = vpack.i.bf16 %v1579_v57, %v1538_v14  ;;  %v3271_v22 = vpop.permute.xlu0 %1392 }
 0x5cb   : > { %4077 = vst [vmem:[#allocation90_spill] sm:$0xff] %v3271_v22 }
 0x5ce   : > { %1517 = vrot.lane.b32.xlu1 %v1505_v56, %s2712_s16  ;;  %1515 = vrot.lane.b32.xlu0 %v1504_v19, %s2712_s16  ;;  %v3273_v2 = vpop.permute.xlu0 %1396 }
 0x5cf   : > { %4078 = vst [vmem:[#allocation91_spill] sm:$0xff] %v3273_v2 }
 0x5d2   : > { %1521 = vrot.lane.b32.xlu1 %v1507_v0, %s2712_s16  ;;  %1519 = vrot.lane.b32.xlu0 %v1506_v6, %s2712_s16  ;;  %v3275_v36 = vpop.permute.xlu0 %1431 }
 0x5d3   : > { %4079 = vst [vmem:[#allocation92_spill] sm:$0xff] %v3275_v36 }
 0x5d6   : > { %2629 = vperm.xlu0 %2551, %v2628_v59   ;;  %v3277_v62 = vpop.permute.xlu0 %1435 }
 0x5d7   : > { %4080 = vst [vmem:[#allocation93_spill] sm:$0xff] %v3277_v62 }
 0x5da   : > { %v3279_v56 = vpop.permute.xlu0 %1439 }
 0x5db   : > { %4081 = vst [vmem:[#allocation94_spill] sm:$0xff] %v3279_v56 }
 0x634   : > { %v3281_v19 = vpop.permute.xlu0 %1472 }
 0x635   : > { %4082 = vst [vmem:[#allocation95_spill] sm:$0xff] %v3281_v19 }
 0x638   : > { %v3283_v20 = vpop.permute.xlu0 %1476 }
 0x639   : > { %4083 = vst [vmem:[#allocation96_spill] sm:$0xff] %v3283_v20 }
 0x63c   : > { %v3285_v4 = vpop.permute.xlu0 %1480 }
 0x63d   : > { %4084 = vst [vmem:[#allocation97_spill] sm:$0xff] %v3285_v4 }
 0x640   : > { %v3287_v23 = vpop.permute.xlu0 %1515 }
 0x641   : > { %4085 = vst [vmem:[#allocation98_spill] sm:$0xff] %v3287_v23  ;;  %v2464_v23 = vld [vmem:[%s3920_s2 + $0x80] sm:$0xff]  }
 0x644   : > { %v3289_v6 = vpop.permute.xlu0 %1519 }
 0x645   : > { %4086 = vst [vmem:[#allocation99_spill] sm:$0xff] %v3289_v6 }
 0x655   : > { %v2630_v14 = vpop.permute.xlu0 %2629 }
 0x656   : > { %v2631_v57 = vunpack.i.l.bf16 %v2630_v14  ;;  %v2632_v36 = vunpack.i.h.bf16 %v2630_v14 }
 0x658   : > { %v1545_v0 = vmul.f32 %v2631_v57, %v2811_v49  ;;  %v1544_v59 = vmul.f32 %v2631_v57, %v2806_v46  ;;  %v1547_v19 = vmul.f32 %v2631_v57, %v2816_v52  ;;  %v1546_v56 = vmul.f32 %v2631_v57, %v2820_v54 }
 0x659   : > { %v1585_v4 = vmul.f32 %v2632_v36, %v2806_v46  ;;  %v1548_v6 = vmul.f32 %v2631_v57, %v2825_v60  ;;  %v1586_v14 = vmul.f32 %v2632_v36, %v2811_v49  ;;  %v1588_v20 = vmul.f32 %v2632_v36, %v2816_v52 }
 0x65a   : > { %1556 = vrot.lane.b32.xlu0 %v1545_v0, %s2713_s22  ;;  %1554 = vrot.lane.b32.xlu1 %v1544_v59, %s2713_s22  ;;  %v1587_v0 = vmul.f32 %v2632_v36, %v2820_v54  ;;  %v1620_v59 = vunpack.c.l.bf16 %v2464_v23 }
 0x65e   : > { %1560 = vrot.lane.b32.xlu0 %v1547_v19, %s2713_s22  ;;  %1558 = vrot.lane.b32.xlu1 %v1546_v56, %s2713_s22  ;;  %v1661_v19 = vunpack.c.h.bf16 %v2464_v23  ;;  %v1589_v56 = vmul.f32 %v2632_v36, %v2825_v60 }
 0x662   : > { %1595 = vrot.lane.b32.xlu0 %v1585_v4, %s2714_s23  ;;  %1562 = vrot.lane.b32.xlu1 %v1548_v6, %s2713_s22  ;;  %v2633_v4 = vpack.i.bf16 %v1661_v19, %v1620_v59  ;;  %v3304_v6 = vpop.permute.xlu1 %1474 }
 0x666   : > { %1599 = vrot.lane.b32.xlu0 %v1587_v0, %s2714_s23  ;;  %1597 = vrot.lane.b32.xlu1 %v1586_v14, %s2714_s23  ;;  %v3306_v57 = vpop.permute.xlu1 %1478 }
 0x66a   : > { %1603 = vrot.lane.b32.xlu0 %v1589_v56, %s2714_s23  ;;  %1601 = vrot.lane.b32.xlu1 %v1588_v20, %s2714_s23  ;;  %v3308_v62 = vpop.permute.xlu1 %1513 }
 0x66b   : > { %4087 = vst [vmem:[#allocation100_spill] sm:$0xff] %v3308_v62 }
 0x66e   : > { %2634 = vperm.xlu1 %2562, %v2633_v4   ;;  %v3310_v2 = vpop.permute.xlu1 %1517 }
 0x66f   : > { %4088 = vst [vmem:[#allocation101_spill] sm:$0xff] %v3310_v2 }
 0x672   : > { %v3312_v0 = vpop.permute.xlu1 %1521 }
 0x673   : > { %4089 = vst [vmem:[#allocation102_spill] sm:$0xff] %v3312_v0 }
 0x6cc   : > { %v3314_v14 = vpop.permute.xlu0 %1556  ;;  %v3316_v23 = vpop.permute.xlu1 %1554 }
 0x6cd   : > { %4090 = vst [vmem:[#allocation103_spill] sm:$0xff] %v3314_v14  ;;  %4091 = vst [vmem:[#allocation104_spill] sm:$0xff] %v3316_v23 }
 0x6d0   : > { %v3318_v22 = vpop.permute.xlu0 %1560  ;;  %v3320_v36 = vpop.permute.xlu1 %1558 }
 0x6d1   : > { %4092 = vst [vmem:[#allocation105_spill] sm:$0xff] %v3318_v22  ;;  %4093 = vst [vmem:[#allocation106_spill] sm:$0xff] %v3320_v36 }
 0x6d4   : > { %v3322_v20 = vpop.permute.xlu1 %1562  ;;  %v3324_v59 = vpop.permute.xlu0 %1595 }
 0x6d5   : > { %4094 = vst [vmem:[#allocation107_spill] sm:$0xff] %v3322_v20  ;;  %4095 = vst [vmem:[#allocation108_spill] sm:$0xff] %v3324_v59 }
 0x6d8   : > { %v3326_v19 = vpop.permute.xlu1 %1597  ;;  %v3328_v56 = vpop.permute.xlu0 %1599 }
 0x6d9   : > { %4096 = vst [vmem:[#allocation109_spill] sm:$0xff] %v3326_v19  ;;  %4097 = vst [vmem:[#allocation110_spill] sm:$0xff] %v3328_v56 }
 0x6dc   : > { %v3330_v4 = vpop.permute.xlu1 %1601 }
 0x6dd   : > { %4098 = vst [vmem:[#allocation111_spill] sm:$0xff] %v3330_v4  ;;  %v3335_v62 = vsel %vm1605_vm0, %v3328_v56, %v3330_v4 }
 0x6de   : > { %4099 = vst [vmem:[#allocation112_spill] sm:$0xff] %v3335_v62  ;;  %v2466_v62 = vld [vmem:[%s3920_s2 + $0x88] sm:$0xff]  }
 0x6ed   : > { %v2635_v23 = vpop.permute.xlu1 %2634 }
 0x6ee   : > { %v2636_v0 = vunpack.i.l.bf16 %v2635_v23  ;;  %v2637_v59 = vunpack.i.h.bf16 %v2635_v23 }
 0x6f0   : > { %v1627_v22 = vmul.f32 %v2636_v0, %v2811_v49  ;;  %v1626_v20 = vmul.f32 %v2636_v0, %v2806_v46  ;;  %v1629_v19 = vmul.f32 %v2636_v0, %v2816_v52  ;;  %v1628_v14 = vmul.f32 %v2636_v0, %v2820_v54 }
 0x6f1   : > { %v1667_v36 = vmul.f32 %v2637_v59, %v2806_v46  ;;  %v1630_v4 = vmul.f32 %v2636_v0, %v2825_v60  ;;  %v1668_v23 = vmul.f32 %v2637_v59, %v2811_v49  ;;  %v1670_v56 = vmul.f32 %v2637_v59, %v2816_v52 }
 0x6f2   : > { %1638 = vrot.lane.b32.xlu1 %v1627_v22, %s2715_s26  ;;  %1636 = vrot.lane.b32.xlu0 %v1626_v20, %s2715_s26  ;;  %v1669_v22 = vmul.f32 %v2637_v59, %v2820_v54  ;;  %v1702_v20 = vunpack.c.l.bf16 %v2466_v62 }
 0x6f6   : > { %1642 = vrot.lane.b32.xlu1 %v1629_v19, %s2715_s26  ;;  %1640 = vrot.lane.b32.xlu0 %v1628_v14, %s2715_s26  ;;  %v1743_v19 = vunpack.c.h.bf16 %v2466_v62  ;;  %v1671_v14 = vmul.f32 %v2637_v59, %v2825_v60  ;;  %v377_v59 = vsel %vm375_vm1, %v2943_v43, %v2947_v45 }
 0x6f8   : > { %v2638_v0 = vpack.i.bf16 %v1743_v19, %v1702_v20  ;;  %v417_v20 = vsel %vm416_vm2, %v2957_v55, %v2908_v21 }
 0x6fa   : > { %1677 = vrot.lane.b32.xlu1 %v1667_v36, %s2716_s27  ;;  %1644 = vrot.lane.b32.xlu0 %v1630_v4, %s2715_s26  ;;  %v2555_v36 = vunpack.i.l.bf16 %v2808_v47  ;;  %v378_v47 = vsel %vm375_vm1, %v2947_v45, %v2904_v16 }
 0x6fc   : > { %v335_v4 = vmul.f32 %v2555_v36, %v2811_v49  ;;  %v336_v2 = vmul.f32 %v2555_v36, %v2820_v54  ;;  %v334_v62 = vmul.f32 %v2555_v36, %v2806_v46 }
 0x6fe   : > { %1681 = vrot.lane.b32.xlu1 %v1669_v22, %s2716_s27  ;;  %1679 = vrot.lane.b32.xlu0 %v1668_v23, %s2716_s27  ;;  %v337_v22 = vmul.f32 %v2555_v36, %v2816_v52  ;;  %v376_v23 = vsel %vm375_vm1, %v2897_v12, %v2943_v43  ;;  %v418_v12 = vsel %vm416_vm2, %v2908_v21, %v2963_v58 }
 0x6ff   : > { %v384_v19 = vadd.f32 %v376_v23, %v334_v62  ;;  %v419_v43 = vsel %vm416_vm2, %v2963_v58, %v2912_v25  ;;  %v385_v45 = vadd.f32 %v377_v59, %v335_v4  ;;  %v459_v21 = vsel %vm457_vm3, %v2971_v63, %v2917_v28 }
 0x700   : > { %v460_v58 = vsel %vm457_vm3, %v2917_v28, %v2975_v1  ;;  %v501_v28 = vsel %vm498_vm4, %v2923_v31, %v2983_v5 }
 0x702   : > { %1685 = vrot.lane.b32.xlu1 %v1671_v14, %s2716_s27  ;;  %1683 = vrot.lane.b32.xlu0 %v1670_v56, %s2716_s27  ;;  %v379_v56 = vsel %vm375_vm1, %v2904_v16, %v2953_v51  ;;  %v386_v14 = vadd.f32 %v378_v47, %v336_v2  ;;  %v420_v16 = vsel %vm416_vm2, %v2912_v25, %v2967_v61  ;;  %vm990_vm1 = vcmask 670720  }
 0x703   : > { %v458_v51 = vsel %vm457_vm3, %v2915_v27, %v2971_v63  ;;  %v387_v55 = vadd.f32 %v379_v56, %v337_v22  ;;  %v426_v2 = vadd.f32 %v418_v12, %v385_v45  ;;  %v461_v25 = vsel %vm457_vm3, %v2975_v1, %v2919_v29 }
 0x704   : > { %v427_v36 = vadd.f32 %v419_v43, %v386_v14  ;;  %v499_v27 = vsel %vm498_vm4, %v2921_v30, %v2979_v3  ;;  %v500_v63 = vsel %vm498_vm4, %v2979_v3, %v2923_v31  ;;  %v502_v29 = vsel %vm498_vm4, %v2983_v5, %v2925_v32 }
 0x705   : > { %v428_v61 = vadd.f32 %v420_v16, %v387_v55  ;;  %v467_v22 = vadd.f32 %v459_v21, %v426_v2  ;;  %v540_v30 = vsel %vm539_vm5, %v2987_v7, %v2927_v33  ;;  %v541_v3 = vsel %vm539_vm5, %v2927_v33, %v2991_v9  ;;  %v4102_v2 = vld [vmem:[#allocation15_spill] sm:$0xff] }
 0x706   : > { %2639 = vperm.xlu0 %2551, %v2638_v0   ;;  %v425_v0 = vadd.f32 %v417_v20, %v384_v19  ;;  %v468_v62 = vadd.f32 %v460_v58, %v427_v36  ;;  %v542_v31 = vsel %vm539_vm5, %v2991_v9, %v2929_v34  ;;  %v543_v32 = vsel %vm539_vm5, %v2929_v34, %v2995_v11  ;;  %v4100_v58 = vld [vmem:[#allocation14_spill] sm:$0xff] }
 0x707   : > { %v469_v1 = vadd.f32 %v461_v25, %v428_v61  ;;  %v508_v59 = vadd.f32 %v500_v63, %v467_v22  ;;  %v581_v5 = vsel %vm580_vm6, %v2999_v18, %v2931_v35  ;;  %v582_v33 = vsel %vm580_vm6, %v2931_v35, %v3005_v26  ;;  %v4104_v61 = vld [vmem:[#allocation5_spill] sm:$0xff]  ;;  %v4106_v22 = vld [vmem:[#allocation18_spill] sm:$0xff] }
 0x708   : > { %v466_v4 = vadd.f32 %v458_v51, %v425_v0  ;;  %v509_v47 = vadd.f32 %v501_v28, %v468_v62  ;;  %v583_v9 = vsel %vm580_vm6, %v3005_v26, %v2933_v37  ;;  %v584_v34 = vsel %vm580_vm6, %v2933_v37, %v3012_v40  ;;  %v4105_v28 = vld [vmem:[#allocation17_spill] sm:$0xff]  ;;  %v4107_v62 = vld [vmem:[#allocation6_spill] sm:$0xff] }
 0x709   : > { %v510_v7 = vadd.f32 %v502_v29, %v469_v1  ;;  %v549_v20 = vadd.f32 %v541_v3, %v508_v59  ;;  %v622_v11 = vsel %vm621_vm7, %v2935_v38, %v3016_v24  ;;  %v623_v35 = vsel %vm621_vm7, %v3016_v24, %v2937_v39 }
 0x70a   : > { %v507_v23 = vadd.f32 %v499_v27, %v466_v4  ;;  %v550_v19 = vadd.f32 %v542_v31, %v509_v47  ;;  %v624_v26 = vsel %vm621_vm7, %v2937_v39, %v3018_v10  ;;  %v625_v40 = vsel %vm621_vm7, %v3018_v10, %v2939_v41  ;;  %v4103_v27 = vld [vmem:[#allocation16_spill] sm:$0xff]  ;;  %v4109_v31 = vld [vmem:[#allocation19_spill] sm:$0xff] }
 0x70b   : > { %v551_v18 = vadd.f32 %v543_v32, %v510_v7  ;;  %v590_v43 = vadd.f32 %v582_v33, %v549_v20  ;;  %v663_v37 = vsel %vm662_vm8, %v2941_v42, %v3020_v8  ;;  %v664_v24 = vsel %vm662_vm8, %v3020_v8, %v2945_v44  ;;  %v4112_v33 = vld [vmem:[#allocation9_spill] sm:$0xff] }
 0x70c   : > { %v548_v56 = vadd.f32 %v540_v30, %v507_v23  ;;  %v591_v45 = vadd.f32 %v583_v9, %v550_v19  ;;  %v665_v39 = vsel %vm662_vm8, %v2945_v44, %v3022_v13  ;;  %v666_v41 = vsel %vm662_vm8, %v3022_v13, %v2949_v48  ;;  %v4101_v13 = vld [vmem:[#allocation4_spill] sm:$0xff]  ;;  %v4108_v23 = vld [vmem:[#allocation7_spill] sm:$0xff] }
 0x70d   : > { %v592_v38 = vadd.f32 %v584_v34, %v551_v18  ;;  %v631_v16 = vadd.f32 %v623_v35, %v590_v43  ;;  %v704_v42 = vsel %vm703_vm9, %v3024_v17, %v2951_v50  ;;  %v705_v8 = vsel %vm703_vm9, %v2951_v50, %v3026_v15  ;;  %v4113_v34 = vld [vmem:[#allocation10_spill] sm:$0xff]  ;;  %v4114_v18 = vld [vmem:[#allocation21_spill] sm:$0xff]  ;;  %v4115_v43 = vld [vmem:[#allocation11_spill] sm:$0xff] }
 0x70e   : > { %v589_v12 = vadd.f32 %v581_v5, %v548_v56  ;;  %v632_v51 = vadd.f32 %v624_v26, %v591_v45  ;;  %v706_v44 = vsel %vm703_vm9, %v3026_v15, %v2955_v53  ;;  %v707_v48 = vsel %vm703_vm9, %v2955_v53, %v4100_v58  ;;  %v4110_v5 = vld [vmem:[#allocation8_spill] sm:$0xff] }
 0x70f   : > { %v633_v10 = vadd.f32 %v625_v40, %v592_v38  ;;  %v672_v0 = vadd.f32 %v664_v24, %v631_v16  ;;  %v745_v17 = vsel %vm744_vm10, %v4102_v2, %v4101_v13  ;;  %v746_v50 = vsel %vm744_vm10, %v4101_v13, %v4103_v27  ;;  %v4111_v56 = vld [vmem:[#allocation20_spill] sm:$0xff] }
 0x710   : > { %v630_v14 = vadd.f32 %v622_v11, %v589_v12  ;;  %v673_v21 = vadd.f32 %v665_v39, %v632_v51  ;;  %v747_v15 = vsel %vm744_vm10, %v4103_v27, %v4104_v61  ;;  %v748_v53 = vsel %vm744_vm10, %v4104_v61, %v4105_v28  ;;  %v4116_v38 = vld [vmem:[#allocation12_spill] sm:$0xff]  ;;  %v4118_v39 = vld [vmem:[#allocation23_spill] sm:$0xff]  ;;  %v4128_v28 = vld [vmem:[#allocation33_spill] sm:$0xff] }
 0x711   : > { %v674_v36 = vadd.f32 %v666_v41, %v633_v10  ;;  %v713_v4 = vadd.f32 %v705_v8, %v672_v0  ;;  %v786_v29 = vsel %vm785_vm11, %v4107_v62, %v4106_v22  ;;  %v787_v3 = vsel %vm785_vm11, %v4106_v22, %v4108_v23  ;;  %v4120_v8 = vld [vmem:[#allocation24_spill] sm:$0xff]  ;;  %v4121_v0 = vld [vmem:[#allocation30_spill] sm:$0xff] }
 0x712   : > { %v671_v55 = vadd.f32 %v663_v37, %v630_v14  ;;  %v714_v63 = vadd.f32 %v706_v44, %v673_v21  ;;  %v788_v59 = vsel %vm785_vm11, %v4108_v23, %v4109_v31  ;;  %v789_v7 = vsel %vm785_vm11, %v4109_v31, %v4110_v5  ;;  %v4117_v14 = vld [vmem:[#allocation22_spill] sm:$0xff]  ;;  %v4122_v21 = vld [vmem:[#allocation25_spill] sm:$0xff] }
 0x713   : > { %v715_v30 = vadd.f32 %v707_v48, %v674_v36  ;;  %v754_v47 = vadd.f32 %v746_v50, %v713_v4  ;;  %v827_v9 = vsel %vm826_vm12, %v4112_v33, %v4111_v56  ;;  %v828_v11 = vsel %vm826_vm12, %v4111_v56, %v4113_v34  ;;  %v4123_v48 = vld [vmem:[#allocation26_spill] sm:$0xff]  ;;  %v4124_v36 = vld [vmem:[#allocation31_spill] sm:$0xff]  ;;  %v4127_v4 = vld [vmem:[#allocation32_spill] sm:$0xff] }
 0x714   : > { %v712_v25 = vadd.f32 %v704_v42, %v671_v55  ;;  %v755_v32 = vadd.f32 %v747_v15, %v714_v63  ;;  %v829_v12 = vsel %vm826_vm12, %v4113_v34, %v4114_v18  ;;  %v830_v45 = vsel %vm826_vm12, %v4114_v18, %v4115_v43  ;;  %v4119_v42 = vld [vmem:[#allocation13_spill] sm:$0xff]  ;;  %v4125_v50 = vld [vmem:[#allocation27_spill] sm:$0xff]  ;;  %v4126_v15 = vld [vmem:[#allocation28_spill] sm:$0xff] }
 0x715   : > { %v756_v20 = vadd.f32 %v748_v53, %v715_v30  ;;  %v795_v35 = vadd.f32 %v787_v3, %v754_v47  ;;  %v868_v24 = vsel %vm867_vm13, %v4117_v14, %v4116_v38  ;;  %v869_v16 = vsel %vm867_vm13, %v4116_v38, %v4118_v39  ;;  %v4129_v30 = vld [vmem:[#allocation29_spill] sm:$0xff]  ;;  %v4130_v3 = vld [vmem:[#allocation34_spill] sm:$0xff]  ;;  %v4132_v47 = vld [vmem:[#allocation35_spill] sm:$0xff] }
 0x716   : > { %v753_v1 = vadd.f32 %v745_v17, %v712_v25  ;;  %v796_v26 = vadd.f32 %v788_v59, %v755_v32  ;;  %v870_v10 = vsel %vm867_vm13, %v4118_v39, %v4119_v42  ;;  %v871_v44 = vsel %vm867_vm13, %v4119_v42, %v4120_v8  ;;  %v4131_v59 = vld [vmem:[#allocation40_spill] sm:$0xff]  ;;  %v4137_v43 = vld [vmem:[#allocation42_spill] sm:$0xff]  ;;  %v4139_v14 = vld [vmem:[#allocation39_spill] sm:$0xff] }
 0x717   : > { %v797_v40 = vadd.f32 %v789_v7, %v756_v20  ;;  %v836_v51 = vadd.f32 %v828_v11, %v795_v35  ;;  %v909_v58 = vsel %vm908_vm14, %v4122_v21, %v4121_v0  ;;  %v910_v13 = vsel %vm908_vm14, %v4121_v0, %v4123_v48  ;;  %v4133_v33 = vld [vmem:[#allocation36_spill] sm:$0xff]  ;;  %v4135_v11 = vld [vmem:[#allocation37_spill] sm:$0xff]  ;;  %v4141_v42 = vld [vmem:[#allocation50_spill] sm:$0xff] }
 0x718   : > { %v794_v19 = vadd.f32 %v786_v29, %v753_v1  ;;  %v837_v41 = vadd.f32 %v829_v12, %v796_v26  ;;  %v911_v25 = vsel %vm908_vm14, %v4123_v48, %v4124_v36  ;;  %v912_v61 = vsel %vm908_vm14, %v4124_v36, %v4125_v50  ;;  %v4136_v26 = vld [vmem:[#allocation38_spill] sm:$0xff]  ;;  %v4140_v39 = vld [vmem:[#allocation44_spill] sm:$0xff] }
 0x719   : > { %v838_v55 = vadd.f32 %v830_v45, %v797_v40  ;;  %v877_v17 = vadd.f32 %v869_v16, %v836_v51  ;;  %v950_v63 = vsel %vm949_vm15, %v4127_v4, %v4126_v15  ;;  %v951_v53 = vsel %vm949_vm15, %v4126_v15, %v4128_v28  ;;  %v4138_v40 = vld [vmem:[#allocation43_spill] sm:$0xff]  ;;  %v4143_v8 = vld [vmem:[#allocation46_spill] sm:$0xff]  ;;  %v4148_v4 = vld [vmem:[#allocation53_spill] sm:$0xff] }
 0x71a   : > { %v835_v37 = vadd.f32 %v827_v9, %v794_v19  ;;  %v878_v27 = vadd.f32 %v870_v10, %v837_v41  ;;  %v952_v1 = vsel %vm949_vm15, %v4128_v28, %v4129_v30  ;;  %v953_v31 = vsel %vm949_vm15, %v4129_v30, %v4130_v3  ;;  %v4134_v19 = vld [vmem:[#allocation41_spill] sm:$0xff]  ;;  %v4151_v30 = vld [vmem:[#allocation60_spill] sm:$0xff] }
 0x71b   : > { %v879_v22 = vadd.f32 %v871_v44, %v838_v55  ;;  %v918_v29 = vadd.f32 %v910_v13, %v877_v17  ;;  %v991_v32 = vsel %vm990_vm1, %v4132_v47, %v4131_v59  ;;  %vm1031_vm2 = vcmask 662528   ;;  %v4142_v10 = vld [vmem:[#allocation45_spill] sm:$0xff]  ;;  %v4145_v17 = vld [vmem:[#allocation47_spill] sm:$0xff] }
 0x71c   : > { %v876_v2 = vadd.f32 %v868_v24, %v835_v37  ;;  %v919_v23 = vadd.f32 %v911_v25, %v878_v27  ;;  %v992_v9 = vsel %vm990_vm1, %v4131_v59, %v4133_v33  ;;  %v993_v34 = vsel %vm990_vm1, %v4133_v33, %v4134_v19  ;;  %v4146_v25 = vld [vmem:[#allocation48_spill] sm:$0xff]  ;;  %v4149_v28 = vld [vmem:[#allocation49_spill] sm:$0xff] }
 0x71d   : > { %v920_v5 = vadd.f32 %v912_v61, %v879_v22  ;;  %v959_v56 = vadd.f32 %v951_v53, %v918_v29  ;;  %v994_v18 = vsel %vm990_vm1, %v4134_v19, %v4135_v11  ;;  %vm1072_vm3 = vcmask 654336   ;;  %v4147_v27 = vld [vmem:[#allocation52_spill] sm:$0xff]  ;;  %v4157_v11 = vld [vmem:[#allocation58_spill] sm:$0xff] }
 0x71e   : > { %v917_v62 = vadd.f32 %v909_v58, %v876_v2  ;;  %v960_v20 = vadd.f32 %v952_v1, %v919_v23  ;;  %v1032_v45 = vsel %vm1031_vm2, %v4137_v43, %v4136_v26  ;;  %v1033_v37 = vsel %vm1031_vm2, %v4136_v26, %v4138_v40  ;;  %v4144_v58 = vld [vmem:[#allocation51_spill] sm:$0xff]  ;;  %v4153_v59 = vld [vmem:[#allocation56_spill] sm:$0xff] }
 0x71f   : > { %v961_v12 = vadd.f32 %v953_v31, %v920_v5  ;;  %v1000_v38 = vadd.f32 %v992_v9, %v959_v56  ;;  %v1034_v24 = vsel %vm1031_vm2, %v4138_v40, %v4139_v14  ;;  %v1035_v16 = vsel %vm1031_vm2, %v4139_v14, %v4140_v39  ;;  %v4152_v1 = vld [vmem:[#allocation55_spill] sm:$0xff]  ;;  %v4161_v14 = vld [vmem:[#allocation66_spill] sm:$0xff] }
 0x720   : > { %v958_v7 = vadd.f32 %v950_v63, %v917_v62  ;;  %vm1113_vm7 = vcmask 646144   ;;  %v1001_v51 = vadd.f32 %v993_v34, %v960_v20  ;;  %v1073_v55 = vsel %vm1072_vm3, %v4142_v10, %v4141_v42  ;;  %v4150_v62 = vld [vmem:[#allocation54_spill] sm:$0xff]  ;;  %v4155_v20 = vld [vmem:[#allocation57_spill] sm:$0xff]  ;;  %v4156_v34 = vld [vmem:[#allocation63_spill] sm:$0xff] }
 0x721   : > { %v1002_v41 = vadd.f32 %v994_v18, %v961_v12  ;;  %v1074_v44 = vsel %vm1072_vm3, %v4141_v42, %v4143_v8  ;;  %v1041_v21 = vadd.f32 %v1033_v37, %v1000_v38  ;;  %v1075_v48 = vsel %vm1072_vm3, %v4143_v8, %v4144_v58  ;;  %v4159_v43 = vld [vmem:[#allocation59_spill] sm:$0xff]  ;;  %v4160_v37 = vld [vmem:[#allocation64_spill] sm:$0xff]  ;;  %v4163_v10 = vld [vmem:[#allocation65_spill] sm:$0xff] }
 0x722   : > { %v999_v35 = vadd.f32 %v991_v32, %v958_v7  ;;  %vm1154_vm8 = vcmask 637952   ;;  %v1042_v13 = vadd.f32 %v1034_v24, %v1001_v51  ;;  %v1076_v36 = vsel %vm1072_vm3, %v4144_v58, %v4145_v17  ;;  %v4154_v7 = vld [vmem:[#allocation61_spill] sm:$0xff]  ;;  %v4162_v24 = vld [vmem:[#allocation70_spill] sm:$0xff]  ;;  %v4164_v8 = vld [vmem:[#allocation71_spill] sm:$0xff] }
 0x723   : > { %v1043_v2 = vadd.f32 %v1035_v16, %v1002_v41  ;;  %v1114_v50 = vsel %vm1113_vm7, %v4147_v27, %v4146_v25  ;;  %v1082_v15 = vadd.f32 %v1074_v44, %v1041_v21  ;;  %v1115_v63 = vsel %vm1113_vm7, %v4146_v25, %v4148_v4  ;;  %v4165_v58 = vld [vmem:[#allocation67_spill] sm:$0xff]  ;;  %v4169_v27 = vld [vmem:[#allocation69_spill] sm:$0xff] }
 0x724   : > { %v1040_v0 = vadd.f32 %v1032_v45, %v999_v35  ;;  %v1116_v53 = vsel %vm1113_vm7, %v4148_v4, %v4149_v28  ;;  %v1083_v22 = vadd.f32 %v1075_v48, %v1042_v13  ;;  %v1117_v29 = vsel %vm1113_vm7, %v4149_v28, %v4150_v62  ;;  %v4158_v35 = vld [vmem:[#allocation62_spill] sm:$0xff]  ;;  %v4166_v13 = vld [vmem:[#allocation73_spill] sm:$0xff]  ;;  %v4170_v4 = vld [vmem:[#allocation76_spill] sm:$0xff] }
 0x725   : > { %v1155_v23 = vsel %vm1154_vm8, %v4152_v1, %v4151_v30  ;;  %vm1195_vm9 = vcmask 506880   ;;  %v1084_v3 = vadd.f32 %v1076_v36, %v1043_v2  ;;  %v1156_v47 = vsel %vm1154_vm8, %v4151_v30, %v4153_v59  ;;  %v4167_v2 = vld [vmem:[#allocation68_spill] sm:$0xff]  ;;  %v4172_v62 = vld [vmem:[#allocation74_spill] sm:$0xff]  ;;  %v4173_v30 = vld [vmem:[#allocation81_spill] sm:$0xff] }
 0x726   : > { %v1081_v61 = vadd.f32 %v1073_v55, %v1040_v0  ;;  %v1123_v32 = vadd.f32 %v1115_v63, %v1082_v15  ;;  %v1124_v5 = vadd.f32 %v1116_v53, %v1083_v22  ;;  %v1157_v56 = vsel %vm1154_vm8, %v4153_v59, %v4154_v7  ;;  %v4168_v36 = vld [vmem:[#allocation72_spill] sm:$0xff] }
 0x727   : > { %v1125_v33 = vadd.f32 %v1117_v29, %v1084_v3  ;;  %v1158_v19 = vsel %vm1154_vm8, %v4154_v7, %v4155_v20  ;;  %v1197_v18 = vsel %vm1195_vm9, %v4157_v11, %v4156_v34  ;;  %v1196_v26 = vsel %vm1195_vm9, %v4158_v35, %v4157_v11  ;;  %v4171_v63 = vld [vmem:[#allocation80_spill] sm:$0xff]  ;;  %v4179_v11 = vld [vmem:[#allocation86_spill] sm:$0xff] }
 0x728   : > { %v1122_v31 = vadd.f32 %v1114_v50, %v1081_v61  ;;  %v1164_v12 = vadd.f32 %v1156_v47, %v1123_v32  ;;  %v1198_v45 = vsel %vm1195_vm9, %v4156_v34, %v4159_v43  ;;  %vm1236_vm10 = vcmask 498688   ;;  %v4175_v47 = vld [vmem:[#allocation83_spill] sm:$0xff]  ;;  %v4176_v32 = vld [vmem:[#allocation78_spill] sm:$0xff] }
 0x729   : > { %v1165_v40 = vadd.f32 %v1157_v56, %v1124_v5  ;;  %v1199_v38 = vsel %vm1195_vm9, %v4159_v43, %v4160_v37  ;;  %v1238_v39 = vsel %vm1236_vm10, %v4162_v24, %v4161_v14  ;;  %vm1277_vm11 = vcmask 490496   ;;  %v4177_v56 = vld [vmem:[#allocation77_spill] sm:$0xff]  ;;  %v4182_v37 = vld [vmem:[#allocation84_spill] sm:$0xff] }
 0x72a   : > { %v1163_v9 = vadd.f32 %v1155_v23, %v1122_v31  ;;  %v1166_v16 = vadd.f32 %v1158_v19, %v1125_v33  ;;  %v1205_v51 = vadd.f32 %v1197_v18, %v1164_v12  ;;  %v1237_v55 = vsel %vm1236_vm10, %v4163_v10, %v4162_v24  ;;  %v4174_v31 = vld [vmem:[#allocation75_spill] sm:$0xff]  ;;  %v4180_v18 = vld [vmem:[#allocation90_spill] sm:$0xff]  ;;  %v4186_v10 = vld [vmem:[#allocation89_spill] sm:$0xff] }
 0x72b   : > { %v1206_v42 = vadd.f32 %v1198_v45, %v1165_v40  ;;  %v1239_v44 = vsel %vm1236_vm10, %v4161_v14, %v4164_v8  ;;  %v1240_v48 = vsel %vm1236_vm10, %v4164_v8, %v4165_v58  ;;  %v1279_v17 = vsel %vm1277_vm11, %v4167_v2, %v4166_v13  ;;  %v4183_v24 = vld [vmem:[#allocation82_spill] sm:$0xff]  ;;  %v4188_v58 = vld [vmem:[#allocation96_spill] sm:$0xff] }
 0x72c   : > { %v1204_v41 = vadd.f32 %v1196_v26, %v1163_v9  ;;  %v1207_v0 = vadd.f32 %v1199_v38, %v1166_v16  ;;  %v1246_v21 = vadd.f32 %v1238_v39, %v1205_v51  ;;  %v1278_v25 = vsel %vm1277_vm11, %v4168_v36, %v4167_v2  ;;  %v4178_v9 = vld [vmem:[#allocation79_spill] sm:$0xff]  ;;  %v4184_v51 = vld [vmem:[#allocation93_spill] sm:$0xff] }
 0x72d   : > { %v1280_v50 = vsel %vm1277_vm11, %v4166_v13, %v4169_v27  ;;  %vm1318_vm12 = vcmask 482304   ;;  %vm1359_vm13 = vcmask 474112   ;;  %v1247_v15 = vadd.f32 %v1239_v44, %v1206_v42  ;;  %v4181_v26 = vld [vmem:[#allocation91_spill] sm:$0xff] }
 0x72e   : > { %v1245_v61 = vadd.f32 %v1237_v55, %v1204_v41  ;;  %v1320_v28 = vsel %vm1318_vm12, %v4171_v63, %v4170_v4  ;;  %v1248_v53 = vadd.f32 %v1240_v48, %v1207_v0  ;;  %v1287_v22 = vadd.f32 %v1279_v17, %v1246_v21  ;;  %v4185_v41 = vld [vmem:[#allocation88_spill] sm:$0xff]  ;;  %v4187_v44 = vld [vmem:[#allocation87_spill] sm:$0xff]  ;;  %v4189_v17 = vld [vmem:[#allocation85_spill] sm:$0xff] }
 0x72f   : > { %v1281_v29 = vsel %vm1277_vm11, %v4169_v27, %v4172_v62  ;;  %v1321_v1 = vsel %vm1318_vm12, %v4170_v4, %v4173_v30  ;;  %v1288_v3 = vadd.f32 %v1280_v50, %v1247_v15  ;;  %v1319_v59 = vsel %vm1318_vm12, %v4174_v31, %v4171_v63  ;;  %v1604_v50 = vpop.permute.xlu0 %1603  ;;  %v4190_v15 = vld [vmem:[#allocation94_spill] sm:$0xff]  ;;  %v4191_v63 = vld [vmem:[#allocation101_spill] sm:$0xff] }
 0x730   : > { %v1286_v23 = vadd.f32 %v1278_v25, %v1245_v61  ;;  %v1361_v5 = vsel %vm1359_vm13, %v4176_v32, %v4175_v47  ;;  %v1328_v7 = vadd.f32 %v1320_v28, %v1287_v22  ;;  %v1322_v33 = vsel %vm1318_vm12, %v4173_v30, %v4177_v56  ;;  %v4192_v28 = vld [vmem:[#allocation98_spill] sm:$0xff]  ;;  %v4193_v22 = vld [vmem:[#allocation99_spill] sm:$0xff] }
 0x731   : > { %v1362_v20 = vsel %vm1359_vm13, %v4175_v47, %v4178_v9  ;;  %vm1400_vm14 = vcmask 465920   ;;  %v1289_v19 = vadd.f32 %v1281_v29, %v1248_v53  ;;  %v1329_v34 = vadd.f32 %v1321_v1, %v1288_v3  ;;  %v4194_v1 = vld [vmem:[#allocation92_spill] sm:$0xff]  ;;  %v4195_v3 = vld [vmem:[#allocation97_spill] sm:$0xff]  ;;  %v4197_v47 = vld [vmem:[#allocation103_spill] sm:$0xff] }
 0x732   : > { %v1402_v12 = vsel %vm1400_vm14, %v4180_v18, %v4179_v11  ;;  %vm1441_vm15 = vcmask 457728   ;;  %v1369_v35 = vadd.f32 %v1361_v5, %v1328_v7  ;;  %v1403_v43 = vsel %vm1400_vm14, %v4179_v11, %v4181_v26  ;;  %v4198_v5 = vld [vmem:[#allocation105_spill] sm:$0xff]  ;;  %v4199_v11 = vld [vmem:[#allocation95_spill] sm:$0xff] }
 0x733   : > { %v1327_v45 = vadd.f32 %v1319_v59, %v1286_v23  ;;  %v1330_v40 = vadd.f32 %v1322_v33, %v1289_v19  ;;  %v1363_v38 = vsel %vm1359_vm13, %v4178_v9, %v4182_v37  ;;  %v1370_v14 = vadd.f32 %v1362_v20, %v1329_v34  ;;  %v4196_v59 = vld [vmem:[#allocation106_spill] sm:$0xff] }
 0x734   : > { %v1360_v39 = vsel %vm1359_vm13, %v4183_v24, %v4176_v32  ;;  %v1410_v16 = vadd.f32 %v1402_v12, %v1369_v35  ;;  %v1443_v42 = vsel %vm1441_vm15, %v4185_v41, %v4184_v51  ;;  %v1444_v55 = vsel %vm1441_vm15, %v4184_v51, %v4186_v10  ;;  %v4200_v12 = vld [vmem:[#allocation102_spill] sm:$0xff]  ;;  %v4203_v24 = vld [vmem:[#allocation100_spill] sm:$0xff] }
 0x735   : > { %v1411_v8 = vadd.f32 %v1403_v43, %v1370_v14  ;;  %v1404_v0 = vsel %vm1400_vm14, %v4181_v26, %v4187_v44  ;;  %vm1482_vm1 = vcmask 326656   ;;  %vm1523_vm2 = vcmask 318464   ;;  %v4201_v35 = vld [vmem:[#allocation110_spill] sm:$0xff]  ;;  %v4202_v26 = vld [vmem:[#allocation109_spill] sm:$0xff] }
 0x736   : > { %v1371_v21 = vadd.f32 %v1363_v38, %v1330_v40  ;;  %v1484_v48 = vsel %vm1482_vm1, %v3304_v6, %v4188_v58  ;;  %v1485_v13 = vsel %vm1482_vm1, %v4188_v58, %v3306_v57  ;;  %v1368_v2 = vadd.f32 %v1360_v39, %v1327_v45  ;;  %v4207_v58 = vld [vmem:[#allocation111_spill] sm:$0xff] }
 0x737   : > { %v1401_v36 = vsel %vm1400_vm14, %v4189_v17, %v4180_v18  ;;  %v1451_v25 = vadd.f32 %v1443_v42, %v1410_v16  ;;  %v1452_v27 = vadd.f32 %v1444_v55, %v1411_v8  ;;  %v1445_v4 = vsel %vm1441_vm15, %v4186_v10, %v4190_v15  ;;  %v4204_v16 = vld [vmem:[#allocation107_spill] sm:$0xff]  ;;  %v4205_v10 = vld [vmem:[#allocation112_spill] sm:$0xff] }
 0x738   : > { %v1412_v61 = vadd.f32 %v1404_v0, %v1371_v21  ;;  %v1525_v53 = vsel %vm1523_vm2, %v4192_v28, %v4191_v63  ;;  %v1526_v62 = vsel %vm1523_vm2, %v4191_v63, %v4193_v22  ;;  %vm1564_vm3 = vcmask 310272   ;;  %v4206_v0 = vld [vmem:[#allocation104_spill] sm:$0xff] }
 0x739   : > { %v1492_v29 = vadd.f32 %v1484_v48, %v1451_v25  ;;  %v1493_v30 = vadd.f32 %v1485_v13, %v1452_v27  ;;  %vm1646_vm7 = vcmask 293888   ;;  %v1442_v23 = vsel %vm1441_vm15, %v4194_v1, %v4185_v41 }
 0x73a   : > { %v1486_v31 = vsel %vm1482_vm1, %v3306_v57, %v4195_v3  ;;  %v1566_v32 = vsel %vm1564_vm3, %v4197_v47, %v4196_v59  ;;  %v1567_v7 = vsel %vm1564_vm3, %v4196_v59, %v4198_v5  ;;  %v1409_v56 = vadd.f32 %v1401_v36, %v1368_v2 }
 0x73b   : > { %v1453_v33 = vadd.f32 %v1445_v4, %v1412_v61  ;;  %v1533_v9 = vadd.f32 %v1525_v53, %v1492_v29  ;;  %v1534_v20 = vadd.f32 %v1526_v62, %v1493_v30  ;;  %v1483_v18 = vsel %vm1482_vm1, %v4199_v11, %v3304_v6  ;;  %v4208_v61 = vld [vmem:[#allocation108_spill] sm:$0xff] }
 0x73c   : > { %v1527_v57 = vsel %vm1523_vm2, %v4193_v22, %v4200_v12  ;;  %v1607_v43 = vsel %vm1605_vm0, %v4202_v26, %v4201_v35  ;;  %v1450_v40 = vadd.f32 %v1442_v23, %v1409_v56  ;;  %v1524_v39 = vsel %vm1523_vm2, %v4203_v24, %v4192_v28 }
 0x73d   : > { %v1494_v37 = vadd.f32 %v1486_v31, %v1453_v33  ;;  %v1574_v38 = vadd.f32 %v1566_v32, %v1533_v9  ;;  %v1575_v14 = vadd.f32 %v1567_v7, %v1534_v20  ;;  %v1568_v6 = vsel %vm1564_vm3, %v4198_v5, %v4204_v16 }
 0x73e   : > { %v1491_v51 = vadd.f32 %v1483_v18, %v1450_v40  ;;  %v1565_v21 = vsel %vm1564_vm3, %v4206_v0, %v4197_v47  ;;  %v1609_v48 = vsel %vm1605_vm0, %v4207_v58, %v1604_v50  ;;  %v1606_v15 = vsel %vm1605_vm0, %v4208_v61, %v4202_v26  ;;  %v2468_v26 = vld [vmem:[%s3920_s2 + $0x90] sm:$0xff]  }
 0x73f   : > { %v1535_v41 = vadd.f32 %v1527_v57, %v1494_v37  ;;  %v1615_v42 = vadd.f32 %v1607_v43, %v1574_v38  ;;  %v1616_v55 = vadd.f32 %v4205_v10, %v1575_v14  ;;  %vm1687_vm8 = vcmask 285696  }
 0x740   : > { %v1532_v17 = vadd.f32 %v1524_v39, %v1491_v51  ;;  %v1784_v40 = vunpack.c.l.bf16 %v2468_v26  ;;  %v1825_v37 = vunpack.c.h.bf16 %v2468_v26  ;;  %vm1728_vm0 = vcmask 277504  }
 0x741   : > { %v1576_v36 = vadd.f32 %v1568_v6, %v1535_v41  ;;  %vm1769_vm9 = vcmask 146432   ;;  %vm1810_vm10 = vcmask 138240   ;;  %vm1851_vm11 = vcmask 130048  }
 0x742   : > { %v1573_v4 = vadd.f32 %v1565_v21, %v1532_v17  ;;  %v2643_v24 = vpack.i.bf16 %v1825_v37, %v1784_v40  ;;  %vm1892_vm12 = vcmask 121856   ;;  %vm1933_vm13 = vcmask 113664  }
 0x743   : > { %v1617_v63 = vadd.f32 %v1609_v48, %v1576_v36  ;;  %vm1974_vm14 = vcmask 105472   ;;  %vm2015_vm15 = vcmask 97280   ;;  %vm2181_vm1 = vcmask 990208  }
 0x744   : > { %v1614_v62 = vadd.f32 %v1606_v15, %v1573_v4  ;;  %vm2222_vm2 = vcmask 982016   ;;  %vm2263_vm3 = vcmask 973824  }
 0x764   : > { %v1639_v19 = vpop.permute.xlu1 %1638  ;;  %v1637_v34 = vpop.permute.xlu0 %1636 }
 0x765   : > { %v1647_v45 = vsel %vm1646_vm7, %v1637_v34, %v1639_v19 }
 0x766   : > { %v1655_v29 = vadd.f32 %v1647_v45, %v1614_v62 }
 0x768   : > { %v1643_v8 = vpop.permute.xlu1 %1642  ;;  %v1641_v44 = vpop.permute.xlu0 %1640 }
 0x769   : > { %v1648_v13 = vsel %vm1646_vm7, %v1639_v19, %v1641_v44  ;;  %v1649_v2 = vsel %vm1646_vm7, %v1641_v44, %v1643_v8 }
 0x76a   : > { %v1656_v25 = vadd.f32 %v1648_v13, %v1615_v42  ;;  %v1657_v27 = vadd.f32 %v1649_v2, %v1616_v55 }
 0x76c   : > { %v1678_v28 = vpop.permute.xlu1 %1677  ;;  %v1645_v53 = vpop.permute.xlu0 %1644 }
 0x76d   : > { %v1650_v22 = vsel %vm1646_vm7, %v1643_v8, %v1645_v53  ;;  %vm2304_vm7 = vcmask 965632  }
 0x76e   : > { %v1658_v50 = vadd.f32 %v1650_v22, %v1617_v63 }
 0x770   : > { %v1682_v30 = vpop.permute.xlu1 %1681  ;;  %v1680_v1 = vpop.permute.xlu0 %1679 }
 0x771   : > { %v1688_v23 = vsel %vm1687_vm8, %v1678_v28, %v1680_v1  ;;  %v1689_v3 = vsel %vm1687_vm8, %v1680_v1, %v1682_v30 }
 0x772   : > { %v1696_v31 = vadd.f32 %v1688_v23, %v1655_v29  ;;  %v1697_v59 = vadd.f32 %v1689_v3, %v1656_v25 }
 0x774   : > { %v1686_v47 = vpop.permute.xlu1 %1685  ;;  %v1684_v32 = vpop.permute.xlu0 %1683 }
 0x775   : > { %v1690_v5 = vsel %vm1687_vm8, %v1682_v30, %v1684_v32  ;;  %v1691_v7 = vsel %vm1687_vm8, %v1684_v32, %v1686_v47  ;;  %v2470_v47 = vld [vmem:[%s3920_s2 + $0x98] sm:$0xff]  }
 0x776   : > { %v1698_v56 = vadd.f32 %v1690_v5, %v1657_v27  ;;  %v1699_v33 = vadd.f32 %v1691_v7, %v1658_v50 }
 0x785   : > { %v2640_v9 = vpop.permute.xlu0 %2639 }
 0x786   : > { %v2641_v20 = vunpack.i.l.bf16 %v2640_v9  ;;  %v2642_v11 = vunpack.i.h.bf16 %v2640_v9  ;;  %v1907_v9 = vunpack.c.h.bf16 %v2470_v47 }
 0x788   : > { %v1709_v19 = vmul.f32 %v2641_v20, %v2811_v49  ;;  %v1708_v34 = vmul.f32 %v2641_v20, %v2806_v46  ;;  %v1711_v18 = vmul.f32 %v2641_v20, %v2816_v52  ;;  %v1710_v12 = vmul.f32 %v2641_v20, %v2820_v54 }
 0x789   : > { %v1749_v57 = vmul.f32 %v2642_v11, %v2806_v46  ;;  %v1712_v35 = vmul.f32 %v2641_v20, %v2825_v60  ;;  %v1751_v43 = vmul.f32 %v2642_v11, %v2820_v54  ;;  %v1750_v45 = vmul.f32 %v2642_v11, %v2811_v49  ;;  %v2476_v20 = vld [vmem:[%s3920_s2 + $0xb0] sm:$0xff]  }
 0x78a   : > { %1720 = vrot.lane.b32.xlu0 %v1709_v19, %s2717_s30  ;;  %1718 = vrot.lane.b32.xlu1 %v1708_v34, %s2717_s30  ;;  %v1753_v38 = vmul.f32 %v2642_v11, %v2825_v60  ;;  %v1752_v14 = vmul.f32 %v2642_v11, %v2816_v52  ;;  %v2474_v19 = vld [vmem:[%s3920_s2 + $0xa8] sm:$0xff]  }
 0x78b   : > { %v2030_v26 = vunpack.c.l.bf16 %v2474_v19 }
 0x78e   : > { %1724 = vrot.lane.b32.xlu0 %v1711_v18, %s2717_s30  ;;  %1722 = vrot.lane.b32.xlu1 %v1710_v12, %s2717_s30  ;;  %v2115_v12 = vunpack.c.l.bf16 %v2476_v20 }
 0x792   : > { %1759 = vrot.lane.b32.xlu0 %v1749_v57, %s2718_s6  ;;  %1726 = vrot.lane.b32.xlu1 %v1712_v35, %s2717_s30  ;;  %v2155_v35 = vunpack.c.h.bf16 %v2476_v20  ;;  %s2723_s30 = smov 13  }
 0x794   : > { %v2663_v40 = vpack.i.bf16 %v2155_v35, %v2115_v12 }
 0x796   : > { %1763 = vrot.lane.b32.xlu0 %v1751_v43, %s2718_s6  ;;  %1761 = vrot.lane.b32.xlu1 %v1750_v45, %s2718_s6  ;;  %v2075_v43 = vunpack.c.h.bf16 %v2474_v19  ;;  %v2478_v45 = vld [vmem:[%s3920_s2 + $0xb8] sm:$0xff]  }
 0x798   : > { %v2658_v37 = vpack.i.bf16 %v2075_v43, %v2030_v26  ;;  %v2673_v43 = vld.sshfl [vmem:[%s2800_s13] sm:$0x11 pattern:$0x75316420]  ;;  %s2725_s13 = smov 121  }
 0x79a   : > { %1767 = vrot.lane.b32.xlu0 %v1753_v38, %s2718_s6  ;;  %1765 = vrot.lane.b32.xlu1 %v1752_v14, %s2718_s6  ;;  %v2196_v38 = vunpack.c.l.bf16 %v2478_v45  ;;  %v2237_v14 = vunpack.c.h.bf16 %v2478_v45  ;;  %s2724_s6 = smov 12   ;;  %v290_v45 = vcombine.high %v2673_v43, %v2673_v43 }
 0x79e   : > { %2644 = vperm.xlu1 %2562, %v2643_v24   ;;  %v2480_v24 = vld [vmem:[%s3920_s2 + $0xc0] sm:$0xf] }
 0x7fc   : > { %v1721_v39 = vpop.permute.xlu0 %1720  ;;  %v1719_v16 = vpop.permute.xlu1 %1718 }
 0x7fd   : > { %v1729_v6 = vsel %vm1728_vm0, %v1719_v16, %v1721_v39  ;;  %v2668_v16 = vpack.i.bf16 %v2237_v14, %v2196_v38 }
 0x7fe   : > { %v1737_v51 = vadd.f32 %v1729_v6, %v1696_v31 }
 0x800   : > { %v1725_v41 = vpop.permute.xlu0 %1724  ;;  %v1723_v42 = vpop.permute.xlu1 %1722 }
 0x801   : > { %v1730_v10 = vsel %vm1728_vm0, %v1721_v39, %v1723_v42  ;;  %v1731_v55 = vsel %vm1728_vm0, %v1723_v42, %v1725_v41  ;;  %v2278_v39 = vunpack.c.l.bf16 %v2480_v24 }
 0x802   : > { %v1738_v8 = vadd.f32 %v1730_v10, %v1697_v59  ;;  %v1739_v44 = vadd.f32 %v1731_v55, %v1698_v56  ;;  %v2472_v59 = vld [vmem:[%s3920_s2 + $0xa0] sm:$0xff]  }
 0x803   : > { %v1948_v7 = vunpack.c.l.bf16 %v2472_v59  ;;  %v1989_v56 = vunpack.c.h.bf16 %v2472_v59 }
 0x804   : > { %v1760_v0 = vpop.permute.xlu0 %1759  ;;  %v1727_v21 = vpop.permute.xlu1 %1726 }
 0x805   : > { %v1732_v58 = vsel %vm1728_vm0, %v1725_v41, %v1727_v21  ;;  %v2653_v18 = vpack.i.bf16 %v1989_v56, %v1948_v7 }
 0x806   : > { %v1740_v48 = vadd.f32 %v1732_v58, %v1699_v33  ;;  %v1866_v33 = vunpack.c.l.bf16 %v2470_v47 }
 0x808   : > { %v1764_v13 = vpop.permute.xlu0 %1763  ;;  %v1762_v2 = vpop.permute.xlu1 %1761  ;;  %v2648_v57 = vpack.i.bf16 %v1907_v9, %v1866_v33 }
 0x809   : > { %v1770_v17 = vsel %vm1769_vm9, %v1760_v0, %v1762_v2  ;;  %v1771_v36 = vsel %vm1769_vm9, %v1762_v2, %v1764_v13 }
 0x80a   : > { %v3725_v25 = vadd.f32 %v1770_v17, %v1737_v51  ;;  %v3727_v27 = vadd.f32 %v1771_v36, %v1738_v8 }
 0x80c   : > { %v1768_v61 = vpop.permute.xlu0 %1767  ;;  %v1766_v15 = vpop.permute.xlu1 %1765 }
 0x80d   : > { %v1772_v4 = vsel %vm1769_vm9, %v1764_v13, %v1766_v15  ;;  %v1773_v63 = vsel %vm1769_vm9, %v1766_v15, %v1768_v61 }
 0x80e   : > { %v3729_v28 = vadd.f32 %v1772_v4, %v1739_v44  ;;  %v3731_v53 = vadd.f32 %v1773_v63, %v1740_v48 }
 0x81d   : > { %v2645_v22 = vpop.permute.xlu1 %2644 }
 0x81e   : > { %v2646_v62 = vunpack.i.l.bf16 %v2645_v22  ;;  %v2647_v30 = vunpack.i.h.bf16 %v2645_v22 }
 0x820   : > { %v1791_v50 = vmul.f32 %v2646_v62, %v2811_v49  ;;  %v1790_v29 = vmul.f32 %v2646_v62, %v2806_v46  ;;  %v1793_v1 = vmul.f32 %v2646_v62, %v2816_v52  ;;  %v1792_v23 = vmul.f32 %v2646_v62, %v2820_v54 }
 0x821   : > { %v1831_v3 = vmul.f32 %v2647_v30, %v2806_v46  ;;  %v1794_v31 = vmul.f32 %v2646_v62, %v2825_v60  ;;  %v1833_v32 = vmul.f32 %v2647_v30, %v2820_v54  ;;  %v1832_v5 = vmul.f32 %v2647_v30, %v2811_v49 }
 0x822   : > { %1802 = vrot.lane.b32.xlu1 %v1791_v50, %s2719_s9  ;;  %1800 = vrot.lane.b32.xlu0 %v1790_v29, %s2719_s9  ;;  %v1835_v34 = vmul.f32 %v2647_v30, %v2825_v60  ;;  %v1834_v11 = vmul.f32 %v2647_v30, %v2816_v52 }
 0x826   : > { %1806 = vrot.lane.b32.xlu1 %v1793_v1, %s2719_s9  ;;  %1804 = vrot.lane.b32.xlu0 %v1792_v23, %s2719_s9 }
 0x82a   : > { %1841 = vrot.lane.b32.xlu1 %v1831_v3, %s2720_s10  ;;  %1808 = vrot.lane.b32.xlu0 %v1794_v31, %s2719_s9  ;;  %s2430_s9 = sshll.u32 %s4214_s5, 2 }
 0x82b   : > { %s249_s12 = scalar_lea.vmem %s3922_s4, %s2430_s9 }
 0x82e   : > { %1845 = vrot.lane.b32.xlu1 %v1833_v32, %s2720_s10  ;;  %1843 = vrot.lane.b32.xlu0 %v1832_v5, %s2720_s10 }
 0x832   : > { %1849 = vrot.lane.b32.xlu1 %v1835_v34, %s2720_s10  ;;  %1847 = vrot.lane.b32.xlu0 %v1834_v11, %s2720_s10 }
 0x836   : > { %2654 = vperm.xlu1 %2562, %v2653_v18   ;;  %2649 = vperm.xlu0 %2551, %v2648_v57  }
 0x83a   : > { %2664 = vperm.xlu1 %2562, %v2663_v40   ;;  %2659 = vperm.xlu0 %2551, %v2658_v37  }
 0x83e   : > { %2281 = vperm.xlu1 %2562, %v2278_v39   ;;  %2669 = vperm.xlu0 %2551, %v2668_v16  }
 0x894   : > { %v1803_v6 = vpop.permute.xlu1 %1802  ;;  %v1801_v51 = vpop.permute.xlu0 %1800 }
 0x895   : > { %v1811_v41 = vsel %vm1810_vm10, %v1801_v51, %v1803_v6 }
 0x896   : > { %v1819_v42 = vadd.f32 %v1811_v41, %v3725_v25 }
 0x898   : > { %v1807_v10 = vpop.permute.xlu1 %1806  ;;  %v1805_v55 = vpop.permute.xlu0 %1804 }
 0x899   : > { %v1812_v8 = vsel %vm1810_vm10, %v1803_v6, %v1805_v55  ;;  %v1813_v44 = vsel %vm1810_vm10, %v1805_v55, %v1807_v10 }
 0x89a   : > { %v1820_v0 = vadd.f32 %v1812_v8, %v3727_v27  ;;  %v1821_v21 = vadd.f32 %v1813_v44, %v3729_v28 }
 0x89c   : > { %v1842_v58 = vpop.permute.xlu1 %1841  ;;  %v1809_v48 = vpop.permute.xlu0 %1808 }
 0x89d   : > { %v1814_v13 = vsel %vm1810_vm10, %v1807_v10, %v1809_v48  ;;  %v4210_v10 = vld [vmem:[#allocation3_spill] sm:$0xff] }
 0x89e   : > { %v1822_v2 = vadd.f32 %v1814_v13, %v3731_v53 }
 0x8a0   : > { %v1846_v17 = vpop.permute.xlu1 %1845  ;;  %v1844_v36 = vpop.permute.xlu0 %1843 }
 0x8a1   : > { %v1852_v61 = vsel %vm1851_vm11, %v1842_v58, %v1844_v36  ;;  %v1853_v15 = vsel %vm1851_vm11, %v1844_v36, %v1846_v17 }
 0x8a2   : > { %v3765_v4 = vadd.f32 %v1852_v61, %v1819_v42  ;;  %v3767_v25 = vadd.f32 %v1853_v15, %v1820_v0 }
 0x8a4   : > { %v1850_v63 = vpop.permute.xlu1 %1849  ;;  %v1848_v22 = vpop.permute.xlu0 %1847 }
 0x8a5   : > { %v1854_v62 = vsel %vm1851_vm11, %v1846_v17, %v1848_v22  ;;  %v1855_v27 = vsel %vm1851_vm11, %v1848_v22, %v1850_v63 }
 0x8a6   : > { %v3769_v50 = vadd.f32 %v1854_v62, %v1821_v21  ;;  %v3771_v28 = vadd.f32 %v1855_v27, %v1822_v2 }
 0x8b5   : > { %v2650_v29 = vpop.permute.xlu0 %2649  ;;  %v2655_v7 = vpop.permute.xlu1 %2654 }
 0x8b6   : > { %v2651_v30 = vunpack.i.l.bf16 %v2650_v29  ;;  %v2652_v23 = vunpack.i.h.bf16 %v2650_v29  ;;  %v2656_v56 = vunpack.i.l.bf16 %v2655_v7  ;;  %v2657_v34 = vunpack.i.h.bf16 %v2655_v7 }
 0x8b8   : > { %v1873_v53 = vmul.f32 %v2651_v30, %v2811_v49  ;;  %v1872_v1 = vmul.f32 %v2651_v30, %v2806_v46  ;;  %v1875_v3 = vmul.f32 %v2651_v30, %v2816_v52  ;;  %v1874_v31 = vmul.f32 %v2651_v30, %v2820_v54 }
 0x8b9   : > { %v1913_v59 = vmul.f32 %v2652_v23, %v2806_v46  ;;  %v1876_v47 = vmul.f32 %v2651_v30, %v2825_v60  ;;  %v1915_v32 = vmul.f32 %v2652_v23, %v2820_v54  ;;  %v1914_v5 = vmul.f32 %v2652_v23, %v2811_v49  ;;  %v2660_v40 = vpop.permute.xlu0 %2659  ;;  %v2665_v58 = vpop.permute.xlu1 %2664 }
 0x8ba   : > { %1884 = vrot.lane.b32.xlu1 %v1873_v53, %s2721_s28  ;;  %1882 = vrot.lane.b32.xlu0 %v1872_v1, %s2721_s28  ;;  %v1917_v33 = vmul.f32 %v2652_v23, %v2825_v60  ;;  %v1916_v9 = vmul.f32 %v2652_v23, %v2816_v52  ;;  %v1955_v20 = vmul.f32 %v2656_v56, %v2811_v49  ;;  %v2661_v37 = vunpack.i.l.bf16 %v2660_v40 }
 0x8bb   : > { %v1954_v19 = vmul.f32 %v2656_v56, %v2806_v46  ;;  %v1957_v11 = vmul.f32 %v2656_v56, %v2816_v52  ;;  %v1956_v18 = vmul.f32 %v2656_v56, %v2820_v54  ;;  %v1995_v12 = vmul.f32 %v2657_v34, %v2806_v46  ;;  %v4209_v46 = vld [vmem:[#allocation2_spill] sm:$0xff] }
 0x8bc   : > { %v1958_v57 = vmul.f32 %v2656_v56, %v2825_v60  ;;  %v1997_v35 = vmul.f32 %v2657_v34, %v2820_v54  ;;  %v1996_v26 = vmul.f32 %v2657_v34, %v2811_v49  ;;  %v1999_v38 = vmul.f32 %v2657_v34, %v2825_v60 }
 0x8bd   : > { %v1998_v14 = vmul.f32 %v2657_v34, %v2816_v52  ;;  %v304_v24 = vrot.slane %v290_v45, %v4209_v46  ;;  %v2042_v39 = vmul.f32 %v2661_v37, %v2820_v54  ;;  %v2041_v16 = vmul.f32 %v2661_v37, %v2811_v49  ;;  %v2670_v30 = vpop.permute.xlu0 %2669 }
 0x8be   : > { %1888 = vrot.lane.b32.xlu1 %v1875_v3, %s2721_s28  ;;  %1886 = vrot.lane.b32.xlu0 %v1874_v31, %s2721_s28  ;;  %v2662_v51 = vunpack.i.h.bf16 %v2660_v40  ;;  %v2044_v41 = vmul.f32 %v2661_v37, %v2825_v60  ;;  %v2043_v42 = vmul.f32 %v2661_v37, %v2816_v52  ;;  %v2666_v48 = vunpack.i.l.bf16 %v2665_v58 }
 0x8bf   : > { %v2031_v6 = vunpack.c.l.bf16 %v304_v24  ;;  %v2667_v61 = vunpack.i.h.bf16 %v2665_v58  ;;  %v2671_v53 = vunpack.i.l.bf16 %v2670_v30 }
 0x8c0   : > { %v2081_v8 = vmul.f32 %v2662_v51, %v2811_v49  ;;  %v2083_v0 = vmul.f32 %v2662_v51, %v2816_v52  ;;  %v2082_v21 = vmul.f32 %v2662_v51, %v2820_v54  ;;  %v2084_v2 = vmul.f32 %v2662_v51, %v2825_v60 }
 0x8c1   : > { %v3802_v55 = vrot.slane %v2031_v6, %v4210_v10  ;;  %v2122_v17 = vmul.f32 %v2666_v48, %v2820_v54  ;;  %v2121_v36 = vmul.f32 %v2666_v48, %v2811_v49  ;;  %v2124_v15 = vmul.f32 %v2666_v48, %v2825_v60 }
 0x8c2   : > { %1923 = vrot.lane.b32.xlu1 %v1913_v59, %s2722_s29  ;;  %1890 = vrot.lane.b32.xlu0 %v1876_v47, %s2721_s28  ;;  %v2123_v63 = vmul.f32 %v2666_v48, %v2816_v52  ;;  %v2161_v22 = vmul.f32 %v2667_v61, %v2811_v49  ;;  %v2163_v27 = vmul.f32 %v2667_v61, %v2816_v52  ;;  %v2317_v59 = vld [vmem:[%s3921_s3] sm:$0xff] }
 0x8c3   : > { %v2045_v44 = vmul.f32 %v2661_v37, %v3802_v55  ;;  %v2085_v13 = vmul.f32 %v2662_v51, %v3802_v55  ;;  %v2125_v62 = vmul.f32 %v2666_v48, %v3802_v55  ;;  %v2162_v29 = vmul.f32 %v2667_v61, %v2820_v54 }
 0x8c4   : > { %v2165_v1 = vmul.f32 %v2667_v61, %v3802_v55  ;;  %v2164_v23 = vmul.f32 %v2667_v61, %v2825_v60  ;;  %v2203_v3 = vmul.f32 %v2671_v53, %v2820_v54  ;;  %v2202_v31 = vmul.f32 %v2671_v53, %v2811_v49 }
 0x8c5   : > { %v2204_v47 = vmul.f32 %v2671_v53, %v2816_v52  ;;  %v2205_v7 = vmul.f32 %v2671_v53, %v2825_v60 }
 0x8c6   : > { %1927 = vrot.lane.b32.xlu1 %v1915_v32, %s2722_s29  ;;  %1925 = vrot.lane.b32.xlu0 %v1914_v5, %s2722_s29  ;;  %v2672_v32 = vunpack.i.h.bf16 %v2670_v30  ;;  %v2206_v5 = vmul.f32 %v2671_v53, %v3802_v55 }
 0x8c8   : > { %v2244_v56 = vmul.f32 %v2672_v32, %v2820_v54 }
 0x8ca   : > { %1931 = vrot.lane.b32.xlu1 %v1917_v33, %s2722_s29  ;;  %1929 = vrot.lane.b32.xlu0 %v1916_v9, %s2722_s29  ;;  %v2243_v33 = vmul.f32 %v2672_v32, %v2811_v49  ;;  %v2246_v9 = vmul.f32 %v2672_v32, %v2825_v60 }
 0x8ce   : > { %1966 = vrot.lane.b32.xlu1 %v1955_v20, %s2723_s30  ;;  %1964 = vrot.lane.b32.xlu0 %v1954_v19, %s2723_s30  ;;  %v2245_v20 = vmul.f32 %v2672_v32, %v2816_v52  ;;  %v2282_v19 = vpop.permute.xlu1 %2281 }
 0x8cf   : > { %v2284_v34 = vmul.f32 %v2282_v19, %v2811_v49 }
 0x8d2   : > { %1970 = vrot.lane.b32.xlu1 %v1957_v11, %s2723_s30  ;;  %1968 = vrot.lane.b32.xlu0 %v1956_v18, %s2723_s30  ;;  %v2247_v11 = vmul.f32 %v2672_v32, %v3802_v55  ;;  %v2286_v18 = vmul.f32 %v2282_v19, %v2816_v52 }
 0x8d6   : > { %2005 = vrot.lane.b32.xlu1 %v1995_v12, %s2724_s6  ;;  %1972 = vrot.lane.b32.xlu0 %v1958_v57, %s2723_s30  ;;  %v2285_v12 = vmul.f32 %v2282_v19, %v2820_v54  ;;  %v2288_v57 = vmul.f32 %v2282_v19, %v3802_v55 }
 0x8da   : > { %2009 = vrot.lane.b32.xlu1 %v1997_v35, %s2724_s6  ;;  %2007 = vrot.lane.b32.xlu0 %v1996_v26, %s2724_s6  ;;  %v2287_v35 = vmul.f32 %v2282_v19, %v2825_v60 }
 0x8de   : > { %2013 = vrot.lane.b32.xlu1 %v1999_v38, %s2724_s6  ;;  %2011 = vrot.lane.b32.xlu0 %v1998_v14, %s2724_s6 }
 0x8e2   : > { %2053 = vrot.lane.b32.xlu1 %v2042_v39, %s2687_s18  ;;  %2051 = vrot.lane.b32.xlu0 %v2041_v16, %s2687_s18 }
 0x8e6   : > { %2057 = vrot.lane.b32.xlu1 %v2044_v41, %s2687_s18  ;;  %2055 = vrot.lane.b32.xlu0 %v2043_v42, %s2687_s18 }
 0x8ea   : > { %2091 = vrot.lane.b32.xlu1 %v2081_v8, %s2688_s19  ;;  %2059 = vrot.lane.b32.xlu0 %v2045_v44, %s2687_s18  ;;  %s2726_s18 = smov 120  }
 0x8ee   : > { %2095 = vrot.lane.b32.xlu1 %v2083_v0, %s2688_s19  ;;  %2093 = vrot.lane.b32.xlu0 %v2082_v21, %s2688_s19 }
 0x8f2   : > { %2099 = vrot.lane.b32.xlu1 %v2085_v13, %s2688_s19  ;;  %2097 = vrot.lane.b32.xlu0 %v2084_v2, %s2688_s19 }
 0x8f6   : > { %2133 = vrot.lane.b32.xlu1 %v2122_v17, %s2689_s20  ;;  %2131 = vrot.lane.b32.xlu0 %v2121_v36, %s2689_s20 }
 0x8fa   : > { %2137 = vrot.lane.b32.xlu1 %v2124_v15, %s2689_s20  ;;  %2135 = vrot.lane.b32.xlu0 %v2123_v63, %s2689_s20 }
 0x8fe   : > { %2171 = vrot.lane.b32.xlu1 %v2161_v22, %s2725_s13  ;;  %2139 = vrot.lane.b32.xlu0 %v2125_v62, %s2689_s20 }
 0x902   : > { %2175 = vrot.lane.b32.xlu1 %v2163_v27, %s2725_s13  ;;  %2173 = vrot.lane.b32.xlu0 %v2162_v29, %s2725_s13 }
 0x906   : > { %2179 = vrot.lane.b32.xlu1 %v2165_v1, %s2725_s13  ;;  %2177 = vrot.lane.b32.xlu0 %v2164_v23, %s2725_s13 }
 0x90a   : > { %2214 = vrot.lane.b32.xlu1 %v2203_v3, %s2726_s18  ;;  %2212 = vrot.lane.b32.xlu0 %v2202_v31, %s2726_s18 }
 0x90e   : > { %2320 = vperm.xlu1 %2562, %v2317_v59   ;;  %2216 = vrot.lane.b32.xlu0 %v2204_v47, %s2726_s18 }
 0x912   : > { %2220 = vrot.lane.b32.xlu1 %v2206_v5, %s2726_s18  ;;  %2218 = vrot.lane.b32.xlu0 %v2205_v7, %s2726_s18 }
 0x916   : > { %2255 = vrot.lane.b32.xlu1 %v2244_v56, %s2727_s7  ;;  %2253 = vrot.lane.b32.xlu0 %v2243_v33, %s2727_s7 }
 0x91a   : > { %2259 = vrot.lane.b32.xlu1 %v2246_v9, %s2727_s7  ;;  %2257 = vrot.lane.b32.xlu0 %v2245_v20, %s2727_s7 }
 0x91e   : > { %2294 = vrot.lane.b32.xlu1 %v2284_v34, %s2728_s8  ;;  %2261 = vrot.lane.b32.xlu0 %v2247_v11, %s2727_s7 }
 0x922   : > { %2298 = vrot.lane.b32.xlu1 %v2286_v18, %s2728_s8  ;;  %2296 = vrot.lane.b32.xlu0 %v2285_v12, %s2728_s8 }
 0x926   : > { %2302 = vrot.lane.b32.xlu1 %v2288_v57, %s2728_s8  ;;  %2300 = vrot.lane.b32.xlu0 %v2287_v35, %s2728_s8 }
 0x92c   : > { %v1885_v26 = vpop.permute.xlu1 %1884  ;;  %v1883_v49 = vpop.permute.xlu0 %1882 }
 0x92d   : > { %v1893_v43 = vsel %vm1892_vm12, %v1883_v49, %v1885_v26 }
 0x92e   : > { %v1901_v45 = vadd.f32 %v1893_v43, %v3765_v4 }
 0x930   : > { %v1889_v40 = vpop.permute.xlu1 %1888  ;;  %v1887_v37 = vpop.permute.xlu0 %1886 }
 0x931   : > { %v1894_v38 = vsel %vm1892_vm12, %v1885_v26, %v1887_v37  ;;  %v1895_v52 = vsel %vm1892_vm12, %v1887_v37, %v1889_v40 }
 0x932   : > { %v1902_v54 = vadd.f32 %v1894_v38, %v3767_v25  ;;  %v1903_v14 = vadd.f32 %v1895_v52, %v3769_v50 }
 0x934   : > { %v1924_v46 = vpop.permute.xlu1 %1923  ;;  %v1891_v24 = vpop.permute.xlu0 %1890 }
 0x935   : > { %v1896_v39 = vsel %vm1892_vm12, %v1889_v40, %v1891_v24 }
 0x936   : > { %v1904_v60 = vadd.f32 %v1896_v39, %v3771_v28 }
 0x938   : > { %v1928_v16 = vpop.permute.xlu1 %1927  ;;  %v1926_v6 = vpop.permute.xlu0 %1925 }
 0x939   : > { %v1934_v51 = vsel %vm1933_vm13, %v1924_v46, %v1926_v6  ;;  %v1935_v41 = vsel %vm1933_vm13, %v1926_v6, %v1928_v16 }
 0x93a   : > { %v1942_v42 = vadd.f32 %v1934_v51, %v1901_v45  ;;  %v1943_v4 = vadd.f32 %v1935_v41, %v1902_v54 }
 0x93c   : > { %v1932_v10 = vpop.permute.xlu1 %1931  ;;  %v1930_v55 = vpop.permute.xlu0 %1929 }
 0x93d   : > { %v1936_v8 = vsel %vm1933_vm13, %v1928_v16, %v1930_v55  ;;  %v1937_v44 = vsel %vm1933_vm13, %v1930_v55, %v1932_v10 }
 0x93e   : > { %v1944_v0 = vadd.f32 %v1936_v8, %v1903_v14  ;;  %v1945_v25 = vadd.f32 %v1937_v44, %v1904_v60 }
 0x940   : > { %v1967_v50 = vpop.permute.xlu1 %1966  ;;  %v1965_v21 = vpop.permute.xlu0 %1964 }
 0x941   : > { %v1975_v58 = vsel %vm1974_vm14, %v1965_v21, %v1967_v50 }
 0x942   : > { %v1983_v48 = vadd.f32 %v1975_v58, %v1942_v42 }
 0x944   : > { %v1971_v13 = vpop.permute.xlu1 %1970  ;;  %v1969_v28 = vpop.permute.xlu0 %1968 }
 0x945   : > { %v1976_v2 = vsel %vm1974_vm14, %v1967_v50, %v1969_v28  ;;  %v1977_v17 = vsel %vm1974_vm14, %v1969_v28, %v1971_v13 }
 0x946   : > { %v1984_v36 = vadd.f32 %v1976_v2, %v1943_v4  ;;  %v1985_v61 = vadd.f32 %v1977_v17, %v1944_v0 }
 0x948   : > { %v2006_v15 = vpop.permute.xlu1 %2005  ;;  %v1973_v63 = vpop.permute.xlu0 %1972 }
 0x949   : > { %v1978_v22 = vsel %vm1974_vm14, %v1971_v13, %v1973_v63 }
 0x94a   : > { %v3855_v62 = vadd.f32 %v1978_v22, %v1945_v25 }
 0x94c   : > { %v2010_v27 = vpop.permute.xlu1 %2009  ;;  %v2008_v29 = vpop.permute.xlu0 %2007 }
 0x94d   : > { %v2016_v38 = vsel %vm2015_vm15, %v2006_v15, %v2008_v29  ;;  %v2017_v24 = vsel %vm2015_vm15, %v2008_v29, %v2010_v27 }
 0x94e   : > { %v2024_v14 = vadd.f32 %v2016_v38, %v1983_v48  ;;  %v2025_v42 = vadd.f32 %v2017_v24, %v1984_v36 }
 0x950   : > { %v2014_v30 = vpop.permute.xlu1 %2013  ;;  %v2012_v53 = vpop.permute.xlu0 %2011 }
 0x951   : > { %v2018_v39 = vsel %vm2015_vm15, %v2010_v27, %v2012_v53  ;;  %v2019_v50 = vsel %vm2015_vm15, %v2012_v53, %v2014_v30 }
 0x952   : > { %v2026_v4 = vadd.f32 %v2018_v39, %v1985_v61  ;;  %v2027_v22 = vadd.f32 %v2019_v50, %v3855_v62 }
 0x954   : > { %v2054_v1 = vpop.permute.xlu1 %2053  ;;  %v2052_v23 = vpop.permute.xlu0 %2051 }
 0x955   : > { %v2061_v54 = vsel %vm498_vm4, %v2052_v23, %v2054_v1 }
 0x956   : > { %v2069_v16 = vadd.f32 %v2061_v54, %v2024_v14 }
 0x958   : > { %v2058_v3 = vpop.permute.xlu1 %2057  ;;  %v2056_v31 = vpop.permute.xlu0 %2055 }
 0x959   : > { %v2062_v6 = vsel %vm498_vm4, %v2054_v1, %v2056_v31  ;;  %v2063_v51 = vsel %vm498_vm4, %v2056_v31, %v2058_v3 }
 0x95a   : > { %v2070_v21 = vadd.f32 %v2062_v6, %v2025_v42  ;;  %v2071_v58 = vadd.f32 %v2063_v51, %v2026_v4 }
 0x95c   : > { %v2092_v59 = vpop.permute.xlu1 %2091  ;;  %v2060_v47 = vpop.permute.xlu0 %2059 }
 0x95d   : > { %v2064_v17 = vsel %vm498_vm4, %v2058_v3, %v2060_v47 }
 0x960   : > { %v2096_v32 = vpop.permute.xlu1 %2095  ;;  %v2094_v5 = vpop.permute.xlu0 %2093 }
 0x961   : > { %v2101_v60 = vsel %vm539_vm5, %v2092_v59, %v2094_v5  ;;  %v2102_v44 = vsel %vm539_vm5, %v2094_v5, %v2096_v32  ;;  %v2072_v59 = vadd.f32 %v2064_v17, %v2027_v22 }
 0x962   : > { %v2109_v10 = vadd.f32 %v2101_v60, %v2069_v16  ;;  %v2110_v36 = vadd.f32 %v2102_v44, %v2070_v21 }
 0x964   : > { %v2098_v7 = vpop.permute.xlu0 %2097  ;;  %v2100_v56 = vpop.permute.xlu1 %2099 }
 0x965   : > { %v2103_v0 = vsel %vm539_vm5, %v2096_v32, %v2098_v7  ;;  %v2104_v53 = vsel %vm539_vm5, %v2098_v7, %v2100_v56 }
 0x966   : > { %v2111_v61 = vadd.f32 %v2103_v0, %v2071_v58 }
 0x968   : > { %v2132_v33 = vpop.permute.xlu0 %2131  ;;  %v2134_v9 = vpop.permute.xlu1 %2133 }
 0x969   : > { %v2141_v41 = vsel %vm580_vm6, %v2132_v33, %v2134_v9 }
 0x96a   : > { %v2149_v48 = vadd.f32 %v2141_v41, %v2109_v10 }
 0x96c   : > { %v2136_v20 = vpop.permute.xlu0 %2135  ;;  %v2138_v34 = vpop.permute.xlu1 %2137 }
 0x96d   : > { %v2142_v13 = vsel %vm580_vm6, %v2134_v9, %v2136_v20  ;;  %v2143_v28 = vsel %vm580_vm6, %v2136_v20, %v2138_v34 }
 0x96e   : > { %v2150_v1 = vadd.f32 %v2142_v13, %v2110_v36  ;;  %v2151_v23 = vadd.f32 %v2143_v28, %v2111_v61 }
 0x970   : > { %v3857_v19 = vpop.permute.xlu0 %2139  ;;  %v2172_v18 = vpop.permute.xlu1 %2171 }
 0x971   : > { %v2144_v32 = vsel %vm580_vm6, %v2138_v34, %v3857_v19 }
 0x974   : > { %v2174_v11 = vpop.permute.xlu0 %2173  ;;  %v2176_v35 = vpop.permute.xlu1 %2175 }
 0x975   : > { %v2182_v25 = vsel %vm2181_vm1, %v2172_v18, %v2174_v11  ;;  %v2183_v27 = vsel %vm2181_vm1, %v2174_v11, %v2176_v35  ;;  %v2112_v11 = vadd.f32 %v2104_v53, %v2072_v59 }
 0x976   : > { %v2190_v15 = vadd.f32 %v2182_v25, %v2149_v48  ;;  %v2191_v5 = vadd.f32 %v2183_v27, %v2150_v1 }
 0x977   : > { %v2152_v34 = vadd.f32 %v2144_v32, %v2112_v11 }
 0x978   : > { %v3859_v12 = vpop.permute.xlu0 %2177  ;;  %v3861_v49 = vpop.permute.xlu1 %2179 }
 0x979   : > { %v2184_v29 = vsel %vm2181_vm1, %v2176_v35, %v3859_v12 }
 0x97a   : > { %v2192_v33 = vadd.f32 %v2184_v29, %v2151_v23 }
 0x97c   : > { %v2213_v57 = vpop.permute.xlu0 %2212  ;;  %v2215_v45 = vpop.permute.xlu1 %2214 }
 0x97d   : > { %v2223_v2 = vsel %vm2222_vm2, %v2213_v57, %v2215_v45  ;;  %v2185_v57 = vsel %vm2181_vm1, %v3859_v12, %v3861_v49 }
 0x97e   : > { %v2231_v31 = vadd.f32 %v2223_v2, %v2190_v15  ;;  %v2193_v24 = vadd.f32 %v2185_v57, %v2152_v34 }
 0x980   : > { %v2217_v26 = vpop.permute.xlu0 %2216 }
 0x981   : > { %v2224_v47 = vsel %vm2222_vm2, %v2215_v45, %v2217_v26 }
 0x982   : > { %v2232_v35 = vadd.f32 %v2224_v47, %v2191_v5 }
 0x984   : > { %v3863_v43 = vpop.permute.xlu0 %2218 }
 0x985   : > { %v2225_v62 = vsel %vm2222_vm2, %v2217_v26, %v3863_v43 }
 0x986   : > { %v2233_v26 = vadd.f32 %v2225_v62, %v2192_v33 }
 0x988   : > { %v2254_v40 = vpop.permute.xlu0 %2253 }
 0x98c   : > { %v2258_v52 = vpop.permute.xlu0 %2257 }
 0x98d   : > { %v3865_v37 = vpop.permute.xlu1 %2320 }
 0x990   : > { %v2262_v55 = vpop.permute.xlu0 %2261 }
 0x991   : > { %v2221_v46 = vpop.permute.xlu1 %2220 }
 0x992   : > { %v2226_v45 = vsel %vm2222_vm2, %v3863_v43, %v2221_v46 }
 0x993   : > { %v2234_v6 = vadd.f32 %v2226_v45, %v2193_v24 }
 0x994   : > { %v2297_v3 = vpop.permute.xlu0 %2296 }
 0x995   : > { %v2256_v8 = vpop.permute.xlu1 %2255 }
 0x996   : > { %v2264_v30 = vsel %vm2263_vm3, %v2254_v40, %v2256_v8  ;;  %v2265_v7 = vsel %vm2263_vm3, %v2256_v8, %v2258_v52 }
 0x997   : > { %v2272_v9 = vadd.f32 %v2264_v30, %v2231_v31  ;;  %v2273_v40 = vadd.f32 %v2265_v7, %v2232_v35 }
 0x998   : > { %v2301_v38 = vpop.permute.xlu0 %2300 }
 0x999   : > { %v2260_v63 = vpop.permute.xlu1 %2259 }
 0x99a   : > { %v2266_v56 = vsel %vm2263_vm3, %v2258_v52, %v2260_v63  ;;  %v2267_v12 = vsel %vm2263_vm3, %v2260_v63, %v2262_v55 }
 0x99b   : > { %v2274_v54 = vadd.f32 %v2266_v56, %v2233_v26  ;;  %v2275_v41 = vadd.f32 %v2267_v12, %v2234_v6 }
 0x99d   : > { %v2295_v20 = vpop.permute.xlu1 %2294 }
 0x99e   : > { %v2305_v18 = vsel %vm2304_vm7, %v2295_v20, %v2297_v3 }
 0x99f   : > { %v2313_v19 = vadd.f32 %v2305_v18, %v2272_v9 }
 0x9a1   : > { %v2323_v14 = vadd.f32 %v3865_v37, %v2313_v19  ;;  %v2299_v52 = vpop.permute.xlu1 %2298 }
 0x9a2   : > { %v2306_v39 = vsel %vm2304_vm7, %v2297_v3, %v2299_v52  ;;  %v2307_v60 = vsel %vm2304_vm7, %v2299_v52, %v2301_v38 }
 0x9a3   : > { %v2314_v49 = vadd.f32 %v2306_v39, %v2273_v40  ;;  %v2315_v16 = vadd.f32 %v2307_v60, %v2274_v54  ;;  %v2331_v51 = vmul.f32 0.25, %v2323_v14  ;;  %vm2327_vm4 = vcmp.gt.f32.partialorder %v2323_v14, 0.0 }
 0x9a5   : > { %v2324_v43 = vadd.f32 %v3865_v37, %v2314_v49  ;;  %v2303_v46 = vpop.permute.xlu1 %2302  ;;  %v2325_v42 = vadd.f32 %v3865_v37, %v2315_v16  ;;  %v2335_v44 = vsel %vm2327_vm4, %v2323_v14, %v2331_v51 }
 0x9a6   : > { %v2308_v4 = vsel %vm2304_vm7, %v2301_v38, %v2303_v46 }
 0x9a7   : > { %vm2328_vm5 = vcmp.gt.f32.partialorder %v2324_v43, 0.0  ;;  %v2332_v10 = vmul.f32 0.25, %v2324_v43  ;;  %v2316_v8 = vadd.f32 %v2308_v4, %v2275_v41  ;;  %v2333_v0 = vmul.f32 0.25, %v2325_v42 }
 0x9a8   : > { %vm2329_vm6 = vcmp.gt.f32.partialorder %v2325_v42, 0.0 }
 0x9a9   : > { %v2336_v55 = vsel %vm2328_vm5, %v2324_v43, %v2332_v10  ;;  %v2326_v50 = vadd.f32 %v3865_v37, %v2316_v8  ;;  %v2337_v58 = vsel %vm2329_vm6, %v2325_v42, %v2333_v0 }
 0x9aa   : > { %v2492_v25 = vpack.c.bf16 %v2336_v55, %v2335_v44 }
 0x9ab   : > { %vm2330_vm8 = vcmp.gt.f32.partialorder %v2326_v50, 0.0  ;;  %v2334_v21 = vmul.f32 0.25, %v2326_v50 }
 0x9ac   : > { %2355 = vst [vmem:[%s249_s12] sm:$0xff] %v2492_v25 }
 0x9ad   : > { %v2338_v48 = vsel %vm2330_vm8, %v2326_v50, %v2334_v21 }
 0x9ae   : > { %v2493_v13 = vpack.c.bf16 %v2338_v48, %v2337_v58 }
 0x9b0   : > { %2356 = vst [vmem:[%s249_s12 + $0x8] sm:$0xff] %v2493_v13 }
 0x9b1 PF: > { %s14_s15 = sadd.s32 1, %s2680_s15  }
 0x9b2   : > { %p11_p6 = scmp.ge.s32.totalorder %s14_s15, 4  }
 0x9b4   :  { %13 = sbr.rel (!%p11_p6) target bundleno = 1 (0x1), region = 117 }

// kernel: resnet_forward.12
= control target key start
LH: loop header
LB: loop body
LE: loop exit
PB: predicated region body
PF: predicated region fallthrough
CT: control target
= control target key end

     0   :  { %vm239_vm0 = vcmask 130048   ;;  %s1223_s16 = smov 123   ;;  %s1224_s17 = smov 127   ;;  %v1226_v26 = vmov 0   ;;  %vm379_vm1 = vcmask 1006592   ;;  %vm236_vm2 = vcmask 1039360   ;;  %s1395_s0 = inlined_call_operand.vmem [shape: bf16[4,16,256], index: 0, kind: input, shape index: {}, may-alias: {0,1}]   ;;  %s1396_s1 = inlined_call_operand.vmem [shape: bf16[4,16,256], index: 1, kind: input, shape index: {}, may-alias: {0,1}]   ;;  %s1397_s2 = inlined_call_operand.vmem [shape: bf16[9,32,16], index: 2, kind: input, shape index: {}]   ;;  %s1398_s3 = inlined_call_operand.vmem [shape: f32[32,1], index: 3, kind: input, shape index: {}]   ;;  %s1399_s4 = inlined_call_operand.vmem [shape: bf16[32,128], index: 4, kind: output, shape index: {}]  }
   0x1   :  { %v30_v0 = vld [vmem:[%s1395_s0 + $0x10] sm:$0xf]  ;;  %v32_v1 = vld [vmem:[%s1395_s0 + $0x18] sm:$0xf]  ;;  %v26_v2 = vld [vmem:[%s1395_s0] sm:$0xf]  ;;  %1197 = vset.pattern.permute.xlu1 %v1226_v26  ;;  %1196 = vset.pattern.permute.xlu0 %v1226_v26 }
   0x2   :  { %31 = vst [vmem:[#allocation2 + $0x8] sm:$0xf] %v30_v0  ;;  %33 = vst [vmem:[#allocation2 + $0xc] sm:$0xf] %v32_v1  ;;  %v28_v3 = vld [vmem:[%s1395_s0 + $0x8] sm:$0xf] }
   0x3   :  { %v979_v4 = vld [vmem:[%s1396_s1 + $0x14] sm:$0xf]  ;;  %27 = vst [vmem:[#allocation2] sm:$0xf] %v26_v2  ;;  %29 = vst [vmem:[#allocation2 + $0x4] sm:$0xf] %v28_v3 }
   0x4   :  { %103 = vst [vmem:[#allocation3 + $0x8] sm:$0xf] %v979_v4  ;;  %v980_v5 = vld [vmem:[%s1396_s1 + $0x1c] sm:$0xf]  ;;  %v977_v6 = vld [vmem:[%s1396_s1 + $0x4] sm:$0xf] }
   0x5   :  { %v978_v7 = vld [vmem:[%s1396_s1 + $0xc] sm:$0xf]  ;;  %105 = vst [vmem:[#allocation3 + $0xc] sm:$0xf] %v980_v5  ;;  %99 = vst [vmem:[#allocation3] sm:$0xf] %v977_v6 }
   0x6   :  { %101 = vst [vmem:[#allocation3 + $0x4] sm:$0xf] %v978_v7  ;;  %v981_v8 = vld [vmem:[%s1396_s1 + $0x24] sm:$0xf]  ;;  %v982_v9 = vld [vmem:[%s1396_s1 + $0x2c] sm:$0xf] }
   0x7   :  { %v34_v10 = vld [vmem:[%s1395_s0 + $0x20] sm:$0xf]  ;;  %107 = vst [vmem:[#allocation3 + $0x10] sm:$0xf] %v981_v8  ;;  %109 = vst [vmem:[#allocation3 + $0x14] sm:$0xf] %v982_v9 }
   0x8   :  { %35 = vst [vmem:[#allocation2 + $0x10] sm:$0xf] %v34_v10  ;;  %v36_v11 = vld [vmem:[%s1395_s0 + $0x28] sm:$0xf]  ;;  %v1204_v12 = vld [vmem:[%s1397_s2 + $0x40] sm:$0xff]   ;;  %v1206_v18 = vld [vmem:[%s1397_s2 + $0x10] sm:$0xff]  }
   0x9   :  { %37 = vst [vmem:[#allocation2 + $0x14] sm:$0xf] %v36_v11  ;;  %1132 = vmatprep.mubr.msk.bf16.mxu0 %vm239_vm0, %v1204_v12  ;;  %v1198_v13 = vld [vmem:[#allocation2 + $0x8] sm:$0xff]   ;;  %v1207_v19 = vld [vmem:[%s1397_s2 + $0x50] sm:$0xff]   ;;  %1108 = vmatprep.mubr.msk.bf16.mxu1 %vm239_vm0, %v1206_v18  ;;  %s1225_s22 = smov 122   ;;  %v904_v25 = vld [vmem:[%s1398_s3] sm:$0xff] }
   0xa   :  { %v1205_v14 = vld [vmem:[%s1397_s2 + $0x48] sm:$0xff]   ;;  %v1295_v15 = vld [vmem:[#allocation2] sm:$0xff]   ;;  %611 = vrot.lane.b32.xlu1 %v1198_v13, %s1223_s16  ;;  %1130 = vmatprep.subr.bf16.mxu0 %v1198_v13  ;;  %v38_v22 = vld [vmem:[%s1395_s0 + $0x30] sm:$0xf]  ;;  %vm460_vm3 = vcmask 998400  }
   0xb   :  { %232 = vrot.lane.b32.xlu0 %v1295_v15, %s1224_s17  ;;  %1131 = vmatpush3.bf16.msra.mxu0 %v1198_v13  ;;  %v40_v23 = vld [vmem:[%s1395_s0 + $0x38] sm:$0xf]  ;;  %39 = vst [vmem:[#allocation2 + $0x18] sm:$0xf] %v38_v22  ;;  %v905_v24 = vld [vmem:[%s1398_s3 + $0x8] sm:$0xff]  ;;  %v906_v27 = vld [vmem:[%s1398_s3 + $0x10] sm:$0xff] }
   0xc   :  { %v1200_v16 = vld [vmem:[#allocation3 + $0x8] sm:$0xff]   ;;  %41 = vst [vmem:[#allocation2 + $0x1c] sm:$0xf] %v40_v23  ;;  %v907_v28 = vld [vmem:[%s1398_s3 + $0x18] sm:$0xff]  ;;  %v1210_v37 = vld [vmem:[%s1397_s2] sm:$0xff]  }
   0xd   :  { %v1201_v17 = vld [vmem:[#allocation3] sm:$0xff]   ;;  %v1209_v35 = vld [vmem:[%s1397_s2 + $0x58] sm:$0xff]   ;;  %v1213_v45 = vld [vmem:[%s1397_s2 + $0x68] sm:$0xff]  }
   0xe   :  { %613 = vrot.lane.b32.xlu1 %v1200_v16, %s1223_s16  ;;  %1133 = vmatmul.mubr.msk.bf16.vlgmr.msra.gmra.mrb[0].mxu0 %vm239_vm0, %v1205_v14  ;;  %v1202_v20 = vld [vmem:[#allocation3 + $0x10] sm:$0xff]   ;;  %v1208_v36 = vld [vmem:[%s1397_s2 + $0x18] sm:$0xff]   ;;  %v1211_v39 = vld [vmem:[%s1397_s2 + $0x60] sm:$0xff]  }
   0xf   :  { %234 = vrot.lane.b32.xlu0 %v1201_v17, %s1224_s17  ;;  %1138 = vmatprep.mubr.msk.bf16.mxu0 %vm239_vm0, %v1207_v19  ;;  %v1212_v46 = vld [vmem:[%s1397_s2 + $0x8] sm:$0xff]   ;;  %v1214_v49 = vld [vmem:[%s1397_s2 + $0x20] sm:$0xff]   ;;  %v1215_v50 = vld [vmem:[%s1397_s2 + $0x70] sm:$0xff]  }
  0x10   :  { %v1203_v21 = vld [vmem:[#allocation2 + $0x10] sm:$0xff]   ;;  %v1217_v53 = vld [vmem:[%s1397_s2 + $0x78] sm:$0xff]   ;;  %v1216_v54 = vld [vmem:[%s1397_s2 + $0x28] sm:$0xff]  }
  0x11   :  { %v1219_v55 = vld [vmem:[%s1397_s2 + $0x30] sm:$0xff]   ;;  %v1220_v56 = vld [vmem:[%s1397_s2 + $0x80] sm:$0xff]   ;;  %v1222_v57 = vld [vmem:[%s1397_s2 + $0x88] sm:$0xff]  }
  0x12   :  { %377 = vrot.lane.b32.xlu1 %v1201_v17, %s1223_s16  ;;  %v1221_v58 = vld [vmem:[%s1397_s2 + $0x38] sm:$0xff]  }
  0x13   :  { %375 = vrot.lane.b32.xlu0 %v1295_v15, %s1223_s16  ;;  %v1218_v52 = vld [vmem:[#allocation2 + $0x18] sm:$0xff]  }
  0x16   :  { %767 = vrot.lane.b32.xlu1 %v1202_v20, %s1224_s17 }
  0x17   :  { %765 = vrot.lane.b32.xlu0 %v1203_v21, %s1224_s17 }
  0x1a   :  { %458 = vrot.lane.b32.xlu1 %v1201_v17, %s1225_s22 }
  0x1b   :  { %456 = vrot.lane.b32.xlu0 %v1295_v15, %s1225_s22 }
  0x1e   :  { %915 = vperm.xlu1 %1197, %v905_v24  }
  0x1f   :  { %910 = vperm.xlu0 %1196, %v904_v25  }
  0x22   :  { %920 = vperm.xlu1 %1197, %v906_v27  }
  0x23   :  { %925 = vperm.xlu0 %1196, %v907_v28  }
  0x7c   :  { %v612_v29 = vpop.permute.xlu1 %611 }
  0x7d   :  { %v233_v30 = vpop.permute.xlu0 %232 }
  0x80   :  { %v614_v31 = vpop.permute.xlu1 %613 }
  0x81   :  { %v235_v32 = vpop.permute.xlu0 %234  ;;  %v615_v33 = vsel %vm379_vm1, %v612_v29, %v614_v31 }
  0x82   :  { %v237_v34 = vsel %vm236_vm2, %v233_v30, %v235_v32  ;;  %1136 = vmatprep.subr.bf16.mxu0 %v615_v33 }
  0x83   :  { %1106 = vmatprep.subr.bf16.mxu1 %v237_v34  ;;  %1137 = vmatpush3.bf16.msra.mxu0 %v615_v33 }
  0x84   :  { %1107 = vmatpush3.bf16.msra.mxu1 %v237_v34  ;;  %1142 = vmatprep.subr.bf16.mxu0 %v1203_v21  ;;  %v378_v38 = vpop.permute.xlu1 %377 }
  0x85   :  { %1112 = vmatprep.subr.bf16.mxu1 %v1295_v15  ;;  %v376_v40 = vpop.permute.xlu0 %375 }
  0x86   :  { %1139 = vmatmul.mubr.msk.bf16.vlgmr.msra.gmra.mrb[0].mxu0 %vm239_vm0, %v1209_v35  ;;  %v380_v41 = vsel %vm379_vm1, %v376_v40, %v378_v38 }
  0x87   :  { %1109 = vmatmul.mubr.msk.bf16.vlgmr.msra.gmra.mrb[0].mxu1 %vm239_vm0, %v1208_v36  ;;  %1143 = vmatpush3.bf16.msra.mxu0 %v1203_v21 }
  0x88   :  { %1113 = vmatpush3.bf16.msra.mxu1 %v1295_v15  ;;  %1114 = vmatprep.mubr.msk.bf16.mxu1 %vm239_vm0, %v1210_v37  ;;  %v768_v42 = vpop.permute.xlu1 %767 }
  0x89   :  { %1144 = vmatprep.mubr.msk.bf16.mxu0 %vm239_vm0, %v1211_v39  ;;  %1118 = vmatprep.subr.bf16.mxu1 %v380_v41  ;;  %v766_v43 = vpop.permute.xlu0 %765 }
  0x8a   :  { %v769_v44 = vsel %vm236_vm2, %v766_v43, %v768_v42 }
  0x8b   :  { %1148 = vmatprep.subr.bf16.mxu0 %v769_v44 }
  0x8c   :  { %v459_v47 = vpop.permute.xlu1 %458 }
  0x8d   :  { %v457_v48 = vpop.permute.xlu0 %456 }
  0x8e   :  { %v461_v51 = vsel %vm460_vm3, %v457_v48, %v459_v47 }
  0x92   :  { %1145 = vmatmul.mubr.msk.bf16.vlgmr.msra.gmra.mrb[0].mxu0 %vm239_vm0, %v1213_v45 }
  0x93   :  { %1115 = vmatmul.mubr.msk.bf16.vlgmr.msra.gmra.mrb[0].mxu1 %vm239_vm0, %v1212_v46  ;;  %1149 = vmatpush3.bf16.msra.mxu0 %v769_v44 }
  0x94   :  { %1119 = vmatpush3.bf16.msra.mxu1 %v380_v41  ;;  %1120 = vmatprep.mubr.msk.bf16.mxu1 %vm239_vm0, %v1214_v49 }
  0x95   :  { %1150 = vmatprep.mubr.msk.bf16.mxu0 %vm239_vm0, %v1215_v50  ;;  %1124 = vmatprep.subr.bf16.mxu1 %v461_v51 }
  0x96   :  { %1154 = vmatprep.subr.bf16.mxu0 %v1218_v52 }
  0x9d   :  { %v916_v59 = vpop.permute.xlu1 %915 }
  0x9e   :  { %1151 = vmatmul.mubr.msk.bf16.vlgmr.msra.gmra.mrb[0].mxu0 %vm239_vm0, %v1217_v53  ;;  %v911_v60 = vpop.permute.xlu0 %910 }
  0x9f   :  { %1121 = vmatmul.mubr.msk.bf16.vlgmr.msra.gmra.mrb[0].mxu1 %vm239_vm0, %v1216_v54  ;;  %1155 = vmatpush3.bf16.msra.mxu0 %v1218_v52 }
  0xa0   :  { %1125 = vmatpush3.bf16.msra.mxu1 %v461_v51  ;;  %1126 = vmatprep.mubr.msk.bf16.mxu1 %vm239_vm0, %v1219_v55 }
  0xa1   :  { %1156 = vmatprep.mubr.msk.bf16.mxu0 %vm239_vm0, %v1220_v56  ;;  %v921_v62 = vpop.permute.xlu1 %920 }
  0xa2   :  { %v926_v12 = vpop.permute.xlu0 %925 }
  0xaa   :  { %1157 = vmatmul.mubr.msk.bf16.vlgmr.msra.gmra.mrb[0].mxu0 %vm239_vm0, %v1222_v57 }
  0xab   :  { %1127 = vmatmul.mubr.msk.bf16.vlgmr.msra.gmra.mrb[0].mxu1 %vm239_vm0, %v1221_v58 }
 0x17d   :  { %v1158_v61 = vpop.f32.mrb[0].mxu0 }
 0x17e   :  { %v1128_v63 = vpop.f32.mrb[0].mxu1  ;;  %v885_v0 = vpop.f32.mrb[1].mxu0 }
 0x17f   :  { %v1160_v1 = vadd.f32 %v1158_v61, %v1128_v63  ;;  %v503_v2 = vpop.f32.mrb[1].mxu1  ;;  %v1159_v3 = vpop.f32.mrb[2].mxu0 }
 0x180   :  { %v1161_v4 = vadd.f32 %v885_v0, %v503_v2  ;;  %v1129_v5 = vpop.f32.mrb[2].mxu1  ;;  %v888_v6 = vpop.f32.mrb[3].mxu0 }
 0x181   :  { %v930_v7 = vadd.f32 %v1160_v1, %v921_v62  ;;  %v1162_v8 = vadd.f32 %v1159_v3, %v1129_v5  ;;  %v506_v9 = vpop.f32.mrb[3].mxu1 }
 0x182   :  { %v928_v10 = vadd.f32 %v1161_v4, %v911_v60  ;;  %v1163_v11 = vadd.f32 %v888_v6, %v506_v9 }
 0x183   :  { %v938_v13 = vmul.f32 0.25, %v930_v7  ;;  %v931_v14 = vadd.f32 %v1162_v8, %v926_v12  ;;  %vm934_vm4 = vcmp.gt.f32.partialorder %v930_v7, 0.0 }
 0x184   :  { %v936_v15 = vmul.f32 0.25, %v928_v10  ;;  %v929_v16 = vadd.f32 %v1163_v11, %v916_v59  ;;  %vm932_vm5 = vcmp.gt.f32.partialorder %v928_v10, 0.0 }
 0x185   :  { %vm935_vm6 = vcmp.gt.f32.partialorder %v931_v14, 0.0  ;;  %v939_v17 = vmul.f32 0.25, %v931_v14  ;;  %v942_v19 = vsel %vm934_vm4, %v930_v7, %v938_v13 }
 0x186   :  { %vm933_vm7 = vcmp.gt.f32.partialorder %v929_v16, 0.0  ;;  %v937_v18 = vmul.f32 0.25, %v929_v16  ;;  %v940_v21 = vsel %vm932_vm5, %v928_v10, %v936_v15 }
 0x187   :  { %v943_v20 = vsel %vm935_vm6, %v931_v14, %v939_v17 }
 0x188   :  { %v941_v22 = vsel %vm933_vm7, %v929_v16, %v937_v18  ;;  %v1076_v23 = vpack.c.bf16 %v943_v20, %v942_v19 }
 0x189   :  { %v1071_v24 = vpack.c.bf16 %v941_v22, %v940_v21 }
 0x18a   :  { %1078 = vst [vmem:[%s1399_s4 + $0x8] sm:$0xff] %v1076_v23  }
 0x18b   :  { %1072 = vst [vmem:[%s1399_s4] sm:$0xff] %v1071_v24  }

// kernel: resnet_forward.13
= control target key start
LH: loop header
LB: loop body
LE: loop exit
PB: predicated region body
PF: predicated region fallthrough
CT: control target
= control target key end

     0   :  { %vm190_vm0 = vcmask 261120   ;;  %s1262_s8 = smov 127   ;;  %s1263_s9 = smov 120   ;;  %v1269_v14 = vmov 0   ;;  %vm508_vm1 = vcmask 990208   ;;  %vm185_vm2 = vcmask 1039360   ;;  %s1447_s0 = inlined_call_operand.vmem [shape: bf16[1,32,256], index: 0, kind: input, shape index: {}, may-alias: {0,1}]   ;;  %s1448_s1 = inlined_call_operand.vmem [shape: bf16[1,32,256], index: 1, kind: input, shape index: {}, may-alias: {0,1}]   ;;  %s1449_s2 = inlined_call_operand.vmem [shape: bf16[9,32,32], index: 2, kind: input, shape index: {}]   ;;  %s1450_s3 = inlined_call_operand.vmem [shape: f32[32,1], index: 3, kind: input, shape index: {}]   ;;  %s1451_s4 = inlined_call_operand.vmem [shape: bf16[32,128], index: 4, kind: output, shape index: {}]  }
   0x1   :  { %v30_v0 = vld [vmem:[%s1447_s0 + $0x10] sm:$0xf]  ;;  %v32_v1 = vld [vmem:[%s1447_s0 + $0x18] sm:$0xf]  ;;  %v26_v2 = vld [vmem:[%s1447_s0] sm:$0xf]  ;;  %1238 = vset.pattern.permute.xlu1 %v1269_v14  ;;  %1237 = vset.pattern.permute.xlu0 %v1269_v14 }
   0x2   :  { %31 = vst [vmem:[#allocation2 + $0x8] sm:$0xf] %v30_v0  ;;  %33 = vst [vmem:[#allocation2 + $0xc] sm:$0xf] %v32_v1  ;;  %v28_v3 = vld [vmem:[%s1447_s0 + $0x8] sm:$0xf] }
   0x3   :  { %v995_v4 = vld [vmem:[%s1448_s1 + $0x14] sm:$0xf]  ;;  %27 = vst [vmem:[#allocation2] sm:$0xf] %v26_v2  ;;  %29 = vst [vmem:[#allocation2 + $0x4] sm:$0xf] %v28_v3 }
   0x4   :  { %87 = vst [vmem:[#allocation3 + $0x8] sm:$0xf] %v995_v4  ;;  %v996_v5 = vld [vmem:[%s1448_s1 + $0x1c] sm:$0xf]  ;;  %v993_v6 = vld [vmem:[%s1448_s1 + $0x4] sm:$0xf] }
   0x5   :  { %v994_v7 = vld [vmem:[%s1448_s1 + $0xc] sm:$0xf]  ;;  %89 = vst [vmem:[#allocation3 + $0xc] sm:$0xf] %v996_v5  ;;  %83 = vst [vmem:[#allocation3] sm:$0xf] %v993_v6 }
   0x6   :  { %85 = vst [vmem:[#allocation3 + $0x4] sm:$0xf] %v994_v7  ;;  %s1261_s0 = smov 121   ;;  %v1243_v12 = vld [vmem:[%s1449_s2 + $0x40] sm:$0xff]   ;;  %v1245_v13 = vld [vmem:[%s1449_s2 + $0x10] sm:$0xff]   ;;  %s1264_s10 = smov 116  }
   0x7   :  { %1160 = vmatprep.mubr.msk.bf16.mxu0 %vm190_vm0, %v1243_v12  ;;  %1128 = vmatprep.mubr.msk.bf16.mxu1 %vm190_vm0, %v1245_v13  ;;  %s1265_s11 = smov 126   ;;  %s1266_s12 = smov 115   ;;  %v921_v15 = vld [vmem:[%s1450_s3 + $0x8] sm:$0xff]  ;;  %v920_v16 = vld [vmem:[%s1450_s3] sm:$0xff]  ;;  %v922_v17 = vld [vmem:[%s1450_s3 + $0x10] sm:$0xff]  ;;  %vm595_vm3 = vcmask 982016  }
   0x8   :  { %s1267_s13 = smov 122   ;;  %s1268_s14 = smov 114   ;;  %v923_v18 = vld [vmem:[%s1450_s3 + $0x18] sm:$0xff]  ;;  %v1244_v28 = vld [vmem:[%s1449_s2 + $0x48] sm:$0xff]   ;;  %v1247_v30 = vld [vmem:[%s1449_s2 + $0x50] sm:$0xff]   ;;  %vm682_vm4 = vcmask 949248  }
   0x9   :  { %v1319_v8 = vld [vmem:[#allocation2 + $0x8] sm:$0xff]   ;;  %v1246_v36 = vld [vmem:[%s1449_s2 + $0x18] sm:$0xff]   ;;  %v1249_v39 = vld [vmem:[%s1449_s2] sm:$0xff]   ;;  %vm334_vm5 = vcmask 1031168   ;;  %vm769_vm6 = vcmask 941056   ;;  %vm421_vm7 = vcmask 998400  }
   0xa   :  { %v1321_v9 = vld [vmem:[#allocation2] sm:$0xff]   ;;  %504 = vrot.lane.b32.xlu1 %v1319_v8, %s1261_s0  ;;  %v1248_v41 = vld [vmem:[%s1449_s2 + $0x58] sm:$0xff]   ;;  %v1250_v49 = vld [vmem:[%s1449_s2 + $0x8] sm:$0xff]   ;;  %vm856_vm8 = vcmask 932864  }
   0xb   :  { %500 = vrot.lane.b32.xlu0 %v1321_v9, %s1261_s0  ;;  %v1251_v44 = vld [vmem:[%s1449_s2 + $0x60] sm:$0xff]   ;;  %v1252_v54 = vld [vmem:[%s1449_s2 + $0x68] sm:$0xff]   ;;  %v1255_v56 = vld [vmem:[%s1449_s2 + $0x70] sm:$0xff]  }
   0xc   :  { %v1241_v10 = vld [vmem:[#allocation3 + $0x8] sm:$0xff]   ;;  %v1253_v51 = vld [vmem:[%s1449_s2 + $0x20] sm:$0xff]   ;;  %v1254_v62 = vld [vmem:[%s1449_s2 + $0x28] sm:$0xff]  }
   0xd   :  { %v1242_v11 = vld [vmem:[#allocation3] sm:$0xff]   ;;  %v1256_v3 = vld [vmem:[%s1449_s2 + $0x78] sm:$0xff]   ;;  %v1259_v5 = vld [vmem:[%s1449_s2 + $0x80] sm:$0xff]  }
   0xe   :  { %506 = vrot.lane.b32.xlu1 %v1241_v10, %s1261_s0  ;;  %v1257_v0 = vld [vmem:[%s1449_s2 + $0x30] sm:$0xff]   ;;  %v1258_v14 = vld [vmem:[%s1449_s2 + $0x38] sm:$0xff]  }
   0xf   :  { %502 = vrot.lane.b32.xlu0 %v1242_v11, %s1261_s0 }
  0x12   :  { %179 = vrot.lane.b32.xlu1 %v1242_v11, %s1262_s8 }
  0x13   :  { %177 = vrot.lane.b32.xlu0 %v1321_v9, %s1262_s8 }
  0x16   :  { %589 = vrot.lane.b32.xlu1 %v1242_v11, %s1263_s9 }
  0x17   :  { %587 = vrot.lane.b32.xlu0 %v1321_v9, %s1263_s9 }
  0x1a   :  { %183 = vrot.lane.b32.xlu1 %v1241_v10, %s1262_s8 }
  0x1b   :  { %181 = vrot.lane.b32.xlu0 %v1319_v8, %s1262_s8 }
  0x1e   :  { %593 = vrot.lane.b32.xlu1 %v1241_v10, %s1263_s9 }
  0x1f   :  { %591 = vrot.lane.b32.xlu0 %v1319_v8, %s1263_s9 }
  0x22   :  { %676 = vrot.lane.b32.xlu1 %v1242_v11, %s1264_s10 }
  0x23   :  { %674 = vrot.lane.b32.xlu0 %v1321_v9, %s1264_s10 }
  0x26   :  { %680 = vrot.lane.b32.xlu1 %v1241_v10, %s1264_s10 }
  0x27   :  { %678 = vrot.lane.b32.xlu0 %v1319_v8, %s1264_s10 }
  0x2a   :  { %328 = vrot.lane.b32.xlu1 %v1242_v11, %s1265_s11 }
  0x2b   :  { %326 = vrot.lane.b32.xlu0 %v1321_v9, %s1265_s11 }
  0x2e   :  { %763 = vrot.lane.b32.xlu1 %v1242_v11, %s1266_s12 }
  0x2f   :  { %761 = vrot.lane.b32.xlu0 %v1321_v9, %s1266_s12 }
  0x32   :  { %332 = vrot.lane.b32.xlu1 %v1241_v10, %s1265_s11 }
  0x33   :  { %330 = vrot.lane.b32.xlu0 %v1319_v8, %s1265_s11 }
  0x36   :  { %767 = vrot.lane.b32.xlu1 %v1241_v10, %s1266_s12 }
  0x37   :  { %765 = vrot.lane.b32.xlu0 %v1319_v8, %s1266_s12 }
  0x3a   :  { %415 = vrot.lane.b32.xlu1 %v1242_v11, %s1267_s13 }
  0x3b   :  { %413 = vrot.lane.b32.xlu0 %v1321_v9, %s1267_s13 }
  0x3e   :  { %850 = vrot.lane.b32.xlu1 %v1242_v11, %s1268_s14 }
  0x3f   :  { %848 = vrot.lane.b32.xlu0 %v1321_v9, %s1268_s14 }
  0x42   :  { %419 = vrot.lane.b32.xlu1 %v1241_v10, %s1267_s13 }
  0x43   :  { %417 = vrot.lane.b32.xlu0 %v1319_v8, %s1267_s13 }
  0x46   :  { %854 = vrot.lane.b32.xlu1 %v1241_v10, %s1268_s14 }
  0x47   :  { %852 = vrot.lane.b32.xlu0 %v1319_v8, %s1268_s14 }
  0x4a   :  { %931 = vperm.xlu1 %1238, %v921_v15  }
  0x4b   :  { %926 = vperm.xlu0 %1237, %v920_v16  }
  0x4e   :  { %936 = vperm.xlu1 %1238, %v922_v17  }
  0x4f   :  { %941 = vperm.xlu0 %1237, %v923_v18   ;;  %v1260_v18 = vld [vmem:[%s1449_s2 + $0x88] sm:$0xff]  }
  0x7c   :  { %v505_v19 = vpop.permute.xlu1 %504 }
  0x7d   :  { %v501_v20 = vpop.permute.xlu0 %500 }
  0x80   :  { %v507_v21 = vpop.permute.xlu1 %506 }
  0x81   :  { %v503_v22 = vpop.permute.xlu0 %502  ;;  %v510_v25 = vsel %vm508_vm1, %v505_v19, %v507_v21 }
  0x82   :  { %v509_v23 = vsel %vm508_vm1, %v501_v20, %v503_v22 }
  0x83   :  { %1156 = vmatprep.subr.bf16.mxu0 %v509_v23 }
  0x84   :  { %1157 = vmatpush3.bf16.msra.mxu0 %v509_v23  ;;  %v180_v24 = vpop.permute.xlu1 %179 }
  0x85   :  { %1158 = vmatprep.subr.bf16.mxu0 %v510_v25  ;;  %v178_v26 = vpop.permute.xlu0 %177 }
  0x86   :  { %v186_v27 = vsel %vm185_vm2, %v178_v26, %v180_v24 }
  0x87   :  { %1124 = vmatprep.subr.bf16.mxu1 %v186_v27 }
  0x88   :  { %1125 = vmatpush3.bf16.msra.mxu1 %v186_v27  ;;  %1159 = vmatpush3.bf16.msra.mxu0 %v510_v25  ;;  %v590_v29 = vpop.permute.xlu1 %589 }
  0x89   :  { %v588_v31 = vpop.permute.xlu0 %587 }
  0x8a   :  { %v596_v32 = vsel %vm595_vm3, %v588_v31, %v590_v29 }
  0x8b   :  { %1164 = vmatprep.subr.bf16.mxu0 %v596_v32  ;;  %1161 = vmatmul.mubr.msk.bf16.vlgmr.msra.gmra.mrb[0].mxu0 %vm190_vm0, %v1244_v28 }
  0x8c   :  { %1165 = vmatpush3.bf16.msra.mxu0 %v596_v32  ;;  %v184_v33 = vpop.permute.xlu1 %183  ;;  %1168 = vmatprep.mubr.msk.bf16.mxu0 %vm190_vm0, %v1247_v30 }
  0x8d   :  { %v182_v34 = vpop.permute.xlu0 %181 }
  0x8e   :  { %v187_v35 = vsel %vm185_vm2, %v182_v34, %v184_v33 }
  0x8f   :  { %1126 = vmatprep.subr.bf16.mxu1 %v187_v35 }
  0x90   :  { %1127 = vmatpush3.bf16.msra.mxu1 %v187_v35  ;;  %v594_v37 = vpop.permute.xlu1 %593 }
  0x91   :  { %v592_v38 = vpop.permute.xlu0 %591  ;;  %1132 = vmatprep.subr.bf16.mxu1 %v1321_v9 }
  0x92   :  { %v597_v40 = vsel %vm595_vm3, %v592_v38, %v594_v37 }
  0x93   :  { %1166 = vmatprep.subr.bf16.mxu0 %v597_v40  ;;  %1129 = vmatmul.mubr.msk.bf16.vlgmr.msra.gmra.mrb[0].mxu1 %vm190_vm0, %v1246_v36 }
  0x94   :  { %1167 = vmatpush3.bf16.msra.mxu0 %v597_v40  ;;  %v677_v42 = vpop.permute.xlu1 %676  ;;  %1133 = vmatpush3.bf16.msra.mxu1 %v1321_v9 }
  0x95   :  { %v675_v43 = vpop.permute.xlu0 %674  ;;  %1134 = vmatprep.subr.bf16.mxu1 %v1319_v8  ;;  %1136 = vmatprep.mubr.msk.bf16.mxu1 %vm190_vm0, %v1249_v39 }
  0x96   :  { %v683_v45 = vsel %vm682_vm4, %v675_v43, %v677_v42 }
  0x97   :  { %1172 = vmatprep.subr.bf16.mxu0 %v683_v45  ;;  %1169 = vmatmul.mubr.msk.bf16.vlgmr.msra.gmra.mrb[0].mxu0 %vm190_vm0, %v1248_v41 }
  0x98   :  { %1173 = vmatpush3.bf16.msra.mxu0 %v683_v45  ;;  %v681_v46 = vpop.permute.xlu1 %680  ;;  %1135 = vmatpush3.bf16.msra.mxu1 %v1319_v8 }
  0x99   :  { %v679_v47 = vpop.permute.xlu0 %678  ;;  %1176 = vmatprep.mubr.msk.bf16.mxu0 %vm190_vm0, %v1251_v44 }
  0x9a   :  { %v684_v48 = vsel %vm682_vm4, %v679_v47, %v681_v46 }
  0x9b   :  { %1174 = vmatprep.subr.bf16.mxu0 %v684_v48 }
  0x9c   :  { %1175 = vmatpush3.bf16.msra.mxu0 %v684_v48  ;;  %v329_v50 = vpop.permute.xlu1 %328 }
  0x9d   :  { %v327_v52 = vpop.permute.xlu0 %326 }
  0x9e   :  { %v335_v53 = vsel %vm334_vm5, %v327_v52, %v329_v50 }
  0x9f   :  { %1140 = vmatprep.subr.bf16.mxu1 %v335_v53  ;;  %1137 = vmatmul.mubr.msk.bf16.vlgmr.msra.gmra.mrb[0].mxu1 %vm190_vm0, %v1250_v49 }
  0xa0   :  { %1141 = vmatpush3.bf16.msra.mxu1 %v335_v53  ;;  %v764_v55 = vpop.permute.xlu1 %763  ;;  %1144 = vmatprep.mubr.msk.bf16.mxu1 %vm190_vm0, %v1253_v51 }
  0xa1   :  { %v762_v57 = vpop.permute.xlu0 %761 }
  0xa2   :  { %v770_v58 = vsel %vm769_vm6, %v762_v57, %v764_v55 }
  0xa3   :  { %1180 = vmatprep.subr.bf16.mxu0 %v770_v58  ;;  %1177 = vmatmul.mubr.msk.bf16.vlgmr.msra.gmra.mrb[0].mxu0 %vm190_vm0, %v1252_v54 }
  0xa4   :  { %1181 = vmatpush3.bf16.msra.mxu0 %v770_v58  ;;  %v333_v59 = vpop.permute.xlu1 %332  ;;  %1184 = vmatprep.mubr.msk.bf16.mxu0 %vm190_vm0, %v1255_v56 }
  0xa5   :  { %v331_v60 = vpop.permute.xlu0 %330 }
  0xa6   :  { %v336_v61 = vsel %vm334_vm5, %v331_v60, %v333_v59 }
  0xa7   :  { %1142 = vmatprep.subr.bf16.mxu1 %v336_v61 }
  0xa8   :  { %1143 = vmatpush3.bf16.msra.mxu1 %v336_v61  ;;  %v768_v63 = vpop.permute.xlu1 %767 }
  0xa9   :  { %v766_v1 = vpop.permute.xlu0 %765 }
  0xaa   :  { %v771_v2 = vsel %vm769_vm6, %v766_v1, %v768_v63 }
  0xab   :  { %1182 = vmatprep.subr.bf16.mxu0 %v771_v2  ;;  %1145 = vmatmul.mubr.msk.bf16.vlgmr.msra.gmra.mrb[0].mxu1 %vm190_vm0, %v1254_v62 }
  0xac   :  { %1183 = vmatpush3.bf16.msra.mxu0 %v771_v2  ;;  %v416_v4 = vpop.permute.xlu1 %415  ;;  %1152 = vmatprep.mubr.msk.bf16.mxu1 %vm190_vm0, %v1257_v0 }
  0xad   :  { %v414_v6 = vpop.permute.xlu0 %413 }
  0xae   :  { %v422_v7 = vsel %vm421_vm7, %v414_v6, %v416_v4 }
  0xaf   :  { %1148 = vmatprep.subr.bf16.mxu1 %v422_v7  ;;  %1185 = vmatmul.mubr.msk.bf16.vlgmr.msra.gmra.mrb[0].mxu0 %vm190_vm0, %v1256_v3 }
  0xb0   :  { %1149 = vmatpush3.bf16.msra.mxu1 %v422_v7  ;;  %v851_v8 = vpop.permute.xlu1 %850  ;;  %1192 = vmatprep.mubr.msk.bf16.mxu0 %vm190_vm0, %v1259_v5 }
  0xb1   :  { %v849_v9 = vpop.permute.xlu0 %848 }
  0xb2   :  { %v857_v10 = vsel %vm856_vm8, %v849_v9, %v851_v8 }
  0xb3   :  { %1188 = vmatprep.subr.bf16.mxu0 %v857_v10 }
  0xb4   :  { %1189 = vmatpush3.bf16.msra.mxu0 %v857_v10  ;;  %v420_v11 = vpop.permute.xlu1 %419 }
  0xb5   :  { %v418_v12 = vpop.permute.xlu0 %417 }
  0xb6   :  { %v423_v13 = vsel %vm421_vm7, %v418_v12, %v420_v11 }
  0xb7   :  { %1150 = vmatprep.subr.bf16.mxu1 %v423_v13 }
  0xb8   :  { %1151 = vmatpush3.bf16.msra.mxu1 %v423_v13  ;;  %v855_v15 = vpop.permute.xlu1 %854 }
  0xb9   :  { %v853_v16 = vpop.permute.xlu0 %852 }
  0xba   :  { %v858_v17 = vsel %vm856_vm8, %v853_v16, %v855_v15 }
  0xbb   :  { %1153 = vmatmul.mubr.msk.bf16.vlgmr.msra.gmra.mrb[0].mxu1 %vm190_vm0, %v1258_v14  ;;  %1190 = vmatprep.subr.bf16.mxu0 %v858_v17 }
  0xbc   :  { %1191 = vmatpush3.bf16.msra.mxu0 %v858_v17 }
  0xbf   :  { %1193 = vmatmul.mubr.msk.bf16.vlgmr.msra.gmra.mrb[0].mxu0 %vm190_vm0, %v1260_v18 }
  0xc9   :  { %v932_v19 = vpop.permute.xlu1 %931 }
  0xca   :  { %v927_v23 = vpop.permute.xlu0 %926 }
  0xcd   :  { %v937_v26 = vpop.permute.xlu1 %936 }
  0xce   :  { %v942_v36 = vpop.permute.xlu0 %941 }
 0x18e   :  { %v1154_v20 = vpop.f32.mrb[0].mxu1 }
 0x18f   :  { %v466_v21 = vpop.f32.mrb[1].mxu1 }
 0x190   :  { %v1155_v22 = vpop.f32.mrb[2].mxu1 }
 0x191   :  { %v469_v24 = vpop.f32.mrb[3].mxu1 }
 0x192   :  { %v1194_v25 = vpop.f32.mrb[0].mxu0 }
 0x193   :  { %v1196_v27 = vadd.f32 %v1194_v25, %v1154_v20  ;;  %v901_v28 = vpop.f32.mrb[1].mxu0 }
 0x194   :  { %v1197_v29 = vadd.f32 %v901_v28, %v466_v21  ;;  %v1195_v30 = vpop.f32.mrb[2].mxu0 }
 0x195   :  { %v946_v31 = vadd.f32 %v1196_v27, %v937_v26  ;;  %v1198_v32 = vadd.f32 %v1195_v30, %v1155_v22  ;;  %v904_v33 = vpop.f32.mrb[3].mxu0 }
 0x196   :  { %v944_v34 = vadd.f32 %v1197_v29, %v927_v23  ;;  %v1199_v35 = vadd.f32 %v904_v33, %v469_v24 }
 0x197   :  { %v954_v37 = vmul.f32 0.25, %v946_v31  ;;  %v947_v38 = vadd.f32 %v1198_v32, %v942_v36  ;;  %vm950_vm9 = vcmp.gt.f32.partialorder %v946_v31, 0.0 }
 0x198   :  { %v952_v39 = vmul.f32 0.25, %v944_v34  ;;  %v945_v40 = vadd.f32 %v1199_v35, %v932_v19  ;;  %vm948_vm10 = vcmp.gt.f32.partialorder %v944_v34, 0.0 }
 0x199   :  { %vm951_vm11 = vcmp.gt.f32.partialorder %v947_v38, 0.0  ;;  %v955_v41 = vmul.f32 0.25, %v947_v38  ;;  %v958_v43 = vsel %vm950_vm9, %v946_v31, %v954_v37 }
 0x19a   :  { %vm949_vm12 = vcmp.gt.f32.partialorder %v945_v40, 0.0  ;;  %v953_v42 = vmul.f32 0.25, %v945_v40  ;;  %v956_v45 = vsel %vm948_vm10, %v944_v34, %v952_v39 }
 0x19b   :  { %v959_v44 = vsel %vm951_vm11, %v947_v38, %v955_v41 }
 0x19c   :  { %v957_v46 = vsel %vm949_vm12, %v945_v40, %v953_v42  ;;  %v1085_v47 = vpack.c.bf16 %v959_v44, %v958_v43 }
 0x19d   :  { %v1080_v48 = vpack.c.bf16 %v957_v46, %v956_v45 }
 0x19e   :  { %1087 = vst [vmem:[%s1451_s4 + $0x8] sm:$0xff] %v1085_v47  }
 0x19f   :  { %1081 = vst [vmem:[%s1451_s4] sm:$0xff] %v1080_v48  }

// kernel: resnet_forward.14
= control target key start
LH: loop header
LB: loop body
LE: loop exit
PB: predicated region body
PF: predicated region fallthrough
CT: control target
= control target key end

     0   :  { %vm193_vm0 = vcmask 261120   ;;  %s1274_s12 = smov 127   ;;  %s1275_s13 = smov 120   ;;  %v1281_v14 = vmov 0   ;;  %vm511_vm1 = vcmask 990208   ;;  %vm188_vm2 = vcmask 1039360   ;;  %s1470_s0 = inlined_call_operand.vmem [shape: bf16[1,32,256], index: 0, kind: input, shape index: {}, may-alias: {0,1}]   ;;  %s1471_s1 = inlined_call_operand.vmem [shape: bf16[1,32,256], index: 1, kind: input, shape index: {}, may-alias: {0,1}]   ;;  %s1472_s2 = inlined_call_operand.vmem [shape: bf16[9,32,32], index: 2, kind: input, shape index: {}]   ;;  %s1473_s3 = inlined_call_operand.vmem [shape: f32[32,1], index: 3, kind: input, shape index: {}]   ;;  %s1474_s4 = inlined_call_operand.vmem [shape: bf16[32,128], index: 4, kind: input, shape index: {}]   ;;  %s1475_s5 = inlined_call_operand.vmem [shape: bf16[32,128], index: 5, kind: output, shape index: {}]  }
   0x1   :  { %v31_v0 = vld [vmem:[%s1470_s0 + $0x10] sm:$0xf]  ;;  %v33_v1 = vld [vmem:[%s1470_s0 + $0x18] sm:$0xf]  ;;  %v27_v2 = vld [vmem:[%s1470_s0] sm:$0xf]  ;;  %1250 = vset.pattern.permute.xlu1 %v1281_v14  ;;  %1249 = vset.pattern.permute.xlu0 %v1281_v14 }
   0x2   :  { %32 = vst [vmem:[#allocation2 + $0x8] sm:$0xf] %v31_v0  ;;  %34 = vst [vmem:[#allocation2 + $0xc] sm:$0xf] %v33_v1  ;;  %v29_v3 = vld [vmem:[%s1470_s0 + $0x8] sm:$0xf] }
   0x3   :  { %v998_v4 = vld [vmem:[%s1471_s1 + $0x14] sm:$0xf]  ;;  %28 = vst [vmem:[#allocation2] sm:$0xf] %v27_v2  ;;  %30 = vst [vmem:[#allocation2 + $0x4] sm:$0xf] %v29_v3 }
   0x4   :  { %88 = vst [vmem:[#allocation3 + $0x8] sm:$0xf] %v998_v4  ;;  %v999_v5 = vld [vmem:[%s1471_s1 + $0x1c] sm:$0xf]  ;;  %v996_v6 = vld [vmem:[%s1471_s1 + $0x4] sm:$0xf] }
   0x5   :  { %v997_v7 = vld [vmem:[%s1471_s1 + $0xc] sm:$0xf]  ;;  %90 = vst [vmem:[#allocation3 + $0xc] sm:$0xf] %v999_v5  ;;  %84 = vst [vmem:[#allocation3] sm:$0xf] %v996_v6 }
   0x6   :  { %86 = vst [vmem:[#allocation3 + $0x4] sm:$0xf] %v997_v7  ;;  %s1273_s0 = smov 121   ;;  %v1255_v12 = vld [vmem:[%s1472_s2 + $0x40] sm:$0xff]   ;;  %v1257_v13 = vld [vmem:[%s1472_s2 + $0x10] sm:$0xff]   ;;  %s1276_s14 = smov 116  }
   0x7   :  { %1172 = vmatprep.mubr.msk.bf16.mxu0 %vm193_vm0, %v1255_v12  ;;  %1140 = vmatprep.mubr.msk.bf16.mxu1 %vm193_vm0, %v1257_v13  ;;  %s1277_s15 = smov 126   ;;  %s1278_s16 = smov 115   ;;  %v924_v15 = vld [vmem:[%s1473_s3 + $0x8] sm:$0xff]  ;;  %v923_v16 = vld [vmem:[%s1473_s3] sm:$0xff]  ;;  %v925_v17 = vld [vmem:[%s1473_s3 + $0x10] sm:$0xff]  ;;  %vm598_vm3 = vcmask 982016  }
   0x8   :  { %s1279_s17 = smov 122   ;;  %s1280_s18 = smov 114   ;;  %v926_v18 = vld [vmem:[%s1473_s3 + $0x18] sm:$0xff]  ;;  %v1256_v28 = vld [vmem:[%s1472_s2 + $0x48] sm:$0xff]   ;;  %v1259_v30 = vld [vmem:[%s1472_s2 + $0x50] sm:$0xff]   ;;  %vm685_vm4 = vcmask 949248  }
   0x9   :  { %v1336_v8 = vld [vmem:[#allocation2 + $0x8] sm:$0xff]   ;;  %v1258_v36 = vld [vmem:[%s1472_s2 + $0x18] sm:$0xff]   ;;  %v1261_v39 = vld [vmem:[%s1472_s2] sm:$0xff]   ;;  %vm337_vm5 = vcmask 1031168   ;;  %vm772_vm6 = vcmask 941056   ;;  %vm424_vm7 = vcmask 998400  }
   0xa   :  { %v1338_v9 = vld [vmem:[#allocation2] sm:$0xff]   ;;  %507 = vrot.lane.b32.xlu1 %v1336_v8, %s1273_s0  ;;  %v1260_v41 = vld [vmem:[%s1472_s2 + $0x58] sm:$0xff]   ;;  %v1262_v49 = vld [vmem:[%s1472_s2 + $0x8] sm:$0xff]   ;;  %vm859_vm8 = vcmask 932864  }
   0xb   :  { %503 = vrot.lane.b32.xlu0 %v1338_v9, %s1273_s0  ;;  %v1263_v44 = vld [vmem:[%s1472_s2 + $0x60] sm:$0xff]   ;;  %v1264_v54 = vld [vmem:[%s1472_s2 + $0x68] sm:$0xff]   ;;  %v1267_v56 = vld [vmem:[%s1472_s2 + $0x70] sm:$0xff]  }
   0xc   :  { %v1253_v10 = vld [vmem:[#allocation3 + $0x8] sm:$0xff]   ;;  %v1265_v51 = vld [vmem:[%s1472_s2 + $0x20] sm:$0xff]   ;;  %v1266_v62 = vld [vmem:[%s1472_s2 + $0x28] sm:$0xff]  }
   0xd   :  { %v1254_v11 = vld [vmem:[#allocation3] sm:$0xff]   ;;  %v1268_v3 = vld [vmem:[%s1472_s2 + $0x78] sm:$0xff]   ;;  %v1271_v5 = vld [vmem:[%s1472_s2 + $0x80] sm:$0xff]  }
   0xe   :  { %509 = vrot.lane.b32.xlu1 %v1253_v10, %s1273_s0  ;;  %v1269_v0 = vld [vmem:[%s1472_s2 + $0x30] sm:$0xff]   ;;  %v1270_v14 = vld [vmem:[%s1472_s2 + $0x38] sm:$0xff]  }
   0xf   :  { %505 = vrot.lane.b32.xlu0 %v1254_v11, %s1273_s0 }
  0x12   :  { %182 = vrot.lane.b32.xlu1 %v1254_v11, %s1274_s12 }
  0x13   :  { %180 = vrot.lane.b32.xlu0 %v1338_v9, %s1274_s12 }
  0x16   :  { %592 = vrot.lane.b32.xlu1 %v1254_v11, %s1275_s13 }
  0x17   :  { %590 = vrot.lane.b32.xlu0 %v1338_v9, %s1275_s13 }
  0x1a   :  { %186 = vrot.lane.b32.xlu1 %v1253_v10, %s1274_s12 }
  0x1b   :  { %184 = vrot.lane.b32.xlu0 %v1336_v8, %s1274_s12 }
  0x1e   :  { %596 = vrot.lane.b32.xlu1 %v1253_v10, %s1275_s13 }
  0x1f   :  { %594 = vrot.lane.b32.xlu0 %v1336_v8, %s1275_s13 }
  0x22   :  { %679 = vrot.lane.b32.xlu1 %v1254_v11, %s1276_s14 }
  0x23   :  { %677 = vrot.lane.b32.xlu0 %v1338_v9, %s1276_s14 }
  0x26   :  { %683 = vrot.lane.b32.xlu1 %v1253_v10, %s1276_s14 }
  0x27   :  { %681 = vrot.lane.b32.xlu0 %v1336_v8, %s1276_s14 }
  0x2a   :  { %331 = vrot.lane.b32.xlu1 %v1254_v11, %s1277_s15 }
  0x2b   :  { %329 = vrot.lane.b32.xlu0 %v1338_v9, %s1277_s15 }
  0x2e   :  { %766 = vrot.lane.b32.xlu1 %v1254_v11, %s1278_s16 }
  0x2f   :  { %764 = vrot.lane.b32.xlu0 %v1338_v9, %s1278_s16 }
  0x32   :  { %335 = vrot.lane.b32.xlu1 %v1253_v10, %s1277_s15 }
  0x33   :  { %333 = vrot.lane.b32.xlu0 %v1336_v8, %s1277_s15 }
  0x36   :  { %770 = vrot.lane.b32.xlu1 %v1253_v10, %s1278_s16 }
  0x37   :  { %768 = vrot.lane.b32.xlu0 %v1336_v8, %s1278_s16 }
  0x3a   :  { %418 = vrot.lane.b32.xlu1 %v1254_v11, %s1279_s17 }
  0x3b   :  { %416 = vrot.lane.b32.xlu0 %v1338_v9, %s1279_s17 }
  0x3e   :  { %853 = vrot.lane.b32.xlu1 %v1254_v11, %s1280_s18 }
  0x3f   :  { %851 = vrot.lane.b32.xlu0 %v1338_v9, %s1280_s18 }
  0x42   :  { %422 = vrot.lane.b32.xlu1 %v1253_v10, %s1279_s17 }
  0x43   :  { %420 = vrot.lane.b32.xlu0 %v1336_v8, %s1279_s17 }
  0x46   :  { %857 = vrot.lane.b32.xlu1 %v1253_v10, %s1280_s18 }
  0x47   :  { %855 = vrot.lane.b32.xlu0 %v1336_v8, %s1280_s18 }
  0x4a   :  { %934 = vperm.xlu1 %1250, %v924_v15  }
  0x4b   :  { %929 = vperm.xlu0 %1249, %v923_v16  }
  0x4e   :  { %939 = vperm.xlu1 %1250, %v925_v17  }
  0x4f   :  { %944 = vperm.xlu0 %1249, %v926_v18   ;;  %v1272_v18 = vld [vmem:[%s1472_s2 + $0x88] sm:$0xff]  }
  0x7c   :  { %v508_v19 = vpop.permute.xlu1 %507 }
  0x7d   :  { %v504_v20 = vpop.permute.xlu0 %503 }
  0x80   :  { %v510_v21 = vpop.permute.xlu1 %509 }
  0x81   :  { %v506_v22 = vpop.permute.xlu0 %505  ;;  %v513_v25 = vsel %vm511_vm1, %v508_v19, %v510_v21 }
  0x82   :  { %v512_v23 = vsel %vm511_vm1, %v504_v20, %v506_v22 }
  0x83   :  { %1168 = vmatprep.subr.bf16.mxu0 %v512_v23 }
  0x84   :  { %1169 = vmatpush3.bf16.msra.mxu0 %v512_v23  ;;  %v183_v24 = vpop.permute.xlu1 %182 }
  0x85   :  { %1170 = vmatprep.subr.bf16.mxu0 %v513_v25  ;;  %v181_v26 = vpop.permute.xlu0 %180 }
  0x86   :  { %v189_v27 = vsel %vm188_vm2, %v181_v26, %v183_v24  ;;  %v1098_v26 = vld [vmem:[%s1474_s4 + $0x8] sm:$0xff]  }
  0x87   :  { %1136 = vmatprep.subr.bf16.mxu1 %v189_v27 }
  0x88   :  { %1137 = vmatpush3.bf16.msra.mxu1 %v189_v27  ;;  %1171 = vmatpush3.bf16.msra.mxu0 %v513_v25  ;;  %v593_v29 = vpop.permute.xlu1 %592 }
  0x89   :  { %v591_v31 = vpop.permute.xlu0 %590 }
  0x8a   :  { %v599_v32 = vsel %vm598_vm3, %v591_v31, %v593_v29 }
  0x8b   :  { %1176 = vmatprep.subr.bf16.mxu0 %v599_v32  ;;  %1173 = vmatmul.mubr.msk.bf16.vlgmr.msra.gmra.mrb[0].mxu0 %vm193_vm0, %v1256_v28 }
  0x8c   :  { %1177 = vmatpush3.bf16.msra.mxu0 %v599_v32  ;;  %v187_v33 = vpop.permute.xlu1 %186  ;;  %1180 = vmatprep.mubr.msk.bf16.mxu0 %vm193_vm0, %v1259_v30  ;;  %v1081_v30 = vld [vmem:[%s1474_s4] sm:$0xff]  }
  0x8d   :  { %v185_v34 = vpop.permute.xlu0 %184 }
  0x8e   :  { %v190_v35 = vsel %vm188_vm2, %v185_v34, %v187_v33  ;;  %v1086_v33 = vunpack.c.l.bf16 %v1098_v26 }
  0x8f   :  { %1138 = vmatprep.subr.bf16.mxu1 %v190_v35 }
  0x90   :  { %1139 = vmatpush3.bf16.msra.mxu1 %v190_v35  ;;  %v597_v37 = vpop.permute.xlu1 %596 }
  0x91   :  { %v595_v38 = vpop.permute.xlu0 %594  ;;  %1144 = vmatprep.subr.bf16.mxu1 %v1338_v9 }
  0x92   :  { %v600_v40 = vsel %vm598_vm3, %v595_v38, %v597_v37  ;;  %v1087_v37 = vunpack.c.h.bf16 %v1098_v26 }
  0x93   :  { %1178 = vmatprep.subr.bf16.mxu0 %v600_v40  ;;  %1141 = vmatmul.mubr.msk.bf16.vlgmr.msra.gmra.mrb[0].mxu1 %vm193_vm0, %v1258_v36 }
  0x94   :  { %1179 = vmatpush3.bf16.msra.mxu0 %v600_v40  ;;  %v680_v42 = vpop.permute.xlu1 %679  ;;  %1145 = vmatpush3.bf16.msra.mxu1 %v1338_v9 }
  0x95   :  { %v678_v43 = vpop.permute.xlu0 %677  ;;  %1146 = vmatprep.subr.bf16.mxu1 %v1336_v8  ;;  %1148 = vmatprep.mubr.msk.bf16.mxu1 %vm193_vm0, %v1261_v39  ;;  %v1082_v39 = vunpack.c.l.bf16 %v1081_v30 }
  0x96   :  { %v686_v45 = vsel %vm685_vm4, %v678_v43, %v680_v42 }
  0x97   :  { %1184 = vmatprep.subr.bf16.mxu0 %v686_v45  ;;  %1181 = vmatmul.mubr.msk.bf16.vlgmr.msra.gmra.mrb[0].mxu0 %vm193_vm0, %v1260_v41  ;;  %v1083_v41 = vunpack.c.h.bf16 %v1081_v30 }
  0x98   :  { %1185 = vmatpush3.bf16.msra.mxu0 %v686_v45  ;;  %v684_v46 = vpop.permute.xlu1 %683  ;;  %1147 = vmatpush3.bf16.msra.mxu1 %v1336_v8 }
  0x99   :  { %v682_v47 = vpop.permute.xlu0 %681  ;;  %1188 = vmatprep.mubr.msk.bf16.mxu0 %vm193_vm0, %v1263_v44 }
  0x9a   :  { %v687_v48 = vsel %vm685_vm4, %v682_v47, %v684_v46 }
  0x9b   :  { %1186 = vmatprep.subr.bf16.mxu0 %v687_v48 }
  0x9c   :  { %1187 = vmatpush3.bf16.msra.mxu0 %v687_v48  ;;  %v332_v50 = vpop.permute.xlu1 %331 }
  0x9d   :  { %v330_v52 = vpop.permute.xlu0 %329 }
  0x9e   :  { %v338_v53 = vsel %vm337_vm5, %v330_v52, %v332_v50 }
  0x9f   :  { %1152 = vmatprep.subr.bf16.mxu1 %v338_v53  ;;  %1149 = vmatmul.mubr.msk.bf16.vlgmr.msra.gmra.mrb[0].mxu1 %vm193_vm0, %v1262_v49 }
  0xa0   :  { %1153 = vmatpush3.bf16.msra.mxu1 %v338_v53  ;;  %v767_v55 = vpop.permute.xlu1 %766  ;;  %1156 = vmatprep.mubr.msk.bf16.mxu1 %vm193_vm0, %v1265_v51 }
  0xa1   :  { %v765_v57 = vpop.permute.xlu0 %764 }
  0xa2   :  { %v773_v58 = vsel %vm772_vm6, %v765_v57, %v767_v55 }
  0xa3   :  { %1192 = vmatprep.subr.bf16.mxu0 %v773_v58  ;;  %1189 = vmatmul.mubr.msk.bf16.vlgmr.msra.gmra.mrb[0].mxu0 %vm193_vm0, %v1264_v54 }
  0xa4   :  { %1193 = vmatpush3.bf16.msra.mxu0 %v773_v58  ;;  %v336_v59 = vpop.permute.xlu1 %335  ;;  %1196 = vmatprep.mubr.msk.bf16.mxu0 %vm193_vm0, %v1267_v56 }
  0xa5   :  { %v334_v60 = vpop.permute.xlu0 %333 }
  0xa6   :  { %v339_v61 = vsel %vm337_vm5, %v334_v60, %v336_v59 }
  0xa7   :  { %1154 = vmatprep.subr.bf16.mxu1 %v339_v61 }
  0xa8   :  { %1155 = vmatpush3.bf16.msra.mxu1 %v339_v61  ;;  %v771_v63 = vpop.permute.xlu1 %770 }
  0xa9   :  { %v769_v1 = vpop.permute.xlu0 %768 }
  0xaa   :  { %v774_v2 = vsel %vm772_vm6, %v769_v1, %v771_v63 }
  0xab   :  { %1194 = vmatprep.subr.bf16.mxu0 %v774_v2  ;;  %1157 = vmatmul.mubr.msk.bf16.vlgmr.msra.gmra.mrb[0].mxu1 %vm193_vm0, %v1266_v62 }
  0xac   :  { %1195 = vmatpush3.bf16.msra.mxu0 %v774_v2  ;;  %v419_v4 = vpop.permute.xlu1 %418  ;;  %1164 = vmatprep.mubr.msk.bf16.mxu1 %vm193_vm0, %v1269_v0 }
  0xad   :  { %v417_v6 = vpop.permute.xlu0 %416 }
  0xae   :  { %v425_v7 = vsel %vm424_vm7, %v417_v6, %v419_v4 }
  0xaf   :  { %1160 = vmatprep.subr.bf16.mxu1 %v425_v7  ;;  %1197 = vmatmul.mubr.msk.bf16.vlgmr.msra.gmra.mrb[0].mxu0 %vm193_vm0, %v1268_v3 }
  0xb0   :  { %1161 = vmatpush3.bf16.msra.mxu1 %v425_v7  ;;  %v854_v8 = vpop.permute.xlu1 %853  ;;  %1204 = vmatprep.mubr.msk.bf16.mxu0 %vm193_vm0, %v1271_v5 }
  0xb1   :  { %v852_v9 = vpop.permute.xlu0 %851 }
  0xb2   :  { %v860_v10 = vsel %vm859_vm8, %v852_v9, %v854_v8 }
  0xb3   :  { %1200 = vmatprep.subr.bf16.mxu0 %v860_v10 }
  0xb4   :  { %1201 = vmatpush3.bf16.msra.mxu0 %v860_v10  ;;  %v423_v11 = vpop.permute.xlu1 %422 }
  0xb5   :  { %v421_v12 = vpop.permute.xlu0 %420 }
  0xb6   :  { %v426_v13 = vsel %vm424_vm7, %v421_v12, %v423_v11 }
  0xb7   :  { %1162 = vmatprep.subr.bf16.mxu1 %v426_v13 }
  0xb8   :  { %1163 = vmatpush3.bf16.msra.mxu1 %v426_v13  ;;  %v858_v15 = vpop.permute.xlu1 %857 }
  0xb9   :  { %v856_v16 = vpop.permute.xlu0 %855 }
  0xba   :  { %v861_v17 = vsel %vm859_vm8, %v856_v16, %v858_v15 }
  0xbb   :  { %1165 = vmatmul.mubr.msk.bf16.vlgmr.msra.gmra.mrb[0].mxu1 %vm193_vm0, %v1270_v14  ;;  %1202 = vmatprep.subr.bf16.mxu0 %v861_v17 }
  0xbc   :  { %1203 = vmatpush3.bf16.msra.mxu0 %v861_v17 }
  0xbf   :  { %1205 = vmatmul.mubr.msk.bf16.vlgmr.msra.gmra.mrb[0].mxu0 %vm193_vm0, %v1272_v18 }
  0xc9   :  { %v935_v19 = vpop.permute.xlu1 %934 }
  0xca   :  { %v930_v23 = vpop.permute.xlu0 %929 }
  0xcd   :  { %v940_v27 = vpop.permute.xlu1 %939 }
  0xce   :  { %v945_v42 = vpop.permute.xlu0 %944 }
 0x18e   :  { %v1166_v20 = vpop.f32.mrb[0].mxu1 }
 0x18f   :  { %v469_v21 = vpop.f32.mrb[1].mxu1 }
 0x190   :  { %v1167_v22 = vpop.f32.mrb[2].mxu1 }
 0x191   :  { %v472_v24 = vpop.f32.mrb[3].mxu1 }
 0x192   :  { %v1206_v25 = vpop.f32.mrb[0].mxu0 }
 0x193   :  { %v1208_v28 = vadd.f32 %v1206_v25, %v1166_v20  ;;  %v904_v29 = vpop.f32.mrb[1].mxu0 }
 0x194   :  { %v1209_v31 = vadd.f32 %v904_v29, %v469_v21  ;;  %v1207_v32 = vpop.f32.mrb[2].mxu0 }
 0x195   :  { %v949_v34 = vadd.f32 %v1208_v28, %v940_v27  ;;  %v1210_v35 = vadd.f32 %v1207_v32, %v1167_v22  ;;  %v907_v36 = vpop.f32.mrb[3].mxu0 }
 0x196   :  { %v947_v38 = vadd.f32 %v1209_v31, %v930_v23  ;;  %v1211_v40 = vadd.f32 %v907_v36, %v472_v24 }
 0x197   :  { %v950_v43 = vadd.f32 %v1210_v35, %v945_v42  ;;  %v961_v45 = vadd.f32 %v1086_v33, %v949_v34 }
 0x198   :  { %v948_v44 = vadd.f32 %v1211_v40, %v935_v19  ;;  %v959_v47 = vadd.f32 %v1082_v39, %v947_v38 }
 0x199   :  { %v962_v46 = vadd.f32 %v1087_v37, %v950_v43 }
 0x19a   :  { %v960_v48 = vadd.f32 %v1083_v41, %v948_v44 }
 0x19b   :  { %v1096_v49 = vpack.c.bf16 %v962_v46, %v961_v45 }
 0x19c   :  { %v1091_v50 = vpack.c.bf16 %v960_v48, %v959_v47 }
 0x19d   :  { %1099 = vst [vmem:[%s1475_s5 + $0x8] sm:$0xff] %v1096_v49  }
 0x19e   :  { %1092 = vst [vmem:[%s1475_s5] sm:$0xff] %v1091_v50  }

// kernel: resnet_forward.17
= control target key start
LH: loop header
LB: loop body
LE: loop exit
PB: predicated region body
PF: predicated region fallthrough
CT: control target
= control target key end

     0   :  { %vm208_vm0 = vcmask 261120   ;;  %s996_s7 = smov 127   ;;  %s997_s9 = smov 122   ;;  %v998_v16 = vmov 0   ;;  %vm203_vm1 = vcmask 1039360   ;;  %vm420_vm2 = vcmask 1006592   ;;  %s1166_s0 = inlined_call_operand.vmem [shape: bf16[1,32,256], index: 0, kind: input, shape index: {}, may-alias: {0,1}]   ;;  %s1167_s1 = inlined_call_operand.vmem [shape: bf16[1,32,256], index: 1, kind: input, shape index: {}, may-alias: {0,1}]   ;;  %s1168_s2 = inlined_call_operand.vmem [shape: bf16[4,64,32], index: 2, kind: input, shape index: {}]   ;;  %s1169_s3 = inlined_call_operand.vmem [shape: f32[64,1], index: 3, kind: input, shape index: {}]   ;;  %s1170_s4 = inlined_call_operand.vmem [shape: bf16[64,128], index: 4, kind: output, shape index: {}]  }
   0x1   :  { %v26_v0 = vld [vmem:[%s1166_s0] sm:$0xf]  ;;  %v28_v1 = vld [vmem:[%s1166_s0 + $0x8] sm:$0xf]  ;;  %v770_v2 = vld [vmem:[%s1167_s1 + $0x4] sm:$0xf]  ;;  %974 = vset.pattern.permute.xlu1 %v998_v16  ;;  %973 = vset.pattern.permute.xlu0 %v998_v16 }
   0x2   :  { %27 = vst [vmem:[#allocation2] sm:$0xf] %v26_v0  ;;  %29 = vst [vmem:[#allocation2 + $0x4] sm:$0xf] %v28_v1  ;;  %v771_v3 = vld [vmem:[%s1167_s1 + $0xc] sm:$0xf] }
   0x3   :  { %v772_v4 = vld [vmem:[%s1167_s1 + $0x14] sm:$0xf]  ;;  %83 = vst [vmem:[#allocation3] sm:$0xf] %v770_v2  ;;  %85 = vst [vmem:[#allocation3 + $0x4] sm:$0xf] %v771_v3 }
   0x4   :  { %87 = vst [vmem:[#allocation3 + $0x8] sm:$0xf] %v772_v4  ;;  %v773_v5 = vld [vmem:[%s1167_s1 + $0x1c] sm:$0xf]  ;;  %v30_v6 = vld [vmem:[%s1166_s0 + $0x10] sm:$0xf] }
   0x5   :  { %v32_v7 = vld [vmem:[%s1166_s0 + $0x18] sm:$0xf]  ;;  %89 = vst [vmem:[#allocation3 + $0xc] sm:$0xf] %v773_v5  ;;  %31 = vst [vmem:[#allocation2 + $0x8] sm:$0xf] %v30_v6 }
   0x6   :  { %33 = vst [vmem:[#allocation2 + $0xc] sm:$0xf] %v32_v7  ;;  %v979_v8 = vld [vmem:[%s1168_s2 + $0x20] sm:$0xff]   ;;  %s995_s1 = smov 123   ;;  %v638_v14 = vld [vmem:[%s1169_s3 + $0x8] sm:$0xff]  ;;  %v639_v17 = vld [vmem:[%s1169_s3 + $0x10] sm:$0xff] }
   0x7   :  { %901 = vmatprep.mubr.msk.bf16.mxu1 %vm208_vm0, %v979_v8  ;;  %v981_v12 = vld [vmem:[%s1168_s2 + $0x40] sm:$0xff]   ;;  %v640_v18 = vld [vmem:[%s1169_s3 + $0x18] sm:$0xff]  ;;  %v642_v20 = vld [vmem:[%s1169_s3 + $0x28] sm:$0xff]  ;;  %vm547_vm3 = vcmask 998400  }
   0x8   :  { %925 = vmatprep.mubr.msk.bf16.mxu0 %vm208_vm0, %v981_v12  ;;  %v637_v15 = vld [vmem:[%s1169_s3] sm:$0xff]  ;;  %v643_v21 = vld [vmem:[%s1169_s3 + $0x30] sm:$0xff]  ;;  %v644_v22 = vld [vmem:[%s1169_s3 + $0x38] sm:$0xff] }
   0x9   :  { %v1051_v9 = vld [vmem:[#allocation2] sm:$0xff]   ;;  %v980_v32 = vld [vmem:[%s1168_s2 + $0x28] sm:$0xff]   ;;  %v983_v35 = vld [vmem:[%s1168_s2 + $0x30] sm:$0xff]  }
   0xa   :  { %412 = vrot.lane.b32.xlu1 %v1051_v9, %s995_s1  ;;  %195 = vrot.lane.b32.xlu0 %v1051_v9, %s996_s7  ;;  %v976_v10 = vld [vmem:[#allocation3] sm:$0xff]   ;;  %v641_v19 = vld [vmem:[%s1169_s3 + $0x20] sm:$0xff]  ;;  %v982_v37 = vld [vmem:[%s1168_s2 + $0x48] sm:$0xff]  }
   0xb   :  { %v985_v38 = vld [vmem:[%s1168_s2 + $0x50] sm:$0xff]   ;;  %v984_v42 = vld [vmem:[%s1168_s2 + $0x38] sm:$0xff]   ;;  %v987_v43 = vld [vmem:[%s1168_s2] sm:$0xff]  }
   0xc   :  { %v977_v11 = vld [vmem:[#allocation3 + $0x8] sm:$0xff]   ;;  %v989_v48 = vld [vmem:[%s1168_s2 + $0x60] sm:$0xff]   ;;  %v988_v49 = vld [vmem:[%s1168_s2 + $0x8] sm:$0xff]  }
   0xd   :  { %v1059_v13 = vld [vmem:[#allocation2 + $0x8] sm:$0xff]   ;;  %v986_v47 = vld [vmem:[%s1168_s2 + $0x58] sm:$0xff]   ;;  %v991_v50 = vld [vmem:[%s1168_s2 + $0x10] sm:$0xff]  }
   0xe   :  { %414 = vrot.lane.b32.xlu1 %v976_v10, %s995_s1  ;;  %197 = vrot.lane.b32.xlu0 %v976_v10, %s996_s7  ;;  %v990_v51 = vld [vmem:[%s1168_s2 + $0x68] sm:$0xff]   ;;  %v993_v52 = vld [vmem:[%s1168_s2 + $0x70] sm:$0xff]  }
   0xf   :  { %v992_v53 = vld [vmem:[%s1168_s2 + $0x18] sm:$0xff]  }
  0x10   :  { %v994_v54 = vld [vmem:[%s1168_s2 + $0x78] sm:$0xff]  }
  0x12   :  { %201 = vrot.lane.b32.xlu1 %v977_v11, %s996_s7  ;;  %199 = vrot.lane.b32.xlu0 %v1059_v13, %s996_s7 }
  0x16   :  { %418 = vrot.lane.b32.xlu1 %v977_v11, %s995_s1  ;;  %416 = vrot.lane.b32.xlu0 %v1059_v13, %s995_s1 }
  0x1a   :  { %541 = vrot.lane.b32.xlu1 %v976_v10, %s997_s9  ;;  %539 = vrot.lane.b32.xlu0 %v1051_v9, %s997_s9 }
  0x1e   :  { %545 = vrot.lane.b32.xlu1 %v977_v11, %s997_s9  ;;  %543 = vrot.lane.b32.xlu0 %v1059_v13, %s997_s9 }
  0x22   :  { %652 = vperm.xlu1 %974, %v638_v14   ;;  %647 = vperm.xlu0 %973, %v637_v15  }
  0x26   :  { %657 = vperm.xlu1 %974, %v639_v17   ;;  %662 = vperm.xlu0 %973, %v640_v18  }
  0x2a   :  { %667 = vperm.xlu1 %974, %v641_v19   ;;  %672 = vperm.xlu0 %973, %v642_v20  }
  0x2e   :  { %677 = vperm.xlu1 %974, %v643_v21   ;;  %682 = vperm.xlu0 %973, %v644_v22  }
  0x7c   :  { %v413_v23 = vpop.permute.xlu1 %412  ;;  %v196_v24 = vpop.permute.xlu0 %195 }
  0x80   :  { %v415_v25 = vpop.permute.xlu1 %414  ;;  %v198_v26 = vpop.permute.xlu0 %197 }
  0x81   :  { %v204_v27 = vsel %vm203_vm1, %v196_v24, %v198_v26  ;;  %v421_v28 = vsel %vm420_vm2, %v413_v23, %v415_v25 }
  0x82   :  { %897 = vmatprep.subr.bf16.mxu1 %v204_v27  ;;  %921 = vmatprep.subr.bf16.mxu0 %v421_v28 }
  0x83   :  { %898 = vmatpush3.bf16.msra.mxu1 %v204_v27  ;;  %922 = vmatpush3.bf16.msra.mxu0 %v421_v28 }
  0x84   :  { %v202_v29 = vpop.permute.xlu1 %201  ;;  %v200_v30 = vpop.permute.xlu0 %199 }
  0x85   :  { %v205_v31 = vsel %vm203_vm1, %v200_v30, %v202_v29 }
  0x86   :  { %899 = vmatprep.subr.bf16.mxu1 %v205_v31 }
  0x87   :  { %900 = vmatpush3.bf16.msra.mxu1 %v205_v31 }
  0x88   :  { %v419_v33 = vpop.permute.xlu1 %418  ;;  %v417_v34 = vpop.permute.xlu0 %416  ;;  %909 = vmatprep.subr.bf16.mxu1 %v1051_v9 }
  0x89   :  { %v422_v36 = vsel %vm420_vm2, %v417_v34, %v419_v33 }
  0x8a   :  { %902 = vmatmul.mubr.msk.bf16.vlgmr.msra.gmra.mrb[0].mxu1 %vm208_vm0, %v980_v32  ;;  %923 = vmatprep.subr.bf16.mxu0 %v422_v36 }
  0x8b   :  { %924 = vmatpush3.bf16.msra.mxu0 %v422_v36  ;;  %910 = vmatpush3.bf16.msra.mxu1 %v1051_v9 }
  0x8c   :  { %v542_v39 = vpop.permute.xlu1 %541  ;;  %v540_v40 = vpop.permute.xlu0 %539  ;;  %905 = vmatprep.mubr.msk.bf16.mxu1 %vm208_vm0, %v983_v35  ;;  %911 = vmatprep.subr.bf16.mxu1 %v1059_v13 }
  0x8d   :  { %v548_v41 = vsel %vm547_vm3, %v540_v40, %v542_v39 }
  0x8e   :  { %926 = vmatmul.mubr.msk.bf16.vlgmr.msra.gmra.mrb[0].mxu0 %vm208_vm0, %v982_v37  ;;  %933 = vmatprep.subr.bf16.mxu0 %v548_v41 }
  0x8f   :  { %934 = vmatpush3.bf16.msra.mxu0 %v548_v41  ;;  %929 = vmatprep.mubr.msk.bf16.mxu0 %vm208_vm0, %v985_v38 }
  0x90   :  { %v546_v44 = vpop.permute.xlu1 %545  ;;  %v544_v45 = vpop.permute.xlu0 %543  ;;  %912 = vmatpush3.bf16.msra.mxu1 %v1059_v13 }
  0x91   :  { %v549_v46 = vsel %vm547_vm3, %v544_v45, %v546_v44 }
  0x92   :  { %906 = vmatmul.mubr.msk.bf16.gmra.mrb[4].mxu1 %vm208_vm0, %v984_v42  ;;  %935 = vmatprep.subr.bf16.mxu0 %v549_v46 }
  0x93   :  { %936 = vmatpush3.bf16.msra.mxu0 %v549_v46  ;;  %913 = vmatprep.mubr.msk.bf16.mxu1 %vm208_vm0, %v987_v43 }
  0x96   :  { %930 = vmatmul.mubr.msk.bf16.gmra.mrb[4].mxu0 %vm208_vm0, %v986_v47 }
  0x97   :  { %937 = vmatprep.mubr.msk.bf16.mxu0 %vm208_vm0, %v989_v48 }
  0x9a   :  { %914 = vmatmul.mubr.msk.bf16.vlgmr.msra.gmra.mrb[0].mxu1 %vm208_vm0, %v988_v49 }
  0x9b   :  { %917 = vmatprep.mubr.msk.bf16.mxu1 %vm208_vm0, %v991_v50 }
  0x9e   :  { %938 = vmatmul.mubr.msk.bf16.vlgmr.msra.gmra.mrb[0].mxu0 %vm208_vm0, %v990_v51 }
  0x9f   :  { %941 = vmatprep.mubr.msk.bf16.mxu0 %vm208_vm0, %v993_v52 }
  0xa1   :  { %v653_v55 = vpop.permute.xlu1 %652  ;;  %v648_v56 = vpop.permute.xlu0 %647 }
  0xa2   :  { %918 = vmatmul.mubr.msk.bf16.gmra.mrb[4].mxu1 %vm208_vm0, %v992_v53 }
  0xa5   :  { %v658_v59 = vpop.permute.xlu1 %657  ;;  %v663_v62 = vpop.permute.xlu0 %662 }
  0xa6   :  { %942 = vmatmul.mubr.msk.bf16.gmra.mrb[4].mxu0 %vm208_vm0, %v994_v54 }
  0xa9   :  { %v668_v7 = vpop.permute.xlu1 %667  ;;  %v673_v14 = vpop.permute.xlu0 %672 }
  0xad   :  { %v678_v27 = vpop.permute.xlu1 %677  ;;  %v683_v36 = vpop.permute.xlu0 %682 }
 0x16d   :  { %v915_v57 = vpop.f32.mrb[0].mxu1 }
 0x16e   :  { %v352_v58 = vpop.f32.mrb[1].mxu1 }
 0x16f   :  { %v916_v60 = vpop.f32.mrb[2].mxu1 }
 0x170   :  { %v355_v61 = vpop.f32.mrb[3].mxu1 }
 0x171   :  { %v939_v63 = vpop.f32.mrb[0].mxu0 }
 0x172   :  { %v945_v0 = vadd.f32 %v939_v63, %v915_v57  ;;  %v598_v1 = vpop.f32.mrb[1].mxu0 }
 0x173   :  { %v946_v2 = vadd.f32 %v598_v1, %v352_v58  ;;  %v940_v3 = vpop.f32.mrb[2].mxu0 }
 0x174   :  { %v687_v4 = vadd.f32 %v945_v0, %v658_v59  ;;  %v947_v5 = vadd.f32 %v940_v3, %v916_v60  ;;  %v601_v6 = vpop.f32.mrb[3].mxu0 }
 0x175   :  { %v685_v8 = vadd.f32 %v946_v2, %v648_v56  ;;  %v948_v9 = vadd.f32 %v601_v6, %v355_v61  ;;  %v919_v10 = vpop.f32.mrb[4].mxu1 }
 0x176   :  { %v703_v11 = vmul.f32 0.25, %v687_v4  ;;  %v688_v12 = vadd.f32 %v947_v5, %v663_v62  ;;  %v368_v13 = vpop.f32.mrb[5].mxu1  ;;  %vm695_vm4 = vcmp.gt.f32.partialorder %v687_v4, 0.0 }
 0x177   :  { %v701_v15 = vmul.f32 0.25, %v685_v8  ;;  %v686_v16 = vadd.f32 %v948_v9, %v653_v55  ;;  %v920_v17 = vpop.f32.mrb[6].mxu1  ;;  %vm693_vm5 = vcmp.gt.f32.partialorder %v685_v8, 0.0 }
 0x178   :  { %vm696_vm6 = vcmp.gt.f32.partialorder %v688_v12, 0.0  ;;  %v704_v18 = vmul.f32 0.25, %v688_v12  ;;  %v371_v19 = vpop.f32.mrb[7].mxu1  ;;  %v711_v22 = vsel %vm695_vm4, %v687_v4, %v703_v11 }
 0x179   :  { %vm694_vm7 = vcmp.gt.f32.partialorder %v686_v16, 0.0  ;;  %v702_v20 = vmul.f32 0.25, %v686_v16  ;;  %v943_v21 = vpop.f32.mrb[4].mxu0  ;;  %v709_v26 = vsel %vm693_vm5, %v685_v8, %v701_v15 }
 0x17a   :  { %v712_v23 = vsel %vm696_vm6, %v688_v12, %v704_v18  ;;  %v949_v24 = vadd.f32 %v943_v21, %v919_v10  ;;  %v614_v25 = vpop.f32.mrb[5].mxu0 }
 0x17b   :  { %v858_v28 = vpack.c.bf16 %v712_v23, %v711_v22  ;;  %v710_v29 = vsel %vm694_vm7, %v686_v16, %v702_v20  ;;  %v950_v30 = vadd.f32 %v614_v25, %v368_v13  ;;  %v944_v31 = vpop.f32.mrb[6].mxu0 }
 0x17c   :  { %v853_v32 = vpack.c.bf16 %v710_v29, %v709_v26  ;;  %v691_v33 = vadd.f32 %v949_v24, %v678_v27  ;;  %v951_v34 = vadd.f32 %v944_v31, %v920_v17  ;;  %v617_v35 = vpop.f32.mrb[7].mxu0 }
 0x17d   :  { %870 = vst [vmem:[%s1170_s4 + $0x8] sm:$0xff] %v858_v28   ;;  %v689_v37 = vadd.f32 %v950_v30, %v668_v7  ;;  %v952_v38 = vadd.f32 %v617_v35, %v371_v19 }
 0x17e   :  { %854 = vst [vmem:[%s1170_s4] sm:$0xff] %v853_v32   ;;  %v707_v39 = vmul.f32 0.25, %v691_v33  ;;  %v692_v40 = vadd.f32 %v951_v34, %v683_v36  ;;  %vm699_vm8 = vcmp.gt.f32.partialorder %v691_v33, 0.0 }
 0x17f   :  { %v705_v41 = vmul.f32 0.25, %v689_v37  ;;  %v690_v42 = vadd.f32 %v952_v38, %v673_v14  ;;  %vm697_vm9 = vcmp.gt.f32.partialorder %v689_v37, 0.0 }
 0x180   :  { %vm700_vm10 = vcmp.gt.f32.partialorder %v692_v40, 0.0  ;;  %v708_v43 = vmul.f32 0.25, %v692_v40  ;;  %v715_v45 = vsel %vm699_vm8, %v691_v33, %v707_v39 }
 0x181   :  { %vm698_vm11 = vcmp.gt.f32.partialorder %v690_v42, 0.0  ;;  %v706_v44 = vmul.f32 0.25, %v690_v42  ;;  %v713_v47 = vsel %vm697_vm9, %v689_v37, %v705_v41 }
 0x182   :  { %v716_v46 = vsel %vm700_vm10, %v692_v40, %v708_v43 }
 0x183   :  { %v868_v48 = vpack.c.bf16 %v716_v46, %v715_v45  ;;  %v714_v49 = vsel %vm698_vm11, %v690_v42, %v706_v44 }
 0x184   :  { %v863_v50 = vpack.c.bf16 %v714_v49, %v713_v47 }
 0x185   :  { %872 = vst [vmem:[%s1170_s4 + $0x18] sm:$0xff] %v868_v48  }
 0x186   :  { %871 = vst [vmem:[%s1170_s4 + $0x10] sm:$0xff] %v863_v50  }

// kernel: resnet_forward.18
= control target key start
LH: loop header
LB: loop body
LE: loop exit
PB: predicated region body
PF: predicated region fallthrough
CT: control target
= control target key end

     0   :  { %s1066_s15 = smov 0   ;;  %s1068_s16 = smov 0   ;;  %s1210_s0 = inlined_call_operand.vmem [shape: bf16[1,16,384], index: 0, kind: input, shape index: {}, may-alias: {0,1}]   ;;  %s1211_s1 = inlined_call_operand.vmem [shape: bf16[1,16,384], index: 1, kind: input, shape index: {}, may-alias: {0,1}]   ;;  %s1212_s2 = inlined_call_operand.vmem [shape: bf16[4,32,16], index: 2, kind: input, shape index: {}]   ;;  %s1213_s3 = inlined_call_operand.vmem [shape: f32[32,1], index: 3, kind: input, shape index: {}]   ;;  %s1214_s4 = inlined_call_operand.vmem [shape: bf16[32,256], index: 4, kind: output, shape index: {}]  }
   0x1   :  { %s1070_s17 = smov 0   ;;  %s1072_s18 = smov 0  }
   0x2   :  { %s1074_s19 = smov 0  }
   0x3 LB: > { %s826_s20 = sadd.s32 4294967295, %s1035_s19   ;;  %s1093_s21 = sadd.s32 1, %s1035_s19   ;;  %s1035_s19 = sphi %s1074_s19, %s1221_s19   ;;  %s1031_s18 = sphi %s1072_s18, %s1220_s18   ;;  %s1027_s17 = sphi %s1070_s17, %s1219_s17   ;;  %s1023_s16 = sphi %s1068_s16, %s1218_s16   ;;  %s1019_s15 = sphi %s1066_s15, %s1217_s15  }
   0x4   : > { %s18_s22 = ssub.s32 %s1035_s19, %s1093_s21  ;;  %s21_s23 = sadd.s32 1, %s1031_s18 }
   0x5   : > { %p19_p0 = scmp.eq.s32.totalorder %s18_s22, 0  ;;  %p28_p1 = scmp.ne.s32.totalorder %s1031_s18, %s1027_s17 }
   0x6   : > { %p29_p2 = scmp.eq.s32.totalorder %s1035_s19, 0  ;;  %s45_s24 = sadd.s32 1, %s1093_s21 }
   0x7   : > { %s1103_s25 = scalar_select %p19_p0, %s1031_s18, %s21_s23  }
   0x8   : > { %p30_p3 = por %p29_p2, %p28_p1  ;;  %s46_s26 = ssub.s32 %s1093_s21, %s45_s24 }
   0x9   : > { %p47_p4 = scmp.eq.s32.totalorder %s46_s26, 0  ;;  %s49_s27 = sadd.s32 1, %s1023_s16 }
   0xa   : > { %p56_p5 = scmp.ne.s32.totalorder %s1023_s16, %s1019_s15  ;;  %p128_p6 = scmp.eq.s32.totalorder %s826_s20, 1 }
   0xb   : > { %s1112_s28 = scalar_select %p47_p4, %s1023_s16, %s49_s27  }
   0xc   : > { %p1114_p7 = por %p56_p5, %p29_p2  ;;  %p1118_p8 = por %p128_p6, %p28_p1 }
   0xd   : > { %p829_p9 = scmp.ge.s32.totalorder %s1035_s19, 2 }
   0xf   : > { %156 = sbr.rel (%p829_p9) target bundleno = 36 (0x24), region = 24 }
  0x16   : > { %159 = sbr.rel (!%p30_p3) target bundleno = 29 (0x1d), region = 28  ;;  %s161_s5 = sand.u32 (%p30_p3), 1, %s1031_s18  }
  0x17   : > { %s831_s6 = sshll.u32 (%p30_p3), %s1035_s19, 2  ;;  %s830_s7 = sshll.u32 (%p30_p3), %s161_s5, 3 }
  0x18   : > { %s165_s10 = scalar_lea.vmem (%p30_p3), %s1210_s0, %s831_s6  ;;  %s163_s11 = scalar_lea.vmem (%p30_p3), [#allocation2], %s830_s7 }
  0x19   : > { %v181_v0 = vld [vmem:[%s165_s10] sm:$0xf] (%p30_p3)  ;;  %v183_v1 = vld [vmem:[%s165_s10 + $0xc] sm:$0xf] (%p30_p3) }
  0x1a   : > { %182 = vst [vmem:[%s163_s11] sm:$0xf] (%p30_p3), %v181_v0  ;;  %184 = vst [vmem:[%s163_s11 + $0x4] sm:$0xf] (%p30_p3), %v183_v1 }
  0x1d PF: > { %211 = sbr.rel (!%p1114_p7) target bundleno = 36 (0x24), region = 69  ;;  %s213_s12 = sand.u32 (%p1114_p7), 1, %s1023_s16  }
  0x1e   : > { %s833_s13 = sshll.u32 (%p1114_p7), %s1035_s19, 2  ;;  %s832_s14 = sshll.u32 (%p1114_p7), %s213_s12, 3 }
  0x1f   : > { %s770_s24 = scalar_lea.vmem (%p1114_p7), %s1211_s1, %s833_s13  ;;  %s215_s26 = scalar_lea.vmem (%p1114_p7), [#allocation3], %s832_s14 }
  0x20   : > { %v834_v2 = vld [vmem:[%s770_s24 + $0x4] sm:$0xf] (%p1114_p7)  ;;  %v835_v3 = vld [vmem:[%s770_s24 + $0x10] sm:$0xf] (%p1114_p7) }
  0x21   : > { %235 = vst [vmem:[%s215_s26] sm:$0xf] (%p1114_p7), %v834_v2  ;;  %237 = vst [vmem:[%s215_s26 + $0x4] sm:$0xf] (%p1114_p7), %v835_v3 }
  0x24 PF: > { %p836_p10 = scmp.ge.s32.totalorder %s1035_s19, 1  ;;  %p263_p11 = scmp.lt.s32.totalorder %s1035_s19, 3 }
  0x26   : > { %p264_p12 = pnand %p836_p10, %p263_p11 }
  0x27   : > { %s270_s27 = sand.u32 (!%p264_p12), 1, %s1027_s17   ;;  %v989_v4 = vld [vmem:[%s1212_s2 + $0x10] sm:$0xff] (!%p264_p12)   ;;  %vm348_vm0 = vcmask (!%p264_p12), 130048   ;;  %s277_s7 = sand.u32 (!%p264_p12), 1, %s1019_s15   ;;  %v990_v6 = vld [vmem:[%s1212_s2 + $0x20] sm:$0xff] (!%p264_p12)   ;;  %v1040_v8 = vmov (!%p264_p12), 0  }
  0x28   : > { %267 = sbr.rel (%p264_p12) target bundleno = 413 (0x19d), region = 110  ;;  %s837_s29 = sshll.u32 (!%p264_p12), %s270_s27, 3  ;;  %907 = vmatprep.mubr.msk.bf16.mxu1 (!%p264_p12), %vm348_vm0, %v989_v4  ;;  %919 = vmatprep.mubr.msk.bf16.mxu0 (!%p264_p12), %vm348_vm0, %v990_v6  ;;  %v632_v9 = vld [vmem:[%s1213_s3 + $0x8] sm:$0xff] (!%p264_p12)  ;;  %v631_v10 = vld [vmem:[%s1213_s3] sm:$0xff] (!%p264_p12)  ;;  %v633_v11 = vld [vmem:[%s1213_s3 + $0x10] sm:$0xff] (!%p264_p12)  ;;  %vm345_vm1 = vcmask (!%p264_p12), 1039360  }
  0x29   : > { %s272_s8 = scalar_lea.vmem (!%p264_p12), [#allocation2], %s837_s29  ;;  %s838_s9 = sshll.u32 (!%p264_p12), %s277_s7, 3  ;;  %986 = vset.pattern.permute.xlu1 (!%p264_p12), %v1040_v8  ;;  %985 = vset.pattern.permute.xlu0 (!%p264_p12), %v1040_v8  ;;  %v634_v12 = vld [vmem:[%s1213_s3 + $0x18] sm:$0xff] (!%p264_p12)  ;;  %vm488_vm2 = vcmask (!%p264_p12), 973824   ;;  %v992_v20 = vld [vmem:[%s1212_s2 + $0x28] sm:$0xff] (!%p264_p12)   ;;  %vm569_vm3 = vcmask (!%p264_p12), 965632  }
  0x2a   : > { %v987_v5 = vld [vmem:[%s272_s8] sm:$0xff] (!%p264_p12)   ;;  %s1037_s12 = smov (!%p264_p12), 119   ;;  %s1038_s13 = smov (!%p264_p12), 127   ;;  %v991_v19 = vld [vmem:[%s1212_s2 + $0x18] sm:$0xff] (!%p264_p12)   ;;  %v994_v25 = vld [vmem:[%s1212_s2 + $0x30] sm:$0xff] (!%p264_p12)  }
  0x2b   : > { %484 = vrot.lane.b32.xlu1 (!%p264_p12), %v987_v5, %s1037_s12  ;;  %341 = vrot.lane.b32.xlu0 (!%p264_p12), %v987_v5, %s1038_s13  ;;  %s279_s14 = scalar_lea.vmem (!%p264_p12), [#allocation3], %s838_s9  ;;  %s1039_s15 = smov (!%p264_p12), 118   ;;  %v993_v23 = vld [vmem:[%s1212_s2] sm:$0xff] (!%p264_p12)   ;;  %v995_v26 = vld [vmem:[%s1212_s2 + $0x8] sm:$0xff] (!%p264_p12)  }
  0x2c   : > { %v988_v7 = vld [vmem:[%s279_s14] sm:$0xff] (!%p264_p12)   ;;  %s839_s29 = sshll.u32 (!%p264_p12), %s270_s27, 4 }
  0x2d   : > { %v996_v27 = vld [vmem:[%s1212_s2 + $0x38] sm:$0xff] (!%p264_p12)   ;;  %s304_s5 = scalar_lea.vmem (!%p264_p12), [#allocation4], %s839_s29 }
  0x2f   : > { %486 = vrot.lane.b32.xlu1 %v988_v7, %s1037_s12  ;;  %343 = vrot.lane.b32.xlu0 %v988_v7, %s1038_s13  ;;  %s875_s17 = sshll.u32 (%p1118_p8), %s826_s20, 2 }
  0x30   : > { %s699_s7 = scalar_lea.vmem (%p1118_p8), %s1214_s4, %s875_s17 }
  0x33   : > { %567 = vrot.lane.b32.xlu1 %v988_v7, %s1039_s15  ;;  %565 = vrot.lane.b32.xlu0 %v987_v5, %s1039_s15 }
  0x37   : > { %642 = vperm.xlu1 %986, %v632_v9   ;;  %637 = vperm.xlu0 %985, %v631_v10  }
  0x3b   : > { %647 = vperm.xlu1 %986, %v633_v11   ;;  %652 = vperm.xlu0 %985, %v634_v12  }
  0x9d   : > { %v485_v13 = vpop.permute.xlu1 %484  ;;  %v342_v14 = vpop.permute.xlu0 %341 }
  0xa1   : > { %v487_v15 = vpop.permute.xlu1 %486  ;;  %v344_v16 = vpop.permute.xlu0 %343 }
  0xa2   : > { %v346_v17 = vsel %vm345_vm1, %v342_v14, %v344_v16  ;;  %v489_v18 = vsel %vm488_vm2, %v485_v13, %v487_v15 }
  0xa3   : > { %905 = vmatprep.subr.bf16.mxu1 %v346_v17  ;;  %917 = vmatprep.subr.bf16.mxu0 %v489_v18 }
  0xa4   : > { %906 = vmatpush3.bf16.msra.mxu1 %v346_v17  ;;  %918 = vmatpush3.bf16.msra.mxu0 %v489_v18 }
  0xa5   : > { %v568_v21 = vpop.permute.xlu1 %567  ;;  %v566_v22 = vpop.permute.xlu0 %565  ;;  %911 = vmatprep.subr.bf16.mxu1 %v987_v5 }
  0xa6   : > { %v570_v24 = vsel %vm569_vm3, %v566_v22, %v568_v21 }
  0xa7   : > { %908 = vmatmul.mubr.msk.bf16.vlgmr.msra.gmra.mrb[0].mxu1 %vm348_vm0, %v991_v19  ;;  %920 = vmatmul.mubr.msk.bf16.vlgmr.msra.gmra.mrb[0].mxu0 %vm348_vm0, %v992_v20 }
  0xa8   : > { %923 = vmatprep.subr.bf16.mxu0 %v570_v24  ;;  %912 = vmatpush3.bf16.msra.mxu1 %v987_v5 }
  0xa9   : > { %924 = vmatpush3.bf16.msra.mxu0 %v570_v24  ;;  %913 = vmatprep.mubr.msk.bf16.mxu1 %vm348_vm0, %v993_v23 }
  0xaa   : > { %925 = vmatprep.mubr.msk.bf16.mxu0 %vm348_vm0, %v994_v25 }
  0xb3   : > { %914 = vmatmul.mubr.msk.bf16.vlgmr.msra.gmra.mrb[0].mxu1 %vm348_vm0, %v995_v26  ;;  %926 = vmatmul.mubr.msk.bf16.vlgmr.msra.gmra.mrb[0].mxu0 %vm348_vm0, %v996_v27 }
  0xb6   : > { %v643_v28 = vpop.permute.xlu1 %642  ;;  %v638_v29 = vpop.permute.xlu0 %637 }
  0xba   : > { %v648_v30 = vpop.permute.xlu1 %647  ;;  %v653_v44 = vpop.permute.xlu0 %652 }
 0x186   : > { %v915_v31 = vpop.f32.mrb[0].mxu1  ;;  %v927_v32 = vpop.f32.mrb[0].mxu0 }
 0x187   : > { %v929_v33 = vadd.f32 %v927_v32, %v915_v31  ;;  %v454_v34 = vpop.f32.mrb[1].mxu1  ;;  %v612_v35 = vpop.f32.mrb[1].mxu0 }
 0x188   : > { %v930_v36 = vadd.f32 %v612_v35, %v454_v34  ;;  %v916_v37 = vpop.f32.mrb[2].mxu1  ;;  %v928_v38 = vpop.f32.mrb[2].mxu0 }
 0x189   : > { %v657_v39 = vadd.f32 %v929_v33, %v648_v30  ;;  %v931_v40 = vadd.f32 %v928_v38, %v916_v37  ;;  %v457_v41 = vpop.f32.mrb[3].mxu1  ;;  %v615_v42 = vpop.f32.mrb[3].mxu0 }
 0x18a   : > { %v655_v43 = vadd.f32 %v930_v36, %v638_v29  ;;  %v932_v45 = vadd.f32 %v615_v42, %v457_v41 }
 0x18b   : > { %v665_v46 = vmul.f32 0.25, %v657_v39  ;;  %v658_v47 = vadd.f32 %v931_v40, %v653_v44  ;;  %vm661_vm4 = vcmp.gt.f32.partialorder %v657_v39, 0.0 }
 0x18c   : > { %v663_v48 = vmul.f32 0.25, %v655_v43  ;;  %v656_v49 = vadd.f32 %v932_v45, %v643_v28  ;;  %vm659_vm5 = vcmp.gt.f32.partialorder %v655_v43, 0.0 }
 0x18d   : > { %vm662_vm6 = vcmp.gt.f32.partialorder %v658_v47, 0.0  ;;  %v666_v50 = vmul.f32 0.25, %v658_v47  ;;  %v669_v52 = vsel %vm661_vm4, %v657_v39, %v665_v46  ;;  %697 = sbr.rel (!%p1118_p8) target bundleno = 413 (0x19d), region = 122 }
 0x18e   : > { %vm660_vm7 = vcmp.gt.f32.partialorder %v656_v49, 0.0  ;;  %v664_v51 = vmul.f32 0.25, %v656_v49  ;;  %v667_v54 = vsel %vm659_vm5, %v655_v43, %v663_v48 }
 0x18f   : > { %v670_v53 = vsel %vm662_vm6, %v658_v47, %v666_v50 }
 0x190   : > { %v890_v55 = vpack.c.bf16 %v670_v53, %v669_v52  ;;  %v668_v56 = vsel %vm660_vm7, %v656_v49, %v664_v51 }
 0x191   : > { %v885_v57 = vpack.c.bf16 %v668_v56, %v667_v54 }
 0x192   : > { %892 = vst [vmem:[%s304_s5 + $0x8] sm:$0xff] %v890_v55  }
 0x193   : > { %886 = vst [vmem:[%s304_s5] sm:$0xff] %v885_v57  }
 0x199   : > { %v719_v60 = vld [vmem:[%s304_s5 + $0x8] sm:$0xf]  ;;  %v721_v61 = vld [vmem:[%s304_s5 + $0xc] sm:$0xf] }
 0x19a   : > { %v715_v58 = vld [vmem:[%s304_s5] sm:$0xf]  ;;  %v717_v59 = vld [vmem:[%s304_s5 + $0x4] sm:$0xf]  ;;  %720 = vst [vmem:[%s699_s7 + $0x10] sm:$0xf] %v719_v60 }
 0x19b   : > { %716 = vst [vmem:[%s699_s7] sm:$0xf] %v715_v58  ;;  %718 = vst [vmem:[%s699_s7 + $0x8] sm:$0xf] %v717_v59 }
 0x19c   : > { %722 = vst [vmem:[%s699_s7 + $0x18] sm:$0xf] %v721_v61 }
 0x19d PF: > { %p11_p13 = scmp.ge.s32.totalorder %s1093_s21, 4   ;;  %s1217_s15 = smov %s1023_s16 }
 0x19e   : > { %s1218_s16 = smov %s1112_s28  ;;  %s1219_s17 = smov %s1031_s18 }
 0x19f   : > { %s1220_s18 = smov %s1103_s25  ;;  %s1221_s19 = smov %s1093_s21 }
 0x1a0   :  { %13 = sbr.rel (!%p11_p13) target bundleno = 3 (0x3), region = 205 }

// kernel: resnet_forward.19
= control target key start
LH: loop header
LB: loop body
LE: loop exit
PB: predicated region body
PF: predicated region fallthrough
CT: control target
= control target key end

     0   :  { %s6562_s17 = smov 0   ;;  %s7697_s0 = inlined_call_operand.vmem [shape: bf16[1,8,1280], index: 0, kind: input, shape index: {}, may-alias: {0,1}]   ;;  %s7698_s1 = inlined_call_operand.vmem [shape: bf16[1,8,1280], index: 1, kind: input, shape index: {}, may-alias: {0,1}]   ;;  %s7699_s2 = inlined_call_operand.vmem [shape: bf16[49,1,8], index: 2, kind: input, shape index: {}]   ;;  %s7700_s3 = inlined_call_operand.<no memory space> [shape: f32[1,1], index: 3, kind: input, shape index: {}]   ;;  %s7701_s4 = inlined_call_operand.vmem [shape: bf16[1,1024], index: 4, kind: output, shape index: {}]  }
   0x1   :  { %v9_v0 = vstv %s7700_s3 }
   0x2   :  { %10 = vst [vmem:[#allocation2] sm:$0x1] %v9_v0 }
   0x3 LB: > { %s6124_s18 = sadd.s32 4294967295, %s6485_s17   ;;  %p6130_p0 = scmp.ge.s32.totalorder %s6485_s17, 1  ;;  %s6485_s17 = sphi %s6562_s17, %s16_s17  }
   0x4   : > { %p192_p1 = scmp.lt.s32.totalorder %s6485_s17, 3 }
   0x6   : > { %p193_p2 = pnand %p6130_p0, %p192_p1 }
   0x7   : > { %s6570_s19 = sshll.u32 (!%p193_p2), %s6124_s18, 2  ;;  %v6487_v1 = vmov (!%p193_p2), 0   ;;  %s6488_s26 = smov (!%p193_p2), 127   ;;  %vm289_vm0 = vcmask (!%p193_p2), 1039360   ;;  %vm298_vm1 = vcmask (!%p193_p2), 1043456   ;;  %vm294_vm2 = vcmask (!%p193_p2), 64512  }
   0x8   : > { %196 = sbr.rel (%p193_p2) target bundleno = 861 (0x35d), region = 36  ;;  %p233_p3 = scmp.lt.s32.totalorder (!%p193_p2), %s6570_s19, 9  ;;  %343 = vmatprep.mubr.bf16.mxu0 (!%p193_p2), %v6487_v1  ;;  %384 = vmatprep.mubr.bf16.mxu1 (!%p193_p2), %v6487_v1  ;;  %v6143_v19 = vld [vmem:[%s7699_s2 + $0x1] sm:$0x1] (!%p193_p2)  ;;  %vm502_vm3 = vcmask (!%p193_p2), 1031168   ;;  %vm620_vm4 = vcmask (!%p193_p2), 1022976  }
   0x9   : > { %s6399_s3 = sadd.s32 (!%p193_p2), 4, %s6570_s19  ;;  %6455 = vset.pattern.permute.xlu0 (!%p193_p2), %v6487_v1  ;;  %s6489_s30 = smov (!%p193_p2), 126   ;;  %v276_v31 = vld [vmem:[%s7699_s2] sm:$0x1] (!%p193_p2)  ;;  %v6152_v41 = vld [vmem:[%s7699_s2 + $0x2] sm:$0x1] (!%p193_p2) }
   0xa   : > { %p245_p4 = scmp.lt.s32.totalorder (!%p193_p2), %s6399_s3, 9  ;;  %s6490_s5 = smov (!%p193_p2), 125   ;;  %vm738_vm5 = vcmask (!%p193_p2), 1014784   ;;  %v6157_v51 = vld [vmem:[%s7699_s2 + $0x3] sm:$0x1] (!%p193_p2)  ;;  %vm856_vm6 = vcmask (!%p193_p2), 1006592  }
   0xb   : > { %s6491_s6 = smov (!%p193_p2), 124   ;;  %s6492_s7 = smov (!%p193_p2), 123   ;;  %v6162_v62 = vld [vmem:[%s7699_s2 + $0x4] sm:$0x1] (!%p193_p2)  ;;  %vm974_vm7 = vcmask (!%p193_p2), 998400   ;;  %vm1092_vm8 = vcmask (!%p193_p2), 867328  }
   0xc   : > { %s6493_s8 = smov (!%p193_p2), 122   ;;  %s6494_s9 = smov (!%p193_p2), 106   ;;  %vm1210_vm9 = vcmask (!%p193_p2), 859136   ;;  %vm1328_vm10 = vcmask (!%p193_p2), 850944   ;;  %vm1446_vm11 = vcmask (!%p193_p2), 842752   ;;  %vm1564_vm12 = vcmask (!%p193_p2), 834560  }
   0xd   : > { %s6495_s10 = smov (!%p193_p2), 105   ;;  %s6496_s11 = smov (!%p193_p2), 104   ;;  %vm1682_vm13 = vcmask (!%p193_p2), 826368   ;;  %vm1800_vm14 = vcmask (!%p193_p2), 818176   ;;  %vm1918_vm15 = vcmask (!%p193_p2), 687104  }
   0xe   : > { %s6497_s12 = smov (!%p193_p2), 103   ;;  %s6498_s13 = smov (!%p193_p2), 102  }
   0xf   : > { %s234_s20 = scalar_select %p233_p3, %s6570_s19, 9 }
  0x10   : > { %s7707_s3 = smov (!%p245_p4, %s6399_s3), 9  ;;  %s6499_s14 = smov 101  }
  0x11   : > { %s6132_s21 = sshll.u32 %s234_s20, 2  ;;  %s6135_s25 = sshll.u32 %s7707_s3, 2 }
  0x12   : > { %s236_s24 = scalar_lea.vmem %s7697_s0, %s6132_s21  ;;  %s6594_s29 = scalar_lea.vmem %s7698_s1, %s6135_s25 }
  0x13   : > { %v259_v2 = vld [vmem:[%s236_s24 + $0x8] sm:$0xff]  ;;  %v258_v3 = vld [vmem:[%s236_s24] sm:$0xff]  ;;  %s6500_s15 = smov 100   ;;  %s6501_s3 = smov 84  }
  0x14   : > { %v6581_v4 = vcombine.low %v259_v2, %v259_v2  ;;  %v6583_v5 = vcombine.low %v258_v3, %v258_v3  ;;  %v6586_v6 = vcombine.high %v258_v3, %v258_v3  ;;  %v6589_v7 = vcombine.high %v259_v2, %v259_v2  ;;  %v260_v8 = vld [vmem:[%s6594_s29] sm:$0xff]  ;;  %s6502_s24 = smov 83   ;;  %s6503_s27 = smov 82  }
  0x15   : > { %v6599_v9 = vcombine.low %v260_v8, %v260_v8  ;;  %s6507_s18 = smov 78   ;;  %s6508_s21 = smov 62  }
  0x16   : > { %283 = vrot.lane.b32.xlu1 %v6581_v4, %s6488_s26  ;;  %279 = vrot.lane.b32.xlu0 %v6583_v5, %s6488_s26  ;;  %v397_v22 = vsel %vm298_vm1, %v6583_v5, 0  ;;  %v403_v27 = vsel %vm298_vm1, %v6581_v4, 0  ;;  %s6530_s22 = smov 120   ;;  %s6531_s25 = smov 119  }
  0x17   : > { %s6532_s28 = smov 118   ;;  %p253_p5 = scmp.lt.s32.totalorder %s6570_s19, 7 }
  0x19   : > { %s7709_s19 = smov (!%p253_p5, %s6570_s19), 7 }
  0x1a   : > { %285 = vrot.lane.b32.xlu1 %v6589_v7, %s6488_s26  ;;  %281 = vrot.lane.b32.xlu0 %v6586_v6, %s6488_s26 }
  0x1e   : > { %492 = vrot.lane.b32.xlu1 %v6583_v5, %s6489_s30  ;;  %287 = vrot.lane.b32.xlu0 %v6599_v9, %s6488_s26 }
  0x22   : > { %496 = vrot.lane.b32.xlu1 %v6581_v4, %s6489_s30  ;;  %494 = vrot.lane.b32.xlu0 %v6586_v6, %s6489_s30 }
  0x26   : > { %500 = vrot.lane.b32.xlu1 %v6599_v9, %s6489_s30  ;;  %498 = vrot.lane.b32.xlu0 %v6589_v7, %s6489_s30 }
  0x2a   : > { %612 = vrot.lane.b32.xlu1 %v6586_v6, %s6490_s5  ;;  %610 = vrot.lane.b32.xlu0 %v6583_v5, %s6490_s5 }
  0x2e   : > { %616 = vrot.lane.b32.xlu1 %v6589_v7, %s6490_s5  ;;  %614 = vrot.lane.b32.xlu0 %v6581_v4, %s6490_s5 }
  0x32   : > { %728 = vrot.lane.b32.xlu1 %v6583_v5, %s6491_s6  ;;  %618 = vrot.lane.b32.xlu0 %v6599_v9, %s6490_s5  ;;  %s6504_s5 = smov 81  }
  0x36   : > { %732 = vrot.lane.b32.xlu1 %v6581_v4, %s6491_s6  ;;  %730 = vrot.lane.b32.xlu0 %v6586_v6, %s6491_s6 }
  0x3a   : > { %736 = vrot.lane.b32.xlu1 %v6599_v9, %s6491_s6  ;;  %734 = vrot.lane.b32.xlu0 %v6589_v7, %s6491_s6 }
  0x3e   : > { %848 = vrot.lane.b32.xlu1 %v6586_v6, %s6492_s7  ;;  %846 = vrot.lane.b32.xlu0 %v6583_v5, %s6492_s7 }
  0x42   : > { %852 = vrot.lane.b32.xlu1 %v6589_v7, %s6492_s7  ;;  %850 = vrot.lane.b32.xlu0 %v6581_v4, %s6492_s7 }
  0x46   : > { %964 = vrot.lane.b32.xlu1 %v6583_v5, %s6493_s8  ;;  %854 = vrot.lane.b32.xlu0 %v6599_v9, %s6492_s7 }
  0x4a   : > { %968 = vrot.lane.b32.xlu1 %v6581_v4, %s6493_s8  ;;  %966 = vrot.lane.b32.xlu0 %v6586_v6, %s6493_s8 }
  0x4e   : > { %972 = vrot.lane.b32.xlu1 %v6599_v9, %s6493_s8  ;;  %970 = vrot.lane.b32.xlu0 %v6589_v7, %s6493_s8 }
  0x52   : > { %1084 = vrot.lane.b32.xlu1 %v6586_v6, %s6494_s9  ;;  %1082 = vrot.lane.b32.xlu0 %v6583_v5, %s6494_s9 }
  0x56   : > { %1088 = vrot.lane.b32.xlu1 %v6589_v7, %s6494_s9  ;;  %1086 = vrot.lane.b32.xlu0 %v6581_v4, %s6494_s9 }
  0x5a   : > { %1200 = vrot.lane.b32.xlu1 %v6583_v5, %s6495_s10  ;;  %1090 = vrot.lane.b32.xlu0 %v6599_v9, %s6494_s9 }
  0x5e   : > { %1204 = vrot.lane.b32.xlu1 %v6581_v4, %s6495_s10  ;;  %1202 = vrot.lane.b32.xlu0 %v6586_v6, %s6495_s10 }
  0x62   : > { %1208 = vrot.lane.b32.xlu1 %v6599_v9, %s6495_s10  ;;  %1206 = vrot.lane.b32.xlu0 %v6589_v7, %s6495_s10 }
  0x66   : > { %1320 = vrot.lane.b32.xlu1 %v6586_v6, %s6496_s11  ;;  %1318 = vrot.lane.b32.xlu0 %v6583_v5, %s6496_s11 }
  0x6a   : > { %1324 = vrot.lane.b32.xlu1 %v6589_v7, %s6496_s11  ;;  %1322 = vrot.lane.b32.xlu0 %v6581_v4, %s6496_s11 }
  0x6e   : > { %1436 = vrot.lane.b32.xlu1 %v6583_v5, %s6497_s12  ;;  %1326 = vrot.lane.b32.xlu0 %v6599_v9, %s6496_s11  ;;  %s6505_s11 = smov 80  }
  0x72   : > { %1440 = vrot.lane.b32.xlu1 %v6581_v4, %s6497_s12  ;;  %1438 = vrot.lane.b32.xlu0 %v6586_v6, %s6497_s12 }
  0x76   : > { %1444 = vrot.lane.b32.xlu1 %v6599_v9, %s6497_s12  ;;  %1442 = vrot.lane.b32.xlu0 %v6589_v7, %s6497_s12 }
  0x7a   : > { %1556 = vrot.lane.b32.xlu1 %v6586_v6, %s6498_s13  ;;  %1554 = vrot.lane.b32.xlu0 %v6583_v5, %s6498_s13 }
  0x7e   : > { %1560 = vrot.lane.b32.xlu1 %v6589_v7, %s6498_s13  ;;  %1558 = vrot.lane.b32.xlu0 %v6581_v4, %s6498_s13 }
  0x82   : > { %1672 = vrot.lane.b32.xlu1 %v6583_v5, %s6499_s14  ;;  %1562 = vrot.lane.b32.xlu0 %v6599_v9, %s6498_s13 }
  0x86   : > { %1676 = vrot.lane.b32.xlu1 %v6581_v4, %s6499_s14  ;;  %1674 = vrot.lane.b32.xlu0 %v6586_v6, %s6499_s14 }
  0x88   : > { %v284_v10 = vpop.permute.xlu1 %283  ;;  %v280_v11 = vpop.permute.xlu0 %279 }
  0x8a   : > { %1680 = vrot.lane.b32.xlu1 %v6599_v9, %s6499_s14  ;;  %1678 = vrot.lane.b32.xlu0 %v6589_v7, %s6499_s14  ;;  %s6506_s14 = smov 79  }
  0x8c   : > { %v286_v12 = vpop.permute.xlu1 %285  ;;  %v282_v13 = vpop.permute.xlu0 %281 }
  0x8d   : > { %v291_v14 = vsel %vm289_vm0, %v282_v13, %v284_v10  ;;  %v290_v15 = vsel %vm289_vm0, %v280_v11, %v282_v13  ;;  %v292_v20 = vsel %vm289_vm0, %v284_v10, %v286_v12  ;;  %v6167_v13 = vld [vmem:[%s7699_s2 + $0x5] sm:$0x1] }
  0x8e   : > { %1792 = vrot.lane.b32.xlu1 %v6586_v6, %s6500_s15  ;;  %1790 = vrot.lane.b32.xlu0 %v6583_v5, %s6500_s15  ;;  %v300_v16 = vsel %vm298_vm1, %v290_v15, 0  ;;  %v306_v23 = vsel %vm298_vm1, %v292_v20, 0 }
  0x8f   : > { %6144 = vmatprep.subr.msk.bf16.mxu0 %vm298_vm1, %v291_v14 }
  0x90   : > { %312 = vmatpush1.bf16.msra.mxu0 %v300_v16  ;;  %v493_v17 = vpop.permute.xlu1 %492  ;;  %v288_v18 = vpop.permute.xlu0 %287 }
  0x91   : > { %v293_v21 = vsel %vm289_vm0, %v286_v12, %v288_v18  ;;  %6148 = vmatprep.subr.msk.bf16.mxu0 %vm298_vm1, %v6586_v6  ;;  %vm2036_vm0 = vcmask 678912  }
  0x92   : > { %1796 = vrot.lane.b32.xlu1 %v6589_v7, %s6500_s15  ;;  %1794 = vrot.lane.b32.xlu0 %v6581_v4, %s6500_s15 }
  0x93   : > { %6145 = vmatmul.mubr.msk.bf16.vlgmr.msra.gmra.mrb[0].mxu0 %vm294_vm2, %v6143_v19  ;;  %6146 = vmatprep.subr.msk.bf16.mxu1 %vm298_vm1, %v293_v21 }
  0x94   : > { %353 = vmatpush1.bf16.msra.mxu1 %v306_v23  ;;  %v497_v24 = vpop.permute.xlu1 %496  ;;  %v495_v25 = vpop.permute.xlu0 %494  ;;  %409 = vmatpush1.bf16.msra.mxu0 %v397_v22  ;;  %v6172_v23 = vld [vmem:[%s7699_s2 + $0x6] sm:$0x1] }
  0x95   : > { %v504_v26 = vsel %vm502_vm3, %v495_v25, %v497_v24  ;;  %6150 = vmatprep.subr.msk.bf16.mxu1 %vm298_vm1, %v6589_v7  ;;  %440 = vmatprep.mubr.bf16.mxu0 %v6487_v1  ;;  %v503_v28 = vsel %vm502_vm3, %v493_v17, %v495_v25 }
  0x96   : > { %1908 = vrot.lane.b32.xlu1 %v6583_v5, %s6501_s3  ;;  %1798 = vrot.lane.b32.xlu0 %v6599_v9, %s6500_s15  ;;  %v511_v33 = vsel %vm298_vm1, %v503_v28, 0 }
  0x97   : > { %6147 = vmatmul.mubr.msk.bf16.vlgmr.msra.gmra.mrb[0].mxu1 %vm294_vm2, %v6143_v19  ;;  %6153 = vmatprep.subr.msk.bf16.mxu0 %vm298_vm1, %v504_v26 }
  0x98   : > { %v501_v29 = vpop.permute.xlu1 %500  ;;  %v499_v30 = vpop.permute.xlu0 %498  ;;  %450 = vmatpush1.bf16.msra.mxu1 %v403_v27  ;;  %481 = vmatprep.mubr.bf16.mxu1 %v6487_v1 }
  0x99   : > { %v506_v32 = vsel %vm502_vm3, %v499_v30, %v501_v29  ;;  %v505_v34 = vsel %vm502_vm3, %v497_v24, %v499_v30  ;;  %vm2154_vm3 = vcmask 670720  }
  0x9a   : > { %1912 = vrot.lane.b32.xlu1 %v6581_v4, %s6501_s3  ;;  %1910 = vrot.lane.b32.xlu0 %v6586_v6, %s6501_s3  ;;  %v517_v37 = vsel %vm298_vm1, %v505_v34, 0 }
  0x9b   : > { %6149 = vmatmul.mubr.msk.bf16.vlgmr.msra.gmra.mrb[4].mxu0 %vm294_vm2, %v276_v31  ;;  %6155 = vmatprep.subr.msk.bf16.mxu1 %vm298_vm1, %v506_v32 }
  0x9c   : > { %523 = vmatpush1.bf16.msra.mxu0 %v511_v33  ;;  %v613_v35 = vpop.permute.xlu1 %612  ;;  %v611_v36 = vpop.permute.xlu0 %610  ;;  %554 = vmatprep.mubr.bf16.mxu0 %v6487_v1 }
  0x9d   : > { %v621_v38 = vsel %vm620_vm4, %v611_v36, %v613_v35 }
  0x9e   : > { %1916 = vrot.lane.b32.xlu1 %v6599_v9, %s6501_s3  ;;  %1914 = vrot.lane.b32.xlu0 %v6589_v7, %s6501_s3  ;;  %v629_v43 = vsel %vm298_vm1, %v621_v38, 0 }
  0x9f   : > { %6151 = vmatmul.mubr.msk.bf16.vlgmr.msra.gmra.mrb[4].mxu1 %vm294_vm2, %v276_v31 }
  0xa0   : > { %564 = vmatpush1.bf16.msra.mxu1 %v517_v37  ;;  %v617_v39 = vpop.permute.xlu1 %616  ;;  %v615_v40 = vpop.permute.xlu0 %614  ;;  %595 = vmatprep.mubr.bf16.mxu1 %v6487_v1  ;;  %v6177_v37 = vld [vmem:[%s7699_s2 + $0x7] sm:$0x1] }
  0xa1   : > { %v622_v42 = vsel %vm620_vm4, %v613_v35, %v615_v40  ;;  %v623_v44 = vsel %vm620_vm4, %v615_v40, %v617_v39 }
  0xa2   : > { %2028 = vrot.lane.b32.xlu1 %v6586_v6, %s6502_s24  ;;  %2026 = vrot.lane.b32.xlu0 %v6583_v5, %s6502_s24  ;;  %v635_v48 = vsel %vm298_vm1, %v623_v44, 0 }
  0xa3   : > { %6158 = vmatprep.subr.msk.bf16.mxu0 %vm298_vm1, %v622_v42  ;;  %6154 = vmatmul.mubr.msk.bf16.vlgmr.msra.gmra.mrb[8].mxu0 %vm294_vm2, %v6152_v41 }
  0xa4   : > { %641 = vmatpush1.bf16.msra.mxu0 %v629_v43  ;;  %v729_v45 = vpop.permute.xlu1 %728  ;;  %v619_v46 = vpop.permute.xlu0 %618  ;;  %672 = vmatprep.mubr.bf16.mxu0 %v6487_v1 }
  0xa5   : > { %v624_v47 = vsel %vm620_vm4, %v617_v39, %v619_v46  ;;  %vm2272_vm4 = vcmask 662528  }
  0xa6   : > { %2032 = vrot.lane.b32.xlu1 %v6589_v7, %s6502_s24  ;;  %2030 = vrot.lane.b32.xlu0 %v6581_v4, %s6502_s24 }
  0xa7   : > { %6160 = vmatprep.subr.msk.bf16.mxu1 %vm298_vm1, %v624_v47  ;;  %6156 = vmatmul.mubr.msk.bf16.vlgmr.msra.gmra.mrb[8].mxu1 %vm294_vm2, %v6152_v41  ;;  %v6182_v47 = vld [vmem:[%s7699_s2 + $0x8] sm:$0x1] }
  0xa8   : > { %682 = vmatpush1.bf16.msra.mxu1 %v635_v48  ;;  %v733_v49 = vpop.permute.xlu1 %732  ;;  %v731_v50 = vpop.permute.xlu0 %730  ;;  %713 = vmatprep.mubr.bf16.mxu1 %v6487_v1 }
  0xa9   : > { %v739_v52 = vsel %vm738_vm5, %v729_v45, %v731_v50  ;;  %v6749_v53 = vsel %vm738_vm5, %v731_v50, %v733_v49 }
  0xaa   : > { %2144 = vrot.lane.b32.xlu1 %v6583_v5, %s6503_s27  ;;  %2034 = vrot.lane.b32.xlu0 %v6599_v9, %s6502_s24  ;;  %v747_v54 = vsel %vm298_vm1, %v739_v52, 0  ;;  %s6509_s24 = smov 61  }
  0xab   : > { %6163 = vmatprep.subr.msk.bf16.mxu0 %vm298_vm1, %v6749_v53  ;;  %6159 = vmatmul.mubr.msk.bf16.vlgmr.msra.gmra.mrb[12].mxu0 %vm294_vm2, %v6157_v51 }
  0xac   : > { %759 = vmatpush1.bf16.msra.mxu0 %v747_v54  ;;  %v6757_v55 = vpop.permute.xlu1 %736  ;;  %v735_v56 = vpop.permute.xlu0 %734  ;;  %790 = vmatprep.mubr.bf16.mxu0 %v6487_v1 }
  0xad   : > { %v6761_v57 = vsel %vm738_vm5, %v733_v49, %v735_v56  ;;  %v6765_v58 = vsel %vm738_vm5, %v735_v56, %v6757_v55 }
  0xae   : > { %2148 = vrot.lane.b32.xlu1 %v6581_v4, %s6503_s27  ;;  %2146 = vrot.lane.b32.xlu0 %v6586_v6, %s6503_s27  ;;  %v753_v59 = vsel %vm298_vm1, %v6761_v57, 0 }
  0xaf   : > { %6165 = vmatprep.subr.msk.bf16.mxu1 %vm298_vm1, %v6765_v58  ;;  %6161 = vmatmul.mubr.msk.bf16.vlgmr.msra.gmra.mrb[12].mxu1 %vm294_vm2, %v6157_v51 }
  0xb0   : > { %800 = vmatpush1.bf16.msra.mxu1 %v753_v59  ;;  %v849_v60 = vpop.permute.xlu1 %848  ;;  %v847_v61 = vpop.permute.xlu0 %846  ;;  %831 = vmatprep.mubr.bf16.mxu1 %v6487_v1 }
  0xb1   : > { %v857_v63 = vsel %vm856_vm6, %v847_v61, %v849_v60 }
  0xb2   : > { %2152 = vrot.lane.b32.xlu1 %v6599_v9, %s6503_s27  ;;  %2150 = vrot.lane.b32.xlu0 %v6589_v7, %s6503_s27  ;;  %v865_v8 = vsel %vm298_vm1, %v857_v63, 0  ;;  %s6510_s27 = smov 60  }
  0xb3   : > { %6164 = vmatmul.mubr.msk.bf16.vlgmr.msra.gmra.mrb[16].mxu0 %vm294_vm2, %v6162_v62 }
  0xb4   : > { %v853_v0 = vpop.permute.xlu1 %852  ;;  %v851_v2 = vpop.permute.xlu0 %850  ;;  %908 = vmatprep.mubr.bf16.mxu0 %v6487_v1 }
  0xb5   : > { %v6784_v3 = vsel %vm856_vm6, %v849_v60, %v851_v2  ;;  %v6793_v10 = vsel %vm856_vm6, %v851_v2, %v853_v0  ;;  %v6187_v2 = vld [vmem:[%s7699_s2 + $0x9] sm:$0x1] }
  0xb6   : > { %2264 = vrot.lane.b32.xlu1 %v6586_v6, %s6504_s5  ;;  %2262 = vrot.lane.b32.xlu0 %v6583_v5, %s6504_s5  ;;  %v871_v15 = vsel %vm298_vm1, %v6793_v10, 0 }
  0xb7   : > { %6168 = vmatprep.subr.msk.bf16.mxu0 %vm298_vm1, %v6784_v3  ;;  %6166 = vmatmul.mubr.msk.bf16.vlgmr.msra.gmra.mrb[16].mxu1 %vm294_vm2, %v6162_v62 }
  0xb8   : > { %877 = vmatpush1.bf16.msra.mxu0 %v865_v8  ;;  %v965_v11 = vpop.permute.xlu1 %964  ;;  %v6795_v12 = vpop.permute.xlu0 %854  ;;  %949 = vmatprep.mubr.bf16.mxu1 %v6487_v1 }
  0xb9   : > { %v6803_v14 = vsel %vm856_vm6, %v853_v0, %v6795_v12 }
  0xba   : > { %2268 = vrot.lane.b32.xlu1 %v6589_v7, %s6504_s5  ;;  %2266 = vrot.lane.b32.xlu0 %v6581_v4, %s6504_s5 }
  0xbb   : > { %6170 = vmatprep.subr.msk.bf16.mxu1 %vm298_vm1, %v6803_v14  ;;  %6169 = vmatmul.mubr.msk.bf16.vlgmr.msra.gmra.mrb[20].mxu0 %vm294_vm2, %v6167_v13 }
  0xbc   : > { %918 = vmatpush1.bf16.msra.mxu1 %v871_v15  ;;  %v969_v16 = vpop.permute.xlu1 %968  ;;  %v967_v17 = vpop.permute.xlu0 %966  ;;  %1026 = vmatprep.mubr.bf16.mxu0 %v6487_v1 }
  0xbd   : > { %v975_v18 = vsel %vm974_vm7, %v965_v11, %v967_v17  ;;  %v6815_v19 = vsel %vm974_vm7, %v967_v17, %v969_v16 }
  0xbe   : > { %2380 = vrot.lane.b32.xlu1 %v6583_v5, %s6505_s11  ;;  %2270 = vrot.lane.b32.xlu0 %v6599_v9, %s6504_s5  ;;  %v983_v20 = vsel %vm298_vm1, %v975_v18, 0  ;;  %s6511_s5 = smov 59  }
  0xbf   : > { %6173 = vmatprep.subr.msk.bf16.mxu0 %vm298_vm1, %v6815_v19  ;;  %6171 = vmatmul.mubr.msk.bf16.vlgmr.msra.gmra.mrb[20].mxu1 %vm294_vm2, %v6167_v13 }
  0xc0   : > { %995 = vmatpush1.bf16.msra.mxu0 %v983_v20  ;;  %v6823_v21 = vpop.permute.xlu1 %972  ;;  %v971_v22 = vpop.permute.xlu0 %970  ;;  %1067 = vmatprep.mubr.bf16.mxu1 %v6487_v1 }
  0xc1   : > { %v6830_v24 = vsel %vm974_vm7, %v969_v16, %v971_v22  ;;  %v6834_v25 = vsel %vm974_vm7, %v971_v22, %v6823_v21 }
  0xc2   : > { %2384 = vrot.lane.b32.xlu1 %v6581_v4, %s6505_s11  ;;  %2382 = vrot.lane.b32.xlu0 %v6586_v6, %s6505_s11  ;;  %v989_v26 = vsel %vm298_vm1, %v6830_v24, 0 }
  0xc3   : > { %6175 = vmatprep.subr.msk.bf16.mxu1 %vm298_vm1, %v6834_v25  ;;  %6174 = vmatmul.mubr.msk.bf16.vlgmr.msra.gmra.mrb[24].mxu0 %vm294_vm2, %v6172_v23 }
  0xc4   : > { %1036 = vmatpush1.bf16.msra.mxu1 %v989_v26  ;;  %v1085_v27 = vpop.permute.xlu1 %1084  ;;  %v1083_v28 = vpop.permute.xlu0 %1082  ;;  %1144 = vmatprep.mubr.bf16.mxu0 %v6487_v1 }
  0xc5   : > { %v1093_v29 = vsel %vm1092_vm8, %v1083_v28, %v1085_v27 }
  0xc6   : > { %2388 = vrot.lane.b32.xlu1 %v6599_v9, %s6505_s11  ;;  %2386 = vrot.lane.b32.xlu0 %v6589_v7, %s6505_s11  ;;  %v1101_v33 = vsel %vm298_vm1, %v1093_v29, 0  ;;  %s6512_s11 = smov 58  }
  0xc7   : > { %6176 = vmatmul.mubr.msk.bf16.vlgmr.msra.gmra.mrb[24].mxu1 %vm294_vm2, %v6172_v23  ;;  %v6192_v23 = vld [vmem:[%s7699_s2 + $0xa] sm:$0x1] }
  0xc8   : > { %v1089_v30 = vpop.permute.xlu1 %1088  ;;  %v1087_v31 = vpop.permute.xlu0 %1086  ;;  %1185 = vmatprep.mubr.bf16.mxu1 %v6487_v1 }
  0xc9   : > { %v1094_v32 = vsel %vm1092_vm8, %v1085_v27, %v1087_v31  ;;  %v1095_v34 = vsel %vm1092_vm8, %v1087_v31, %v1089_v30 }
  0xca   : > { %2500 = vrot.lane.b32.xlu1 %v6586_v6, %s6506_s14  ;;  %2498 = vrot.lane.b32.xlu0 %v6583_v5, %s6506_s14  ;;  %v1107_v39 = vsel %vm298_vm1, %v1095_v34, 0 }
  0xcb   : > { %6178 = vmatprep.subr.msk.bf16.mxu0 %vm298_vm1, %v1094_v32 }
  0xcc   : > { %1113 = vmatpush1.bf16.msra.mxu0 %v1101_v33  ;;  %v1201_v35 = vpop.permute.xlu1 %1200  ;;  %v1091_v36 = vpop.permute.xlu0 %1090 }
  0xcd   : > { %v1096_v38 = vsel %vm1092_vm8, %v1089_v30, %v1091_v36  ;;  %vm2390_vm8 = vcmask 654336  }
  0xce   : > { %2504 = vrot.lane.b32.xlu1 %v6589_v7, %s6506_s14  ;;  %2502 = vrot.lane.b32.xlu0 %v6581_v4, %s6506_s14 }
  0xcf   : > { %6180 = vmatprep.subr.msk.bf16.mxu1 %vm298_vm1, %v1096_v38  ;;  %6179 = vmatmul.mubr.msk.bf16.vlgmr.msra.gmra.mrb[28].mxu0 %vm294_vm2, %v6177_v37 }
  0xd0   : > { %1154 = vmatpush1.bf16.msra.mxu1 %v1107_v39  ;;  %v1205_v40 = vpop.permute.xlu1 %1204  ;;  %v1203_v41 = vpop.permute.xlu0 %1202  ;;  %1262 = vmatprep.mubr.bf16.mxu0 %v6487_v1  ;;  %v6197_v39 = vld [vmem:[%s7699_s2 + $0xb] sm:$0x1] }
  0xd1   : > { %v1211_v42 = vsel %vm1210_vm9, %v1201_v35, %v1203_v41  ;;  %v1212_v43 = vsel %vm1210_vm9, %v1203_v41, %v1205_v40 }
  0xd2   : > { %2616 = vrot.lane.b32.xlu1 %v6583_v5, %s6507_s18  ;;  %2506 = vrot.lane.b32.xlu0 %v6599_v9, %s6506_s14  ;;  %v1219_v44 = vsel %vm298_vm1, %v1211_v42, 0  ;;  %s6513_s14 = smov 57  }
  0xd3   : > { %6183 = vmatprep.subr.msk.bf16.mxu0 %vm298_vm1, %v1212_v43  ;;  %6181 = vmatmul.mubr.msk.bf16.vlgmr.msra.gmra.mrb[28].mxu1 %vm294_vm2, %v6177_v37 }
  0xd4   : > { %1231 = vmatpush1.bf16.msra.mxu0 %v1219_v44  ;;  %v1209_v45 = vpop.permute.xlu1 %1208  ;;  %v1207_v46 = vpop.permute.xlu0 %1206  ;;  %1303 = vmatprep.mubr.bf16.mxu1 %v6487_v1 }
  0xd5   : > { %v1213_v48 = vsel %vm1210_vm9, %v1205_v40, %v1207_v46  ;;  %v1214_v49 = vsel %vm1210_vm9, %v1207_v46, %v1209_v45  ;;  %vm2508_vm9 = vcmask 646144  }
  0xd6   : > { %2620 = vrot.lane.b32.xlu1 %v6581_v4, %s6507_s18  ;;  %2618 = vrot.lane.b32.xlu0 %v6586_v6, %s6507_s18  ;;  %v1225_v50 = vsel %vm298_vm1, %v1213_v48, 0 }
  0xd7   : > { %6185 = vmatprep.subr.msk.bf16.mxu1 %vm298_vm1, %v1214_v49  ;;  %6184 = vmatmul.mubr.msk.bf16.vlgmr.msra.gmra.mrb[32].mxu0 %vm294_vm2, %v6182_v47  ;;  %v6202_v49 = vld [vmem:[%s7699_s2 + $0xc] sm:$0x1] }
  0xd8   : > { %1272 = vmatpush1.bf16.msra.mxu1 %v1225_v50  ;;  %v1321_v51 = vpop.permute.xlu1 %1320  ;;  %v1319_v52 = vpop.permute.xlu0 %1318  ;;  %1380 = vmatprep.mubr.bf16.mxu0 %v6487_v1 }
  0xd9   : > { %v1329_v54 = vsel %vm1328_vm10, %v1319_v52, %v1321_v51 }
  0xda   : > { %2624 = vrot.lane.b32.xlu1 %v6599_v9, %s6507_s18  ;;  %2622 = vrot.lane.b32.xlu0 %v6589_v7, %s6507_s18  ;;  %v1337_v61 = vsel %vm298_vm1, %v1329_v54, 0  ;;  %s6514_s18 = smov 56  }
  0xdb   : > { %6186 = vmatmul.mubr.msk.bf16.vlgmr.msra.gmra.mrb[32].mxu1 %vm294_vm2, %v6182_v47 }
  0xdc   : > { %v1325_v56 = vpop.permute.xlu1 %1324  ;;  %v1323_v59 = vpop.permute.xlu0 %1322  ;;  %1421 = vmatprep.mubr.bf16.mxu1 %v6487_v1 }
  0xdd   : > { %v1330_v60 = vsel %vm1328_vm10, %v1321_v51, %v1323_v59  ;;  %v1331_v62 = vsel %vm1328_vm10, %v1323_v59, %v1325_v56 }
  0xde   : > { %2736 = vrot.lane.b32.xlu1 %v6586_v6, %s6508_s21  ;;  %2734 = vrot.lane.b32.xlu0 %v6583_v5, %s6508_s21  ;;  %v1343_v11 = vsel %vm298_vm1, %v1331_v62, 0 }
  0xdf   : > { %6188 = vmatprep.subr.msk.bf16.mxu0 %vm298_vm1, %v1330_v60 }
  0xe0   : > { %1349 = vmatpush1.bf16.msra.mxu0 %v1337_v61  ;;  %v1437_v63 = vpop.permute.xlu1 %1436  ;;  %v1327_v0 = vpop.permute.xlu0 %1326 }
  0xe1   : > { %v1332_v8 = vsel %vm1328_vm10, %v1325_v56, %v1327_v0  ;;  %vm2626_vm10 = vcmask 637952  }
  0xe2   : > { %2740 = vrot.lane.b32.xlu1 %v6589_v7, %s6508_s21  ;;  %2738 = vrot.lane.b32.xlu0 %v6581_v4, %s6508_s21 }
  0xe3   : > { %6190 = vmatprep.subr.msk.bf16.mxu1 %vm298_vm1, %v1332_v8  ;;  %6189 = vmatmul.mubr.msk.bf16.vlgmr.msra.gmra.mrb[36].mxu0 %vm294_vm2, %v6187_v2 }
  0xe4   : > { %1390 = vmatpush1.bf16.msra.mxu1 %v1343_v11  ;;  %v1441_v13 = vpop.permute.xlu1 %1440  ;;  %v1439_v15 = vpop.permute.xlu0 %1438  ;;  %1498 = vmatprep.mubr.bf16.mxu0 %v6487_v1  ;;  %v6207_v11 = vld [vmem:[%s7699_s2 + $0xd] sm:$0x1] }
  0xe5   : > { %v1447_v16 = vsel %vm1446_vm11, %v1437_v63, %v1439_v15  ;;  %v1448_v17 = vsel %vm1446_vm11, %v1439_v15, %v1441_v13 }
  0xe6   : > { %2852 = vrot.lane.b32.xlu1 %v6583_v5, %s6509_s24  ;;  %2742 = vrot.lane.b32.xlu0 %v6599_v9, %s6508_s21  ;;  %v1455_v18 = vsel %vm298_vm1, %v1447_v16, 0  ;;  %s6515_s21 = smov 40  }
  0xe7   : > { %6193 = vmatprep.subr.msk.bf16.mxu0 %vm298_vm1, %v1448_v17  ;;  %6191 = vmatmul.mubr.msk.bf16.vlgmr.msra.gmra.mrb[36].mxu1 %vm294_vm2, %v6187_v2 }
  0xe8   : > { %1467 = vmatpush1.bf16.msra.mxu0 %v1455_v18  ;;  %v1445_v20 = vpop.permute.xlu1 %1444  ;;  %v1443_v22 = vpop.permute.xlu0 %1442  ;;  %1539 = vmatprep.mubr.bf16.mxu1 %v6487_v1 }
  0xe9   : > { %v1449_v26 = vsel %vm1446_vm11, %v1441_v13, %v1443_v22  ;;  %v1450_v27 = vsel %vm1446_vm11, %v1443_v22, %v1445_v20  ;;  %vm2744_vm11 = vcmask 506880  }
  0xea   : > { %2856 = vrot.lane.b32.xlu1 %v6581_v4, %s6509_s24  ;;  %2854 = vrot.lane.b32.xlu0 %v6586_v6, %s6509_s24  ;;  %v1461_v28 = vsel %vm298_vm1, %v1449_v26, 0 }
  0xeb   : > { %6195 = vmatprep.subr.msk.bf16.mxu1 %vm298_vm1, %v1450_v27  ;;  %6194 = vmatmul.mubr.msk.bf16.vlgmr.msra.gmra.mrb[40].mxu0 %vm294_vm2, %v6192_v23  ;;  %v6212_v27 = vld [vmem:[%s7699_s2 + $0xe] sm:$0x1] }
  0xec   : > { %1508 = vmatpush1.bf16.msra.mxu1 %v1461_v28  ;;  %v1557_v29 = vpop.permute.xlu1 %1556  ;;  %v1555_v30 = vpop.permute.xlu0 %1554  ;;  %1616 = vmatprep.mubr.bf16.mxu0 %v6487_v1 }
  0xed   : > { %v1565_v31 = vsel %vm1564_vm12, %v1555_v30, %v1557_v29 }
  0xee   : > { %2860 = vrot.lane.b32.xlu1 %v6599_v9, %s6509_s24  ;;  %2858 = vrot.lane.b32.xlu0 %v6589_v7, %s6509_s24  ;;  %v1573_v35 = vsel %vm298_vm1, %v1565_v31, 0  ;;  %s6516_s24 = smov 39  }
  0xef   : > { %6196 = vmatmul.mubr.msk.bf16.vlgmr.msra.gmra.mrb[40].mxu1 %vm294_vm2, %v6192_v23 }
  0xf0   : > { %v1561_v32 = vpop.permute.xlu1 %1560  ;;  %v1559_v33 = vpop.permute.xlu0 %1558  ;;  %1657 = vmatprep.mubr.bf16.mxu1 %v6487_v1 }
  0xf1   : > { %v1566_v34 = vsel %vm1564_vm12, %v1557_v29, %v1559_v33  ;;  %v1567_v36 = vsel %vm1564_vm12, %v1559_v33, %v1561_v32 }
  0xf2   : > { %2972 = vrot.lane.b32.xlu1 %v6586_v6, %s6510_s27  ;;  %2970 = vrot.lane.b32.xlu0 %v6583_v5, %s6510_s27  ;;  %v1579_v41 = vsel %vm298_vm1, %v1567_v36, 0 }
  0xf3   : > { %6198 = vmatprep.subr.msk.bf16.mxu0 %vm298_vm1, %v1566_v34 }
  0xf4   : > { %1585 = vmatpush1.bf16.msra.mxu0 %v1573_v35  ;;  %v1673_v37 = vpop.permute.xlu1 %1672  ;;  %v1563_v38 = vpop.permute.xlu0 %1562 }
  0xf5   : > { %v1568_v40 = vsel %vm1564_vm12, %v1561_v32, %v1563_v38  ;;  %vm2862_vm12 = vcmask 498688  }
  0xf6   : > { %2976 = vrot.lane.b32.xlu1 %v6589_v7, %s6510_s27  ;;  %2974 = vrot.lane.b32.xlu0 %v6581_v4, %s6510_s27 }
  0xf7   : > { %6199 = vmatmul.mubr.msk.bf16.vlgmr.msra.gmra.mrb[44].mxu0 %vm294_vm2, %v6197_v39  ;;  %6200 = vmatprep.subr.msk.bf16.mxu1 %vm298_vm1, %v1568_v40 }
  0xf8   : > { %1626 = vmatpush1.bf16.msra.mxu1 %v1579_v41  ;;  %v1677_v42 = vpop.permute.xlu1 %1676  ;;  %v1675_v43 = vpop.permute.xlu0 %1674  ;;  %1734 = vmatprep.mubr.bf16.mxu0 %v6487_v1  ;;  %v6217_v41 = vld [vmem:[%s7699_s2 + $0xf] sm:$0x1] }
  0xf9   : > { %v1683_v44 = vsel %vm1682_vm13, %v1673_v37, %v1675_v43  ;;  %v1684_v45 = vsel %vm1682_vm13, %v1675_v43, %v1677_v42 }
  0xfa   : > { %3088 = vrot.lane.b32.xlu1 %v6583_v5, %s6511_s5  ;;  %2978 = vrot.lane.b32.xlu0 %v6599_v9, %s6510_s27  ;;  %v1691_v46 = vsel %vm298_vm1, %v1683_v44, 0  ;;  %s6517_s27 = smov 38  }
  0xfb   : > { %6201 = vmatmul.mubr.msk.bf16.vlgmr.msra.gmra.mrb[44].mxu1 %vm294_vm2, %v6197_v39  ;;  %6203 = vmatprep.subr.msk.bf16.mxu0 %vm298_vm1, %v1684_v45 }
  0xfc   : > { %1703 = vmatpush1.bf16.msra.mxu0 %v1691_v46  ;;  %v1681_v47 = vpop.permute.xlu1 %1680  ;;  %v1679_v48 = vpop.permute.xlu0 %1678  ;;  %1775 = vmatprep.mubr.bf16.mxu1 %v6487_v1 }
  0xfd   : > { %v1685_v50 = vsel %vm1682_vm13, %v1677_v42, %v1679_v48  ;;  %v1686_v51 = vsel %vm1682_vm13, %v1679_v48, %v1681_v47  ;;  %vm2980_vm13 = vcmask 490496  }
  0xfe   : > { %3092 = vrot.lane.b32.xlu1 %v6581_v4, %s6511_s5  ;;  %3090 = vrot.lane.b32.xlu0 %v6586_v6, %s6511_s5  ;;  %v1697_v52 = vsel %vm298_vm1, %v1685_v50, 0 }
  0xff   : > { %6204 = vmatmul.mubr.msk.bf16.vlgmr.msra.gmra.mrb[48].mxu0 %vm294_vm2, %v6202_v49  ;;  %6205 = vmatprep.subr.msk.bf16.mxu1 %vm298_vm1, %v1686_v51  ;;  %v6222_v51 = vld [vmem:[%s7699_s2 + $0x10] sm:$0x1] }
 0x100   : > { %1744 = vmatpush1.bf16.msra.mxu1 %v1697_v52  ;;  %v1793_v54 = vpop.permute.xlu1 %1792  ;;  %v1791_v56 = vpop.permute.xlu0 %1790  ;;  %1852 = vmatprep.mubr.bf16.mxu0 %v6487_v1 }
 0x101   : > { %v1801_v59 = vsel %vm1800_vm14, %v1791_v56, %v1793_v54 }
 0x102   : > { %3096 = vrot.lane.b32.xlu1 %v6599_v9, %s6511_s5  ;;  %3094 = vrot.lane.b32.xlu0 %v6589_v7, %s6511_s5  ;;  %v1809_v63 = vsel %vm298_vm1, %v1801_v59, 0  ;;  %s6518_s5 = smov 37  }
 0x103   : > { %6206 = vmatmul.mubr.msk.bf16.vlgmr.msra.gmra.mrb[48].mxu1 %vm294_vm2, %v6202_v49 }
 0x104   : > { %v1797_v60 = vpop.permute.xlu1 %1796  ;;  %v1795_v61 = vpop.permute.xlu0 %1794  ;;  %1893 = vmatprep.mubr.bf16.mxu1 %v6487_v1 }
 0x105   : > { %v1802_v62 = vsel %vm1800_vm14, %v1793_v54, %v1795_v61  ;;  %v1803_v0 = vsel %vm1800_vm14, %v1795_v61, %v1797_v60 }
 0x106   : > { %3208 = vrot.lane.b32.xlu1 %v6586_v6, %s6512_s11  ;;  %3206 = vrot.lane.b32.xlu0 %v6583_v5, %s6512_s11  ;;  %v1815_v15 = vsel %vm298_vm1, %v1803_v0, 0 }
 0x107   : > { %6208 = vmatprep.subr.msk.bf16.mxu0 %vm298_vm1, %v1802_v62 }
 0x108   : > { %1821 = vmatpush1.bf16.msra.mxu0 %v1809_v63  ;;  %v1909_v2 = vpop.permute.xlu1 %1908  ;;  %v1799_v8 = vpop.permute.xlu0 %1798 }
 0x109   : > { %v1804_v13 = vsel %vm1800_vm14, %v1797_v60, %v1799_v8  ;;  %vm3098_vm14 = vcmask 482304  }
 0x10a   : > { %3212 = vrot.lane.b32.xlu1 %v6589_v7, %s6512_s11  ;;  %3210 = vrot.lane.b32.xlu0 %v6581_v4, %s6512_s11 }
 0x10b   : > { %6209 = vmatmul.mubr.msk.bf16.vlgmr.msra.gmra.mrb[52].mxu0 %vm294_vm2, %v6207_v11  ;;  %6210 = vmatprep.subr.msk.bf16.mxu1 %vm298_vm1, %v1804_v13 }
 0x10c   : > { %1862 = vmatpush1.bf16.msra.mxu1 %v1815_v15  ;;  %v1913_v16 = vpop.permute.xlu1 %1912  ;;  %v1911_v17 = vpop.permute.xlu0 %1910  ;;  %1970 = vmatprep.mubr.bf16.mxu0 %v6487_v1  ;;  %v6227_v15 = vld [vmem:[%s7699_s2 + $0x11] sm:$0x1] }
 0x10d   : > { %v1919_v18 = vsel %vm1918_vm15, %v1909_v2, %v1911_v17  ;;  %v1920_v20 = vsel %vm1918_vm15, %v1911_v17, %v1913_v16 }
 0x10e   : > { %3324 = vrot.lane.b32.xlu1 %v6583_v5, %s6513_s14  ;;  %3214 = vrot.lane.b32.xlu0 %v6599_v9, %s6512_s11  ;;  %v1927_v22 = vsel %vm298_vm1, %v1919_v18, 0  ;;  %s6519_s11 = smov 36  }
 0x10f   : > { %6211 = vmatmul.mubr.msk.bf16.vlgmr.msra.gmra.mrb[52].mxu1 %vm294_vm2, %v6207_v11  ;;  %6213 = vmatprep.subr.msk.bf16.mxu0 %vm298_vm1, %v1920_v20 }
 0x110   : > { %1939 = vmatpush1.bf16.msra.mxu0 %v1927_v22  ;;  %v1917_v23 = vpop.permute.xlu1 %1916  ;;  %v1915_v26 = vpop.permute.xlu0 %1914  ;;  %2011 = vmatprep.mubr.bf16.mxu1 %v6487_v1 }
 0x111   : > { %v1921_v28 = vsel %vm1918_vm15, %v1913_v16, %v1915_v26  ;;  %v1922_v29 = vsel %vm1918_vm15, %v1915_v26, %v1917_v23  ;;  %vm3216_vm15 = vcmask 474112  }
 0x112   : > { %3328 = vrot.lane.b32.xlu1 %v6581_v4, %s6513_s14  ;;  %3326 = vrot.lane.b32.xlu0 %v6586_v6, %s6513_s14  ;;  %v1933_v30 = vsel %vm298_vm1, %v1921_v28, 0 }
 0x113   : > { %6214 = vmatmul.mubr.msk.bf16.vlgmr.msra.gmra.mrb[56].mxu0 %vm294_vm2, %v6212_v27  ;;  %6215 = vmatprep.subr.msk.bf16.mxu1 %vm298_vm1, %v1922_v29  ;;  %v6232_v29 = vld [vmem:[%s7699_s2 + $0x12] sm:$0x1] }
 0x114   : > { %1980 = vmatpush1.bf16.msra.mxu1 %v1933_v30  ;;  %v2029_v31 = vpop.permute.xlu1 %2028  ;;  %v2027_v32 = vpop.permute.xlu0 %2026  ;;  %2088 = vmatprep.mubr.bf16.mxu0 %v6487_v1 }
 0x115   : > { %v2037_v33 = vsel %vm2036_vm0, %v2027_v32, %v2029_v31 }
 0x116   : > { %3332 = vrot.lane.b32.xlu1 %v6599_v9, %s6513_s14  ;;  %3330 = vrot.lane.b32.xlu0 %v6589_v7, %s6513_s14  ;;  %v2045_v37 = vsel %vm298_vm1, %v2037_v33, 0  ;;  %s6520_s14 = smov 35  }
 0x117   : > { %6216 = vmatmul.mubr.msk.bf16.vlgmr.msra.gmra.mrb[56].mxu1 %vm294_vm2, %v6212_v27 }
 0x118   : > { %v2033_v34 = vpop.permute.xlu1 %2032  ;;  %v2031_v35 = vpop.permute.xlu0 %2030  ;;  %2129 = vmatprep.mubr.bf16.mxu1 %v6487_v1 }
 0x119   : > { %v2038_v36 = vsel %vm2036_vm0, %v2029_v31, %v2031_v35  ;;  %v2039_v38 = vsel %vm2036_vm0, %v2031_v35, %v2033_v34 }
 0x11a   : > { %3444 = vrot.lane.b32.xlu1 %v6586_v6, %s6514_s18  ;;  %3442 = vrot.lane.b32.xlu0 %v6583_v5, %s6514_s18  ;;  %v2051_v43 = vsel %vm298_vm1, %v2039_v38, 0 }
 0x11b   : > { %6218 = vmatprep.subr.msk.bf16.mxu0 %vm298_vm1, %v2038_v36 }
 0x11c   : > { %2057 = vmatpush1.bf16.msra.mxu0 %v2045_v37  ;;  %v2145_v39 = vpop.permute.xlu1 %2144  ;;  %v2035_v40 = vpop.permute.xlu0 %2034 }
 0x11d   : > { %v2040_v42 = vsel %vm2036_vm0, %v2033_v34, %v2035_v40  ;;  %vm3334_vm0 = vcmask 465920  }
 0x11e   : > { %3448 = vrot.lane.b32.xlu1 %v6589_v7, %s6514_s18  ;;  %3446 = vrot.lane.b32.xlu0 %v6581_v4, %s6514_s18 }
 0x11f   : > { %6219 = vmatmul.mubr.msk.bf16.vlgmr.msra.gmra.mrb[60].mxu0 %vm294_vm2, %v6217_v41  ;;  %6220 = vmatprep.subr.msk.bf16.mxu1 %vm298_vm1, %v2040_v42 }
 0x120   : > { %2098 = vmatpush1.bf16.msra.mxu1 %v2051_v43  ;;  %v2149_v44 = vpop.permute.xlu1 %2148  ;;  %v2147_v45 = vpop.permute.xlu0 %2146  ;;  %2206 = vmatprep.mubr.bf16.mxu0 %v6487_v1  ;;  %v6237_v43 = vld [vmem:[%s7699_s2 + $0x13] sm:$0x1] }
 0x121   : > { %v2155_v46 = vsel %vm2154_vm3, %v2145_v39, %v2147_v45  ;;  %v2156_v47 = vsel %vm2154_vm3, %v2147_v45, %v2149_v44 }
 0x122   : > { %3560 = vrot.lane.b32.xlu1 %v6583_v5, %s6515_s21  ;;  %3450 = vrot.lane.b32.xlu0 %v6599_v9, %s6514_s18  ;;  %v2163_v48 = vsel %vm298_vm1, %v2155_v46, 0  ;;  %s6521_s18 = smov 34  }
 0x123   : > { %6221 = vmatmul.mubr.msk.bf16.vlgmr.msra.gmra.mrb[60].mxu1 %vm294_vm2, %v6217_v41  ;;  %6223 = vmatprep.subr.msk.bf16.mxu0 %vm298_vm1, %v2156_v47 }
 0x124   : > { %2175 = vmatpush1.bf16.msra.mxu0 %v2163_v48  ;;  %v2153_v49 = vpop.permute.xlu1 %2152  ;;  %v2151_v50 = vpop.permute.xlu0 %2150  ;;  %2247 = vmatprep.mubr.bf16.mxu1 %v6487_v1 }
 0x125   : > { %v2157_v52 = vsel %vm2154_vm3, %v2149_v44, %v2151_v50  ;;  %v2158_v54 = vsel %vm2154_vm3, %v2151_v50, %v2153_v49  ;;  %vm3452_vm3 = vcmask 457728  }
 0x126   : > { %3564 = vrot.lane.b32.xlu1 %v6581_v4, %s6515_s21  ;;  %3562 = vrot.lane.b32.xlu0 %v6586_v6, %s6515_s21  ;;  %v2169_v56 = vsel %vm298_vm1, %v2157_v52, 0 }
 0x127   : > { %6224 = vmatmul.mubr.msk.bf16.vlgmr.msra.gmra.mrb[64].mxu0 %vm294_vm2, %v6222_v51  ;;  %6225 = vmatprep.subr.msk.bf16.mxu1 %vm298_vm1, %v2158_v54  ;;  %v6242_v54 = vld [vmem:[%s7699_s2 + $0x14] sm:$0x1] }
 0x128   : > { %2216 = vmatpush1.bf16.msra.mxu1 %v2169_v56  ;;  %v2265_v59 = vpop.permute.xlu1 %2264  ;;  %v2263_v60 = vpop.permute.xlu0 %2262  ;;  %2324 = vmatprep.mubr.bf16.mxu0 %v6487_v1 }
 0x129   : > { %v2273_v61 = vsel %vm2272_vm4, %v2263_v60, %v2265_v59 }
 0x12a   : > { %3568 = vrot.lane.b32.xlu1 %v6599_v9, %s6515_s21  ;;  %3566 = vrot.lane.b32.xlu0 %v6589_v7, %s6515_s21  ;;  %v2281_v2 = vsel %vm298_vm1, %v2273_v61, 0  ;;  %s6522_s21 = smov 18  }
 0x12b   : > { %6226 = vmatmul.mubr.msk.bf16.vlgmr.msra.gmra.mrb[64].mxu1 %vm294_vm2, %v6222_v51 }
 0x12c   : > { %v2269_v62 = vpop.permute.xlu1 %2268  ;;  %v2267_v63 = vpop.permute.xlu0 %2266  ;;  %2365 = vmatprep.mubr.bf16.mxu1 %v6487_v1 }
 0x12d   : > { %v2274_v0 = vsel %vm2272_vm4, %v2265_v59, %v2267_v63  ;;  %v2275_v8 = vsel %vm2272_vm4, %v2267_v63, %v2269_v62 }
 0x12e   : > { %3680 = vrot.lane.b32.xlu1 %v6586_v6, %s6516_s24  ;;  %3678 = vrot.lane.b32.xlu0 %v6583_v5, %s6516_s24  ;;  %v2287_v17 = vsel %vm298_vm1, %v2275_v8, 0 }
 0x12f   : > { %6228 = vmatprep.subr.msk.bf16.mxu0 %vm298_vm1, %v2274_v0 }
 0x130   : > { %2293 = vmatpush1.bf16.msra.mxu0 %v2281_v2  ;;  %v2381_v11 = vpop.permute.xlu1 %2380  ;;  %v2271_v13 = vpop.permute.xlu0 %2270 }
 0x131   : > { %v2276_v16 = vsel %vm2272_vm4, %v2269_v62, %v2271_v13  ;;  %vm3570_vm4 = vcmask 326656  }
 0x132   : > { %3684 = vrot.lane.b32.xlu1 %v6589_v7, %s6516_s24  ;;  %3682 = vrot.lane.b32.xlu0 %v6581_v4, %s6516_s24 }
 0x133   : > { %6229 = vmatmul.mubr.msk.bf16.vlgmr.msra.gmra.mrb[68].mxu0 %vm294_vm2, %v6227_v15  ;;  %6230 = vmatprep.subr.msk.bf16.mxu1 %vm298_vm1, %v2276_v16 }
 0x134   : > { %2334 = vmatpush1.bf16.msra.mxu1 %v2287_v17  ;;  %v2385_v18 = vpop.permute.xlu1 %2384  ;;  %v2383_v20 = vpop.permute.xlu0 %2382  ;;  %2442 = vmatprep.mubr.bf16.mxu0 %v6487_v1  ;;  %v6247_v17 = vld [vmem:[%s7699_s2 + $0x15] sm:$0x1] }
 0x135   : > { %v2391_v22 = vsel %vm2390_vm8, %v2381_v11, %v2383_v20  ;;  %v2392_v23 = vsel %vm2390_vm8, %v2383_v20, %v2385_v18 }
 0x136   : > { %3796 = vrot.lane.b32.xlu1 %v6583_v5, %s6517_s27  ;;  %3686 = vrot.lane.b32.xlu0 %v6599_v9, %s6516_s24  ;;  %v2399_v26 = vsel %vm298_vm1, %v2391_v22, 0  ;;  %s6523_s24 = smov 17  }
 0x137   : > { %6231 = vmatmul.mubr.msk.bf16.vlgmr.msra.gmra.mrb[68].mxu1 %vm294_vm2, %v6227_v15  ;;  %6233 = vmatprep.subr.msk.bf16.mxu0 %vm298_vm1, %v2392_v23 }
 0x138   : > { %2411 = vmatpush1.bf16.msra.mxu0 %v2399_v26  ;;  %v2389_v27 = vpop.permute.xlu1 %2388  ;;  %v2387_v28 = vpop.permute.xlu0 %2386  ;;  %2483 = vmatprep.mubr.bf16.mxu1 %v6487_v1 }
 0x139   : > { %v2393_v30 = vsel %vm2390_vm8, %v2385_v18, %v2387_v28  ;;  %v2394_v31 = vsel %vm2390_vm8, %v2387_v28, %v2389_v27  ;;  %vm3688_vm8 = vcmask 318464  }
 0x13a   : > { %3800 = vrot.lane.b32.xlu1 %v6581_v4, %s6517_s27  ;;  %3798 = vrot.lane.b32.xlu0 %v6586_v6, %s6517_s27  ;;  %v2405_v32 = vsel %vm298_vm1, %v2393_v30, 0 }
 0x13b   : > { %6234 = vmatmul.mubr.msk.bf16.vlgmr.msra.gmra.mrb[72].mxu0 %vm294_vm2, %v6232_v29  ;;  %6235 = vmatprep.subr.msk.bf16.mxu1 %vm298_vm1, %v2394_v31  ;;  %v6252_v31 = vld [vmem:[%s7699_s2 + $0x16] sm:$0x1] }
 0x13c   : > { %2452 = vmatpush1.bf16.msra.mxu1 %v2405_v32  ;;  %v2501_v33 = vpop.permute.xlu1 %2500  ;;  %v2499_v34 = vpop.permute.xlu0 %2498  ;;  %2560 = vmatprep.mubr.bf16.mxu0 %v6487_v1 }
 0x13d   : > { %v2509_v35 = vsel %vm2508_vm9, %v2499_v34, %v2501_v33 }
 0x13e   : > { %3804 = vrot.lane.b32.xlu1 %v6599_v9, %s6517_s27  ;;  %3802 = vrot.lane.b32.xlu0 %v6589_v7, %s6517_s27  ;;  %v2517_v39 = vsel %vm298_vm1, %v2509_v35, 0  ;;  %s6524_s27 = smov 16  }
 0x13f   : > { %6236 = vmatmul.mubr.msk.bf16.vlgmr.msra.gmra.mrb[72].mxu1 %vm294_vm2, %v6232_v29 }
 0x140   : > { %v2505_v36 = vpop.permute.xlu1 %2504  ;;  %v2503_v37 = vpop.permute.xlu0 %2502  ;;  %2601 = vmatprep.mubr.bf16.mxu1 %v6487_v1 }
 0x141   : > { %v2510_v38 = vsel %vm2508_vm9, %v2501_v33, %v2503_v37  ;;  %v2511_v40 = vsel %vm2508_vm9, %v2503_v37, %v2505_v36 }
 0x142   : > { %3916 = vrot.lane.b32.xlu1 %v6586_v6, %s6518_s5  ;;  %3914 = vrot.lane.b32.xlu0 %v6583_v5, %s6518_s5  ;;  %v2523_v45 = vsel %vm298_vm1, %v2511_v40, 0 }
 0x143   : > { %6238 = vmatprep.subr.msk.bf16.mxu0 %vm298_vm1, %v2510_v38 }
 0x144   : > { %2529 = vmatpush1.bf16.msra.mxu0 %v2517_v39  ;;  %v2617_v41 = vpop.permute.xlu1 %2616  ;;  %v2507_v42 = vpop.permute.xlu0 %2506 }
 0x145   : > { %v2512_v44 = vsel %vm2508_vm9, %v2505_v36, %v2507_v42  ;;  %vm3806_vm9 = vcmask 310272  }
 0x146   : > { %3920 = vrot.lane.b32.xlu1 %v6589_v7, %s6518_s5  ;;  %3918 = vrot.lane.b32.xlu0 %v6581_v4, %s6518_s5 }
 0x147   : > { %6239 = vmatmul.mubr.msk.bf16.vlgmr.msra.gmra.mrb[76].mxu0 %vm294_vm2, %v6237_v43  ;;  %6240 = vmatprep.subr.msk.bf16.mxu1 %vm298_vm1, %v2512_v44 }
 0x148   : > { %2570 = vmatpush1.bf16.msra.mxu1 %v2523_v45  ;;  %v2621_v46 = vpop.permute.xlu1 %2620  ;;  %v2619_v47 = vpop.permute.xlu0 %2618  ;;  %2678 = vmatprep.mubr.bf16.mxu0 %v6487_v1 }
 0x149   : > { %v2627_v48 = vsel %vm2626_vm10, %v2617_v41, %v2619_v47  ;;  %v2628_v49 = vsel %vm2626_vm10, %v2619_v47, %v2621_v46 }
 0x14a   : > { %4032 = vrot.lane.b32.xlu1 %v6583_v5, %s6519_s11  ;;  %3922 = vrot.lane.b32.xlu0 %v6599_v9, %s6518_s5  ;;  %v2635_v50 = vsel %vm298_vm1, %v2627_v48, 0  ;;  %s6525_s5 = smov 15  }
 0x14b   : > { %6241 = vmatmul.mubr.msk.bf16.vlgmr.msra.gmra.mrb[76].mxu1 %vm294_vm2, %v6237_v43  ;;  %6243 = vmatprep.subr.msk.bf16.mxu0 %vm298_vm1, %v2628_v49 }
 0x14c   : > { %2647 = vmatpush1.bf16.msra.mxu0 %v2635_v50  ;;  %v2625_v51 = vpop.permute.xlu1 %2624  ;;  %v2623_v52 = vpop.permute.xlu0 %2622  ;;  %2719 = vmatprep.mubr.bf16.mxu1 %v6487_v1 }
 0x14d   : > { %v2629_v56 = vsel %vm2626_vm10, %v2621_v46, %v2623_v52  ;;  %v2630_v59 = vsel %vm2626_vm10, %v2623_v52, %v2625_v51  ;;  %v6257_v51 = vld [vmem:[%s7699_s2 + $0x17] sm:$0x1]  ;;  %vm3924_vm10 = vcmask 302080  }
 0x14e   : > { %4036 = vrot.lane.b32.xlu1 %v6581_v4, %s6519_s11  ;;  %4034 = vrot.lane.b32.xlu0 %v6586_v6, %s6519_s11  ;;  %v2641_v60 = vsel %vm298_vm1, %v2629_v56, 0 }
 0x14f   : > { %6244 = vmatmul.mubr.msk.bf16.vlgmr.msra.gmra.mrb[80].mxu0 %vm294_vm2, %v6242_v54  ;;  %6245 = vmatprep.subr.msk.bf16.mxu1 %vm298_vm1, %v2630_v59 }
 0x150   : > { %2688 = vmatpush1.bf16.msra.mxu1 %v2641_v60  ;;  %v2737_v61 = vpop.permute.xlu1 %2736  ;;  %v2735_v62 = vpop.permute.xlu0 %2734  ;;  %2796 = vmatprep.mubr.bf16.mxu0 %v6487_v1 }
 0x151   : > { %v2745_v63 = vsel %vm2744_vm11, %v2735_v62, %v2737_v61 }
 0x152   : > { %4040 = vrot.lane.b32.xlu1 %v6599_v9, %s6519_s11  ;;  %4038 = vrot.lane.b32.xlu0 %v6589_v7, %s6519_s11  ;;  %v2753_v11 = vsel %vm298_vm1, %v2745_v63, 0  ;;  %s6526_s11 = smov 14  }
 0x153   : > { %6246 = vmatmul.mubr.msk.bf16.vlgmr.msra.gmra.mrb[80].mxu1 %vm294_vm2, %v6242_v54 }
 0x154   : > { %v2741_v0 = vpop.permute.xlu1 %2740  ;;  %v2739_v2 = vpop.permute.xlu0 %2738  ;;  %2837 = vmatprep.mubr.bf16.mxu1 %v6487_v1 }
 0x155   : > { %v2746_v8 = vsel %vm2744_vm11, %v2737_v61, %v2739_v2  ;;  %v2747_v13 = vsel %vm2744_vm11, %v2739_v2, %v2741_v0 }
 0x156   : > { %4152 = vrot.lane.b32.xlu1 %v6586_v6, %s6520_s14  ;;  %4150 = vrot.lane.b32.xlu0 %v6583_v5, %s6520_s14  ;;  %v2759_v20 = vsel %vm298_vm1, %v2747_v13, 0 }
 0x157   : > { %6248 = vmatprep.subr.msk.bf16.mxu0 %vm298_vm1, %v2746_v8 }
 0x158   : > { %2765 = vmatpush1.bf16.msra.mxu0 %v2753_v11  ;;  %v2853_v15 = vpop.permute.xlu1 %2852  ;;  %v2743_v16 = vpop.permute.xlu0 %2742 }
 0x159   : > { %v2748_v18 = vsel %vm2744_vm11, %v2741_v0, %v2743_v16  ;;  %vm4042_vm11 = vcmask 293888  }
 0x15a   : > { %4156 = vrot.lane.b32.xlu1 %v6589_v7, %s6520_s14  ;;  %4154 = vrot.lane.b32.xlu0 %v6581_v4, %s6520_s14 }
 0x15b   : > { %6249 = vmatmul.mubr.msk.bf16.vlgmr.msra.gmra.mrb[84].mxu0 %vm294_vm2, %v6247_v17  ;;  %6250 = vmatprep.subr.msk.bf16.mxu1 %vm298_vm1, %v2748_v18 }
 0x15c   : > { %2806 = vmatpush1.bf16.msra.mxu1 %v2759_v20  ;;  %v2857_v22 = vpop.permute.xlu1 %2856  ;;  %v2855_v23 = vpop.permute.xlu0 %2854  ;;  %2914 = vmatprep.mubr.bf16.mxu0 %v6487_v1 }
 0x15d   : > { %v2863_v26 = vsel %vm2862_vm12, %v2853_v15, %v2855_v23  ;;  %v2864_v27 = vsel %vm2862_vm12, %v2855_v23, %v2857_v22 }
 0x15e   : > { %4268 = vrot.lane.b32.xlu1 %v6583_v5, %s6521_s18  ;;  %4158 = vrot.lane.b32.xlu0 %v6599_v9, %s6520_s14  ;;  %v2871_v28 = vsel %vm298_vm1, %v2863_v26, 0  ;;  %v6262_v26 = vld [vmem:[%s7699_s2 + $0x18] sm:$0x1]  ;;  %s6527_s14 = smov 13  }
 0x15f   : > { %6251 = vmatmul.mubr.msk.bf16.vlgmr.msra.gmra.mrb[84].mxu1 %vm294_vm2, %v6247_v17  ;;  %6253 = vmatprep.subr.msk.bf16.mxu0 %vm298_vm1, %v2864_v27 }
 0x160   : > { %2883 = vmatpush1.bf16.msra.mxu0 %v2871_v28  ;;  %v2861_v29 = vpop.permute.xlu1 %2860  ;;  %v2859_v30 = vpop.permute.xlu0 %2858  ;;  %2955 = vmatprep.mubr.bf16.mxu1 %v6487_v1 }
 0x161   : > { %v2865_v32 = vsel %vm2862_vm12, %v2857_v22, %v2859_v30  ;;  %v2866_v33 = vsel %vm2862_vm12, %v2859_v30, %v2861_v29  ;;  %vm4160_vm12 = vcmask 285696  }
 0x162   : > { %4272 = vrot.lane.b32.xlu1 %v6581_v4, %s6521_s18  ;;  %4270 = vrot.lane.b32.xlu0 %v6586_v6, %s6521_s18  ;;  %v2877_v34 = vsel %vm298_vm1, %v2865_v32, 0 }
 0x163   : > { %6254 = vmatmul.mubr.msk.bf16.vlgmr.msra.gmra.mrb[88].mxu0 %vm294_vm2, %v6252_v31  ;;  %6255 = vmatprep.subr.msk.bf16.mxu1 %vm298_vm1, %v2866_v33 }
 0x164   : > { %2924 = vmatpush1.bf16.msra.mxu1 %v2877_v34  ;;  %v2973_v35 = vpop.permute.xlu1 %2972  ;;  %v2971_v36 = vpop.permute.xlu0 %2970  ;;  %3032 = vmatprep.mubr.bf16.mxu0 %v6487_v1 }
 0x165   : > { %v2981_v39 = vsel %vm2980_vm13, %v2971_v36, %v2973_v35 }
 0x166   : > { %4276 = vrot.lane.b32.xlu1 %v6599_v9, %s6521_s18  ;;  %4274 = vrot.lane.b32.xlu0 %v6589_v7, %s6521_s18  ;;  %v345_v37 = vpop.f32.mrb[0].mxu0  ;;  %v2989_v46 = vsel %vm298_vm1, %v2981_v39, 0  ;;  %s6528_s18 = smov 12  }
 0x167   : > { %6256 = vmatmul.mubr.msk.bf16.vlgmr.msra.gmra.mrb[88].mxu1 %vm294_vm2, %v6252_v31  ;;  %v347_v38 = vpop.f32.mrb[1].mxu0 }
 0x168   : > { %v2977_v40 = vpop.permute.xlu1 %2976  ;;  %v2975_v41 = vpop.permute.xlu0 %2974  ;;  %3073 = vmatprep.mubr.bf16.mxu1 %v6487_v1 }
 0x169   : > { %v2982_v42 = vsel %vm2980_vm13, %v2973_v35, %v2975_v41  ;;  %v349_v43 = vpop.f32.mrb[2].mxu0  ;;  %v2983_v48 = vsel %vm2980_vm13, %v2975_v41, %v2977_v40 }
 0x16a   : > { %4388 = vrot.lane.b32.xlu1 %v6586_v6, %s6522_s21  ;;  %4386 = vrot.lane.b32.xlu0 %v6583_v5, %s6522_s21  ;;  %v386_v44 = vpop.f32.mrb[0].mxu1  ;;  %v350_v45 = vpop.f32.mrb[3].mxu0  ;;  %v2995_v60 = vsel %vm298_vm1, %v2983_v48, 0 }
 0x16b   : > { %6258 = vmatprep.subr.msk.bf16.mxu0 %vm298_vm1, %v2982_v42  ;;  %v388_v47 = vpop.f32.mrb[1].mxu1 }
 0x16c   : > { %3001 = vmatpush1.bf16.msra.mxu0 %v2989_v46  ;;  %v3089_v49 = vpop.permute.xlu1 %3088  ;;  %v2979_v50 = vpop.permute.xlu0 %2978 }
 0x16d   : > { %v2984_v52 = vsel %vm2980_vm13, %v2977_v40, %v2979_v50  ;;  %v390_v54 = vpop.f32.mrb[2].mxu1  ;;  %vm4278_vm13 = vcmask 277504  }
 0x16e   : > { %4392 = vrot.lane.b32.xlu1 %v6589_v7, %s6522_s21  ;;  %4390 = vrot.lane.b32.xlu0 %v6581_v4, %s6522_s21  ;;  %v442_v56 = vpop.f32.mrb[4].mxu0  ;;  %v391_v59 = vpop.f32.mrb[3].mxu1 }
 0x16f   : > { %6259 = vmatmul.mubr.msk.bf16.vlgmr.msra.gmra.mrb[92].mxu0 %vm294_vm2, %v6257_v51  ;;  %6260 = vmatprep.subr.msk.bf16.mxu1 %vm298_vm1, %v2984_v52  ;;  %v443_v61 = vadd.f32 %v442_v56, %v345_v37  ;;  %v444_v62 = vpop.f32.mrb[5].mxu0 }
 0x170   : > { %3042 = vmatpush1.bf16.msra.mxu1 %v2995_v60  ;;  %v3093_v63 = vpop.permute.xlu1 %3092  ;;  %v3091_v0 = vpop.permute.xlu0 %3090  ;;  %3150 = vmatprep.mubr.bf16.mxu0 %v6487_v1  ;;  %v445_v2 = vadd.f32 %v444_v62, %v347_v38  ;;  %v6267_v62 = vld [vmem:[%s7699_s2 + $0x19] sm:$0x1] }
 0x171   : > { %v3099_v8 = vsel %vm3098_vm14, %v3089_v49, %v3091_v0  ;;  %v3100_v11 = vsel %vm3098_vm14, %v3091_v0, %v3093_v63  ;;  %v446_v13 = vpop.f32.mrb[6].mxu0 }
 0x172   : > { %4504 = vrot.lane.b32.xlu1 %v6583_v5, %s6523_s24  ;;  %4394 = vrot.lane.b32.xlu0 %v6599_v9, %s6522_s21  ;;  %v3107_v15 = vsel %vm298_vm1, %v3099_v8, 0  ;;  %v483_v16 = vpop.f32.mrb[4].mxu1  ;;  %v447_v17 = vpop.f32.mrb[7].mxu0 }
 0x173   : > { %6261 = vmatmul.mubr.msk.bf16.vlgmr.msra.gmra.mrb[92].mxu1 %vm294_vm2, %v6257_v51  ;;  %6263 = vmatprep.subr.msk.bf16.mxu0 %vm298_vm1, %v3100_v11  ;;  %v484_v18 = vadd.f32 %v483_v16, %v386_v44  ;;  %v485_v20 = vpop.f32.mrb[5].mxu1 }
 0x174   : > { %3119 = vmatpush1.bf16.msra.mxu0 %v3107_v15  ;;  %v3097_v22 = vpop.permute.xlu1 %3096  ;;  %v3095_v23 = vpop.permute.xlu0 %3094  ;;  %3191 = vmatprep.mubr.bf16.mxu1 %v6487_v1  ;;  %v486_v27 = vadd.f32 %v485_v20, %v388_v47 }
 0x175   : > { %v3101_v28 = vsel %vm3098_vm14, %v3093_v63, %v3095_v23  ;;  %v3102_v29 = vsel %vm3098_vm14, %v3095_v23, %v3097_v22  ;;  %v487_v30 = vpop.f32.mrb[6].mxu1  ;;  %vm4396_vm14 = vcmask 146432  }
 0x176   : > { %4508 = vrot.lane.b32.xlu1 %v6581_v4, %s6523_s24  ;;  %4506 = vrot.lane.b32.xlu0 %v6586_v6, %s6523_s24  ;;  %v3113_v31 = vsel %vm298_vm1, %v3101_v28, 0  ;;  %v556_v32 = vpop.f32.mrb[8].mxu0  ;;  %v488_v33 = vpop.f32.mrb[7].mxu1 }
 0x177   : > { %6264 = vmatmul.mubr.msk.bf16.vlgmr.msra.gmra.mrb[96].mxu0 %vm294_vm2, %v6262_v26  ;;  %6265 = vmatprep.subr.msk.bf16.mxu1 %vm298_vm1, %v3102_v29  ;;  %v604_v34 = vadd.f32 %v556_v32, %v443_v61  ;;  %v558_v35 = vpop.f32.mrb[9].mxu0 }
 0x178   : > { %3160 = vmatpush1.bf16.msra.mxu1 %v3113_v31  ;;  %v3209_v36 = vpop.permute.xlu1 %3208  ;;  %v3207_v37 = vpop.permute.xlu0 %3206  ;;  %3268 = vmatprep.mubr.bf16.mxu0 %v6487_v1  ;;  %v605_v38 = vadd.f32 %v558_v35, %v445_v2 }
 0x179   : > { %v560_v39 = vpop.f32.mrb[10].mxu0  ;;  %v3217_v44 = vsel %vm3216_vm15, %v3207_v37, %v3209_v36 }
 0x17a   : > { %4512 = vrot.lane.b32.xlu1 %v6599_v9, %s6523_s24  ;;  %4510 = vrot.lane.b32.xlu0 %v6589_v7, %s6523_s24  ;;  %v597_v40 = vpop.f32.mrb[8].mxu1  ;;  %v561_v41 = vpop.f32.mrb[11].mxu0  ;;  %v3225_v52 = vsel %vm298_vm1, %v3217_v44, 0 }
 0x17b   : > { %6266 = vmatmul.mubr.msk.bf16.vlgmr.msra.gmra.mrb[96].mxu1 %vm294_vm2, %v6262_v26  ;;  %v606_v42 = vadd.f32 %v597_v40, %v484_v18  ;;  %v599_v43 = vpop.f32.mrb[9].mxu1 }
 0x17c   : > { %v3213_v45 = vpop.permute.xlu1 %3212  ;;  %v3211_v46 = vpop.permute.xlu0 %3210  ;;  %3309 = vmatprep.mubr.bf16.mxu1 %v6487_v1  ;;  %v607_v47 = vadd.f32 %v599_v43, %v486_v27 }
 0x17d   : > { %v3218_v48 = vsel %vm3216_vm15, %v3209_v36, %v3211_v46  ;;  %v601_v49 = vpop.f32.mrb[10].mxu1  ;;  %v3219_v59 = vsel %vm3216_vm15, %v3211_v46, %v3213_v45 }
 0x17e   : > { %4624 = vrot.lane.b32.xlu1 %v6586_v6, %s6524_s27  ;;  %4622 = vrot.lane.b32.xlu0 %v6583_v5, %s6524_s27  ;;  %v674_v50 = vpop.f32.mrb[12].mxu0  ;;  %v602_v51 = vpop.f32.mrb[11].mxu1  ;;  %v3231_v13 = vsel %vm298_vm1, %v3219_v59, 0 }
 0x17f   : > { %6268 = vmatprep.subr.msk.bf16.mxu0 %vm298_vm1, %v3218_v48  ;;  %v722_v54 = vadd.f32 %v674_v50, %v604_v34  ;;  %v676_v56 = vpop.f32.mrb[13].mxu0  ;;  %v6272_v34 = vld [vmem:[%s7699_s2 + $0x1a] sm:$0x1] }
 0x180   : > { %3237 = vmatpush1.bf16.msra.mxu0 %v3225_v52  ;;  %v3325_v60 = vpop.permute.xlu1 %3324  ;;  %v3215_v61 = vpop.permute.xlu0 %3214  ;;  %v723_v63 = vadd.f32 %v676_v56, %v605_v38 }
 0x181   : > { %v3220_v0 = vsel %vm3216_vm15, %v3213_v45, %v3215_v61  ;;  %v678_v2 = vpop.f32.mrb[14].mxu0  ;;  %vm4514_vm15 = vcmask 138240  }
 0x182   : > { %4628 = vrot.lane.b32.xlu1 %v6589_v7, %s6524_s27  ;;  %4626 = vrot.lane.b32.xlu0 %v6581_v4, %s6524_s27  ;;  %v715_v8 = vpop.f32.mrb[12].mxu1  ;;  %v679_v11 = vpop.f32.mrb[15].mxu0 }
 0x183   : > { %6269 = vmatmul.mubr.msk.bf16.vlgmr.msra.gmra.mrb[100].mxu0 %vm294_vm2, %v6267_v62  ;;  %6270 = vmatprep.subr.msk.bf16.mxu1 %vm298_vm1, %v3220_v0  ;;  %v724_v15 = vadd.f32 %v715_v8, %v606_v42  ;;  %v717_v16 = vpop.f32.mrb[13].mxu1 }
 0x184   : > { %3278 = vmatpush1.bf16.msra.mxu1 %v3231_v13  ;;  %v3329_v17 = vpop.permute.xlu1 %3328  ;;  %v3327_v18 = vpop.permute.xlu0 %3326  ;;  %3386 = vmatprep.mubr.bf16.mxu0 %v6487_v1  ;;  %v725_v20 = vadd.f32 %v717_v16, %v607_v47  ;;  %v6277_v16 = vld [vmem:[%s7699_s2 + $0x1b] sm:$0x1] }
 0x185   : > { %v3335_v22 = vsel %vm3334_vm0, %v3325_v60, %v3327_v18  ;;  %v3336_v23 = vsel %vm3334_vm0, %v3327_v18, %v3329_v17  ;;  %v719_v26 = vpop.f32.mrb[14].mxu1 }
 0x186   : > { %4740 = vrot.lane.b32.xlu1 %v6583_v5, %s6525_s5  ;;  %4630 = vrot.lane.b32.xlu0 %v6599_v9, %s6524_s27  ;;  %v3343_v27 = vsel %vm298_vm1, %v3335_v22, 0  ;;  %v792_v28 = vpop.f32.mrb[16].mxu0  ;;  %v720_v29 = vpop.f32.mrb[15].mxu1 }
 0x187   : > { %6271 = vmatmul.mubr.msk.bf16.vlgmr.msra.gmra.mrb[100].mxu1 %vm294_vm2, %v6267_v62  ;;  %6273 = vmatprep.subr.msk.bf16.mxu0 %vm298_vm1, %v3336_v23  ;;  %v840_v30 = vadd.f32 %v792_v28, %v722_v54  ;;  %v794_v31 = vpop.f32.mrb[17].mxu0 }
 0x188   : > { %3355 = vmatpush1.bf16.msra.mxu0 %v3343_v27  ;;  %v3333_v32 = vpop.permute.xlu1 %3332  ;;  %v3331_v33 = vpop.permute.xlu0 %3330  ;;  %3427 = vmatprep.mubr.bf16.mxu1 %v6487_v1  ;;  %v841_v35 = vadd.f32 %v794_v31, %v723_v63 }
 0x189   : > { %v3337_v36 = vsel %vm3334_vm0, %v3329_v17, %v3331_v33  ;;  %v3338_v37 = vsel %vm3334_vm0, %v3331_v33, %v3333_v32  ;;  %v796_v38 = vpop.f32.mrb[18].mxu0  ;;  %vm4632_vm0 = vcmask 130048  }
 0x18a   : > { %4744 = vrot.lane.b32.xlu1 %v6581_v4, %s6525_s5  ;;  %4742 = vrot.lane.b32.xlu0 %v6586_v6, %s6525_s5  ;;  %v3349_v39 = vsel %vm298_vm1, %v3337_v36, 0  ;;  %v833_v40 = vpop.f32.mrb[16].mxu1  ;;  %v797_v41 = vpop.f32.mrb[19].mxu0 }
 0x18b   : > { %6274 = vmatmul.mubr.msk.bf16.vlgmr.msra.gmra.mrb[104].mxu0 %vm294_vm2, %v6272_v34  ;;  %6275 = vmatprep.subr.msk.bf16.mxu1 %vm298_vm1, %v3338_v37  ;;  %v842_v42 = vadd.f32 %v833_v40, %v724_v15  ;;  %v835_v43 = vpop.f32.mrb[17].mxu1 }
 0x18c   : > { %3396 = vmatpush1.bf16.msra.mxu1 %v3349_v39  ;;  %v3445_v44 = vpop.permute.xlu1 %3444  ;;  %v3443_v45 = vpop.permute.xlu0 %3442  ;;  %3504 = vmatprep.mubr.bf16.mxu0 %v6487_v1  ;;  %v843_v46 = vadd.f32 %v835_v43, %v725_v20 }
 0x18d   : > { %v837_v47 = vpop.f32.mrb[18].mxu1  ;;  %v3453_v52 = vsel %vm3452_vm3, %v3443_v45, %v3445_v44 }
 0x18e   : > { %4748 = vrot.lane.b32.xlu1 %v6599_v9, %s6525_s5  ;;  %4746 = vrot.lane.b32.xlu0 %v6589_v7, %s6525_s5  ;;  %v910_v48 = vpop.f32.mrb[20].mxu0  ;;  %v838_v49 = vpop.f32.mrb[19].mxu1  ;;  %v3461_v0 = vsel %vm298_vm1, %v3453_v52, 0 }
 0x18f   : > { %6276 = vmatmul.mubr.msk.bf16.vlgmr.msra.gmra.mrb[104].mxu1 %vm294_vm2, %v6272_v34  ;;  %v958_v50 = vadd.f32 %v910_v48, %v840_v30  ;;  %v912_v51 = vpop.f32.mrb[21].mxu0 }
 0x190   : > { %v3449_v54 = vpop.permute.xlu1 %3448  ;;  %v3447_v56 = vpop.permute.xlu0 %3446  ;;  %3545 = vmatprep.mubr.bf16.mxu1 %v6487_v1  ;;  %v959_v59 = vadd.f32 %v912_v51, %v841_v35 }
 0x191   : > { %v3454_v60 = vsel %vm3452_vm3, %v3445_v44, %v3447_v56  ;;  %v914_v61 = vpop.f32.mrb[22].mxu0  ;;  %v3455_v11 = vsel %vm3452_vm3, %v3447_v56, %v3449_v54 }
 0x192   : > { %4860 = vrot.lane.b32.xlu1 %v6586_v6, %s6526_s11  ;;  %4858 = vrot.lane.b32.xlu0 %v6583_v5, %s6526_s11  ;;  %v951_v62 = vpop.f32.mrb[20].mxu1  ;;  %v915_v63 = vpop.f32.mrb[23].mxu0  ;;  %v3467_v26 = vsel %vm298_vm1, %v3455_v11, 0 }
 0x193   : > { %6278 = vmatprep.subr.msk.bf16.mxu0 %vm298_vm1, %v3454_v60  ;;  %v960_v2 = vadd.f32 %v951_v62, %v842_v42  ;;  %v953_v8 = vpop.f32.mrb[21].mxu1  ;;  %v6282_v42 = vld [vmem:[%s7699_s2 + $0x1c] sm:$0x1] }
 0x194   : > { %3473 = vmatpush1.bf16.msra.mxu0 %v3461_v0  ;;  %v3561_v13 = vpop.permute.xlu1 %3560  ;;  %v3451_v15 = vpop.permute.xlu0 %3450  ;;  %v961_v17 = vadd.f32 %v953_v8, %v843_v46 }
 0x195   : > { %v3456_v18 = vsel %vm3452_vm3, %v3449_v54, %v3451_v15  ;;  %v955_v20 = vpop.f32.mrb[22].mxu1  ;;  %vm4750_vm3 = vcmask 121856  }
 0x196   : > { %4864 = vrot.lane.b32.xlu1 %v6589_v7, %s6526_s11  ;;  %4862 = vrot.lane.b32.xlu0 %v6581_v4, %s6526_s11  ;;  %v1028_v22 = vpop.f32.mrb[24].mxu0  ;;  %v956_v23 = vpop.f32.mrb[23].mxu1 }
 0x197   : > { %6279 = vmatmul.mubr.msk.bf16.vlgmr.msra.gmra.mrb[108].mxu0 %vm294_vm2, %v6277_v16  ;;  %6280 = vmatprep.subr.msk.bf16.mxu1 %vm298_vm1, %v3456_v18  ;;  %v1076_v27 = vadd.f32 %v1028_v22, %v958_v50  ;;  %v1030_v28 = vpop.f32.mrb[25].mxu0  ;;  %v6287_v18 = vld [vmem:[%s7699_s2 + $0x1d] sm:$0x1]  ;;  %v6478_v23 = vld [vmem:[%s6594_s29] sm:$0xff] }
 0x198   : > { %3514 = vmatpush1.bf16.msra.mxu1 %v3467_v26  ;;  %v3565_v29 = vpop.permute.xlu1 %3564  ;;  %v3563_v30 = vpop.permute.xlu0 %3562  ;;  %3622 = vmatprep.mubr.bf16.mxu0 %v6487_v1  ;;  %v1077_v31 = vadd.f32 %v1030_v28, %v959_v59  ;;  %v7331_v26 = vcombine.high %v6478_v23, %v6478_v23 }
 0x199   : > { %v3571_v32 = vsel %vm3570_vm4, %v3561_v13, %v3563_v30  ;;  %v3572_v33 = vsel %vm3570_vm4, %v3563_v30, %v3565_v29  ;;  %v1032_v34 = vpop.f32.mrb[26].mxu0 }
 0x19a   : > { %v3579_v35 = vsel %vm298_vm1, %v3571_v32, 0  ;;  %4976 = vrot.lane.b32.xlu1 %v6583_v5, %s6527_s14  ;;  %4866 = vrot.lane.b32.xlu0 %v6599_v9, %s6526_s11  ;;  %v1069_v36 = vpop.f32.mrb[24].mxu1  ;;  %v1033_v37 = vpop.f32.mrb[27].mxu0 }
 0x19b   : > { %6281 = vmatmul.mubr.msk.bf16.vlgmr.msra.gmra.mrb[108].mxu1 %vm294_vm2, %v6277_v16  ;;  %6283 = vmatprep.subr.msk.bf16.mxu0 %vm298_vm1, %v3572_v33  ;;  %v1078_v38 = vadd.f32 %v1069_v36, %v960_v2  ;;  %v1071_v39 = vpop.f32.mrb[25].mxu1 }
 0x19c   : > { %3591 = vmatpush1.bf16.msra.mxu0 %v3579_v35  ;;  %v3569_v40 = vpop.permute.xlu1 %3568  ;;  %v3567_v41 = vpop.permute.xlu0 %3566  ;;  %3663 = vmatprep.mubr.bf16.mxu1 %v6487_v1  ;;  %v1079_v43 = vadd.f32 %v1071_v39, %v961_v17 }
 0x19d   : > { %v3573_v44 = vsel %vm3570_vm4, %v3565_v29, %v3567_v41  ;;  %v3574_v45 = vsel %vm3570_vm4, %v3567_v41, %v3569_v40  ;;  %v1073_v46 = vpop.f32.mrb[26].mxu1  ;;  %vm4868_vm4 = vcmask 113664  }
 0x19e   : > { %v3585_v47 = vsel %vm298_vm1, %v3573_v44, 0  ;;  %4980 = vrot.lane.b32.xlu1 %v6581_v4, %s6527_s14  ;;  %4978 = vrot.lane.b32.xlu0 %v6586_v6, %s6527_s14  ;;  %v1074_v48 = vpop.f32.mrb[27].mxu1 }
 0x19f   : > { %6284 = vmatmul.mubr.msk.bf16.vlgmr.msra.gmra.mrb[112].mxu0 %vm294_vm2, %v6282_v42  ;;  %6285 = vmatprep.subr.msk.bf16.mxu1 %vm298_vm1, %v3574_v45  ;;  %v6292_v45 = vld [vmem:[%s7699_s2 + $0x1e] sm:$0x1] }
 0x1a0   : > { %3632 = vmatpush1.bf16.msra.mxu1 %v3585_v47  ;;  %v3681_v49 = vpop.permute.xlu1 %3680  ;;  %v3679_v50 = vpop.permute.xlu0 %3678  ;;  %3740 = vmatprep.mubr.bf16.mxu0 %v6487_v1 }
 0x1a1   : > { %v3689_v56 = vsel %vm3688_vm8, %v3679_v50, %v3681_v49 }
 0x1a2   : > { %4984 = vrot.lane.b32.xlu1 %v6599_v9, %s6527_s14  ;;  %4982 = vrot.lane.b32.xlu0 %v6589_v7, %s6527_s14  ;;  %v1146_v51 = vpop.f32.mrb[28].mxu0  ;;  %v3697_v8 = vsel %vm298_vm1, %v3689_v56, 0  ;;  %s255_s14 = scalar_lea.vmem %s7701_s4, %s7709_s19 }
 0x1a3   : > { %6286 = vmatmul.mubr.msk.bf16.vlgmr.msra.gmra.mrb[112].mxu1 %vm294_vm2, %v6282_v42  ;;  %v1194_v52 = vadd.f32 %v1146_v51, %v1076_v27  ;;  %v1148_v54 = vpop.f32.mrb[29].mxu0 }
 0x1a4   : > { %v3685_v59 = vpop.permute.xlu1 %3684  ;;  %v3683_v60 = vpop.permute.xlu0 %3682  ;;  %3781 = vmatprep.mubr.bf16.mxu1 %v6487_v1  ;;  %v1195_v61 = vadd.f32 %v1148_v54, %v1077_v31 }
 0x1a5   : > { %v3690_v62 = vsel %vm3688_vm8, %v3681_v49, %v3683_v60  ;;  %v1150_v63 = vpop.f32.mrb[30].mxu0  ;;  %v3691_v15 = vsel %vm3688_vm8, %v3683_v60, %v3685_v59 }
 0x1a6   : > { %5096 = vrot.lane.b32.xlu1 %v6586_v6, %s6528_s18  ;;  %5094 = vrot.lane.b32.xlu0 %v6583_v5, %s6528_s18  ;;  %v1187_v0 = vpop.f32.mrb[28].mxu1  ;;  %v1151_v2 = vpop.f32.mrb[31].mxu0  ;;  %v3703_v29 = vsel %vm298_vm1, %v3691_v15, 0 }
 0x1a7   : > { %6288 = vmatprep.subr.msk.bf16.mxu0 %vm298_vm1, %v3690_v62  ;;  %v1196_v11 = vadd.f32 %v1187_v0, %v1078_v38  ;;  %v1189_v13 = vpop.f32.mrb[29].mxu1 }
 0x1a8   : > { %3709 = vmatpush1.bf16.msra.mxu0 %v3697_v8  ;;  %v3797_v16 = vpop.permute.xlu1 %3796  ;;  %v3687_v17 = vpop.permute.xlu0 %3686  ;;  %v1197_v20 = vadd.f32 %v1189_v13, %v1079_v43 }
 0x1a9   : > { %v3692_v5 = vsel %vm3688_vm8, %v3685_v59, %v3687_v17  ;;  %v1191_v22 = vpop.f32.mrb[30].mxu1  ;;  %v6297_v17 = vld [vmem:[%s7699_s2 + $0x1f] sm:$0x1]  ;;  %vm4986_vm8 = vcmask 105472  }
 0x1aa   : > { %5100 = vrot.lane.b32.xlu1 %v6589_v7, %s6528_s18  ;;  %5098 = vrot.lane.b32.xlu0 %v6581_v4, %s6528_s18  ;;  %v1264_v27 = vpop.f32.mrb[32].mxu0  ;;  %v1192_v28 = vpop.f32.mrb[31].mxu1 }
 0x1ab   : > { %6289 = vmatmul.mubr.msk.bf16.vlgmr.msra.gmra.mrb[116].mxu0 %vm294_vm2, %v6287_v18  ;;  %6290 = vmatprep.subr.msk.bf16.mxu1 %vm298_vm1, %v3692_v5  ;;  %v1312_v30 = vadd.f32 %v1264_v27, %v1194_v52  ;;  %v1266_v31 = vpop.f32.mrb[33].mxu0 }
 0x1ac   : > { %3750 = vmatpush1.bf16.msra.mxu1 %v3703_v29  ;;  %v3801_v32 = vpop.permute.xlu1 %3800  ;;  %v3799_v33 = vpop.permute.xlu0 %3798  ;;  %3858 = vmatprep.mubr.bf16.mxu0 %v6487_v1  ;;  %v1313_v34 = vadd.f32 %v1266_v31, %v1195_v61 }
 0x1ad   : > { %v3807_v35 = vsel %vm3806_vm9, %v3797_v16, %v3799_v33  ;;  %v3808_v36 = vsel %vm3806_vm9, %v3799_v33, %v3801_v32  ;;  %v1268_v37 = vpop.f32.mrb[34].mxu0 }
 0x1ae   : > { %v3815_v38 = vsel %vm298_vm1, %v3807_v35, 0  ;;  %5212 = vrot.lane.b32.xlu1 %v7331_v26, %s6491_s6  ;;  %5102 = vrot.lane.b32.xlu0 %v6599_v9, %s6528_s18  ;;  %v1305_v39 = vpop.f32.mrb[32].mxu1  ;;  %v1269_v40 = vpop.f32.mrb[35].mxu0  ;;  %s6529_s6 = smov 121  }
 0x1af   : > { %6291 = vmatmul.mubr.msk.bf16.vlgmr.msra.gmra.mrb[116].mxu1 %vm294_vm2, %v6287_v18  ;;  %6293 = vmatprep.subr.msk.bf16.mxu0 %vm298_vm1, %v3808_v36  ;;  %v1314_v41 = vadd.f32 %v1305_v39, %v1196_v11  ;;  %v1307_v42 = vpop.f32.mrb[33].mxu1 }
 0x1b0   : > { %3827 = vmatpush1.bf16.msra.mxu0 %v3815_v38  ;;  %v3805_v43 = vpop.permute.xlu1 %3804  ;;  %v3803_v44 = vpop.permute.xlu0 %3802  ;;  %3899 = vmatprep.mubr.bf16.mxu1 %v6487_v1  ;;  %v1315_v46 = vadd.f32 %v1307_v42, %v1197_v20 }
 0x1b1   : > { %v3809_v47 = vsel %vm3806_vm9, %v3801_v32, %v3803_v44  ;;  %v3810_v48 = vsel %vm3806_vm9, %v3803_v44, %v3805_v43  ;;  %v1309_v49 = vpop.f32.mrb[34].mxu1  ;;  %v6302_v43 = vld [vmem:[%s7699_s2 + $0x20] sm:$0x1]  ;;  %vm5104_vm9 = vcmask 97280  }
 0x1b2   : > { %v3821_v50 = vsel %vm298_vm1, %v3809_v47, 0  ;;  %5406 = vrot.lane.b32.xlu1 %v7331_v26, %s6493_s8  ;;  %5309 = vrot.lane.b32.xlu0 %v7331_v26, %s6492_s7  ;;  %v1310_v51 = vpop.f32.mrb[35].mxu1 }
 0x1b3   : > { %6294 = vmatmul.mubr.msk.bf16.vlgmr.msra.gmra.mrb[120].mxu0 %vm294_vm2, %v6292_v45  ;;  %6295 = vmatprep.subr.msk.bf16.mxu1 %vm298_vm1, %v3810_v48 }
 0x1b4   : > { %3868 = vmatpush1.bf16.msra.mxu1 %v3821_v50  ;;  %v3917_v52 = vpop.permute.xlu1 %3916  ;;  %v3915_v54 = vpop.permute.xlu0 %3914  ;;  %3976 = vmatprep.mubr.bf16.mxu0 %v6487_v1 }
 0x1b5   : > { %v3925_v59 = vsel %vm3924_vm10, %v3915_v54, %v3917_v52 }
 0x1b6   : > { %5505 = vrot.lane.b32.xlu1 %v6581_v4, %s6529_s6  ;;  %5503 = vrot.lane.b32.xlu0 %v6586_v6, %s6529_s6  ;;  %v1382_v56 = vpop.f32.mrb[36].mxu0  ;;  %v3933_v11 = vsel %vm298_vm1, %v3925_v59, 0 }
 0x1b7   : > { %6296 = vmatmul.mubr.msk.bf16.vlgmr.msra.gmra.mrb[120].mxu1 %vm294_vm2, %v6292_v45  ;;  %v1430_v60 = vadd.f32 %v1382_v56, %v1312_v30  ;;  %v1384_v61 = vpop.f32.mrb[37].mxu0 }
 0x1b8   : > { %v3921_v62 = vpop.permute.xlu1 %3920  ;;  %v3919_v63 = vpop.permute.xlu0 %3918  ;;  %4017 = vmatprep.mubr.bf16.mxu1 %v6487_v1  ;;  %v1431_v0 = vadd.f32 %v1384_v61, %v1313_v34 }
 0x1b9   : > { %v3926_v2 = vsel %vm3924_vm10, %v3917_v52, %v3919_v63  ;;  %v1386_v8 = vpop.f32.mrb[38].mxu0  ;;  %v3927_v16 = vsel %vm3924_vm10, %v3919_v63, %v3921_v62 }
 0x1ba   : > { %6298 = vmatprep.subr.msk.bf16.mxu0 %vm298_vm1, %v3926_v2  ;;  %5509 = vrot.lane.b32.xlu1 %v6599_v9, %s6529_s6  ;;  %v1423_v13 = vpop.f32.mrb[36].mxu1  ;;  %v1387_v15 = vpop.f32.mrb[39].mxu0  ;;  %v3939_v29 = vsel %vm298_vm1, %v3927_v16, 0 }
 0x1bb   : > { %3945 = vmatpush1.bf16.msra.mxu0 %v3933_v11  ;;  %5507 = vrot.lane.b32.xlu0 %v6589_v7, %s6529_s6  ;;  %v1432_v18 = vadd.f32 %v1423_v13, %v1314_v41  ;;  %v1425_v20 = vpop.f32.mrb[37].mxu1 }
 0x1bc   : > { %v4033_v5 = vpop.permute.xlu1 %4032  ;;  %v3923_v22 = vpop.permute.xlu0 %3922  ;;  %v1433_v23 = vadd.f32 %v1425_v20, %v1315_v46 }
 0x1bd   : > { %v3928_v27 = vsel %vm3924_vm10, %v3921_v62, %v3923_v22  ;;  %v1427_v28 = vpop.f32.mrb[38].mxu1  ;;  %v6307_v22 = vld [vmem:[%s7699_s2 + $0x21] sm:$0x1]  ;;  %vm5867_vm10 = vcmask 965632  }
 0x1be   : > { %6299 = vmatmul.mubr.msk.bf16.vlgmr.msra.gmra.mrb[124].mxu0 %vm294_vm2, %v6297_v17  ;;  %6300 = vmatprep.subr.msk.bf16.mxu1 %vm298_vm1, %v3928_v27  ;;  %v1500_v30 = vpop.f32.mrb[40].mxu0  ;;  %v1428_v31 = vpop.f32.mrb[39].mxu1 }
 0x1bf   : > { %3986 = vmatpush1.bf16.msra.mxu1 %v3939_v29  ;;  %v1548_v32 = vadd.f32 %v1500_v30, %v1430_v60  ;;  %4094 = vmatprep.mubr.bf16.mxu0 %v6487_v1  ;;  %v1502_v33 = vpop.f32.mrb[41].mxu0 }
 0x1c0   : > { %v4037_v34 = vpop.permute.xlu1 %4036  ;;  %v4035_v35 = vpop.permute.xlu0 %4034  ;;  %5621 = vrot.lane.b32.xlu1 %v6586_v6, %s6530_s22  ;;  %5511 = vrot.lane.b32.xlu0 %v7331_v26, %s6529_s6  ;;  %v1549_v36 = vadd.f32 %v1502_v33, %v1431_v0 }
 0x1c1   : > { %v4043_v37 = vsel %vm4042_vm11, %v4033_v5, %v4035_v35  ;;  %v4044_v38 = vsel %vm4042_vm11, %v4035_v35, %v4037_v34  ;;  %v1504_v39 = vpop.f32.mrb[42].mxu0 }
 0x1c2   : > { %v4051_v40 = vsel %vm298_vm1, %v4043_v37, 0  ;;  %6301 = vmatmul.mubr.msk.bf16.vlgmr.msra.gmra.mrb[124].mxu1 %vm294_vm2, %v6297_v17  ;;  %6303 = vmatprep.subr.msk.bf16.mxu0 %vm298_vm1, %v4044_v38  ;;  %v1541_v41 = vpop.f32.mrb[40].mxu1  ;;  %v1505_v42 = vpop.f32.mrb[43].mxu0 }
 0x1c3   : > { %4063 = vmatpush1.bf16.msra.mxu0 %v4051_v40  ;;  %v1550_v44 = vadd.f32 %v1541_v41, %v1432_v18  ;;  %v1543_v45 = vpop.f32.mrb[41].mxu1  ;;  %4135 = vmatprep.mubr.bf16.mxu1 %v6487_v1 }
 0x1c4   : > { %v4041_v46 = vpop.permute.xlu1 %4040  ;;  %v4039_v47 = vpop.permute.xlu0 %4038  ;;  %v1551_v48 = vadd.f32 %v1543_v45, %v1433_v23  ;;  %5625 = vrot.lane.b32.xlu1 %v6589_v7, %s6530_s22  ;;  %5623 = vrot.lane.b32.xlu0 %v6581_v4, %s6530_s22 }
 0x1c5   : > { %v4045_v49 = vsel %vm4042_vm11, %v4037_v34, %v4039_v47  ;;  %v4046_v50 = vsel %vm4042_vm11, %v4039_v47, %v4041_v46  ;;  %v1545_v51 = vpop.f32.mrb[42].mxu1  ;;  %vm6047_vm11 = vcmask 1041409  }
 0x1c6   : > { %v4057_v52 = vsel %vm298_vm1, %v4045_v49, 0  ;;  %6304 = vmatmul.mubr.msk.bf16.vlgmr.msra.gmra.mrb[128].mxu0 %vm294_vm2, %v6302_v43  ;;  %6305 = vmatprep.subr.msk.bf16.mxu1 %vm298_vm1, %v4046_v50  ;;  %v1546_v54 = vpop.f32.mrb[43].mxu1 }
 0x1c7   : > { %4104 = vmatpush1.bf16.msra.mxu1 %v4057_v52  ;;  %4212 = vmatprep.mubr.bf16.mxu0 %v6487_v1 }
 0x1c8   : > { %v4153_v56 = vpop.permute.xlu1 %4152  ;;  %v4151_v59 = vpop.permute.xlu0 %4150  ;;  %5629 = vrot.lane.b32.xlu1 %v7331_v26, %s6530_s22  ;;  %5627 = vrot.lane.b32.xlu0 %v6599_v9, %s6530_s22 }
 0x1c9   : > { %v4161_v61 = vsel %vm4160_vm12, %v4151_v59, %v4153_v56 }
 0x1ca   : > { %v1618_v60 = vpop.f32.mrb[44].mxu0  ;;  %6306 = vmatmul.mubr.msk.bf16.vlgmr.msra.gmra.mrb[128].mxu1 %vm294_vm2, %v6302_v43  ;;  %v4169_v15 = vsel %vm298_vm1, %v4161_v61, 0 }
 0x1cb   : > { %v1666_v62 = vadd.f32 %v1618_v60, %v1548_v32  ;;  %v1620_v63 = vpop.f32.mrb[45].mxu0  ;;  %4253 = vmatprep.mubr.bf16.mxu1 %v6487_v1 }
 0x1cc   : > { %v1667_v0 = vadd.f32 %v1620_v63, %v1549_v36  ;;  %v4157_v2 = vpop.permute.xlu1 %4156  ;;  %v4155_v8 = vpop.permute.xlu0 %4154  ;;  %5741 = vrot.lane.b32.xlu1 %v6581_v4, %s6531_s25  ;;  %5739 = vrot.lane.b32.xlu0 %v6586_v6, %s6531_s25 }
 0x1cd   : > { %v4162_v11 = vsel %vm4160_vm12, %v4153_v56, %v4155_v8  ;;  %v1622_v13 = vpop.f32.mrb[46].mxu0  ;;  %v4163_v18 = vsel %vm4160_vm12, %v4155_v8, %v4157_v2 }
 0x1ce   : > { %v1659_v16 = vpop.f32.mrb[44].mxu1  ;;  %6308 = vmatprep.subr.msk.bf16.mxu0 %vm298_vm1, %v4162_v11  ;;  %v1623_v17 = vpop.f32.mrb[47].mxu0  ;;  %v4175_v31 = vsel %vm298_vm1, %v4163_v18, 0  ;;  %v6317_v18 = vld [vmem:[%s7699_s2 + $0x23] sm:$0x1] }
 0x1cf   : > { %v1668_v20 = vadd.f32 %v1659_v16, %v1550_v44  ;;  %v1661_v5 = vpop.f32.mrb[45].mxu1  ;;  %4181 = vmatpush1.bf16.msra.mxu0 %v4169_v15 }
 0x1d0   : > { %v1669_v23 = vadd.f32 %v1661_v5, %v1551_v48  ;;  %v4269_v27 = vpop.permute.xlu1 %4268  ;;  %v4159_v28 = vpop.permute.xlu0 %4158  ;;  %5745 = vrot.lane.b32.xlu1 %v6599_v9, %s6531_s25  ;;  %5743 = vrot.lane.b32.xlu0 %v6589_v7, %s6531_s25 }
 0x1d1   : > { %v4164_v29 = vsel %vm4160_vm12, %v4157_v2, %v4159_v28  ;;  %v1663_v30 = vpop.f32.mrb[46].mxu1  ;;  %vm6048_vm12 = vsmask.f32 1280 }
 0x1d2   : > { %v1736_v32 = vpop.f32.mrb[48].mxu0  ;;  %6309 = vmatmul.mubr.msk.bf16.vlgmr.msra.gmra.mrb[132].mxu0 %vm294_vm2, %v6307_v22  ;;  %6310 = vmatprep.subr.msk.bf16.mxu1 %vm298_vm1, %v4164_v29  ;;  %v1664_v33 = vpop.f32.mrb[47].mxu1 }
 0x1d3   : > { %v1784_v34 = vadd.f32 %v1736_v32, %v1666_v62  ;;  %v1738_v35 = vpop.f32.mrb[49].mxu0  ;;  %4222 = vmatpush1.bf16.msra.mxu1 %v4175_v31  ;;  %4330 = vmatprep.mubr.bf16.mxu0 %v6487_v1 }
 0x1d4   : > { %v1785_v36 = vadd.f32 %v1738_v35, %v1667_v0  ;;  %v4273_v37 = vpop.permute.xlu1 %4272  ;;  %v4271_v38 = vpop.permute.xlu0 %4270  ;;  %5857 = vrot.lane.b32.xlu1 %v6586_v6, %s6532_s28  ;;  %5747 = vrot.lane.b32.xlu0 %v7331_v26, %s6531_s25  ;;  %v6312_v6 = vld [vmem:[%s7699_s2 + $0x22] sm:$0x1] }
 0x1d5   : > { %v4279_v39 = vsel %vm4278_vm13, %v4269_v27, %v4271_v38  ;;  %v4280_v40 = vsel %vm4278_vm13, %v4271_v38, %v4273_v37  ;;  %v1740_v41 = vpop.f32.mrb[50].mxu0 }
 0x1d6   : > { %v4287_v42 = vsel %vm298_vm1, %v4279_v39, 0  ;;  %v1777_v43 = vpop.f32.mrb[48].mxu1  ;;  %6311 = vmatmul.mubr.msk.bf16.vlgmr.msra.gmra.mrb[132].mxu1 %vm294_vm2, %v6307_v22  ;;  %6313 = vmatprep.subr.msk.bf16.mxu0 %vm298_vm1, %v4280_v40  ;;  %v1741_v44 = vpop.f32.mrb[51].mxu0 }
 0x1d7   : > { %v1786_v45 = vadd.f32 %v1777_v43, %v1668_v20  ;;  %v1779_v46 = vpop.f32.mrb[49].mxu1  ;;  %4299 = vmatpush1.bf16.msra.mxu0 %v4287_v42  ;;  %4371 = vmatprep.mubr.bf16.mxu1 %v6487_v1  ;;  %v6322_v44 = vld [vmem:[%s7699_s2 + $0x24] sm:$0x1] }
 0x1d8   : > { %v1787_v47 = vadd.f32 %v1779_v46, %v1669_v23  ;;  %v4277_v48 = vpop.permute.xlu1 %4276  ;;  %v4275_v49 = vpop.permute.xlu0 %4274  ;;  %5861 = vrot.lane.b32.xlu1 %v6589_v7, %s6532_s28  ;;  %5859 = vrot.lane.b32.xlu0 %v6581_v4, %s6532_s28 }
 0x1d9   : > { %v4281_v50 = vsel %vm4278_vm13, %v4273_v37, %v4275_v49  ;;  %v4282_v51 = vsel %vm4278_vm13, %v4275_v49, %v4277_v48  ;;  %v1781_v52 = vpop.f32.mrb[50].mxu1 }
 0x1da   : > { %v4293_v54 = vsel %vm298_vm1, %v4281_v50, 0  ;;  %6314 = vmatmul.mubr.msk.bf16.vlgmr.msra.gmra.mrb[136].mxu0 %vm294_vm2, %v6312_v6  ;;  %6315 = vmatprep.subr.msk.bf16.mxu1 %vm298_vm1, %v4282_v51  ;;  %v1782_v56 = vpop.f32.mrb[51].mxu1 }
 0x1db   : > { %4340 = vmatpush1.bf16.msra.mxu1 %v4293_v54  ;;  %4448 = vmatprep.mubr.bf16.mxu0 %v6487_v1 }
 0x1dc   : > { %v4389_v59 = vpop.permute.xlu1 %4388  ;;  %v4387_v7 = vpop.permute.xlu0 %4386  ;;  %5865 = vrot.lane.b32.xlu1 %v7331_v26, %s6532_s28  ;;  %5863 = vrot.lane.b32.xlu0 %v6599_v9, %s6532_s28 }
 0x1dd   : > { %v4397_v60 = vsel %vm4396_vm14, %v4387_v7, %v4389_v59 }
 0x1de   : > { %v1854_v4 = vpop.f32.mrb[52].mxu0  ;;  %6316 = vmatmul.mubr.msk.bf16.vlgmr.msra.gmra.mrb[136].mxu1 %vm294_vm2, %v6312_v6  ;;  %v4405_v26 = vsel %vm298_vm1, %v4397_v60, 0 }
 0x1df   : > { %v1902_v61 = vadd.f32 %v1854_v4, %v1784_v34  ;;  %v1856_v62 = vpop.f32.mrb[53].mxu0  ;;  %4489 = vmatprep.mubr.bf16.mxu1 %v6487_v1 }
 0x1e0   : > { %v1903_v63 = vadd.f32 %v1856_v62, %v1785_v36  ;;  %v4393_v0 = vpop.permute.xlu1 %4392  ;;  %v4391_v2 = vpop.permute.xlu0 %4390 }
 0x1e1   : > { %v4398_v8 = vsel %vm4396_vm14, %v4389_v59, %v4391_v2  ;;  %v1858_v11 = vpop.f32.mrb[54].mxu0  ;;  %v4399_v15 = vsel %vm4396_vm14, %v4391_v2, %v4393_v0 }
 0x1e2   : > { %v1895_v13 = vpop.f32.mrb[52].mxu1  ;;  %6318 = vmatprep.subr.msk.bf16.mxu0 %vm298_vm1, %v4398_v8  ;;  %v1859_v9 = vpop.f32.mrb[55].mxu0  ;;  %v4411_v28 = vsel %vm298_vm1, %v4399_v15, 0  ;;  %v6327_v15 = vld [vmem:[%s7699_s2 + $0x25] sm:$0x1] }
 0x1e3   : > { %v1904_v16 = vadd.f32 %v1895_v13, %v1786_v45  ;;  %v1897_v17 = vpop.f32.mrb[53].mxu1  ;;  %4417 = vmatpush1.bf16.msra.mxu0 %v4405_v26 }
 0x1e4   : > { %v1905_v20 = vadd.f32 %v1897_v17, %v1787_v47  ;;  %v4505_v5 = vpop.permute.xlu1 %4504  ;;  %v4395_v22 = vpop.permute.xlu0 %4394 }
 0x1e5   : > { %v4400_v23 = vsel %vm4396_vm14, %v4393_v0, %v4395_v22  ;;  %v1899_v27 = vpop.f32.mrb[54].mxu1  ;;  %vm7681_vm14 = vmand %vm6047_vm11, %vm6048_vm12 }
 0x1e6   : > { %v1972_v29 = vpop.f32.mrb[56].mxu0  ;;  %6319 = vmatmul.mubr.msk.bf16.vlgmr.msra.gmra.mrb[140].mxu0 %vm294_vm2, %v6317_v18  ;;  %6320 = vmatprep.subr.msk.bf16.mxu1 %vm298_vm1, %v4400_v23  ;;  %v1900_v30 = vpop.f32.mrb[55].mxu1 }
 0x1e7   : > { %v2020_v31 = vadd.f32 %v1972_v29, %v1902_v61  ;;  %v1974_v32 = vpop.f32.mrb[57].mxu0  ;;  %4458 = vmatpush1.bf16.msra.mxu1 %v4411_v28  ;;  %4566 = vmatprep.mubr.bf16.mxu0 %v6487_v1 }
 0x1e8   : > { %v2021_v33 = vadd.f32 %v1974_v32, %v1903_v63  ;;  %v4509_v34 = vpop.permute.xlu1 %4508  ;;  %v4507_v35 = vpop.permute.xlu0 %4506 }
 0x1e9   : > { %v4515_v36 = vsel %vm4514_vm15, %v4505_v5, %v4507_v35  ;;  %v4516_v37 = vsel %vm4514_vm15, %v4507_v35, %v4509_v34  ;;  %v1976_v38 = vpop.f32.mrb[58].mxu0 }
 0x1ea   : > { %v4523_v39 = vsel %vm298_vm1, %v4515_v36, 0  ;;  %v2013_v40 = vpop.f32.mrb[56].mxu1  ;;  %6321 = vmatmul.mubr.msk.bf16.vlgmr.msra.gmra.mrb[140].mxu1 %vm294_vm2, %v6317_v18  ;;  %6323 = vmatprep.subr.msk.bf16.mxu0 %vm298_vm1, %v4516_v37  ;;  %v1977_v41 = vpop.f32.mrb[59].mxu0 }
 0x1eb   : > { %v2022_v42 = vadd.f32 %v2013_v40, %v1904_v16  ;;  %v2015_v43 = vpop.f32.mrb[57].mxu1  ;;  %4535 = vmatpush1.bf16.msra.mxu0 %v4523_v39  ;;  %4607 = vmatprep.mubr.bf16.mxu1 %v6487_v1  ;;  %v6332_v41 = vld [vmem:[%s7699_s2 + $0x26] sm:$0x1] }
 0x1ec   : > { %v2023_v45 = vadd.f32 %v2015_v43, %v1905_v20  ;;  %v4513_v46 = vpop.permute.xlu1 %4512  ;;  %v4511_v6 = vpop.permute.xlu0 %4510 }
 0x1ed   : > { %v4517_v47 = vsel %vm4514_vm15, %v4509_v34, %v4511_v6  ;;  %v4518_v48 = vsel %vm4514_vm15, %v4511_v6, %v4513_v46  ;;  %v2017_v49 = vpop.f32.mrb[58].mxu1  ;;  %vm6051_vm15 = vcmask 1042434  }
 0x1ee   : > { %v4529_v50 = vsel %vm298_vm1, %v4517_v47, 0  ;;  %6324 = vmatmul.mubr.msk.bf16.vlgmr.msra.gmra.mrb[144].mxu0 %vm294_vm2, %v6322_v44  ;;  %6325 = vmatprep.subr.msk.bf16.mxu1 %vm298_vm1, %v4518_v48  ;;  %v2018_v51 = vpop.f32.mrb[59].mxu1 }
 0x1ef   : > { %4576 = vmatpush1.bf16.msra.mxu1 %v4529_v50  ;;  %4684 = vmatprep.mubr.bf16.mxu0 %v6487_v1 }
 0x1f0   : > { %v4625_v52 = vpop.permute.xlu1 %4624  ;;  %v4623_v54 = vpop.permute.xlu0 %4622 }
 0x1f1   : > { %v4633_v59 = vsel %vm4632_vm0, %v4623_v54, %v4625_v52 }
 0x1f2   : > { %v2090_v56 = vpop.f32.mrb[60].mxu0  ;;  %6326 = vmatmul.mubr.msk.bf16.vlgmr.msra.gmra.mrb[144].mxu1 %vm294_vm2, %v6322_v44  ;;  %v4641_v2 = vsel %vm298_vm1, %v4633_v59, 0 }
 0x1f3   : > { %v2138_v7 = vadd.f32 %v2090_v56, %v2020_v31  ;;  %v2092_v4 = vpop.f32.mrb[61].mxu0  ;;  %4725 = vmatprep.mubr.bf16.mxu1 %v6487_v1 }
 0x1f4   : > { %v2139_v60 = vadd.f32 %v2092_v4, %v2021_v33  ;;  %v4629_v61 = vpop.permute.xlu1 %4628  ;;  %v4627_v62 = vpop.permute.xlu0 %4626 }
 0x1f5   : > { %v4634_v63 = vsel %vm4632_vm0, %v4625_v52, %v4627_v62  ;;  %v2094_v0 = vpop.f32.mrb[62].mxu0  ;;  %v4635_v26 = vsel %vm4632_vm0, %v4627_v62, %v4629_v61 }
 0x1f6   : > { %v2131_v8 = vpop.f32.mrb[60].mxu1  ;;  %6328 = vmatprep.subr.msk.bf16.mxu0 %vm298_vm1, %v4634_v63  ;;  %v2095_v11 = vpop.f32.mrb[63].mxu0  ;;  %v4647_v22 = vsel %vm298_vm1, %v4635_v26, 0  ;;  %v6337_v26 = vld [vmem:[%s7699_s2 + $0x27] sm:$0x1] }
 0x1f7   : > { %v2140_v13 = vadd.f32 %v2131_v8, %v2022_v42  ;;  %v2133_v9 = vpop.f32.mrb[61].mxu1  ;;  %4653 = vmatpush1.bf16.msra.mxu0 %v4641_v2 }
 0x1f8   : > { %v2141_v16 = vadd.f32 %v2133_v9, %v2023_v45  ;;  %v4741_v17 = vpop.permute.xlu1 %4740  ;;  %v4631_v18 = vpop.permute.xlu0 %4630 }
 0x1f9   : > { %v4636_v20 = vsel %vm4632_vm0, %v4629_v61, %v4631_v18  ;;  %v2135_v5 = vpop.f32.mrb[62].mxu1  ;;  %vm6052_vm0 = vsmask.f32 2304 }
 0x1fa   : > { %v2208_v23 = vpop.f32.mrb[64].mxu0  ;;  %6329 = vmatmul.mubr.msk.bf16.vlgmr.msra.gmra.mrb[148].mxu0 %vm294_vm2, %v6327_v15  ;;  %6330 = vmatprep.subr.msk.bf16.mxu1 %vm298_vm1, %v4636_v20  ;;  %v2136_v27 = vpop.f32.mrb[63].mxu1 }
 0x1fb   : > { %v2256_v28 = vadd.f32 %v2208_v23, %v2138_v7  ;;  %v2210_v29 = vpop.f32.mrb[65].mxu0  ;;  %4694 = vmatpush1.bf16.msra.mxu1 %v4647_v22  ;;  %4802 = vmatprep.mubr.bf16.mxu0 %v6487_v1 }
 0x1fc   : > { %v2257_v30 = vadd.f32 %v2210_v29, %v2139_v60  ;;  %v4745_v31 = vpop.permute.xlu1 %4744  ;;  %v4743_v32 = vpop.permute.xlu0 %4742 }
 0x1fd   : > { %v4751_v33 = vsel %vm4750_vm3, %v4741_v17, %v4743_v32  ;;  %v4752_v34 = vsel %vm4750_vm3, %v4743_v32, %v4745_v31  ;;  %v2212_v35 = vpop.f32.mrb[66].mxu0 }
 0x1fe   : > { %v4759_v36 = vsel %vm298_vm1, %v4751_v33, 0  ;;  %v2249_v37 = vpop.f32.mrb[64].mxu1  ;;  %6331 = vmatmul.mubr.msk.bf16.vlgmr.msra.gmra.mrb[148].mxu1 %vm294_vm2, %v6327_v15  ;;  %6333 = vmatprep.subr.msk.bf16.mxu0 %vm298_vm1, %v4752_v34  ;;  %v2213_v38 = vpop.f32.mrb[67].mxu0 }
 0x1ff   : > { %v2258_v39 = vadd.f32 %v2249_v37, %v2140_v13  ;;  %v2251_v40 = vpop.f32.mrb[65].mxu1  ;;  %4771 = vmatpush1.bf16.msra.mxu0 %v4759_v36  ;;  %4843 = vmatprep.mubr.bf16.mxu1 %v6487_v1  ;;  %v6342_v38 = vld [vmem:[%s7699_s2 + $0x28] sm:$0x1] }
 0x200   : > { %v2259_v42 = vadd.f32 %v2251_v40, %v2141_v16  ;;  %v4749_v43 = vpop.permute.xlu1 %4748  ;;  %v4747_v44 = vpop.permute.xlu0 %4746 }
 0x201   : > { %v4753_v45 = vsel %vm4750_vm3, %v4745_v31, %v4747_v44  ;;  %v4754_v46 = vsel %vm4750_vm3, %v4747_v44, %v4749_v43  ;;  %v2253_v6 = vpop.f32.mrb[66].mxu1 }
 0x202   : > { %v4765_v47 = vsel %vm298_vm1, %v4753_v45, 0  ;;  %6334 = vmatmul.mubr.msk.bf16.vlgmr.msra.gmra.mrb[152].mxu0 %vm294_vm2, %v6332_v41  ;;  %6335 = vmatprep.subr.msk.bf16.mxu1 %vm298_vm1, %v4754_v46  ;;  %v2254_v48 = vpop.f32.mrb[67].mxu1 }
 0x203   : > { %4812 = vmatpush1.bf16.msra.mxu1 %v4765_v47  ;;  %4920 = vmatprep.mubr.bf16.mxu0 %v6487_v1 }
 0x204   : > { %v4861_v49 = vpop.permute.xlu1 %4860  ;;  %v4859_v50 = vpop.permute.xlu0 %4858 }
 0x205   : > { %v4869_v52 = vsel %vm4868_vm4, %v4859_v50, %v4861_v49 }
 0x206   : > { %v2326_v51 = vpop.f32.mrb[68].mxu0  ;;  %6336 = vmatmul.mubr.msk.bf16.vlgmr.msra.gmra.mrb[152].mxu1 %vm294_vm2, %v6332_v41  ;;  %v4877_v62 = vsel %vm298_vm1, %v4869_v52, 0 }
 0x207   : > { %v2374_v54 = vadd.f32 %v2326_v51, %v2256_v28  ;;  %v2328_v56 = vpop.f32.mrb[69].mxu0  ;;  %4961 = vmatprep.mubr.bf16.mxu1 %v6487_v1 }
 0x208   : > { %v2375_v59 = vadd.f32 %v2328_v56, %v2257_v30  ;;  %v4865_v7 = vpop.permute.xlu1 %4864  ;;  %v4863_v4 = vpop.permute.xlu0 %4862 }
 0x209   : > { %v4870_v60 = vsel %vm4868_vm4, %v4861_v49, %v4863_v4  ;;  %v2330_v61 = vpop.f32.mrb[70].mxu0  ;;  %v4871_v2 = vsel %vm4868_vm4, %v4863_v4, %v4865_v7 }
 0x20a   : > { %v2367_v63 = vpop.f32.mrb[68].mxu1  ;;  %6338 = vmatprep.subr.msk.bf16.mxu0 %vm298_vm1, %v4870_v60  ;;  %v2331_v0 = vpop.f32.mrb[71].mxu0  ;;  %v4883_v18 = vsel %vm298_vm1, %v4871_v2, 0  ;;  %v6347_v2 = vld [vmem:[%s7699_s2 + $0x29] sm:$0x1] }
 0x20b   : > { %v2376_v8 = vadd.f32 %v2367_v63, %v2258_v39  ;;  %v2369_v11 = vpop.f32.mrb[69].mxu1  ;;  %4889 = vmatpush1.bf16.msra.mxu0 %v4877_v62 }
 0x20c   : > { %v2377_v13 = vadd.f32 %v2369_v11, %v2259_v42  ;;  %v4977_v9 = vpop.permute.xlu1 %4976  ;;  %v4867_v15 = vpop.permute.xlu0 %4866 }
 0x20d   : > { %v4872_v16 = vsel %vm4868_vm4, %v4865_v7, %v4867_v15  ;;  %v2371_v17 = vpop.f32.mrb[70].mxu1  ;;  %vm6053_vm4 = vmand %vm6051_vm15, %vm6052_vm0 }
 0x20e   : > { %v2444_v20 = vpop.f32.mrb[72].mxu0  ;;  %6339 = vmatmul.mubr.msk.bf16.vlgmr.msra.gmra.mrb[156].mxu0 %vm294_vm2, %v6337_v26  ;;  %6340 = vmatprep.subr.msk.bf16.mxu1 %vm298_vm1, %v4872_v16  ;;  %v2372_v5 = vpop.f32.mrb[71].mxu1  ;;  %v750_v17 = vsel %vm298_vm1, %v6749_v53, 0 }
 0x20f   : > { %v2492_v22 = vadd.f32 %v2444_v20, %v2374_v54  ;;  %v2446_v23 = vpop.f32.mrb[73].mxu0  ;;  %4930 = vmatpush1.bf16.msra.mxu1 %v4883_v18  ;;  %5038 = vmatprep.mubr.bf16.mxu0 %v6487_v1 }
 0x210   : > { %v2493_v27 = vadd.f32 %v2446_v23, %v2375_v59  ;;  %v4981_v28 = vpop.permute.xlu1 %4980  ;;  %v4979_v29 = vpop.permute.xlu0 %4978 }
 0x211   : > { %v4987_v30 = vsel %vm4986_vm8, %v4977_v9, %v4979_v29  ;;  %v4988_v31 = vsel %vm4986_vm8, %v4979_v29, %v4981_v28  ;;  %v2448_v32 = vpop.f32.mrb[74].mxu0 }
 0x212   : > { %v4995_v33 = vsel %vm298_vm1, %v4987_v30, 0  ;;  %v2485_v34 = vpop.f32.mrb[72].mxu1  ;;  %6341 = vmatmul.mubr.msk.bf16.vlgmr.msra.gmra.mrb[156].mxu1 %vm294_vm2, %v6337_v26  ;;  %6343 = vmatprep.subr.msk.bf16.mxu0 %vm298_vm1, %v4988_v31  ;;  %v2449_v35 = vpop.f32.mrb[75].mxu0 }
 0x213   : > { %v2494_v36 = vadd.f32 %v2485_v34, %v2376_v8  ;;  %v2487_v37 = vpop.f32.mrb[73].mxu1  ;;  %5007 = vmatpush1.bf16.msra.mxu0 %v4995_v33  ;;  %5079 = vmatprep.mubr.bf16.mxu1 %v6487_v1 }
 0x214   : > { %v2495_v39 = vadd.f32 %v2487_v37, %v2377_v13  ;;  %v4985_v40 = vpop.permute.xlu1 %4984  ;;  %v4983_v41 = vpop.permute.xlu0 %4982 }
 0x215   : > { %v4989_v42 = vsel %vm4986_vm8, %v4981_v28, %v4983_v41  ;;  %v4990_v43 = vsel %vm4986_vm8, %v4983_v41, %v4985_v40  ;;  %v2489_v44 = vpop.f32.mrb[74].mxu1  ;;  %v874_v40 = vsel %vm298_vm1, %v6803_v14, 0  ;;  %v5973_v41 = vld [vmem:[#allocation2] sm:$0x1]  ;;  %vm6055_vm8 = vcmask 1043459  }
 0x216   : > { %v5001_v45 = vsel %vm298_vm1, %v4989_v42, 0  ;;  %6344 = vmatmul.mubr.msk.bf16.vlgmr.msra.gmra.mrb[160].mxu0 %vm294_vm2, %v6342_v38  ;;  %6345 = vmatprep.subr.msk.bf16.mxu1 %vm298_vm1, %v4990_v43  ;;  %v2490_v46 = vpop.f32.mrb[75].mxu1 }
 0x217   : > { %5048 = vmatpush1.bf16.msra.mxu1 %v5001_v45  ;;  %5156 = vmatprep.mubr.bf16.mxu0 %v6487_v1 }
 0x218   : > { %v5097_v6 = vpop.permute.xlu1 %5096  ;;  %v5095_v47 = vpop.permute.xlu0 %5094  ;;  %5976 = vperm.xlu0 %6455, %v5973_v41  }
 0x219   : > { %v5105_v49 = vsel %vm5104_vm9, %v5095_v47, %v5097_v6 }
 0x21a   : > { %v2562_v48 = vpop.f32.mrb[76].mxu0  ;;  %6346 = vmatmul.mubr.msk.bf16.vlgmr.msra.gmra.mrb[160].mxu1 %vm294_vm2, %v6342_v38  ;;  %v5113_v4 = vsel %vm298_vm1, %v5105_v49, 0 }
 0x21b   : > { %v2610_v50 = vadd.f32 %v2562_v48, %v2492_v22  ;;  %v2564_v51 = vpop.f32.mrb[77].mxu0  ;;  %5197 = vmatprep.mubr.bf16.mxu1 %v6487_v1 }
 0x21c   : > { %v2611_v52 = vadd.f32 %v2564_v51, %v2493_v27  ;;  %v5101_v54 = vpop.permute.xlu1 %5100  ;;  %v5099_v56 = vpop.permute.xlu0 %5098 }
 0x21d   : > { %v5106_v59 = vsel %vm5104_vm9, %v5097_v6, %v5099_v56  ;;  %v2566_v7 = vpop.f32.mrb[78].mxu0  ;;  %v5107_v62 = vsel %vm5104_vm9, %v5099_v56, %v5101_v54 }
 0x21e   : > { %v2603_v60 = vpop.f32.mrb[76].mxu1  ;;  %6348 = vmatprep.subr.msk.bf16.mxu0 %vm298_vm1, %v5106_v59  ;;  %v2567_v61 = vpop.f32.mrb[79].mxu0  ;;  %v5119_v15 = vsel %vm298_vm1, %v5107_v62, 0  ;;  %v6362_v62 = vld [vmem:[%s7699_s2 + $0x2c] sm:$0x1] }
 0x21f   : > { %v2612_v63 = vadd.f32 %v2603_v60, %v2494_v36  ;;  %v2605_v0 = vpop.f32.mrb[77].mxu1  ;;  %5125 = vmatpush1.bf16.msra.mxu0 %v5113_v4 }
 0x220   : > { %v2613_v8 = vadd.f32 %v2605_v0, %v2495_v39  ;;  %v5213_v11 = vpop.permute.xlu1 %5212  ;;  %v5103_v26 = vpop.permute.xlu0 %5102  ;;  %6353 = vmatprep.subr.msk.bf16.mxu0 %vm298_vm1, %v6761_v57 }
 0x221   : > { %v5108_v13 = vsel %vm5104_vm9, %v5101_v54, %v5103_v26  ;;  %v2607_v9 = vpop.f32.mrb[78].mxu1  ;;  %v5214_v20 = vsel %vm738_vm5, %v6757_v55, %v5213_v11  ;;  %v756_v55 = vsel %vm298_vm1, %v6765_v58, 0  ;;  %vm5513_vm5 = vcmask 990208  }
 0x222   : > { %v2680_v16 = vpop.f32.mrb[80].mxu0  ;;  %6349 = vmatmul.mubr.msk.bf16.vlgmr.msra.gmra.mrb[164].mxu0 %vm294_vm2, %v6347_v2  ;;  %6350 = vmatprep.subr.msk.bf16.mxu1 %vm298_vm1, %v5108_v13  ;;  %v2608_v18 = vpop.f32.mrb[79].mxu1  ;;  %vm6056_vm9 = vsmask.f32 3328 }
 0x223   : > { %v2728_v5 = vadd.f32 %v2680_v16, %v2610_v50  ;;  %v2682_v22 = vpop.f32.mrb[81].mxu0  ;;  %5166 = vmatpush1.bf16.msra.mxu1 %v5119_v15  ;;  %5222 = vmatpush1.bf16.msra.mxu0 %v750_v17 }
 0x224   : > { %v2729_v57 = vadd.f32 %v2682_v22, %v2611_v52  ;;  %v5407_v23 = vpop.permute.xlu1 %5406  ;;  %6355 = vmatprep.subr.msk.bf16.mxu1 %vm298_vm1, %v5214_v20  ;;  %v5310_v27 = vpop.permute.xlu0 %5309  ;;  %6358 = vmatprep.subr.msk.bf16.mxu0 %vm298_vm1, %v6793_v10  ;;  %v6352_v10 = vld [vmem:[%s7699_s2 + $0x2a] sm:$0x1] }
 0x225   : > { %5253 = vmatprep.mubr.bf16.mxu0 %v6487_v1  ;;  %v2684_v28 = vpop.f32.mrb[82].mxu0  ;;  %v5311_v30 = vsel %vm856_vm6, %v6795_v12, %v5310_v27  ;;  %v868_v12 = vsel %vm298_vm1, %v6784_v3, 0  ;;  %v5408_v42 = vsel %vm974_vm7, %v6823_v21, %v5407_v23  ;;  %v986_v21 = vsel %vm298_vm1, %v6815_v19, 0 }
 0x226   : > { %v2721_v53 = vpop.f32.mrb[80].mxu1  ;;  %6351 = vmatmul.mubr.msk.bf16.vlgmr.msra.gmra.mrb[164].mxu1 %vm294_vm2, %v6347_v2  ;;  %v2685_v29 = vpop.f32.mrb[83].mxu0  ;;  %v992_v19 = vsel %vm298_vm1, %v6834_v25, 0  ;;  %vm5631_vm6 = vcmask 982016   ;;  %v6367_v28 = vld [vmem:[%s7699_s2 + $0x2d] sm:$0x1] }
 0x227   : > { %v2730_v31 = vadd.f32 %v2721_v53, %v2612_v63  ;;  %v2723_v32 = vpop.f32.mrb[81].mxu1  ;;  %5263 = vmatpush1.bf16.msra.mxu1 %v756_v55  ;;  %5294 = vmatprep.mubr.bf16.mxu1 %v6487_v1  ;;  %vm5749_vm7 = vcmask 973824  }
 0x228   : > { %v2731_v33 = vadd.f32 %v2723_v32, %v2613_v8  ;;  %6360 = vmatprep.subr.msk.bf16.mxu1 %vm298_vm1, %v5311_v30  ;;  %v2725_v34 = vpop.f32.mrb[82].mxu1  ;;  %v5506_v35 = vpop.permute.xlu1 %5505 }
 0x229   : > { %v2726_v36 = vpop.f32.mrb[83].mxu1  ;;  %v5504_v58 = vpop.permute.xlu0 %5503 }
 0x22a   : > { %6354 = vmatmul.mubr.msk.bf16.vlgmr.msra.gmra.mrb[168].mxu0 %vm294_vm2, %v6352_v10  ;;  %v5514_v4 = vsel %vm5513_vm5, %v5504_v58, %v5506_v35 }
 0x22b   : > { %5319 = vmatpush1.bf16.msra.mxu0 %v868_v12  ;;  %5350 = vmatprep.mubr.bf16.mxu0 %v6487_v1  ;;  %v5522_v11 = vsel %vm298_vm1, %v5514_v4, 0 }
 0x22c   : > { %6363 = vmatprep.subr.msk.bf16.mxu0 %vm298_vm1, %v6830_v24  ;;  %v5510_v37 = vpop.permute.xlu1 %5509  ;;  %v6357_v24 = vld [vmem:[%s7699_s2 + $0x2b] sm:$0x1] }
 0x22d   : > { %v5508_v38 = vpop.permute.xlu0 %5507 }
 0x22e   : > { %v2798_v39 = vpop.f32.mrb[84].mxu0  ;;  %6356 = vmatmul.mubr.msk.bf16.vlgmr.msra.gmra.mrb[168].mxu1 %vm294_vm2, %v6352_v10  ;;  %v5515_v14 = vsel %vm5513_vm5, %v5506_v35, %v5508_v38  ;;  %v5516_v9 = vsel %vm5513_vm5, %v5508_v38, %v5510_v37 }
 0x22f   : > { %v2846_v3 = vadd.f32 %v2798_v39, %v2728_v5  ;;  %v2800_v43 = vpop.f32.mrb[85].mxu0  ;;  %5360 = vmatpush1.bf16.msra.mxu1 %v874_v40  ;;  %5391 = vmatprep.mubr.bf16.mxu1 %v6487_v1 }
 0x230   : > { %v2847_v44 = vadd.f32 %v2800_v43, %v2729_v57  ;;  %6365 = vmatprep.subr.msk.bf16.mxu1 %vm298_vm1, %v5408_v42  ;;  %v2802_v45 = vpop.f32.mrb[86].mxu0  ;;  %v5528_v57 = vsel %vm298_vm1, %v5516_v9, 0  ;;  %v6372_v42 = vld [vmem:[%s7699_s2 + $0x2e] sm:$0x1] }
 0x231   : > { %v2803_v46 = vpop.f32.mrb[87].mxu0 }
 0x232   : > { %v2839_v6 = vpop.f32.mrb[84].mxu1  ;;  %6359 = vmatmul.mubr.msk.bf16.vlgmr.msra.gmra.mrb[172].mxu0 %vm294_vm2, %v6357_v24  ;;  %v5622_v47 = vpop.permute.xlu1 %5621 }
 0x233   : > { %v2848_v48 = vadd.f32 %v2839_v6, %v2730_v31  ;;  %v2841_v49 = vpop.f32.mrb[85].mxu1  ;;  %5416 = vmatpush1.bf16.msra.mxu0 %v986_v21  ;;  %v5512_v50 = vpop.permute.xlu0 %5511  ;;  %5447 = vmatprep.mubr.bf16.mxu0 %v6487_v1 }
 0x234   : > { %v2849_v51 = vadd.f32 %v2841_v49, %v2731_v33  ;;  %6368 = vmatprep.subr.msk.bf16.mxu0 %vm298_vm1, %v5515_v14  ;;  %v2843_v52 = vpop.f32.mrb[86].mxu1  ;;  %v5517_v56 = vsel %vm5513_vm5, %v5510_v37, %v5512_v50 }
 0x235   : > { %v2844_v54 = vpop.f32.mrb[87].mxu1 }
 0x236   : > { %v2916_v59 = vpop.f32.mrb[88].mxu0  ;;  %6361 = vmatmul.mubr.msk.bf16.vlgmr.msra.gmra.mrb[172].mxu1 %vm294_vm2, %v6357_v24  ;;  %v5626_v7 = vpop.permute.xlu1 %5625 }
 0x237   : > { %v2964_v60 = vadd.f32 %v2916_v59, %v2846_v3  ;;  %v2918_v61 = vpop.f32.mrb[89].mxu0  ;;  %5457 = vmatpush1.bf16.msra.mxu1 %v992_v19  ;;  %v5624_v63 = vpop.permute.xlu0 %5623  ;;  %5488 = vmatprep.mubr.bf16.mxu1 %v6487_v1 }
 0x238   : > { %v2965_v0 = vadd.f32 %v2918_v61, %v2847_v44  ;;  %6370 = vmatprep.subr.msk.bf16.mxu1 %vm298_vm1, %v5517_v56  ;;  %v2920_v2 = vpop.f32.mrb[90].mxu0  ;;  %v5633_v25 = vsel %vm5631_vm6, %v5624_v63, %v5626_v7  ;;  %v5632_v27 = vsel %vm5631_vm6, %v5622_v47, %v5624_v63  ;;  %v6377_v61 = vld [vmem:[%s7699_s2 + $0x2f] sm:$0x1] }
 0x239   : > { %v2921_v8 = vpop.f32.mrb[91].mxu0  ;;  %v5640_v55 = vsel %vm298_vm1, %v5632_v27, 0 }
 0x23a   : > { %v2957_v26 = vpop.f32.mrb[88].mxu1  ;;  %6364 = vmatmul.mubr.msk.bf16.vlgmr.msra.gmra.mrb[176].mxu0 %vm294_vm2, %v6362_v62  ;;  %v5630_v13 = vpop.permute.xlu1 %5629 }
 0x23b   : > { %v2966_v15 = vadd.f32 %v2957_v26, %v2848_v48  ;;  %v2959_v16 = vpop.f32.mrb[89].mxu1  ;;  %5534 = vmatpush1.bf16.msra.mxu0 %v5522_v11  ;;  %v5628_v17 = vpop.permute.xlu0 %5627  ;;  %5565 = vmatprep.mubr.bf16.mxu0 %v6487_v1 }
 0x23c   : > { %v2967_v18 = vadd.f32 %v2959_v16, %v2849_v51  ;;  %6373 = vmatprep.subr.msk.bf16.mxu0 %vm298_vm1, %v5633_v25  ;;  %v2961_v20 = vpop.f32.mrb[90].mxu1  ;;  %v5635_v5 = vsel %vm5631_vm6, %v5628_v17, %v5630_v13  ;;  %v5634_v31 = vsel %vm5631_vm6, %v5626_v7, %v5628_v17  ;;  %v6382_v16 = vld [vmem:[%s7699_s2 + $0x30] sm:$0x1]  ;;  %vm6057_vm6 = vmand %vm6055_vm8, %vm6056_vm9 }
 0x23d   : > { %v2962_v22 = vpop.f32.mrb[91].mxu1  ;;  %v5646_v37 = vsel %vm298_vm1, %v5634_v31, 0 }
 0x23e   : > { %6366 = vmatmul.mubr.msk.bf16.vlgmr.msra.gmra.mrb[176].mxu1 %vm294_vm2, %v6362_v62  ;;  %v5742_v23 = vpop.permute.xlu1 %5741 }
 0x23f   : > { %5575 = vmatpush1.bf16.msra.mxu1 %v5528_v57  ;;  %v5740_v53 = vpop.permute.xlu0 %5739  ;;  %5606 = vmatprep.mubr.bf16.mxu1 %v6487_v1 }
 0x240   : > { %6375 = vmatprep.subr.msk.bf16.mxu1 %vm298_vm1, %v5635_v5  ;;  %v5750_v58 = vsel %vm5749_vm7, %v5740_v53, %v5742_v23 }
 0x241   : > { %v5758_v43 = vsel %vm298_vm1, %v5750_v58, 0 }
 0x242   : > { %v3034_v29 = vpop.f32.mrb[92].mxu0  ;;  %6369 = vmatmul.mubr.msk.bf16.vlgmr.msra.gmra.mrb[180].mxu0 %vm294_vm2, %v6367_v28  ;;  %v5746_v30 = vpop.permute.xlu1 %5745 }
 0x243   : > { %v3082_v32 = vadd.f32 %v3034_v29, %v2964_v60  ;;  %v3036_v10 = vpop.f32.mrb[93].mxu0  ;;  %5652 = vmatpush1.bf16.msra.mxu0 %v5640_v55  ;;  %v5744_v33 = vpop.permute.xlu0 %5743  ;;  %5683 = vmatprep.mubr.bf16.mxu0 %v6487_v1 }
 0x244   : > { %v3083_v34 = vadd.f32 %v3036_v10, %v2965_v0  ;;  %v3038_v35 = vpop.f32.mrb[94].mxu0  ;;  %v5751_v36 = vsel %vm5749_vm7, %v5742_v23, %v5744_v33  ;;  %v5752_v14 = vsel %vm5749_vm7, %v5744_v33, %v5746_v30 }
 0x245   : > { %v3039_v12 = vpop.f32.mrb[95].mxu0  ;;  %6378 = vmatprep.subr.msk.bf16.mxu0 %vm298_vm1, %v5751_v36  ;;  %v5764_v50 = vsel %vm298_vm1, %v5752_v14, 0 }
 0x246   : > { %v3075_v38 = vpop.f32.mrb[92].mxu1  ;;  %6371 = vmatmul.mubr.msk.bf16.vlgmr.msra.gmra.mrb[180].mxu1 %vm294_vm2, %v6367_v28  ;;  %v5858_v39 = vpop.permute.xlu1 %5857 }
 0x247   : > { %v3084_v40 = vadd.f32 %v3075_v38, %v2966_v15  ;;  %v3077_v41 = vpop.f32.mrb[93].mxu1  ;;  %5693 = vmatpush1.bf16.msra.mxu1 %v5646_v37  ;;  %v5748_v3 = vpop.permute.xlu0 %5747  ;;  %5724 = vmatprep.mubr.bf16.mxu1 %v6487_v1 }
 0x248   : > { %v3085_v24 = vadd.f32 %v3077_v41, %v2967_v18  ;;  %v3079_v44 = vpop.f32.mrb[94].mxu1  ;;  %v5753_v45 = vsel %vm5749_vm7, %v5746_v30, %v5748_v3 }
 0x249   : > { %v3080_v46 = vpop.f32.mrb[95].mxu1  ;;  %6380 = vmatprep.subr.msk.bf16.mxu1 %vm298_vm1, %v5753_v45 }
 0x24a   : > { %v3152_v6 = vpop.f32.mrb[96].mxu0  ;;  %6374 = vmatmul.mubr.msk.bf16.vlgmr.msra.gmra.mrb[184].mxu0 %vm294_vm2, %v6372_v42  ;;  %v5862_v21 = vpop.permute.xlu1 %5861 }
 0x24b   : > { %v3200_v47 = vadd.f32 %v3152_v6, %v3082_v32  ;;  %v3154_v48 = vpop.f32.mrb[97].mxu0  ;;  %5770 = vmatpush1.bf16.msra.mxu0 %v5758_v43  ;;  %v5860_v49 = vpop.permute.xlu0 %5859  ;;  %5801 = vmatprep.mubr.bf16.mxu0 %v6487_v1 }
 0x24c   : > { %v3201_v51 = vadd.f32 %v3154_v48, %v3083_v34  ;;  %v5869_v52 = vsel %vm5867_vm10, %v5860_v49, %v5862_v21  ;;  %v3156_v54 = vpop.f32.mrb[98].mxu0  ;;  %v5868_v56 = vsel %vm5867_vm10, %v5858_v39, %v5860_v49 }
 0x24d   : > { %6383 = vmatprep.subr.msk.bf16.mxu0 %vm298_vm1, %v5869_v52  ;;  %v3157_v59 = vpop.f32.mrb[99].mxu0  ;;  %v5876_v0 = vsel %vm298_vm1, %v5868_v56, 0 }
 0x24e   : > { %v3193_v19 = vpop.f32.mrb[96].mxu1  ;;  %6376 = vmatmul.mubr.msk.bf16.vlgmr.msra.gmra.mrb[184].mxu1 %vm294_vm2, %v6372_v42  ;;  %v5866_v7 = vpop.permute.xlu1 %5865 }
 0x24f   : > { %v3202_v4 = vadd.f32 %v3193_v19, %v3084_v40  ;;  %v3195_v60 = vpop.f32.mrb[97].mxu1  ;;  %5811 = vmatpush1.bf16.msra.mxu1 %v5764_v50  ;;  %v5864_v62 = vpop.permute.xlu0 %5863  ;;  %5842 = vmatprep.mubr.bf16.mxu1 %v6487_v1 }
 0x250   : > { %v3203_v63 = vadd.f32 %v3195_v60, %v3085_v24  ;;  %v5871_v2 = vsel %vm5867_vm10, %v5864_v62, %v5866_v7  ;;  %v3197_v25 = vpop.f32.mrb[98].mxu1  ;;  %v5870_v8 = vsel %vm5867_vm10, %v5862_v21, %v5864_v62 }
 0x251   : > { %6385 = vmatprep.subr.msk.bf16.mxu1 %vm298_vm1, %v5871_v2  ;;  %v3198_v11 = vpop.f32.mrb[99].mxu1  ;;  %v5882_v26 = vsel %vm298_vm1, %v5870_v8, 0  ;;  %vm6044_vm1 = vcmask 1040384  }
 0x252   : > { %6379 = vmatmul.mubr.msk.bf16.vlgmr.msra.gmra.mrb[188].mxu0 %vm294_vm2, %v6377_v61 }
 0x253   : > { %5888 = vmatpush1.bf16.msra.mxu0 %v5876_v0  ;;  %5919 = vmatprep.mubr.bf16.mxu0 %v6487_v1 }
 0x256   : > { %v3270_v13 = vpop.f32.mrb[100].mxu0  ;;  %6381 = vmatmul.mubr.msk.bf16.vlgmr.msra.gmra.mrb[188].mxu1 %vm294_vm2, %v6377_v61 }
 0x257   : > { %v3318_v9 = vadd.f32 %v3270_v13, %v3200_v47  ;;  %v3272_v15 = vpop.f32.mrb[101].mxu0  ;;  %5929 = vmatpush1.bf16.msra.mxu1 %v5882_v26  ;;  %5960 = vmatprep.mubr.bf16.mxu1 %v6487_v1 }
 0x258   : > { %v3319_v17 = vadd.f32 %v3272_v15, %v3201_v51  ;;  %v3274_v18 = vpop.f32.mrb[102].mxu0 }
 0x259   : > { %v3275_v20 = vpop.f32.mrb[103].mxu0 }
 0x25a   : > { %v3311_v5 = vpop.f32.mrb[100].mxu1  ;;  %6384 = vmatmul.mubr.msk.bf16.vlgmr.msra.gmra.mrb[192].mxu0 %vm294_vm2, %v6382_v16 }
 0x25b   : > { %v3320_v22 = vadd.f32 %v3311_v5, %v3202_v4  ;;  %v3313_v57 = vpop.f32.mrb[101].mxu1 }
 0x25c   : > { %v3321_v23 = vadd.f32 %v3313_v57, %v3203_v63  ;;  %v3315_v27 = vpop.f32.mrb[102].mxu1 }
 0x25d   : > { %v3316_v28 = vpop.f32.mrb[103].mxu1 }
 0x25e   : > { %v3388_v53 = vpop.f32.mrb[104].mxu0  ;;  %6386 = vmatmul.mubr.msk.bf16.vlgmr.msra.gmra.mrb[192].mxu1 %vm294_vm2, %v6382_v16  ;;  %vm6045_vm2 = vsmask.f32 256 }
 0x25f   : > { %v3436_v55 = vadd.f32 %v3388_v53, %v3318_v9  ;;  %v3390_v29 = vpop.f32.mrb[105].mxu0  ;;  %vm7676_vm13 = vmand %vm6044_vm1, %vm6045_vm2 }
 0x260   : > { %v3437_v30 = vadd.f32 %v3390_v29, %v3319_v17  ;;  %v3392_v31 = vpop.f32.mrb[106].mxu0  ;;  %vm6050_vm3 = vmor %vm7681_vm14, %vm7676_vm13 }
 0x261   : > { %v3393_v32 = vpop.f32.mrb[107].mxu0  ;;  %vm6054_vm5 = vmor %vm6053_vm4, %vm6050_vm3 }
 0x262   : > { %v3429_v1 = vpop.f32.mrb[104].mxu1  ;;  %vm6058_vm7 = vmor %vm6057_vm6, %vm6054_vm5 }
 0x263   : > { %v3438_v10 = vadd.f32 %v3429_v1, %v3320_v22  ;;  %v3431_v33 = vpop.f32.mrb[105].mxu1 }
 0x264   : > { %v3439_v34 = vadd.f32 %v3431_v33, %v3321_v23  ;;  %v3433_v35 = vpop.f32.mrb[106].mxu1 }
 0x265   : > { %v3434_v36 = vpop.f32.mrb[107].mxu1 }
 0x26a   : > { %v3506_v58 = vpop.f32.mrb[108].mxu0 }
 0x26b   : > { %v3554_v12 = vadd.f32 %v3506_v58, %v3436_v55  ;;  %v3508_v37 = vpop.f32.mrb[109].mxu0 }
 0x26c   : > { %v3555_v38 = vadd.f32 %v3508_v37, %v3437_v30  ;;  %v3510_v39 = vpop.f32.mrb[110].mxu0 }
 0x26d   : > { %v3511_v40 = vpop.f32.mrb[111].mxu0 }
 0x26e   : > { %v3547_v41 = vpop.f32.mrb[108].mxu1 }
 0x26f   : > { %v3556_v42 = vadd.f32 %v3547_v41, %v3438_v10  ;;  %v3549_v3 = vpop.f32.mrb[109].mxu1 }
 0x270   : > { %v3557_v43 = vadd.f32 %v3549_v3, %v3439_v34  ;;  %v3551_v24 = vpop.f32.mrb[110].mxu1 }
 0x271   : > { %v3552_v44 = vpop.f32.mrb[111].mxu1 }
 0x272   : > { %v3624_v45 = vpop.f32.mrb[112].mxu0 }
 0x273   : > { %v3672_v14 = vadd.f32 %v3624_v45, %v3554_v12  ;;  %v3626_v46 = vpop.f32.mrb[113].mxu0 }
 0x274   : > { %v3673_v6 = vadd.f32 %v3626_v46, %v3555_v38  ;;  %v3628_v21 = vpop.f32.mrb[114].mxu0 }
 0x275   : > { %v3629_v47 = vpop.f32.mrb[115].mxu0 }
 0x276   : > { %v3665_v48 = vpop.f32.mrb[112].mxu1 }
 0x277   : > { %v3674_v49 = vadd.f32 %v3665_v48, %v3556_v42  ;;  %v3667_v50 = vpop.f32.mrb[113].mxu1 }
 0x278   : > { %v3675_v51 = vadd.f32 %v3667_v50, %v3557_v43  ;;  %v3669_v52 = vpop.f32.mrb[114].mxu1 }
 0x279   : > { %v3670_v54 = vpop.f32.mrb[115].mxu1 }
 0x27e   : > { %v3742_v56 = vpop.f32.mrb[116].mxu0 }
 0x27f   : > { %v3790_v59 = vadd.f32 %v3742_v56, %v3672_v14  ;;  %v3744_v19 = vpop.f32.mrb[117].mxu0 }
 0x280   : > { %v3791_v7 = vadd.f32 %v3744_v19, %v3673_v6  ;;  %v3746_v4 = vpop.f32.mrb[118].mxu0 }
 0x281   : > { %v3747_v60 = vpop.f32.mrb[119].mxu0 }
 0x282   : > { %v3783_v61 = vpop.f32.mrb[116].mxu1 }
 0x283   : > { %v3792_v62 = vadd.f32 %v3783_v61, %v3674_v49  ;;  %v3785_v63 = vpop.f32.mrb[117].mxu1 }
 0x284   : > { %v3793_v0 = vadd.f32 %v3785_v63, %v3675_v51  ;;  %v3787_v2 = vpop.f32.mrb[118].mxu1 }
 0x285   : > { %v3788_v25 = vpop.f32.mrb[119].mxu1 }
 0x286   : > { %v3860_v8 = vpop.f32.mrb[120].mxu0 }
 0x287   : > { %v3908_v11 = vadd.f32 %v3860_v8, %v3790_v59  ;;  %v3862_v26 = vpop.f32.mrb[121].mxu0 }
 0x288   : > { %v3909_v13 = vadd.f32 %v3862_v26, %v3791_v7  ;;  %v3864_v9 = vpop.f32.mrb[122].mxu0 }
 0x289   : > { %v3865_v15 = vpop.f32.mrb[123].mxu0 }
 0x28a   : > { %v3901_v16 = vpop.f32.mrb[120].mxu1 }
 0x28b   : > { %v3910_v17 = vadd.f32 %v3901_v16, %v3792_v62  ;;  %v3903_v18 = vpop.f32.mrb[121].mxu1 }
 0x28c   : > { %v3911_v20 = vadd.f32 %v3903_v18, %v3793_v0  ;;  %v3905_v5 = vpop.f32.mrb[122].mxu1 }
 0x28d   : > { %v3906_v22 = vpop.f32.mrb[123].mxu1 }
 0x291   : > { %v3978_v57 = vpop.f32.mrb[124].mxu0 }
 0x292   : > { %v4026_v23 = vadd.f32 %v3978_v57, %v3908_v11  ;;  %v3980_v27 = vpop.f32.mrb[125].mxu0 }
 0x293   : > { %v4027_v28 = vadd.f32 %v3980_v27, %v3909_v13  ;;  %v3982_v53 = vpop.f32.mrb[126].mxu0 }
 0x294   : > { %v3983_v55 = vpop.f32.mrb[127].mxu0 }
 0x295   : > { %v4019_v29 = vpop.f32.mrb[124].mxu1 }
 0x296   : > { %v4028_v30 = vadd.f32 %v4019_v29, %v3910_v17  ;;  %v4021_v31 = vpop.f32.mrb[125].mxu1 }
 0x297   : > { %v4029_v32 = vadd.f32 %v4021_v31, %v3911_v20  ;;  %v4023_v1 = vpop.f32.mrb[126].mxu1 }
 0x298   : > { %v4024_v10 = vpop.f32.mrb[127].mxu1 }
 0x299   : > { %v4096_v33 = vpop.f32.mrb[128].mxu0 }
 0x29a   : > { %v4144_v34 = vadd.f32 %v4096_v33, %v4026_v23  ;;  %v4098_v35 = vpop.f32.mrb[129].mxu0 }
 0x29b   : > { %v4145_v36 = vadd.f32 %v4098_v35, %v4027_v28  ;;  %v4100_v58 = vpop.f32.mrb[130].mxu0 }
 0x29c   : > { %v4101_v12 = vpop.f32.mrb[131].mxu0 }
 0x29d   : > { %v4137_v37 = vpop.f32.mrb[128].mxu1 }
 0x29e   : > { %v4146_v38 = vadd.f32 %v4137_v37, %v4028_v30  ;;  %v4139_v39 = vpop.f32.mrb[129].mxu1 }
 0x29f   : > { %v4147_v40 = vadd.f32 %v4139_v39, %v4029_v32  ;;  %v4141_v41 = vpop.f32.mrb[130].mxu1 }
 0x2a0   : > { %v4142_v42 = vpop.f32.mrb[131].mxu1 }
 0x2a5   : > { %v4214_v3 = vpop.f32.mrb[132].mxu0 }
 0x2a6   : > { %v4262_v43 = vadd.f32 %v4214_v3, %v4144_v34  ;;  %v4216_v24 = vpop.f32.mrb[133].mxu0 }
 0x2a7   : > { %v4263_v44 = vadd.f32 %v4216_v24, %v4145_v36  ;;  %v4218_v45 = vpop.f32.mrb[134].mxu0 }
 0x2a8   : > { %v4219_v14 = vpop.f32.mrb[135].mxu0 }
 0x2a9   : > { %v4255_v46 = vpop.f32.mrb[132].mxu1 }
 0x2aa   : > { %v4264_v6 = vadd.f32 %v4255_v46, %v4146_v38  ;;  %v4257_v21 = vpop.f32.mrb[133].mxu1 }
 0x2ab   : > { %v4265_v47 = vadd.f32 %v4257_v21, %v4147_v40  ;;  %v4259_v48 = vpop.f32.mrb[134].mxu1 }
 0x2ac   : > { %v4260_v49 = vpop.f32.mrb[135].mxu1 }
 0x2ad   : > { %v4332_v50 = vpop.f32.mrb[136].mxu0 }
 0x2ae   : > { %v4380_v51 = vadd.f32 %v4332_v50, %v4262_v43  ;;  %v4334_v52 = vpop.f32.mrb[137].mxu0 }
 0x2af   : > { %v4381_v54 = vadd.f32 %v4334_v52, %v4263_v44  ;;  %v4336_v56 = vpop.f32.mrb[138].mxu0 }
 0x2b0   : > { %v4337_v59 = vpop.f32.mrb[139].mxu0 }
 0x2b1   : > { %v4373_v19 = vpop.f32.mrb[136].mxu1 }
 0x2b2   : > { %v4382_v7 = vadd.f32 %v4373_v19, %v4264_v6  ;;  %v4375_v4 = vpop.f32.mrb[137].mxu1 }
 0x2b3   : > { %v4383_v60 = vadd.f32 %v4375_v4, %v4265_v47  ;;  %v4377_v61 = vpop.f32.mrb[138].mxu1 }
 0x2b4   : > { %v4378_v62 = vpop.f32.mrb[139].mxu1 }
 0x2b9   : > { %v4450_v63 = vpop.f32.mrb[140].mxu0 }
 0x2ba   : > { %v4498_v0 = vadd.f32 %v4450_v63, %v4380_v51  ;;  %v4452_v2 = vpop.f32.mrb[141].mxu0 }
 0x2bb   : > { %v4499_v25 = vadd.f32 %v4452_v2, %v4381_v54  ;;  %v4454_v8 = vpop.f32.mrb[142].mxu0 }
 0x2bc   : > { %v4455_v11 = vpop.f32.mrb[143].mxu0 }
 0x2bd   : > { %v4491_v26 = vpop.f32.mrb[140].mxu1 }
 0x2be   : > { %v4500_v13 = vadd.f32 %v4491_v26, %v4382_v7  ;;  %v4493_v9 = vpop.f32.mrb[141].mxu1 }
 0x2bf   : > { %v4501_v15 = vadd.f32 %v4493_v9, %v4383_v60  ;;  %v4495_v16 = vpop.f32.mrb[142].mxu1 }
 0x2c0   : > { %v4496_v17 = vpop.f32.mrb[143].mxu1 }
 0x2c1   : > { %v4568_v18 = vpop.f32.mrb[144].mxu0 }
 0x2c2   : > { %v4616_v20 = vadd.f32 %v4568_v18, %v4498_v0  ;;  %v4570_v5 = vpop.f32.mrb[145].mxu0 }
 0x2c3   : > { %v4617_v22 = vadd.f32 %v4570_v5, %v4499_v25  ;;  %v4572_v57 = vpop.f32.mrb[146].mxu0 }
 0x2c4   : > { %v4573_v23 = vpop.f32.mrb[147].mxu0 }
 0x2c5   : > { %v4609_v27 = vpop.f32.mrb[144].mxu1 }
 0x2c6   : > { %v4618_v28 = vadd.f32 %v4609_v27, %v4500_v13  ;;  %v4611_v53 = vpop.f32.mrb[145].mxu1 }
 0x2c7   : > { %v4619_v55 = vadd.f32 %v4611_v53, %v4501_v15  ;;  %v4613_v29 = vpop.f32.mrb[146].mxu1 }
 0x2c8   : > { %v4614_v30 = vpop.f32.mrb[147].mxu1 }
 0x2cd   : > { %v4686_v31 = vpop.f32.mrb[148].mxu0 }
 0x2ce   : > { %v4734_v32 = vadd.f32 %v4686_v31, %v4616_v20  ;;  %v4688_v1 = vpop.f32.mrb[149].mxu0 }
 0x2cf   : > { %v4735_v10 = vadd.f32 %v4688_v1, %v4617_v22  ;;  %v4690_v33 = vpop.f32.mrb[150].mxu0 }
 0x2d0   : > { %v4691_v34 = vpop.f32.mrb[151].mxu0 }
 0x2d1   : > { %v4727_v35 = vpop.f32.mrb[148].mxu1 }
 0x2d2   : > { %v4736_v36 = vadd.f32 %v4727_v35, %v4618_v28  ;;  %v4729_v58 = vpop.f32.mrb[149].mxu1 }
 0x2d3   : > { %v4737_v12 = vadd.f32 %v4729_v58, %v4619_v55  ;;  %v4731_v37 = vpop.f32.mrb[150].mxu1 }
 0x2d4   : > { %v4732_v38 = vpop.f32.mrb[151].mxu1 }
 0x2d5   : > { %v4804_v39 = vpop.f32.mrb[152].mxu0 }
 0x2d6   : > { %v4852_v40 = vadd.f32 %v4804_v39, %v4734_v32  ;;  %v4806_v41 = vpop.f32.mrb[153].mxu0 }
 0x2d7   : > { %v4853_v42 = vadd.f32 %v4806_v41, %v4735_v10  ;;  %v4808_v3 = vpop.f32.mrb[154].mxu0 }
 0x2d8   : > { %v4809_v43 = vpop.f32.mrb[155].mxu0 }
 0x2d9   : > { %v4845_v24 = vpop.f32.mrb[152].mxu1 }
 0x2da   : > { %v4854_v44 = vadd.f32 %v4845_v24, %v4736_v36  ;;  %v4847_v45 = vpop.f32.mrb[153].mxu1 }
 0x2db   : > { %v4855_v14 = vadd.f32 %v4847_v45, %v4737_v12  ;;  %v4849_v46 = vpop.f32.mrb[154].mxu1 }
 0x2dc   : > { %v4850_v6 = vpop.f32.mrb[155].mxu1 }
 0x2e1   : > { %v4922_v21 = vpop.f32.mrb[156].mxu0 }
 0x2e2   : > { %v4970_v47 = vadd.f32 %v4922_v21, %v4852_v40  ;;  %v4924_v48 = vpop.f32.mrb[157].mxu0 }
 0x2e3   : > { %v4971_v49 = vadd.f32 %v4924_v48, %v4853_v42  ;;  %v4926_v50 = vpop.f32.mrb[158].mxu0 }
 0x2e4   : > { %v4927_v51 = vpop.f32.mrb[159].mxu0 }
 0x2e5   : > { %v4963_v52 = vpop.f32.mrb[156].mxu1 }
 0x2e6   : > { %v4972_v54 = vadd.f32 %v4963_v52, %v4854_v44  ;;  %v4965_v56 = vpop.f32.mrb[157].mxu1 }
 0x2e7   : > { %v4973_v59 = vadd.f32 %v4965_v56, %v4855_v14  ;;  %v4967_v19 = vpop.f32.mrb[158].mxu1 }
 0x2e8   : > { %v4968_v7 = vpop.f32.mrb[159].mxu1 }
 0x2e9   : > { %v5040_v4 = vpop.f32.mrb[160].mxu0 }
 0x2ea   : > { %v5088_v60 = vadd.f32 %v5040_v4, %v4970_v47  ;;  %v5042_v61 = vpop.f32.mrb[161].mxu0 }
 0x2eb   : > { %v5089_v62 = vadd.f32 %v5042_v61, %v4971_v49  ;;  %v5044_v63 = vpop.f32.mrb[162].mxu0 }
 0x2ec   : > { %v5045_v0 = vpop.f32.mrb[163].mxu0 }
 0x2ed   : > { %v5081_v2 = vpop.f32.mrb[160].mxu1 }
 0x2ee   : > { %v5090_v25 = vadd.f32 %v5081_v2, %v4972_v54  ;;  %v5083_v8 = vpop.f32.mrb[161].mxu1 }
 0x2ef   : > { %v5091_v11 = vadd.f32 %v5083_v8, %v4973_v59  ;;  %v5085_v26 = vpop.f32.mrb[162].mxu1 }
 0x2f0   : > { %v5086_v13 = vpop.f32.mrb[163].mxu1 }
 0x2f5   : > { %v5158_v9 = vpop.f32.mrb[164].mxu0 }
 0x2f6   : > { %v5206_v15 = vadd.f32 %v5158_v9, %v5088_v60  ;;  %v5160_v16 = vpop.f32.mrb[165].mxu0 }
 0x2f7   : > { %v5207_v17 = vadd.f32 %v5160_v16, %v5089_v62  ;;  %v5162_v18 = vpop.f32.mrb[166].mxu0  ;;  %v5979_v16 = vlaneseq }
 0x2f8   : > { %v5163_v20 = vpop.f32.mrb[167].mxu0 }
 0x2f9   : > { %v5199_v5 = vpop.f32.mrb[164].mxu1 }
 0x2fa   : > { %v5208_v22 = vadd.f32 %v5199_v5, %v5090_v25  ;;  %v5201_v57 = vpop.f32.mrb[165].mxu1 }
 0x2fb   : > { %v5209_v23 = vadd.f32 %v5201_v57, %v5091_v11  ;;  %v5203_v27 = vpop.f32.mrb[166].mxu1 }
 0x2fc   : > { %v5204_v28 = vpop.f32.mrb[167].mxu1 }
 0x2fd   : > { %v5255_v53 = vpop.f32.mrb[168].mxu0 }
 0x2fe   : > { %v5303_v55 = vadd.f32 %v5255_v53, %v5206_v15  ;;  %v5257_v29 = vpop.f32.mrb[169].mxu0 }
 0x2ff   : > { %v5304_v30 = vadd.f32 %v5257_v29, %v5207_v17  ;;  %v5259_v31 = vpop.f32.mrb[170].mxu0 }
 0x300   : > { %v5260_v32 = vpop.f32.mrb[171].mxu0 }
 0x301   : > { %v5296_v1 = vpop.f32.mrb[168].mxu1 }
 0x302   : > { %v5305_v10 = vadd.f32 %v5296_v1, %v5208_v22  ;;  %v5298_v33 = vpop.f32.mrb[169].mxu1  ;;  %v5977_v1 = vpop.permute.xlu0 %5976 }
 0x303   : > { %v5306_v34 = vadd.f32 %v5298_v33, %v5209_v23  ;;  %v5300_v35 = vpop.f32.mrb[170].mxu1  ;;  %v7673_v23 = vshrl.u32 %v5979_v16, 7 }
 0x304   : > { %v5301_v36 = vpop.f32.mrb[171].mxu1 }
 0x305   : > { %v5352_v58 = vpop.f32.mrb[172].mxu0  ;;  %v5981_v31 = vsub.s32 0, %v7673_v23 }
 0x306   : > { %v5400_v12 = vadd.f32 %v5352_v58, %v5303_v55  ;;  %v5354_v37 = vpop.f32.mrb[173].mxu0 }
 0x307   : > { %v5401_v38 = vadd.f32 %v5354_v37, %v5304_v30  ;;  %v5356_v39 = vpop.f32.mrb[174].mxu0  ;;  %v5982_v36 = vrot.slane %v5977_v1, %v5981_v31 }
 0x308   : > { %v5357_v40 = vpop.f32.mrb[175].mxu0 }
 0x309   : > { %v5393_v41 = vpop.f32.mrb[172].mxu1 }
 0x30a   : > { %v5402_v42 = vadd.f32 %v5393_v41, %v5305_v10  ;;  %v5395_v3 = vpop.f32.mrb[173].mxu1 }
 0x30b   : > { %v5403_v43 = vadd.f32 %v5395_v3, %v5306_v34  ;;  %v5397_v24 = vpop.f32.mrb[174].mxu1 }
 0x30c   : > { %v5398_v44 = vpop.f32.mrb[175].mxu1 }
 0x30d   : > { %v5449_v45 = vpop.f32.mrb[176].mxu0 }
 0x30e   : > { %v5497_v14 = vadd.f32 %v5449_v45, %v5400_v12  ;;  %v5451_v46 = vpop.f32.mrb[177].mxu0 }
 0x30f   : > { %v5498_v6 = vadd.f32 %v5451_v46, %v5401_v38  ;;  %v5453_v21 = vpop.f32.mrb[178].mxu0 }
 0x310   : > { %v5454_v47 = vpop.f32.mrb[179].mxu0 }
 0x311   : > { %v5490_v48 = vpop.f32.mrb[176].mxu1 }
 0x312   : > { %v5499_v49 = vadd.f32 %v5490_v48, %v5402_v42  ;;  %v5492_v50 = vpop.f32.mrb[177].mxu1 }
 0x313   : > { %v5500_v51 = vadd.f32 %v5492_v50, %v5403_v43  ;;  %v5494_v52 = vpop.f32.mrb[178].mxu1 }
 0x314   : > { %v5495_v54 = vpop.f32.mrb[179].mxu1 }
 0x315   : > { %v5567_v56 = vpop.f32.mrb[180].mxu0 }
 0x316   : > { %v5615_v59 = vadd.f32 %v5567_v56, %v5497_v14  ;;  %v5569_v19 = vpop.f32.mrb[181].mxu0 }
 0x317   : > { %v5616_v7 = vadd.f32 %v5569_v19, %v5498_v6  ;;  %v5571_v4 = vpop.f32.mrb[182].mxu0 }
 0x318   : > { %v5572_v60 = vpop.f32.mrb[183].mxu0 }
 0x319   : > { %v5608_v61 = vpop.f32.mrb[180].mxu1 }
 0x31a   : > { %v5617_v62 = vadd.f32 %v5608_v61, %v5499_v49  ;;  %v5610_v63 = vpop.f32.mrb[181].mxu1 }
 0x31b   : > { %v5618_v0 = vadd.f32 %v5610_v63, %v5500_v51  ;;  %v5612_v2 = vpop.f32.mrb[182].mxu1 }
 0x31c   : > { %v5613_v25 = vpop.f32.mrb[183].mxu1 }
 0x31d   : > { %v5685_v8 = vpop.f32.mrb[184].mxu0 }
 0x31e   : > { %v5733_v11 = vadd.f32 %v5685_v8, %v5615_v59  ;;  %v5687_v26 = vpop.f32.mrb[185].mxu0 }
 0x31f   : > { %v5734_v13 = vadd.f32 %v5687_v26, %v5616_v7  ;;  %v5689_v9 = vpop.f32.mrb[186].mxu0 }
 0x320   : > { %v5690_v15 = vpop.f32.mrb[187].mxu0 }
 0x321   : > { %v5726_v17 = vpop.f32.mrb[184].mxu1 }
 0x322   : > { %v5735_v18 = vadd.f32 %v5726_v17, %v5617_v62  ;;  %v5728_v20 = vpop.f32.mrb[185].mxu1 }
 0x323   : > { %v5736_v5 = vadd.f32 %v5728_v20, %v5618_v0  ;;  %v5730_v22 = vpop.f32.mrb[186].mxu1  ;;  %v6533_v0 = vmov 1966171168  }
 0x324   : > { %v5731_v57 = vpop.f32.mrb[187].mxu1  ;;  %v6022_v2 = vunpack.c.l.s4 %v6533_v0 }
 0x325   : > { %v5803_v27 = vpop.f32.mrb[188].mxu0  ;;  %v6059_v57 = vld [vmem:[%s255_s14] sm:$0xf] }
 0x326   : > { %v5851_v28 = vadd.f32 %v5803_v27, %v5733_v11  ;;  %v5805_v53 = vpop.f32.mrb[189].mxu0  ;;  %v6023_v11 = vunpack.c.0.s8 %v6022_v2 }
 0x327   : > { %v5852_v55 = vadd.f32 %v5805_v53, %v5734_v13  ;;  %v5807_v29 = vpop.f32.mrb[190].mxu0 }
 0x328   : > { %v5808_v30 = vpop.f32.mrb[191].mxu0  ;;  %v6026_v16 = vsub.s32 %v6023_v11, %v7673_v23 }
 0x329   : > { %v5844_v32 = vpop.f32.mrb[188].mxu1 }
 0x32a   : > { %v5853_v10 = vadd.f32 %v5844_v32, %v5735_v18  ;;  %v5846_v33 = vpop.f32.mrb[189].mxu1 }
 0x32b   : > { %v5854_v34 = vadd.f32 %v5846_v33, %v5736_v5  ;;  %v5848_v35 = vpop.f32.mrb[190].mxu1 }
 0x32c   : > { %v5849_v58 = vpop.f32.mrb[191].mxu1 }
 0x32d   : > { %v5921_v12 = vpop.f32.mrb[192].mxu0 }
 0x32e   : > { %v5969_v37 = vadd.f32 %v5921_v12, %v5851_v28  ;;  %v5923_v38 = vpop.f32.mrb[193].mxu0 }
 0x32f   : > { %v5970_v39 = vadd.f32 %v5923_v38, %v5852_v55  ;;  %v5925_v40 = vpop.f32.mrb[194].mxu0 }
 0x330   : > { %v5983_v41 = vadd.f32 %v5982_v36, %v5969_v37  ;;  %v5926_v42 = vpop.f32.mrb[195].mxu0 }
 0x331   : > { %v5984_v3 = vadd.f32 %v5982_v36, %v5970_v39  ;;  %v5962_v43 = vpop.f32.mrb[192].mxu1 }
 0x332   : > { %v5987_v24 = vsub.f32 0.0, %v5983_v41  ;;  %v5971_v44 = vadd.f32 %v5962_v43, %v5853_v10  ;;  %v5964_v45 = vpop.f32.mrb[193].mxu1 }
 0x333   : > { %v5988_v14 = vsub.f32 0.0, %v5984_v3  ;;  %v5972_v46 = vadd.f32 %v5964_v45, %v5854_v34  ;;  %v5966_v6 = vpop.f32.mrb[194].mxu1 }
 0x334   : > { %v5991_v21 = vmul.f32 1.442695, %v5987_v24  ;;  %v5985_v47 = vadd.f32 %v5982_v36, %v5971_v44  ;;  %v5967_v48 = vpop.f32.mrb[195].mxu1 }
 0x335   : > { %v5993_v49 = vmul.f32 1.442695, %v5988_v14  ;;  %v5986_v50 = vadd.f32 %v5982_v36, %v5972_v46 }
 0x336   : > { %6462 = vpow2.f32 %v5991_v21  ;;  %v5989_v51 = vsub.f32 0.0, %v5985_v47 }
 0x337   : > { %6464 = vpow2.f32 %v5993_v49  ;;  %v5990_v52 = vsub.f32 0.0, %v5986_v50 }
 0x338   : > { %v5995_v54 = vmul.f32 1.442695, %v5989_v51 }
 0x339   : > { %v5997_v56 = vmul.f32 1.442695, %v5990_v52 }
 0x33a   : > { %6466 = vpow2.f32 %v5995_v54 }
 0x33b   : > { %6468 = vpow2.f32 %v5997_v56 }
 0x340   : > { %v6463_v59 = vpop.eup %6462 }
 0x341   : > { %v6465_v19 = vpop.eup %6464  ;;  %v5999_v7 = vadd.f32 1.0, %v6463_v59 }
 0x342   : > { %v6000_v4 = vadd.f32 1.0, %v6465_v19 }
 0x343   : > { %6470 = vrcp.f32 %v5999_v7 }
 0x344   : > { %v6467_v60 = vpop.eup %6466  ;;  %6472 = vrcp.f32 %v6000_v4 }
 0x345   : > { %v6469_v61 = vpop.eup %6468  ;;  %v6001_v62 = vadd.f32 1.0, %v6467_v60 }
 0x346   : > { %v6002_v63 = vadd.f32 1.0, %v6469_v61 }
 0x347   : > { %6474 = vrcp.f32 %v6001_v62 }
 0x348   : > { %6476 = vrcp.f32 %v6002_v63 }
 0x34d   : > { %v6471_v8 = vpop.eup %6470 }
 0x34e   : > { %v6473_v13 = vpop.eup %6472 }
 0x34f   : > { %v6387_v9 = vpack.c.bf16 %v6473_v13, %v6471_v8 }
 0x351   : > { %v6475_v15 = vpop.eup %6474  ;;  %v6027_v20 = vrot.slane %v6387_v9, %v6026_v16 }
 0x352   : > { %v6477_v17 = vpop.eup %6476 }
 0x353   : > { %v6388_v18 = vpack.c.bf16 %v6477_v17, %v6475_v15 }
 0x355   : > { %v6034_v5 = vrot.slane %v6388_v18, %v6026_v16 }
 0x357   : > { %v6035_v22 = vcombine.low %v6027_v20, %v6034_v5 }
 0x359   : > { %v6042_v27 = vrot.slane %v6035_v22, %v6026_v16 }
 0x35b   : > { %v6060_v28 = vsel %vm6058_vm7, %v6042_v27, %v6059_v57 }
 0x35c   : > { %6061 = vst [vmem:[%s255_s14] sm:$0xf] %v6060_v28 }
 0x35d PF: > { %s16_s17 = sadd.s32 1, %s6485_s17  }
 0x35e   : > { %p13_p6 = scmp.ge.s32.totalorder %s16_s17, 4  }
 0x360   :  { %15 = sbr.rel (!%p13_p6) target bundleno = 3 (0x3), region = 117 }

</bundles_post_ra>
